<compile_context>
chip_gen: v7x
topology: tpu7x:2x2x1
jax: 0.10.0
libtpu: 0.0.40
codegen_flags: <defaults>
</compile_context>

<pallas_src>
import math
from functools import partial

import jax
import jax.numpy as jnp
from jax.experimental import pallas as pl
from jax.experimental.pallas import tpu as pltpu


# ----------------------------------------------------------------------------
# Pallas kernel: fused im2col + matmul + bias (+ ReLU) for a stride-1 conv.
#
#   x_ref : (1, Hz, Wz, Cz)   whole (pre-padded / space-to-depth) image of one
#                             batch element, bf16, VMEM resident.
#   w_ref : (KH*KW, Cz, Cout) per-tap weight matrices (BN scale folded in).
#   b_ref : (1, Cout)         bias / BN shift, f32.
#   o_ref : (1, TH, Wo, Cout) output row tile.
#
# grid = (N, Ho // TH); both axes are independent ("parallel").
# ----------------------------------------------------------------------------
def _conv_kernel(x_ref, w_ref, b_ref, o_ref, *, kh, kw, th, wo, relu):
    cz = x_ref.shape[-1]
    cout = o_ref.shape[-1]
    h0 = pl.program_id(1) * th
    bias = b_ref[...]                                       # (1, Cout) f32

    if wo % 16 == 0:
        # One (TH*Wo, Cz) x (Cz, Cout) MXU matmul per tap; the window reshape
        # is layout-trivial because Wo is a multiple of the packed sublane
        # width (16 rows for bf16, 8 for the f32 accumulator).
        acc = jnp.zeros((th * wo, cout), jnp.float32)
        for t in range(kh * kw):
            qi, qj = divmod(t, kw)
            win = x_ref[0, pl.ds(h0 + qi, th), pl.ds(qj, wo), :]   # (TH,Wo,Cz)
            acc = acc + jnp.dot(win.reshape(th * wo, cz), w_ref[t],
                                preferred_element_type=jnp.float32)
        y = acc + bias
        if relu:
            y = jnp.maximum(y, 0.0)
        o_ref[0] = y.reshape(th, wo, cout).astype(o_ref.dtype)
    else:
        # Tiny feature maps: one small matmul per output row, no reshapes.
        for r in range(th):
            acc = jnp.zeros((wo, cout), jnp.float32)
            for t in range(kh * kw):
                qi, qj = divmod(t, kw)
                win = x_ref[0, h0 + r + qi, pl.ds(qj, wo), :]      # (Wo, Cz)
                acc = acc + jnp.dot(win, w_ref[t],
                                    preferred_element_type=jnp.float32)
            y = acc + bias
            if relu:
                y = jnp.maximum(y, 0.0)
            o_ref[0, r] = y.astype(o_ref.dtype)


# ----------------------------------------------------------------------------
# Wrapper glue (plain JAX, cheap): padding, space-to-depth, weight reshaping.
# ----------------------------------------------------------------------------
def _pick_th(ho, wo):
    """Largest divisor of Ho keeping the matmul M-tile (TH*Wo) small enough."""
    max_rows = 256 if wo % 16 == 0 else 8   # per-row path: bound the unroll
    best = 1
    for th in range(1, ho + 1):
        if ho % th == 0 and th * wo <= max_rows:
            best = th
    return best


def _space_to_depth(x, stride, pad, ho, wo, kh2, kw2):
    """Pad + (for stride>1) space-to-depth so the kernel sees a stride-1 conv."""
    n, h, w, c = x.shape
    hz, wz = ho + kh2 - 1, wo + kw2 - 1
    hp, wp = stride * hz, stride * wz
    xp = jnp.pad(x, ((0, 0), (pad, hp - h - pad), (pad, wp - w - pad), (0, 0)))
    if stride > 1:
        xp = xp.reshape(n, hz, stride, wz, stride, c)
        xp = xp.transpose(0, 1, 3, 2, 4, 5).reshape(n, hz, wz,
                                                    stride * stride * c)
    return xp


def _space_to_depth_weights(w, stride, kh2, kw2):
    """(KH,KW,Cin,Cout) -> (KH2*KW2, s*s*Cin, Cout) matching _space_to_depth."""
    kh, kw, cin, cout = w.shape
    if stride == 1:
        return w.reshape(kh * kw, cin, cout)
    s = stride
    wp = jnp.pad(w, ((0, kh2 * s - kh), (0, kw2 * s - kw), (0, 0), (0, 0)))
    wp = wp.reshape(kh2, s, kw2, s, cin, cout).transpose(0, 2, 1, 3, 4, 5)
    return wp.reshape(kh2 * kw2, s * s * cin, cout)


def conv2d_fused(x, w, scale, shift, *, stride=1, pad=0, relu=True,
                 out_dtype=jnp.bfloat16):
    """Fused conv + (scale, shift) affine + optional ReLU.

    x: (N,H,W,Cin) float; w: (KH,KW,Cin,Cout); scale/shift: (Cout,) f32.
    Computes relu(conv(x, w) * scale + shift) == relu(conv(x, w*scale) + shift).
    """
    n, h, wd, _ = x.shape
    kh, kw, _, cout = w.shape
    kh2 = -(-kh // stride)
    kw2 = -(-kw // stride)
    ho = (h + 2 * pad - kh) // stride + 1
    wo = (wd + 2 * pad - kw) // stride + 1

    # Fold the BN scale into the weights (static), keep bias separate.
    w_eff = w.astype(jnp.float32) * scale.astype(jnp.float32).reshape(1, 1, 1, -1)
    w3 = _space_to_depth_weights(w_eff, stride, kh2, kw2).astype(jnp.bfloat16)
    z = _space_to_depth(x.astype(jnp.bfloat16), stride, pad, ho, wo, kh2, kw2)
    bias = shift.astype(jnp.float32).reshape(1, cout)

    hz, wz, cz = z.shape[1], z.shape[2], z.shape[3]
    th = _pick_th(ho, wo)

    kernel = partial(_conv_kernel, kh=kh2, kw=kw2, th=th, wo=wo, relu=relu)
    out = pl.pallas_call(
        kernel,
        out_shape=jax.ShapeDtypeStruct((n, ho, wo, cout), out_dtype),
        grid_spec=pltpu.PrefetchScalarGridSpec(
            num_scalar_prefetch=0,
            grid=(n, ho // th),
            in_specs=[
                pl.BlockSpec((1, hz, wz, cz), lambda b, i: (b, 0, 0, 0)),
                pl.BlockSpec((kh2 * kw2, cz, cout), lambda b, i: (0, 0, 0)),
                pl.BlockSpec((1, cout), lambda b, i: (0, 0)),
            ],
            out_specs=pl.BlockSpec((1, th, wo, cout), lambda b, i: (b, i, 0, 0)),
        ),
        compiler_params=pltpu.CompilerParams(
            dimension_semantics=("parallel", "parallel"),
            vmem_limit_bytes=32 * 1024 * 1024,
        ),
    )(z, w3, bias)
    return out


# BasicConv2d: conv (no bias) + BatchNorm(eps=1e-3, identity stats) + ReLU
_BN_EPS = 1e-3


def basic_conv2d(x, w, *, stride=1, pad=0):
    cout = w.shape[-1]
    scale = jnp.full((cout,), 1.0 / math.sqrt(1.0 + _BN_EPS), jnp.float32)
    shift = jnp.zeros((cout,), jnp.float32)
    return conv2d_fused(x, w, scale, shift, stride=stride, pad=pad, relu=True,
                        out_dtype=jnp.bfloat16)


# ----------------------------------------------------------------------------
# Deterministic parameter init (xavier uniform, as in the module)
# ----------------------------------------------------------------------------
def _xavier(key, kh, kw, cin, cout):
    fan_in = kh * kw * cin
    fan_out = kh * kw * cout
    bound = math.sqrt(6.0 / (fan_in + fan_out))
    return jax.random.uniform(key, (kh, kw, cin, cout), jnp.float32,
                              -bound, bound)


NUM_CLASSES = 8
NUM_ANCHORS = 6          # len(aspect_ratios) + 1

# scaled-down MobileNetV2-style backbone config (kh, cin, cout, stride, pad)
_BACKBONE_1TO12 = [(3, 3, 8, 2, 1), (3, 8, 16, 2, 1),
                   (3, 16, 24, 2, 1), (3, 24, 32, 2, 1)]
_BACKBONE_13TO16 = [(3, 32, 48, 2, 1), (1, 48, 64, 1, 0)]
_DOWNSAMPLE_OUT = [64, 32, 32]           # DownSample(output_channels=[...])
_BOX_CHANNELS = [32, 64, 64, 32, 32]     # channels of the 5 feature maps


def init_params(key):
    params = {"b1": [], "b2": [], "ds": [], "loc": [], "conf": []}
    for k, cin, cout, _, _ in _BACKBONE_1TO12:
        key, sub = jax.random.split(key)
        params["b1"].append(_xavier(sub, k, k, cin, cout))
    for k, cin, cout, _, _ in _BACKBONE_13TO16:
        key, sub = jax.random.split(key)
        params["b2"].append(_xavier(sub, k, k, cin, cout))
    inc = _BACKBONE_13TO16[-1][2]
    for outc in _DOWNSAMPLE_OUT:
        key, k1, k2 = jax.random.split(key, 3)
        params["ds"].append((_xavier(k1, 1, 1, inc, outc // 2),
                             _xavier(k2, 3, 3, outc // 2, outc)))
        inc = outc
    for c in _BOX_CHANNELS:
        key, kl, kc, kb1, kb2 = jax.random.split(key, 5)
        wl = _xavier(kl, 3, 3, c, NUM_ANCHORS * 4)
        bl = jax.random.uniform(kb1, (NUM_ANCHORS * 4,), jnp.float32,
                                -0.01, 0.01)
        wc = _xavier(kc, 3, 3, c, NUM_ANCHORS * NUM_CLASSES)
        bc = jax.random.uniform(kb2, (NUM_ANCHORS * NUM_CLASSES,), jnp.float32,
                                -0.01, 0.01)
        params["loc"].append((wl, bl))
        params["conf"].append((wc, bc))
    return params


# ----------------------------------------------------------------------------
# SSD forward
# ----------------------------------------------------------------------------
def backbone_forward(params, x):
    feats = []
    for w, (_, _, _, s, p) in zip(params["b1"], _BACKBONE_1TO12):
        x = basic_conv2d(x, w, stride=s, pad=p)
    feats.append(x)                                    # conv1to12 output
    for w, (_, _, _, s, p) in zip(params["b2"], _BACKBONE_13TO16):
        x = basic_conv2d(x, w, stride=s, pad=p)
    feats.append(x)                                    # conv13to16 output
    for w1, w2 in params["ds"]:                        # DownSample blocks
        x = basic_conv2d(x, w1, stride=1, pad=0)
        x = basic_conv2d(x, w2, stride=2, pad=1)
        feats.append(x)
    return feats


def multibox_forward(params, feats):
    y_locs, y_confs = [], []
    nloc = NUM_ANCHORS * 4
    for i, f in enumerate(feats):
        wl, bl = params["loc"][i]
        wc, bc = params["conf"][i]
        # merged loc+conf head: one conv, Cout = a*4 + a*num_classes = 72
        w = jnp.concatenate([wl, wc], axis=-1)
        b = jnp.concatenate([bl, bc], axis=0)
        cout = NUM_ANCHORS * (4 + NUM_CLASSES)
        y = conv2d_fused(f, w, jnp.ones((cout,), jnp.float32), b,
                         stride=1, pad=1, relu=False, out_dtype=jnp.float32)
        n = y.shape[0]
        y_locs.append(y[..., :nloc].reshape(n, -1, 4))
        y_confs.append(y[..., nloc:].reshape(n, -1, NUM_CLASSES))
    return jnp.concatenate(y_locs, axis=1), jnp.concatenate(y_confs, axis=1)


def ssd_forward(params, x_nchw):
    # layout: transpose NCHW (PyTorch) -> NHWC (TPU lanes = channels)
    x = jnp.transpose(x_nchw, (0, 2, 3, 1))
    feats = backbone_forward(params, x)
    loc_preds, conf_preds = multibox_forward(params, feats)
    # TODO(synk): DataEncoder decode + NMS (inference post-processing) not
    # available in the provided source; return raw head predictions.
    return loc_preds, conf_preds


# ----------------------------------------------------------------------------
if __name__ == "__main__":
    key = jax.random.PRNGKey(0)
    k_x, k_p = jax.random.split(key)
    N, C, H, W = 2, 3, 32, 64
    x = jax.random.normal(k_x, (N, C, H, W), jnp.float32)   # NCHW like PyTorch
    params = init_params(k_p)

    fwd = jax.jit(ssd_forward)
    loc_preds, conf_preds = fwd(params, x)
    jax.block_until_ready((loc_preds, conf_preds))

    assert loc_preds.shape[0] == N and loc_preds.shape[2] == 4
    assert conf_preds.shape[:2] == loc_preds.shape[:2]
    assert conf_preds.shape[2] == NUM_CLASSES
    print("KERNEL_OK")
</pallas_src>

<mosaic_0001>
module attributes {stable_mosaic.version = 11 : i64} {
  func.func @_conv_kernel(%arg0: i32, %arg1: i32, %arg2: memref<1x17x33x12xbf16, #tpu.memory_space<vmem>>, %arg3: memref<4x12x8xbf16, #tpu.memory_space<vmem>>, %arg4: memref<1x8xf32, #tpu.memory_space<vmem>>, %arg5: memref<1x8x32x8xbf16, #tpu.memory_space<vmem>>) attributes {dimension_semantics = [#tpu.dimension_semantics<parallel>, #tpu.dimension_semantics<parallel>], iteration_bounds = array<i64: 2, 2>, scalar_prefetch = 0 : i64, scratch_operands = 0 : i64, tpu.core_type = #tpu.core_type<tc>, window_params = [{transform_indices = @transform_0, window_bounds = array<i64: 1, 17, 33, 12>}, {pipeline_mode = #tpu.pipeline_mode<synchronous>, transform_indices = @transform_1, window_bounds = array<i64: 4, 12, 8>}, {pipeline_mode = #tpu.pipeline_mode<synchronous>, transform_indices = @transform_2, window_bounds = array<i64: 1, 8>}, {transform_indices = @transform_3, window_bounds = array<i64: 1, 8, 32, 8>}]} {
    %c8_i32 = arith.constant 8 : i32
    %0 = arith.muli %arg1, %c8_i32 : i32
    %c0 = arith.constant 0 : index
    %c0_0 = arith.constant 0 : index
    %1 = vector.load %arg4[%c0, %c0_0] : memref<1x8xf32, #tpu.memory_space<vmem>>, vector<1x8xf32>
    %cst = arith.constant 0.000000e+00 : f32
    %2 = vector.broadcast %cst : f32 to vector<256x8xf32>
    %c0_i32 = arith.constant 0 : i32
    %3 = arith.addi %0, %c0_i32 : i32
    %c0_1 = arith.constant 0 : index
    %4 = arith.index_cast %3 : i32 to index
    %c0_2 = arith.constant 0 : index
    %c0_3 = arith.constant 0 : index
    %5 = vector.load %arg2[%c0_1, %4, %c0_2, %c0_3] : memref<1x17x33x12xbf16, #tpu.memory_space<vmem>>, vector<1x8x32x12xbf16>
    %6 = vector.shape_cast %5 : vector<1x8x32x12xbf16> to vector<8x32x12xbf16>
    %7 = vector.shape_cast %6 : vector<8x32x12xbf16> to vector<256x12xbf16>
    %c0_4 = arith.constant 0 : index
    %c0_5 = arith.constant 0 : index
    %c0_6 = arith.constant 0 : index
    %8 = vector.load %arg3[%c0_4, %c0_5, %c0_6] : memref<4x12x8xbf16, #tpu.memory_space<vmem>>, vector<1x12x8xbf16>
    %9 = vector.shape_cast %8 : vector<1x12x8xbf16> to vector<12x8xbf16>
    %cst_7 = arith.constant dense<0.000000e+00> : vector<256x8xf32>
    %10 = tpu.matmul %7, %9, %cst_7 {dimension_numbers = #tpu.dot_dimension_numbers<[1], [0], [0], [1], [0, 0, 1, 1], [], []>} : vector<256x12xbf16>, vector<12x8xbf16>, vector<256x8xf32> -> vector<256x8xf32>
    %11 = arith.addf %2, %10 : vector<256x8xf32>
    %c0_i32_8 = arith.constant 0 : i32
    %12 = arith.addi %0, %c0_i32_8 : i32
    %c0_9 = arith.constant 0 : index
    %13 = arith.index_cast %12 : i32 to index
    %c1 = arith.constant 1 : index
    %c0_10 = arith.constant 0 : index
    %14 = vector.load %arg2[%c0_9, %13, %c1, %c0_10] : memref<1x17x33x12xbf16, #tpu.memory_space<vmem>>, vector<1x8x32x12xbf16>
    %15 = vector.shape_cast %14 : vector<1x8x32x12xbf16> to vector<8x32x12xbf16>
    %16 = vector.shape_cast %15 : vector<8x32x12xbf16> to vector<256x12xbf16>
    %c1_11 = arith.constant 1 : index
    %c0_12 = arith.constant 0 : index
    %c0_13 = arith.constant 0 : index
    %17 = vector.load %arg3[%c1_11, %c0_12, %c0_13] : memref<4x12x8xbf16, #tpu.memory_space<vmem>>, vector<1x12x8xbf16>
    %18 = vector.shape_cast %17 : vector<1x12x8xbf16> to vector<12x8xbf16>
    %cst_14 = arith.constant dense<0.000000e+00> : vector<256x8xf32>
    %19 = tpu.matmul %16, %18, %cst_14 {dimension_numbers = #tpu.dot_dimension_numbers<[1], [0], [0], [1], [0, 0, 1, 1], [], []>} : vector<256x12xbf16>, vector<12x8xbf16>, vector<256x8xf32> -> vector<256x8xf32>
    %20 = arith.addf %11, %19 : vector<256x8xf32>
    %c1_i32 = arith.constant 1 : i32
    %21 = arith.addi %0, %c1_i32 : i32
    %c0_15 = arith.constant 0 : index
    %22 = arith.index_cast %21 : i32 to index
    %c0_16 = arith.constant 0 : index
    %c0_17 = arith.constant 0 : index
    %23 = vector.load %arg2[%c0_15, %22, %c0_16, %c0_17] : memref<1x17x33x12xbf16, #tpu.memory_space<vmem>>, vector<1x8x32x12xbf16>
    %24 = vector.shape_cast %23 : vector<1x8x32x12xbf16> to vector<8x32x12xbf16>
    %25 = vector.shape_cast %24 : vector<8x32x12xbf16> to vector<256x12xbf16>
    %c2 = arith.constant 2 : index
    %c0_18 = arith.constant 0 : index
    %c0_19 = arith.constant 0 : index
    %26 = vector.load %arg3[%c2, %c0_18, %c0_19] : memref<4x12x8xbf16, #tpu.memory_space<vmem>>, vector<1x12x8xbf16>
    %27 = vector.shape_cast %26 : vector<1x12x8xbf16> to vector<12x8xbf16>
    %cst_20 = arith.constant dense<0.000000e+00> : vector<256x8xf32>
    %28 = tpu.matmul %25, %27, %cst_20 {dimension_numbers = #tpu.dot_dimension_numbers<[1], [0], [0], [1], [0, 0, 1, 1], [], []>} : vector<256x12xbf16>, vector<12x8xbf16>, vector<256x8xf32> -> vector<256x8xf32>
    %29 = arith.addf %20, %28 : vector<256x8xf32>
    %c1_i32_21 = arith.constant 1 : i32
    %30 = arith.addi %0, %c1_i32_21 : i32
    %c0_22 = arith.constant 0 : index
    %31 = arith.index_cast %30 : i32 to index
    %c1_23 = arith.constant 1 : index
    %c0_24 = arith.constant 0 : index
    %32 = vector.load %arg2[%c0_22, %31, %c1_23, %c0_24] : memref<1x17x33x12xbf16, #tpu.memory_space<vmem>>, vector<1x8x32x12xbf16>
    %33 = vector.shape_cast %32 : vector<1x8x32x12xbf16> to vector<8x32x12xbf16>
    %34 = vector.shape_cast %33 : vector<8x32x12xbf16> to vector<256x12xbf16>
    %c3 = arith.constant 3 : index
    %c0_25 = arith.constant 0 : index
    %c0_26 = arith.constant 0 : index
    %35 = vector.load %arg3[%c3, %c0_25, %c0_26] : memref<4x12x8xbf16, #tpu.memory_space<vmem>>, vector<1x12x8xbf16>
    %36 = vector.shape_cast %35 : vector<1x12x8xbf16> to vector<12x8xbf16>
    %cst_27 = arith.constant dense<0.000000e+00> : vector<256x8xf32>
    %37 = tpu.matmul %34, %36, %cst_27 {dimension_numbers = #tpu.dot_dimension_numbers<[1], [0], [0], [1], [0, 0, 1, 1], [], []>} : vector<256x12xbf16>, vector<12x8xbf16>, vector<256x8xf32> -> vector<256x8xf32>
    %38 = arith.addf %29, %37 : vector<256x8xf32>
    %39 = vector.broadcast %1 : vector<1x8xf32> to vector<256x8xf32>
    %40 = arith.addf %38, %39 : vector<256x8xf32>
    %cst_28 = arith.constant 0.000000e+00 : f32
    %41 = vector.broadcast %cst_28 : f32 to vector<256x8xf32>
    %42 = arith.maximumf %40, %41 : vector<256x8xf32>
    %43 = vector.shape_cast %42 : vector<256x8xf32> to vector<8x32x8xf32>
    %44 = arith.truncf %43 : vector<8x32x8xf32> to vector<8x32x8xbf16>
    %c0_29 = arith.constant 0 : index
    %c0_30 = arith.constant 0 : index
    %c0_31 = arith.constant 0 : index
    %c0_32 = arith.constant 0 : index
    %45 = vector.load %arg5[%c0_29, %c0_30, %c0_31, %c0_32] : memref<1x8x32x8xbf16, #tpu.memory_space<vmem>>, vector<1x8x32x8xbf16>
    %46 = vector.shape_cast %45 : vector<1x8x32x8xbf16> to vector<8x32x8xbf16>
    %47 = vector.shape_cast %44 : vector<8x32x8xbf16> to vector<1x8x32x8xbf16>
    tpu.vector_store %arg5[%c0_29, %c0_30, %c0_31, %c0_32], %47 {strides = array<i32>} : memref<1x8x32x8xbf16, #tpu.memory_space<vmem>>, vector<1x8x32x8xbf16>,
    return
  }
  func.func @transform_0(%arg0: i32, %arg1: i32) -> (i32, i32, i32, i32) {
    %c0_i32 = arith.constant 0 : i32
    %c0_i32_0 = arith.constant 0 : i32
    %c0_i32_1 = arith.constant 0 : i32
    %c0_i32_2 = arith.constant 0 : i32
    return %arg0, %c0_i32, %c0_i32_0, %c0_i32_1 : i32, i32, i32, i32
  }
  func.func @transform_1(%arg0: i32, %arg1: i32) -> (i32, i32, i32) {
    %c0_i32 = arith.constant 0 : i32
    %c0_i32_0 = arith.constant 0 : i32
    %c0_i32_1 = arith.constant 0 : i32
    %c0_i32_2 = arith.constant 0 : i32
    return %c0_i32, %c0_i32_0, %c0_i32_1 : i32, i32, i32
  }
  func.func @transform_2(%arg0: i32, %arg1: i32) -> (i32, i32) {
    %c0_i32 = arith.constant 0 : i32
    %c0_i32_0 = arith.constant 0 : i32
    %c0_i32_1 = arith.constant 0 : i32
    return %c0_i32, %c0_i32_0 : i32, i32
  }
  func.func @transform_3(%arg0: i32, %arg1: i32) -> (i32, i32, i32, i32) {
    %c0_i32 = arith.constant 0 : i32
    %c0_i32_0 = arith.constant 0 : i32
    %c0_i32_1 = arith.constant 0 : i32
    return %arg0, %arg1, %c0_i32, %c0_i32_0 : i32, i32, i32, i32
  }
}

module attributes {stable_mosaic.version = 11 : i64} {
  func.func @_conv_kernel(%arg0: i32, %arg1: i32, %arg2: memref<1x9x17x32xbf16, #tpu.memory_space<vmem>>, %arg3: memref<4x32x16xbf16, #tpu.memory_space<vmem>>, %arg4: memref<1x16xf32, #tpu.memory_space<vmem>>, %arg5: memref<1x8x16x16xbf16, #tpu.memory_space<vmem>>) attributes {dimension_semantics = [#tpu.dimension_semantics<parallel>, #tpu.dimension_semantics<parallel>], iteration_bounds = array<i64: 2, 1>, scalar_prefetch = 0 : i64, scratch_operands = 0 : i64, tpu.core_type = #tpu.core_type<tc>, window_params = [{transform_indices = @transform_0, window_bounds = array<i64: 1, 9, 17, 32>}, {pipeline_mode = #tpu.pipeline_mode<synchronous>, transform_indices = @transform_1, window_bounds = array<i64: 4, 32, 16>}, {pipeline_mode = #tpu.pipeline_mode<synchronous>, transform_indices = @transform_2, window_bounds = array<i64: 1, 16>}, {transform_indices = @transform_3, window_bounds = array<i64: 1, 8, 16, 16>}]} {
    %c8_i32 = arith.constant 8 : i32
    %0 = arith.muli %arg1, %c8_i32 : i32
    %c0 = arith.constant 0 : index
    %c0_0 = arith.constant 0 : index
    %1 = vector.load %arg4[%c0, %c0_0] : memref<1x16xf32, #tpu.memory_space<vmem>>, vector<1x16xf32>
    %cst = arith.constant 0.000000e+00 : f32
    %2 = vector.broadcast %cst : f32 to vector<128x16xf32>
    %c0_i32 = arith.constant 0 : i32
    %3 = arith.addi %0, %c0_i32 : i32
    %c0_1 = arith.constant 0 : index
    %4 = arith.index_cast %3 : i32 to index
    %c0_2 = arith.constant 0 : index
    %c0_3 = arith.constant 0 : index
    %5 = vector.load %arg2[%c0_1, %4, %c0_2, %c0_3] : memref<1x9x17x32xbf16, #tpu.memory_space<vmem>>, vector<1x8x16x32xbf16>
    %6 = vector.shape_cast %5 : vector<1x8x16x32xbf16> to vector<8x16x32xbf16>
    %7 = vector.shape_cast %6 : vector<8x16x32xbf16> to vector<128x32xbf16>
    %c0_4 = arith.constant 0 : index
    %c0_5 = arith.constant 0 : index
    %c0_6 = arith.constant 0 : index
    %8 = vector.load %arg3[%c0_4, %c0_5, %c0_6] : memref<4x32x16xbf16, #tpu.memory_space<vmem>>, vector<1x32x16xbf16>
    %9 = vector.shape_cast %8 : vector<1x32x16xbf16> to vector<32x16xbf16>
    %cst_7 = arith.constant dense<0.000000e+00> : vector<128x16xf32>
    %10 = tpu.matmul %7, %9, %cst_7 {dimension_numbers = #tpu.dot_dimension_numbers<[1], [0], [0], [1], [0, 0, 1, 1], [], []>} : vector<128x32xbf16>, vector<32x16xbf16>, vector<128x16xf32> -> vector<128x16xf32>
    %11 = arith.addf %2, %10 : vector<128x16xf32>
    %c0_i32_8 = arith.constant 0 : i32
    %12 = arith.addi %0, %c0_i32_8 : i32
    %c0_9 = arith.constant 0 : index
    %13 = arith.index_cast %12 : i32 to index
    %c1 = arith.constant 1 : index
    %c0_10 = arith.constant 0 : index
    %14 = vector.load %arg2[%c0_9, %13, %c1, %c0_10] : memref<1x9x17x32xbf16, #tpu.memory_space<vmem>>, vector<1x8x16x32xbf16>
    %15 = vector.shape_cast %14 : vector<1x8x16x32xbf16> to vector<8x16x32xbf16>
    %16 = vector.shape_cast %15 : vector<8x16x32xbf16> to vector<128x32xbf16>
    %c1_11 = arith.constant 1 : index
    %c0_12 = arith.constant 0 : index
    %c0_13 = arith.constant 0 : index
    %17 = vector.load %arg3[%c1_11, %c0_12, %c0_13] : memref<4x32x16xbf16, #tpu.memory_space<vmem>>, vector<1x32x16xbf16>
    %18 = vector.shape_cast %17 : vector<1x32x16xbf16> to vector<32x16xbf16>
    %cst_14 = arith.constant dense<0.000000e+00> : vector<128x16xf32>
    %19 = tpu.matmul %16, %18, %cst_14 {dimension_numbers = #tpu.dot_dimension_numbers<[1], [0], [0], [1], [0, 0, 1, 1], [], []>} : vector<128x32xbf16>, vector<32x16xbf16>, vector<128x16xf32> -> vector<128x16xf32>
    %20 = arith.addf %11, %19 : vector<128x16xf32>
    %c1_i32 = arith.constant 1 : i32
    %21 = arith.addi %0, %c1_i32 : i32
    %c0_15 = arith.constant 0 : index
    %22 = arith.index_cast %21 : i32 to index
    %c0_16 = arith.constant 0 : index
    %c0_17 = arith.constant 0 : index
    %23 = vector.load %arg2[%c0_15, %22, %c0_16, %c0_17] : memref<1x9x17x32xbf16, #tpu.memory_space<vmem>>, vector<1x8x16x32xbf16>
    %24 = vector.shape_cast %23 : vector<1x8x16x32xbf16> to vector<8x16x32xbf16>
    %25 = vector.shape_cast %24 : vector<8x16x32xbf16> to vector<128x32xbf16>
    %c2 = arith.constant 2 : index
    %c0_18 = arith.constant 0 : index
    %c0_19 = arith.constant 0 : index
    %26 = vector.load %arg3[%c2, %c0_18, %c0_19] : memref<4x32x16xbf16, #tpu.memory_space<vmem>>, vector<1x32x16xbf16>
    %27 = vector.shape_cast %26 : vector<1x32x16xbf16> to vector<32x16xbf16>
    %cst_20 = arith.constant dense<0.000000e+00> : vector<128x16xf32>
    %28 = tpu.matmul %25, %27, %cst_20 {dimension_numbers = #tpu.dot_dimension_numbers<[1], [0], [0], [1], [0, 0, 1, 1], [], []>} : vector<128x32xbf16>, vector<32x16xbf16>, vector<128x16xf32> -> vector<128x16xf32>
    %29 = arith.addf %20, %28 : vector<128x16xf32>
    %c1_i32_21 = arith.constant 1 : i32
    %30 = arith.addi %0, %c1_i32_21 : i32
    %c0_22 = arith.constant 0 : index
    %31 = arith.index_cast %30 : i32 to index
    %c1_23 = arith.constant 1 : index
    %c0_24 = arith.constant 0 : index
    %32 = vector.load %arg2[%c0_22, %31, %c1_23, %c0_24] : memref<1x9x17x32xbf16, #tpu.memory_space<vmem>>, vector<1x8x16x32xbf16>
    %33 = vector.shape_cast %32 : vector<1x8x16x32xbf16> to vector<8x16x32xbf16>
    %34 = vector.shape_cast %33 : vector<8x16x32xbf16> to vector<128x32xbf16>
    %c3 = arith.constant 3 : index
    %c0_25 = arith.constant 0 : index
    %c0_26 = arith.constant 0 : index
    %35 = vector.load %arg3[%c3, %c0_25, %c0_26] : memref<4x32x16xbf16, #tpu.memory_space<vmem>>, vector<1x32x16xbf16>
    %36 = vector.shape_cast %35 : vector<1x32x16xbf16> to vector<32x16xbf16>
    %cst_27 = arith.constant dense<0.000000e+00> : vector<128x16xf32>
    %37 = tpu.matmul %34, %36, %cst_27 {dimension_numbers = #tpu.dot_dimension_numbers<[1], [0], [0], [1], [0, 0, 1, 1], [], []>} : vector<128x32xbf16>, vector<32x16xbf16>, vector<128x16xf32> -> vector<128x16xf32>
    %38 = arith.addf %29, %37 : vector<128x16xf32>
    %39 = vector.broadcast %1 : vector<1x16xf32> to vector<128x16xf32>
    %40 = arith.addf %38, %39 : vector<128x16xf32>
    %cst_28 = arith.constant 0.000000e+00 : f32
    %41 = vector.broadcast %cst_28 : f32 to vector<128x16xf32>
    %42 = arith.maximumf %40, %41 : vector<128x16xf32>
    %43 = vector.shape_cast %42 : vector<128x16xf32> to vector<8x16x16xf32>
    %44 = arith.truncf %43 : vector<8x16x16xf32> to vector<8x16x16xbf16>
    %c0_29 = arith.constant 0 : index
    %c0_30 = arith.constant 0 : index
    %c0_31 = arith.constant 0 : index
    %c0_32 = arith.constant 0 : index
    %45 = vector.load %arg5[%c0_29, %c0_30, %c0_31, %c0_32] : memref<1x8x16x16xbf16, #tpu.memory_space<vmem>>, vector<1x8x16x16xbf16>
    %46 = vector.shape_cast %45 : vector<1x8x16x16xbf16> to vector<8x16x16xbf16>
    %47 = vector.shape_cast %44 : vector<8x16x16xbf16> to vector<1x8x16x16xbf16>
    tpu.vector_store %arg5[%c0_29, %c0_30, %c0_31, %c0_32], %47 {strides = array<i32>} : memref<1x8x16x16xbf16, #tpu.memory_space<vmem>>, vector<1x8x16x16xbf16>,
    return
  }
  func.func @transform_0(%arg0: i32, %arg1: i32) -> (i32, i32, i32, i32) {
    %c0_i32 = arith.constant 0 : i32
    %c0_i32_0 = arith.constant 0 : i32
    %c0_i32_1 = arith.constant 0 : i32
    %c0_i32_2 = arith.constant 0 : i32
    return %arg0, %c0_i32, %c0_i32_0, %c0_i32_1 : i32, i32, i32, i32
  }
  func.func @transform_1(%arg0: i32, %arg1: i32) -> (i32, i32, i32) {
    %c0_i32 = arith.constant 0 : i32
    %c0_i32_0 = arith.constant 0 : i32
    %c0_i32_1 = arith.constant 0 : i32
    %c0_i32_2 = arith.constant 0 : i32
    return %c0_i32, %c0_i32_0, %c0_i32_1 : i32, i32, i32
  }
  func.func @transform_2(%arg0: i32, %arg1: i32) -> (i32, i32) {
    %c0_i32 = arith.constant 0 : i32
    %c0_i32_0 = arith.constant 0 : i32
    %c0_i32_1 = arith.constant 0 : i32
    return %c0_i32, %c0_i32_0 : i32, i32
  }
  func.func @transform_3(%arg0: i32, %arg1: i32) -> (i32, i32, i32, i32) {
    %c0_i32 = arith.constant 0 : i32
    %c0_i32_0 = arith.constant 0 : i32
    %c0_i32_1 = arith.constant 0 : i32
    return %arg0, %arg1, %c0_i32, %c0_i32_0 : i32, i32, i32, i32
  }
}

module attributes {stable_mosaic.version = 11 : i64} {
  func.func @_conv_kernel(%arg0: i32, %arg1: i32, %arg2: memref<1x5x9x64xbf16, #tpu.memory_space<vmem>>, %arg3: memref<4x64x24xbf16, #tpu.memory_space<vmem>>, %arg4: memref<1x24xf32, #tpu.memory_space<vmem>>, %arg5: memref<1x1x8x24xbf16, #tpu.memory_space<vmem>>) attributes {dimension_semantics = [#tpu.dimension_semantics<parallel>, #tpu.dimension_semantics<parallel>], iteration_bounds = array<i64: 2, 4>, scalar_prefetch = 0 : i64, scratch_operands = 0 : i64, tpu.core_type = #tpu.core_type<tc>, window_params = [{transform_indices = @transform_0, window_bounds = array<i64: 1, 5, 9, 64>}, {pipeline_mode = #tpu.pipeline_mode<synchronous>, transform_indices = @transform_1, window_bounds = array<i64: 4, 64, 24>}, {pipeline_mode = #tpu.pipeline_mode<synchronous>, transform_indices = @transform_2, window_bounds = array<i64: 1, 24>}, {transform_indices = @transform_3, window_bounds = array<i64: 1, 1, 8, 24>}]} {
    %c1_i32 = arith.constant 1 : i32
    %0 = arith.muli %arg1, %c1_i32 : i32
    %c0 = arith.constant 0 : index
    %c0_0 = arith.constant 0 : index
    %1 = vector.load %arg4[%c0, %c0_0] : memref<1x24xf32, #tpu.memory_space<vmem>>, vector<1x24xf32>
    %cst = arith.constant 0.000000e+00 : f32
    %2 = vector.broadcast %cst : f32 to vector<8x24xf32>
    %c0_i32 = arith.constant 0 : i32
    %3 = arith.addi %0, %c0_i32 : i32
    %c0_i32_1 = arith.constant 0 : i32
    %4 = arith.addi %3, %c0_i32_1 : i32
    %c0_2 = arith.constant 0 : index
    %5 = arith.index_cast %4 : i32 to index
    %c0_3 = arith.constant 0 : index
    %c0_4 = arith.constant 0 : index
    %6 = vector.load %arg2[%c0_2, %5, %c0_3, %c0_4] : memref<1x5x9x64xbf16, #tpu.memory_space<vmem>>, vector<1x1x8x64xbf16>
    %7 = vector.shape_cast %6 : vector<1x1x8x64xbf16> to vector<8x64xbf16>
    %c0_5 = arith.constant 0 : index
    %c0_6 = arith.constant 0 : index
    %c0_7 = arith.constant 0 : index
    %8 = vector.load %arg3[%c0_5, %c0_6, %c0_7] : memref<4x64x24xbf16, #tpu.memory_space<vmem>>, vector<1x64x24xbf16>
    %9 = vector.shape_cast %8 : vector<1x64x24xbf16> to vector<64x24xbf16>
    %cst_8 = arith.constant dense<0.000000e+00> : vector<8x24xf32>
    %10 = tpu.matmul %7, %9, %cst_8 {dimension_numbers = #tpu.dot_dimension_numbers<[1], [0], [0], [1], [0, 0, 1, 1], [], []>} : vector<8x64xbf16>, vector<64x24xbf16>, vector<8x24xf32> -> vector<8x24xf32>
    %11 = arith.addf %2, %10 : vector<8x24xf32>
    %c0_i32_9 = arith.constant 0 : i32
    %12 = arith.addi %0, %c0_i32_9 : i32
    %c0_i32_10 = arith.constant 0 : i32
    %13 = arith.addi %12, %c0_i32_10 : i32
    %c0_11 = arith.constant 0 : index
    %14 = arith.index_cast %13 : i32 to index
    %c1 = arith.constant 1 : index
    %c0_12 = arith.constant 0 : index
    %15 = vector.load %arg2[%c0_11, %14, %c1, %c0_12] : memref<1x5x9x64xbf16, #tpu.memory_space<vmem>>, vector<1x1x8x64xbf16>
    %16 = vector.shape_cast %15 : vector<1x1x8x64xbf16> to vector<8x64xbf16>
    %c1_13 = arith.constant 1 : index
    %c0_14 = arith.constant 0 : index
    %c0_15 = arith.constant 0 : index
    %17 = vector.load %arg3[%c1_13, %c0_14, %c0_15] : memref<4x64x24xbf16, #tpu.memory_space<vmem>>, vector<1x64x24xbf16>
    %18 = vector.shape_cast %17 : vector<1x64x24xbf16> to vector<64x24xbf16>
    %cst_16 = arith.constant dense<0.000000e+00> : vector<8x24xf32>
    %19 = tpu.matmul %16, %18, %cst_16 {dimension_numbers = #tpu.dot_dimension_numbers<[1], [0], [0], [1], [0, 0, 1, 1], [], []>} : vector<8x64xbf16>, vector<64x24xbf16>, vector<8x24xf32> -> vector<8x24xf32>
    %20 = arith.addf %11, %19 : vector<8x24xf32>
    %c0_i32_17 = arith.constant 0 : i32
    %21 = arith.addi %0, %c0_i32_17 : i32
    %c1_i32_18 = arith.constant 1 : i32
    %22 = arith.addi %21, %c1_i32_18 : i32
    %c0_19 = arith.constant 0 : index
    %23 = arith.index_cast %22 : i32 to index
    %c0_20 = arith.constant 0 : index
    %c0_21 = arith.constant 0 : index
    %24 = vector.load %arg2[%c0_19, %23, %c0_20, %c0_21] : memref<1x5x9x64xbf16, #tpu.memory_space<vmem>>, vector<1x1x8x64xbf16>
    %25 = vector.shape_cast %24 : vector<1x1x8x64xbf16> to vector<8x64xbf16>
    %c2 = arith.constant 2 : index
    %c0_22 = arith.constant 0 : index
    %c0_23 = arith.constant 0 : index
    %26 = vector.load %arg3[%c2, %c0_22, %c0_23] : memref<4x64x24xbf16, #tpu.memory_space<vmem>>, vector<1x64x24xbf16>
    %27 = vector.shape_cast %26 : vector<1x64x24xbf16> to vector<64x24xbf16>
    %cst_24 = arith.constant dense<0.000000e+00> : vector<8x24xf32>
    %28 = tpu.matmul %25, %27, %cst_24 {dimension_numbers = #tpu.dot_dimension_numbers<[1], [0], [0], [1], [0, 0, 1, 1], [], []>} : vector<8x64xbf16>, vector<64x24xbf16>, vector<8x24xf32> -> vector<8x24xf32>
    %29 = arith.addf %20, %28 : vector<8x24xf32>
    %c0_i32_25 = arith.constant 0 : i32
    %30 = arith.addi %0, %c0_i32_25 : i32
    %c1_i32_26 = arith.constant 1 : i32
    %31 = arith.addi %30, %c1_i32_26 : i32
    %c0_27 = arith.constant 0 : index
    %32 = arith.index_cast %31 : i32 to index
    %c1_28 = arith.constant 1 : index
    %c0_29 = arith.constant 0 : index
    %33 = vector.load %arg2[%c0_27, %32, %c1_28, %c0_29] : memref<1x5x9x64xbf16, #tpu.memory_space<vmem>>, vector<1x1x8x64xbf16>
    %34 = vector.shape_cast %33 : vector<1x1x8x64xbf16> to vector<8x64xbf16>
    %c3 = arith.constant 3 : index
    %c0_30 = arith.constant 0 : index
    %c0_31 = arith.constant 0 : index
    %35 = vector.load %arg3[%c3, %c0_30, %c0_31] : memref<4x64x24xbf16, #tpu.memory_space<vmem>>, vector<1x64x24xbf16>
    %36 = vector.shape_cast %35 : vector<1x64x24xbf16> to vector<64x24xbf16>
    %cst_32 = arith.constant dense<0.000000e+00> : vector<8x24xf32>
    %37 = tpu.matmul %34, %36, %cst_32 {dimension_numbers = #tpu.dot_dimension_numbers<[1], [0], [0], [1], [0, 0, 1, 1], [], []>} : vector<8x64xbf16>, vector<64x24xbf16>, vector<8x24xf32> -> vector<8x24xf32>
    %38 = arith.addf %29, %37 : vector<8x24xf32>
    %39 = vector.broadcast %1 : vector<1x24xf32> to vector<8x24xf32>
    %40 = arith.addf %38, %39 : vector<8x24xf32>
    %cst_33 = arith.constant 0.000000e+00 : f32
    %41 = vector.broadcast %cst_33 : f32 to vector<8x24xf32>
    %42 = arith.maximumf %40, %41 : vector<8x24xf32>
    %43 = arith.truncf %42 : vector<8x24xf32> to vector<8x24xbf16>
    %c0_34 = arith.constant 0 : index
    %c0_35 = arith.constant 0 : index
    %c0_36 = arith.constant 0 : index
    %c0_37 = arith.constant 0 : index
    %44 = vector.load %arg5[%c0_34, %c0_35, %c0_36, %c0_37] : memref<1x1x8x24xbf16, #tpu.memory_space<vmem>>, vector<1x1x8x24xbf16>
    %45 = vector.shape_cast %44 : vector<1x1x8x24xbf16> to vector<8x24xbf16>
    %46 = vector.shape_cast %43 : vector<8x24xbf16> to vector<1x1x8x24xbf16>
    tpu.vector_store %arg5[%c0_34, %c0_35, %c0_36, %c0_37], %46 {strides = array<i32>} : memref<1x1x8x24xbf16, #tpu.memory_space<vmem>>, vector<1x1x8x24xbf16>,
    return
  }
  func.func @transform_0(%arg0: i32, %arg1: i32) -> (i32, i32, i32, i32) {
    %c0_i32 = arith.constant 0 : i32
    %c0_i32_0 = arith.constant 0 : i32
    %c0_i32_1 = arith.constant 0 : i32
    %c0_i32_2 = arith.constant 0 : i32
    return %arg0, %c0_i32, %c0_i32_0, %c0_i32_1 : i32, i32, i32, i32
  }
  func.func @transform_1(%arg0: i32, %arg1: i32) -> (i32, i32, i32) {
    %c0_i32 = arith.constant 0 : i32
    %c0_i32_0 = arith.constant 0 : i32
    %c0_i32_1 = arith.constant 0 : i32
    %c0_i32_2 = arith.constant 0 : i32
    return %c0_i32, %c0_i32_0, %c0_i32_1 : i32, i32, i32
  }
  func.func @transform_2(%arg0: i32, %arg1: i32) -> (i32, i32) {
    %c0_i32 = arith.constant 0 : i32
    %c0_i32_0 = arith.constant 0 : i32
    %c0_i32_1 = arith.constant 0 : i32
    return %c0_i32, %c0_i32_0 : i32, i32
  }
  func.func @transform_3(%arg0: i32, %arg1: i32) -> (i32, i32, i32, i32) {
    %c0_i32 = arith.constant 0 : i32
    %c0_i32_0 = arith.constant 0 : i32
    %c0_i32_1 = arith.constant 0 : i32
    return %arg0, %arg1, %c0_i32, %c0_i32_0 : i32, i32, i32, i32
  }
}

module attributes {stable_mosaic.version = 11 : i64} {
  func.func @_conv_kernel(%arg0: i32, %arg1: i32, %arg2: memref<1x3x5x96xbf16, #tpu.memory_space<vmem>>, %arg3: memref<4x96x32xbf16, #tpu.memory_space<vmem>>, %arg4: memref<1x32xf32, #tpu.memory_space<vmem>>, %arg5: memref<1x2x4x32xbf16, #tpu.memory_space<vmem>>) attributes {dimension_semantics = [#tpu.dimension_semantics<parallel>, #tpu.dimension_semantics<parallel>], iteration_bounds = array<i64: 2, 1>, scalar_prefetch = 0 : i64, scratch_operands = 0 : i64, tpu.core_type = #tpu.core_type<tc>, window_params = [{transform_indices = @transform_0, window_bounds = array<i64: 1, 3, 5, 96>}, {pipeline_mode = #tpu.pipeline_mode<synchronous>, transform_indices = @transform_1, window_bounds = array<i64: 4, 96, 32>}, {pipeline_mode = #tpu.pipeline_mode<synchronous>, transform_indices = @transform_2, window_bounds = array<i64: 1, 32>}, {transform_indices = @transform_3, window_bounds = array<i64: 1, 2, 4, 32>}]} {
    %c2_i32 = arith.constant 2 : i32
    %0 = arith.muli %arg1, %c2_i32 : i32
    %c0 = arith.constant 0 : index
    %c0_0 = arith.constant 0 : index
    %1 = vector.load %arg4[%c0, %c0_0] : memref<1x32xf32, #tpu.memory_space<vmem>>, vector<1x32xf32>
    %cst = arith.constant 0.000000e+00 : f32
    %2 = vector.broadcast %cst : f32 to vector<4x32xf32>
    %c0_i32 = arith.constant 0 : i32
    %3 = arith.addi %0, %c0_i32 : i32
    %c0_i32_1 = arith.constant 0 : i32
    %4 = arith.addi %3, %c0_i32_1 : i32
    %c0_2 = arith.constant 0 : index
    %5 = arith.index_cast %4 : i32 to index
    %c0_3 = arith.constant 0 : index
    %c0_4 = arith.constant 0 : index
    %6 = vector.load %arg2[%c0_2, %5, %c0_3, %c0_4] : memref<1x3x5x96xbf16, #tpu.memory_space<vmem>>, vector<1x1x4x96xbf16>
    %7 = vector.shape_cast %6 : vector<1x1x4x96xbf16> to vector<4x96xbf16>
    %c0_5 = arith.constant 0 : index
    %c0_6 = arith.constant 0 : index
    %c0_7 = arith.constant 0 : index
    %8 = vector.load %arg3[%c0_5, %c0_6, %c0_7] : memref<4x96x32xbf16, #tpu.memory_space<vmem>>, vector<1x96x32xbf16>
    %9 = vector.shape_cast %8 : vector<1x96x32xbf16> to vector<96x32xbf16>
    %cst_8 = arith.constant dense<0.000000e+00> : vector<4x32xf32>
    %10 = tpu.matmul %7, %9, %cst_8 {dimension_numbers = #tpu.dot_dimension_numbers<[1], [0], [0], [1], [0, 0, 1, 1], [], []>} : vector<4x96xbf16>, vector<96x32xbf16>, vector<4x32xf32> -> vector<4x32xf32>
    %11 = arith.addf %2, %10 : vector<4x32xf32>
    %c0_i32_9 = arith.constant 0 : i32
    %12 = arith.addi %0, %c0_i32_9 : i32
    %c0_i32_10 = arith.constant 0 : i32
    %13 = arith.addi %12, %c0_i32_10 : i32
    %c0_11 = arith.constant 0 : index
    %14 = arith.index_cast %13 : i32 to index
    %c1 = arith.constant 1 : index
    %c0_12 = arith.constant 0 : index
    %15 = vector.load %arg2[%c0_11, %14, %c1, %c0_12] : memref<1x3x5x96xbf16, #tpu.memory_space<vmem>>, vector<1x1x4x96xbf16>
    %16 = vector.shape_cast %15 : vector<1x1x4x96xbf16> to vector<4x96xbf16>
    %c1_13 = arith.constant 1 : index
    %c0_14 = arith.constant 0 : index
    %c0_15 = arith.constant 0 : index
    %17 = vector.load %arg3[%c1_13, %c0_14, %c0_15] : memref<4x96x32xbf16, #tpu.memory_space<vmem>>, vector<1x96x32xbf16>
    %18 = vector.shape_cast %17 : vector<1x96x32xbf16> to vector<96x32xbf16>
    %cst_16 = arith.constant dense<0.000000e+00> : vector<4x32xf32>
    %19 = tpu.matmul %16, %18, %cst_16 {dimension_numbers = #tpu.dot_dimension_numbers<[1], [0], [0], [1], [0, 0, 1, 1], [], []>} : vector<4x96xbf16>, vector<96x32xbf16>, vector<4x32xf32> -> vector<4x32xf32>
    %20 = arith.addf %11, %19 : vector<4x32xf32>
    %c0_i32_17 = arith.constant 0 : i32
    %21 = arith.addi %0, %c0_i32_17 : i32
    %c1_i32 = arith.constant 1 : i32
    %22 = arith.addi %21, %c1_i32 : i32
    %c0_18 = arith.constant 0 : index
    %23 = arith.index_cast %22 : i32 to index
    %c0_19 = arith.constant 0 : index
    %c0_20 = arith.constant 0 : index
    %24 = vector.load %arg2[%c0_18, %23, %c0_19, %c0_20] : memref<1x3x5x96xbf16, #tpu.memory_space<vmem>>, vector<1x1x4x96xbf16>
    %25 = vector.shape_cast %24 : vector<1x1x4x96xbf16> to vector<4x96xbf16>
    %c2 = arith.constant 2 : index
    %c0_21 = arith.constant 0 : index
    %c0_22 = arith.constant 0 : index
    %26 = vector.load %arg3[%c2, %c0_21, %c0_22] : memref<4x96x32xbf16, #tpu.memory_space<vmem>>, vector<1x96x32xbf16>
    %27 = vector.shape_cast %26 : vector<1x96x32xbf16> to vector<96x32xbf16>
    %cst_23 = arith.constant dense<0.000000e+00> : vector<4x32xf32>
    %28 = tpu.matmul %25, %27, %cst_23 {dimension_numbers = #tpu.dot_dimension_numbers<[1], [0], [0], [1], [0, 0, 1, 1], [], []>} : vector<4x96xbf16>, vector<96x32xbf16>, vector<4x32xf32> -> vector<4x32xf32>
    %29 = arith.addf %20, %28 : vector<4x32xf32>
    %c0_i32_24 = arith.constant 0 : i32
    %30 = arith.addi %0, %c0_i32_24 : i32
    %c1_i32_25 = arith.constant 1 : i32
    %31 = arith.addi %30, %c1_i32_25 : i32
    %c0_26 = arith.constant 0 : index
    %32 = arith.index_cast %31 : i32 to index
    %c1_27 = arith.constant 1 : index
    %c0_28 = arith.constant 0 : index
    %33 = vector.load %arg2[%c0_26, %32, %c1_27, %c0_28] : memref<1x3x5x96xbf16, #tpu.memory_space<vmem>>, vector<1x1x4x96xbf16>
    %34 = vector.shape_cast %33 : vector<1x1x4x96xbf16> to vector<4x96xbf16>
    %c3 = arith.constant 3 : index
    %c0_29 = arith.constant 0 : index
    %c0_30 = arith.constant 0 : index
    %35 = vector.load %arg3[%c3, %c0_29, %c0_30] : memref<4x96x32xbf16, #tpu.memory_space<vmem>>, vector<1x96x32xbf16>
    %36 = vector.shape_cast %35 : vector<1x96x32xbf16> to vector<96x32xbf16>
    %cst_31 = arith.constant dense<0.000000e+00> : vector<4x32xf32>
    %37 = tpu.matmul %34, %36, %cst_31 {dimension_numbers = #tpu.dot_dimension_numbers<[1], [0], [0], [1], [0, 0, 1, 1], [], []>} : vector<4x96xbf16>, vector<96x32xbf16>, vector<4x32xf32> -> vector<4x32xf32>
    %38 = arith.addf %29, %37 : vector<4x32xf32>
    %39 = vector.broadcast %1 : vector<1x32xf32> to vector<4x32xf32>
    %40 = arith.addf %38, %39 : vector<4x32xf32>
    %cst_32 = arith.constant 0.000000e+00 : f32
    %41 = vector.broadcast %cst_32 : f32 to vector<4x32xf32>
    %42 = arith.maximumf %40, %41 : vector<4x32xf32>
    %43 = arith.truncf %42 : vector<4x32xf32> to vector<4x32xbf16>
    %c0_33 = arith.constant 0 : index
    %c0_34 = arith.constant 0 : index
    %c0_35 = arith.constant 0 : index
    %c0_36 = arith.constant 0 : index
    %44 = vector.load %arg5[%c0_33, %c0_34, %c0_35, %c0_36] : memref<1x2x4x32xbf16, #tpu.memory_space<vmem>>, vector<1x1x4x32xbf16>
    %45 = vector.shape_cast %44 : vector<1x1x4x32xbf16> to vector<4x32xbf16>
    %46 = vector.shape_cast %43 : vector<4x32xbf16> to vector<1x1x4x32xbf16>
    tpu.vector_store %arg5[%c0_33, %c0_34, %c0_35, %c0_36], %46 {strides = array<i32>} : memref<1x2x4x32xbf16, #tpu.memory_space<vmem>>, vector<1x1x4x32xbf16>,
    %cst_37 = arith.constant 0.000000e+00 : f32
    %47 = vector.broadcast %cst_37 : f32 to vector<4x32xf32>
    %c1_i32_38 = arith.constant 1 : i32
    %48 = arith.addi %0, %c1_i32_38 : i32
    %c0_i32_39 = arith.constant 0 : i32
    %49 = arith.addi %48, %c0_i32_39 : i32
    %c0_40 = arith.constant 0 : index
    %50 = arith.index_cast %49 : i32 to index
    %c0_41 = arith.constant 0 : index
    %c0_42 = arith.constant 0 : index
    %51 = vector.load %arg2[%c0_40, %50, %c0_41, %c0_42] : memref<1x3x5x96xbf16, #tpu.memory_space<vmem>>, vector<1x1x4x96xbf16>
    %52 = vector.shape_cast %51 : vector<1x1x4x96xbf16> to vector<4x96xbf16>
    %c0_43 = arith.constant 0 : index
    %c0_44 = arith.constant 0 : index
    %c0_45 = arith.constant 0 : index
    %53 = vector.load %arg3[%c0_43, %c0_44, %c0_45] : memref<4x96x32xbf16, #tpu.memory_space<vmem>>, vector<1x96x32xbf16>
    %54 = vector.shape_cast %53 : vector<1x96x32xbf16> to vector<96x32xbf16>
    %cst_46 = arith.constant dense<0.000000e+00> : vector<4x32xf32>
    %55 = tpu.matmul %52, %54, %cst_46 {dimension_numbers = #tpu.dot_dimension_numbers<[1], [0], [0], [1], [0, 0, 1, 1], [], []>} : vector<4x96xbf16>, vector<96x32xbf16>, vector<4x32xf32> -> vector<4x32xf32>
    %56 = arith.addf %47, %55 : vector<4x32xf32>
    %c1_i32_47 = arith.constant 1 : i32
    %57 = arith.addi %0, %c1_i32_47 : i32
    %c0_i32_48 = arith.constant 0 : i32
    %58 = arith.addi %57, %c0_i32_48 : i32
    %c0_49 = arith.constant 0 : index
    %59 = arith.index_cast %58 : i32 to index
    %c1_50 = arith.constant 1 : index
    %c0_51 = arith.constant 0 : index
    %60 = vector.load %arg2[%c0_49, %59, %c1_50, %c0_51] : memref<1x3x5x96xbf16, #tpu.memory_space<vmem>>, vector<1x1x4x96xbf16>
    %61 = vector.shape_cast %60 : vector<1x1x4x96xbf16> to vector<4x96xbf16>
    %c1_52 = arith.constant 1 : index
    %c0_53 = arith.constant 0 : index
    %c0_54 = arith.constant 0 : index
    %62 = vector.load %arg3[%c1_52, %c0_53, %c0_54] : memref<4x96x32xbf16, #tpu.memory_space<vmem>>, vector<1x96x32xbf16>
    %63 = vector.shape_cast %62 : vector<1x96x32xbf16> to vector<96x32xbf16>
    %cst_55 = arith.constant dense<0.000000e+00> : vector<4x32xf32>
    %64 = tpu.matmul %61, %63, %cst_55 {dimension_numbers = #tpu.dot_dimension_numbers<[1], [0], [0], [1], [0, 0, 1, 1], [], []>} : vector<4x96xbf16>, vector<96x32xbf16>, vector<4x32xf32> -> vector<4x32xf32>
    %65 = arith.addf %56, %64 : vector<4x32xf32>
    %c1_i32_56 = arith.constant 1 : i32
    %66 = arith.addi %0, %c1_i32_56 : i32
    %c1_i32_57 = arith.constant 1 : i32
    %67 = arith.addi %66, %c1_i32_57 : i32
    %c0_58 = arith.constant 0 : index
    %68 = arith.index_cast %67 : i32 to index
    %c0_59 = arith.constant 0 : index
    %c0_60 = arith.constant 0 : index
    %69 = vector.load %arg2[%c0_58, %68, %c0_59, %c0_60] : memref<1x3x5x96xbf16, #tpu.memory_space<vmem>>, vector<1x1x4x96xbf16>
    %70 = vector.shape_cast %69 : vector<1x1x4x96xbf16> to vector<4x96xbf16>
    %c2_61 = arith.constant 2 : index
    %c0_62 = arith.constant 0 : index
    %c0_63 = arith.constant 0 : index
    %71 = vector.load %arg3[%c2_61, %c0_62, %c0_63] : memref<4x96x32xbf16, #tpu.memory_space<vmem>>, vector<1x96x32xbf16>
    %72 = vector.shape_cast %71 : vector<1x96x32xbf16> to vector<96x32xbf16>
    %cst_64 = arith.constant dense<0.000000e+00> : vector<4x32xf32>
    %73 = tpu.matmul %70, %72, %cst_64 {dimension_numbers = #tpu.dot_dimension_numbers<[1], [0], [0], [1], [0, 0, 1, 1], [], []>} : vector<4x96xbf16>, vector<96x32xbf16>, vector<4x32xf32> -> vector<4x32xf32>
    %74 = arith.addf %65, %73 : vector<4x32xf32>
    %c1_i32_65 = arith.constant 1 : i32
    %75 = arith.addi %0, %c1_i32_65 : i32
    %c1_i32_66 = arith.constant 1 : i32
    %76 = arith.addi %75, %c1_i32_66 : i32
    %c0_67 = arith.constant 0 : index
    %77 = arith.index_cast %76 : i32 to index
    %c1_68 = arith.constant 1 : index
    %c0_69 = arith.constant 0 : index
    %78 = vector.load %arg2[%c0_67, %77, %c1_68, %c0_69] : memref<1x3x5x96xbf16, #tpu.memory_space<vmem>>, vector<1x1x4x96xbf16>
    %79 = vector.shape_cast %78 : vector<1x1x4x96xbf16> to vector<4x96xbf16>
    %c3_70 = arith.constant 3 : index
    %c0_71 = arith.constant 0 : index
    %c0_72 = arith.constant 0 : index
    %80 = vector.load %arg3[%c3_70, %c0_71, %c0_72] : memref<4x96x32xbf16, #tpu.memory_space<vmem>>, vector<1x96x32xbf16>
    %81 = vector.shape_cast %80 : vector<1x96x32xbf16> to vector<96x32xbf16>
    %cst_73 = arith.constant dense<0.000000e+00> : vector<4x32xf32>
    %82 = tpu.matmul %79, %81, %cst_73 {dimension_numbers = #tpu.dot_dimension_numbers<[1], [0], [0], [1], [0, 0, 1, 1], [], []>} : vector<4x96xbf16>, vector<96x32xbf16>, vector<4x32xf32> -> vector<4x32xf32>
    %83 = arith.addf %74, %82 : vector<4x32xf32>
    %84 = vector.broadcast %1 : vector<1x32xf32> to vector<4x32xf32>
    %85 = arith.addf %83, %84 : vector<4x32xf32>
    %cst_74 = arith.constant 0.000000e+00 : f32
    %86 = vector.broadcast %cst_74 : f32 to vector<4x32xf32>
    %87 = arith.maximumf %85, %86 : vector<4x32xf32>
    %88 = arith.truncf %87 : vector<4x32xf32> to vector<4x32xbf16>
    %c0_75 = arith.constant 0 : index
    %c1_76 = arith.constant 1 : index
    %c0_77 = arith.constant 0 : index
    %c0_78 = arith.constant 0 : index
    %89 = vector.load %arg5[%c0_75, %c1_76, %c0_77, %c0_78] : memref<1x2x4x32xbf16, #tpu.memory_space<vmem>>, vector<1x1x4x32xbf16>
    %90 = vector.shape_cast %89 : vector<1x1x4x32xbf16> to vector<4x32xbf16>
    %91 = vector.shape_cast %88 : vector<4x32xbf16> to vector<1x1x4x32xbf16>
    tpu.vector_store %arg5[%c0_75, %c1_76, %c0_77, %c0_78], %91 {strides = array<i32>} : memref<1x2x4x32xbf16, #tpu.memory_space<vmem>>, vector<1x1x4x32xbf16>,
    return
  }
  func.func @transform_0(%arg0: i32, %arg1: i32) -> (i32, i32, i32, i32) {
    %c0_i32 = arith.constant 0 : i32
    %c0_i32_0 = arith.constant 0 : i32
    %c0_i32_1 = arith.constant 0 : i32
    %c0_i32_2 = arith.constant 0 : i32
    return %arg0, %c0_i32, %c0_i32_0, %c0_i32_1 : i32, i32, i32, i32
  }
  func.func @transform_1(%arg0: i32, %arg1: i32) -> (i32, i32, i32) {
    %c0_i32 = arith.constant 0 : i32
    %c0_i32_0 = arith.constant 0 : i32
    %c0_i32_1 = arith.constant 0 : i32
    %c0_i32_2 = arith.constant 0 : i32
    return %c0_i32, %c0_i32_0, %c0_i32_1 : i32, i32, i32
  }
  func.func @transform_2(%arg0: i32, %arg1: i32) -> (i32, i32) {
    %c0_i32 = arith.constant 0 : i32
    %c0_i32_0 = arith.constant 0 : i32
    %c0_i32_1 = arith.constant 0 : i32
    return %c0_i32, %c0_i32_0 : i32, i32
  }
  func.func @transform_3(%arg0: i32, %arg1: i32) -> (i32, i32, i32, i32) {
    %c0_i32 = arith.constant 0 : i32
    %c0_i32_0 = arith.constant 0 : i32
    %c0_i32_1 = arith.constant 0 : i32
    return %arg0, %arg1, %c0_i32, %c0_i32_0 : i32, i32, i32, i32
  }
}

module attributes {stable_mosaic.version = 11 : i64} {
  func.func @_conv_kernel(%arg0: i32, %arg1: i32, %arg2: memref<1x4x6x32xbf16, #tpu.memory_space<vmem>>, %arg3: memref<9x32x72xbf16, #tpu.memory_space<vmem>>, %arg4: memref<1x72xf32, #tpu.memory_space<vmem>>, %arg5: memref<1x2x4x72xf32, #tpu.memory_space<vmem>>) attributes {dimension_semantics = [#tpu.dimension_semantics<parallel>, #tpu.dimension_semantics<parallel>], iteration_bounds = array<i64: 2, 1>, scalar_prefetch = 0 : i64, scratch_operands = 0 : i64, tpu.core_type = #tpu.core_type<tc>, window_params = [{transform_indices = @transform_0, window_bounds = array<i64: 1, 4, 6, 32>}, {pipeline_mode = #tpu.pipeline_mode<synchronous>, transform_indices = @transform_1, window_bounds = array<i64: 9, 32, 72>}, {pipeline_mode = #tpu.pipeline_mode<synchronous>, transform_indices = @transform_2, window_bounds = array<i64: 1, 72>}, {transform_indices = @transform_3, window_bounds = array<i64: 1, 2, 4, 72>}]} {
    %c2_i32 = arith.constant 2 : i32
    %0 = arith.muli %arg1, %c2_i32 : i32
    %c0 = arith.constant 0 : index
    %c0_0 = arith.constant 0 : index
    %1 = vector.load %arg4[%c0, %c0_0] : memref<1x72xf32, #tpu.memory_space<vmem>>, vector<1x72xf32>
    %cst = arith.constant 0.000000e+00 : f32
    %2 = vector.broadcast %cst : f32 to vector<4x72xf32>
    %c0_i32 = arith.constant 0 : i32
    %3 = arith.addi %0, %c0_i32 : i32
    %c0_i32_1 = arith.constant 0 : i32
    %4 = arith.addi %3, %c0_i32_1 : i32
    %c0_2 = arith.constant 0 : index
    %5 = arith.index_cast %4 : i32 to index
    %c0_3 = arith.constant 0 : index
    %c0_4 = arith.constant 0 : index
    %6 = vector.load %arg2[%c0_2, %5, %c0_3, %c0_4] : memref<1x4x6x32xbf16, #tpu.memory_space<vmem>>, vector<1x1x4x32xbf16>
    %7 = vector.shape_cast %6 : vector<1x1x4x32xbf16> to vector<4x32xbf16>
    %c0_5 = arith.constant 0 : index
    %c0_6 = arith.constant 0 : index
    %c0_7 = arith.constant 0 : index
    %8 = vector.load %arg3[%c0_5, %c0_6, %c0_7] : memref<9x32x72xbf16, #tpu.memory_space<vmem>>, vector<1x32x72xbf16>
    %9 = vector.shape_cast %8 : vector<1x32x72xbf16> to vector<32x72xbf16>
    %cst_8 = arith.constant dense<0.000000e+00> : vector<4x72xf32>
    %10 = tpu.matmul %7, %9, %cst_8 {dimension_numbers = #tpu.dot_dimension_numbers<[1], [0], [0], [1], [0, 0, 1, 1], [], []>} : vector<4x32xbf16>, vector<32x72xbf16>, vector<4x72xf32> -> vector<4x72xf32>
    %11 = arith.addf %2, %10 : vector<4x72xf32>
    %c0_i32_9 = arith.constant 0 : i32
    %12 = arith.addi %0, %c0_i32_9 : i32
    %c0_i32_10 = arith.constant 0 : i32
    %13 = arith.addi %12, %c0_i32_10 : i32
    %c0_11 = arith.constant 0 : index
    %14 = arith.index_cast %13 : i32 to index
    %c1 = arith.constant 1 : index
    %c0_12 = arith.constant 0 : index
    %15 = vector.load %arg2[%c0_11, %14, %c1, %c0_12] : memref<1x4x6x32xbf16, #tpu.memory_space<vmem>>, vector<1x1x4x32xbf16>
    %16 = vector.shape_cast %15 : vector<1x1x4x32xbf16> to vector<4x32xbf16>
    %c1_13 = arith.constant 1 : index
    %c0_14 = arith.constant 0 : index
    %c0_15 = arith.constant 0 : index
    %17 = vector.load %arg3[%c1_13, %c0_14, %c0_15] : memref<9x32x72xbf16, #tpu.memory_space<vmem>>, vector<1x32x72xbf16>
    %18 = vector.shape_cast %17 : vector<1x32x72xbf16> to vector<32x72xbf16>
    %cst_16 = arith.constant dense<0.000000e+00> : vector<4x72xf32>
    %19 = tpu.matmul %16, %18, %cst_16 {dimension_numbers = #tpu.dot_dimension_numbers<[1], [0], [0], [1], [0, 0, 1, 1], [], []>} : vector<4x32xbf16>, vector<32x72xbf16>, vector<4x72xf32> -> vector<4x72xf32>
    %20 = arith.addf %11, %19 : vector<4x72xf32>
    %c0_i32_17 = arith.constant 0 : i32
    %21 = arith.addi %0, %c0_i32_17 : i32
    %c0_i32_18 = arith.constant 0 : i32
    %22 = arith.addi %21, %c0_i32_18 : i32
    %c0_19 = arith.constant 0 : index
    %23 = arith.index_cast %22 : i32 to index
    %c2 = arith.constant 2 : index
    %c0_20 = arith.constant 0 : index
    %24 = vector.load %arg2[%c0_19, %23, %c2, %c0_20] : memref<1x4x6x32xbf16, #tpu.memory_space<vmem>>, vector<1x1x4x32xbf16>
    %25 = vector.shape_cast %24 : vector<1x1x4x32xbf16> to vector<4x32xbf16>
    %c2_21 = arith.constant 2 : index
    %c0_22 = arith.constant 0 : index
    %c0_23 = arith.constant 0 : index
    %26 = vector.load %arg3[%c2_21, %c0_22, %c0_23] : memref<9x32x72xbf16, #tpu.memory_space<vmem>>, vector<1x32x72xbf16>
    %27 = vector.shape_cast %26 : vector<1x32x72xbf16> to vector<32x72xbf16>
    %cst_24 = arith.constant dense<0.000000e+00> : vector<4x72xf32>
    %28 = tpu.matmul %25, %27, %cst_24 {dimension_numbers = #tpu.dot_dimension_numbers<[1], [0], [0], [1], [0, 0, 1, 1], [], []>} : vector<4x32xbf16>, vector<32x72xbf16>, vector<4x72xf32> -> vector<4x72xf32>
    %29 = arith.addf %20, %28 : vector<4x72xf32>
    %c0_i32_25 = arith.constant 0 : i32
    %30 = arith.addi %0, %c0_i32_25 : i32
    %c1_i32 = arith.constant 1 : i32
    %31 = arith.addi %30, %c1_i32 : i32
    %c0_26 = arith.constant 0 : index
    %32 = arith.index_cast %31 : i32 to index
    %c0_27 = arith.constant 0 : index
    %c0_28 = arith.constant 0 : index
    %33 = vector.load %arg2[%c0_26, %32, %c0_27, %c0_28] : memref<1x4x6x32xbf16, #tpu.memory_space<vmem>>, vector<1x1x4x32xbf16>
    %34 = vector.shape_cast %33 : vector<1x1x4x32xbf16> to vector<4x32xbf16>
    %c3 = arith.constant 3 : index
    %c0_29 = arith.constant 0 : index
    %c0_30 = arith.constant 0 : index
    %35 = vector.load %arg3[%c3, %c0_29, %c0_30] : memref<9x32x72xbf16, #tpu.memory_space<vmem>>, vector<1x32x72xbf16>
    %36 = vector.shape_cast %35 : vector<1x32x72xbf16> to vector<32x72xbf16>
    %cst_31 = arith.constant dense<0.000000e+00> : vector<4x72xf32>
    %37 = tpu.matmul %34, %36, %cst_31 {dimension_numbers = #tpu.dot_dimension_numbers<[1], [0], [0], [1], [0, 0, 1, 1], [], []>} : vector<4x32xbf16>, vector<32x72xbf16>, vector<4x72xf32> -> vector<4x72xf32>
    %38 = arith.addf %29, %37 : vector<4x72xf32>
    %c0_i32_32 = arith.constant 0 : i32
    %39 = arith.addi %0, %c0_i32_32 : i32
    %c1_i32_33 = arith.constant 1 : i32
    %40 = arith.addi %39, %c1_i32_33 : i32
    %c0_34 = arith.constant 0 : index
    %41 = arith.index_cast %40 : i32 to index
    %c1_35 = arith.constant 1 : index
    %c0_36 = arith.constant 0 : index
    %42 = vector.load %arg2[%c0_34, %41, %c1_35, %c0_36] : memref<1x4x6x32xbf16, #tpu.memory_space<vmem>>, vector<1x1x4x32xbf16>
    %43 = vector.shape_cast %42 : vector<1x1x4x32xbf16> to vector<4x32xbf16>
    %c4 = arith.constant 4 : index
    %c0_37 = arith.constant 0 : index
    %c0_38 = arith.constant 0 : index
    %44 = vector.load %arg3[%c4, %c0_37, %c0_38] : memref<9x32x72xbf16, #tpu.memory_space<vmem>>, vector<1x32x72xbf16>
    %45 = vector.shape_cast %44 : vector<1x32x72xbf16> to vector<32x72xbf16>
    %cst_39 = arith.constant dense<0.000000e+00> : vector<4x72xf32>
    %46 = tpu.matmul %43, %45, %cst_39 {dimension_numbers = #tpu.dot_dimension_numbers<[1], [0], [0], [1], [0, 0, 1, 1], [], []>} : vector<4x32xbf16>, vector<32x72xbf16>, vector<4x72xf32> -> vector<4x72xf32>
    %47 = arith.addf %38, %46 : vector<4x72xf32>
    %c0_i32_40 = arith.constant 0 : i32
    %48 = arith.addi %0, %c0_i32_40 : i32
    %c1_i32_41 = arith.constant 1 : i32
    %49 = arith.addi %48, %c1_i32_41 : i32
    %c0_42 = arith.constant 0 : index
    %50 = arith.index_cast %49 : i32 to index
    %c2_43 = arith.constant 2 : index
    %c0_44 = arith.constant 0 : index
    %51 = vector.load %arg2[%c0_42, %50, %c2_43, %c0_44] : memref<1x4x6x32xbf16, #tpu.memory_space<vmem>>, vector<1x1x4x32xbf16>
    %52 = vector.shape_cast %51 : vector<1x1x4x32xbf16> to vector<4x32xbf16>
    %c5 = arith.constant 5 : index
    %c0_45 = arith.constant 0 : index
    %c0_46 = arith.constant 0 : index
    %53 = vector.load %arg3[%c5, %c0_45, %c0_46] : memref<9x32x72xbf16, #tpu.memory_space<vmem>>, vector<1x32x72xbf16>
    %54 = vector.shape_cast %53 : vector<1x32x72xbf16> to vector<32x72xbf16>
    %cst_47 = arith.constant dense<0.000000e+00> : vector<4x72xf32>
    %55 = tpu.matmul %52, %54, %cst_47 {dimension_numbers = #tpu.dot_dimension_numbers<[1], [0], [0], [1], [0, 0, 1, 1], [], []>} : vector<4x32xbf16>, vector<32x72xbf16>, vector<4x72xf32> -> vector<4x72xf32>
    %56 = arith.addf %47, %55 : vector<4x72xf32>
    %c0_i32_48 = arith.constant 0 : i32
    %57 = arith.addi %0, %c0_i32_48 : i32
    %c2_i32_49 = arith.constant 2 : i32
    %58 = arith.addi %57, %c2_i32_49 : i32
    %c0_50 = arith.constant 0 : index
    %59 = arith.index_cast %58 : i32 to index
    %c0_51 = arith.constant 0 : index
    %c0_52 = arith.constant 0 : index
    %60 = vector.load %arg2[%c0_50, %59, %c0_51, %c0_52] : memref<1x4x6x32xbf16, #tpu.memory_space<vmem>>, vector<1x1x4x32xbf16>
    %61 = vector.shape_cast %60 : vector<1x1x4x32xbf16> to vector<4x32xbf16>
    %c6 = arith.constant 6 : index
    %c0_53 = arith.constant 0 : index
    %c0_54 = arith.constant 0 : index
    %62 = vector.load %arg3[%c6, %c0_53, %c0_54] : memref<9x32x72xbf16, #tpu.memory_space<vmem>>, vector<1x32x72xbf16>
    %63 = vector.shape_cast %62 : vector<1x32x72xbf16> to vector<32x72xbf16>
    %cst_55 = arith.constant dense<0.000000e+00> : vector<4x72xf32>
    %64 = tpu.matmul %61, %63, %cst_55 {dimension_numbers = #tpu.dot_dimension_numbers<[1], [0], [0], [1], [0, 0, 1, 1], [], []>} : vector<4x32xbf16>, vector<32x72xbf16>, vector<4x72xf32> -> vector<4x72xf32>
    %65 = arith.addf %56, %64 : vector<4x72xf32>
    %c0_i32_56 = arith.constant 0 : i32
    %66 = arith.addi %0, %c0_i32_56 : i32
    %c2_i32_57 = arith.constant 2 : i32
    %67 = arith.addi %66, %c2_i32_57 : i32
    %c0_58 = arith.constant 0 : index
    %68 = arith.index_cast %67 : i32 to index
    %c1_59 = arith.constant 1 : index
    %c0_60 = arith.constant 0 : index
    %69 = vector.load %arg2[%c0_58, %68, %c1_59, %c0_60] : memref<1x4x6x32xbf16, #tpu.memory_space<vmem>>, vector<1x1x4x32xbf16>
    %70 = vector.shape_cast %69 : vector<1x1x4x32xbf16> to vector<4x32xbf16>
    %c7 = arith.constant 7 : index
    %c0_61 = arith.constant 0 : index
    %c0_62 = arith.constant 0 : index
    %71 = vector.load %arg3[%c7, %c0_61, %c0_62] : memref<9x32x72xbf16, #tpu.memory_space<vmem>>, vector<1x32x72xbf16>
    %72 = vector.shape_cast %71 : vector<1x32x72xbf16> to vector<32x72xbf16>
    %cst_63 = arith.constant dense<0.000000e+00> : vector<4x72xf32>
    %73 = tpu.matmul %70, %72, %cst_63 {dimension_numbers = #tpu.dot_dimension_numbers<[1], [0], [0], [1], [0, 0, 1, 1], [], []>} : vector<4x32xbf16>, vector<32x72xbf16>, vector<4x72xf32> -> vector<4x72xf32>
    %74 = arith.addf %65, %73 : vector<4x72xf32>
    %c0_i32_64 = arith.constant 0 : i32
    %75 = arith.addi %0, %c0_i32_64 : i32
    %c2_i32_65 = arith.constant 2 : i32
    %76 = arith.addi %75, %c2_i32_65 : i32
    %c0_66 = arith.constant 0 : index
    %77 = arith.index_cast %76 : i32 to index
    %c2_67 = arith.constant 2 : index
    %c0_68 = arith.constant 0 : index
    %78 = vector.load %arg2[%c0_66, %77, %c2_67, %c0_68] : memref<1x4x6x32xbf16, #tpu.memory_space<vmem>>, vector<1x1x4x32xbf16>
    %79 = vector.shape_cast %78 : vector<1x1x4x32xbf16> to vector<4x32xbf16>
    %c8 = arith.constant 8 : index
    %c0_69 = arith.constant 0 : index
    %c0_70 = arith.constant 0 : index
    %80 = vector.load %arg3[%c8, %c0_69, %c0_70] : memref<9x32x72xbf16, #tpu.memory_space<vmem>>, vector<1x32x72xbf16>
    %81 = vector.shape_cast %80 : vector<1x32x72xbf16> to vector<32x72xbf16>
    %cst_71 = arith.constant dense<0.000000e+00> : vector<4x72xf32>
    %82 = tpu.matmul %79, %81, %cst_71 {dimension_numbers = #tpu.dot_dimension_numbers<[1], [0], [0], [1], [0, 0, 1, 1], [], []>} : vector<4x32xbf16>, vector<32x72xbf16>, vector<4x72xf32> -> vector<4x72xf32>
    %83 = arith.addf %74, %82 : vector<4x72xf32>
    %84 = vector.broadcast %1 : vector<1x72xf32> to vector<4x72xf32>
    %85 = arith.addf %83, %84 : vector<4x72xf32>
    %c0_72 = arith.constant 0 : index
    %c0_73 = arith.constant 0 : index
    %c0_74 = arith.constant 0 : index
    %c0_75 = arith.constant 0 : index
    %86 = vector.load %arg5[%c0_72, %c0_73, %c0_74, %c0_75] : memref<1x2x4x72xf32, #tpu.memory_space<vmem>>, vector<1x1x4x72xf32>
    %87 = vector.shape_cast %86 : vector<1x1x4x72xf32> to vector<4x72xf32>
    %88 = vector.shape_cast %85 : vector<4x72xf32> to vector<1x1x4x72xf32>
    tpu.vector_store %arg5[%c0_72, %c0_73, %c0_74, %c0_75], %88 {strides = array<i32>} : memref<1x2x4x72xf32, #tpu.memory_space<vmem>>, vector<1x1x4x72xf32>,
    %cst_76 = arith.constant 0.000000e+00 : f32
    %89 = vector.broadcast %cst_76 : f32 to vector<4x72xf32>
    %c1_i32_77 = arith.constant 1 : i32
    %90 = arith.addi %0, %c1_i32_77 : i32
    %c0_i32_78 = arith.constant 0 : i32
    %91 = arith.addi %90, %c0_i32_78 : i32
    %c0_79 = arith.constant 0 : index
    %92 = arith.index_cast %91 : i32 to index
    %c0_80 = arith.constant 0 : index
    %c0_81 = arith.constant 0 : index
    %93 = vector.load %arg2[%c0_79, %92, %c0_80, %c0_81] : memref<1x4x6x32xbf16, #tpu.memory_space<vmem>>, vector<1x1x4x32xbf16>
    %94 = vector.shape_cast %93 : vector<1x1x4x32xbf16> to vector<4x32xbf16>
    %c0_82 = arith.constant 0 : index
    %c0_83 = arith.constant 0 : index
    %c0_84 = arith.constant 0 : index
    %95 = vector.load %arg3[%c0_82, %c0_83, %c0_84] : memref<9x32x72xbf16, #tpu.memory_space<vmem>>, vector<1x32x72xbf16>
    %96 = vector.shape_cast %95 : vector<1x32x72xbf16> to vector<32x72xbf16>
    %cst_85 = arith.constant dense<0.000000e+00> : vector<4x72xf32>
    %97 = tpu.matmul %94, %96, %cst_85 {dimension_numbers = #tpu.dot_dimension_numbers<[1], [0], [0], [1], [0, 0, 1, 1], [], []>} : vector<4x32xbf16>, vector<32x72xbf16>, vector<4x72xf32> -> vector<4x72xf32>
    %98 = arith.addf %89, %97 : vector<4x72xf32>
    %c1_i32_86 = arith.constant 1 : i32
    %99 = arith.addi %0, %c1_i32_86 : i32
    %c0_i32_87 = arith.constant 0 : i32
    %100 = arith.addi %99, %c0_i32_87 : i32
    %c0_88 = arith.constant 0 : index
    %101 = arith.index_cast %100 : i32 to index
    %c1_89 = arith.constant 1 : index
    %c0_90 = arith.constant 0 : index
    %102 = vector.load %arg2[%c0_88, %101, %c1_89, %c0_90] : memref<1x4x6x32xbf16, #tpu.memory_space<vmem>>, vector<1x1x4x32xbf16>
    %103 = vector.shape_cast %102 : vector<1x1x4x32xbf16> to vector<4x32xbf16>
    %c1_91 = arith.constant 1 : index
    %c0_92 = arith.constant 0 : index
    %c0_93 = arith.constant 0 : index
    %104 = vector.load %arg3[%c1_91, %c0_92, %c0_93] : memref<9x32x72xbf16, #tpu.memory_space<vmem>>, vector<1x32x72xbf16>
    %105 = vector.shape_cast %104 : vector<1x32x72xbf16> to vector<32x72xbf16>
    %cst_94 = arith.constant dense<0.000000e+00> : vector<4x72xf32>
    %106 = tpu.matmul %103, %105, %cst_94 {dimension_numbers = #tpu.dot_dimension_numbers<[1], [0], [0], [1], [0, 0, 1, 1], [], []>} : vector<4x32xbf16>, vector<32x72xbf16>, vector<4x72xf32> -> vector<4x72xf32>
    %107 = arith.addf %98, %106 : vector<4x72xf32>
    %c1_i32_95 = arith.constant 1 : i32
    %108 = arith.addi %0, %c1_i32_95 : i32
    %c0_i32_96 = arith.constant 0 : i32
    %109 = arith.addi %108, %c0_i32_96 : i32
    %c0_97 = arith.constant 0 : index
    %110 = arith.index_cast %109 : i32 to index
    %c2_98 = arith.constant 2 : index
    %c0_99 = arith.constant 0 : index
    %111 = vector.load %arg2[%c0_97, %110, %c2_98, %c0_99] : memref<1x4x6x32xbf16, #tpu.memory_space<vmem>>, vector<1x1x4x32xbf16>
    %112 = vector.shape_cast %111 : vector<1x1x4x32xbf16> to vector<4x32xbf16>
    %c2_100 = arith.constant 2 : index
    %c0_101 = arith.constant 0 : index
    %c0_102 = arith.constant 0 : index
    %113 = vector.load %arg3[%c2_100, %c0_101, %c0_102] : memref<9x32x72xbf16, #tpu.memory_space<vmem>>, vector<1x32x72xbf16>
    %114 = vector.shape_cast %113 : vector<1x32x72xbf16> to vector<32x72xbf16>
    %cst_103 = arith.constant dense<0.000000e+00> : vector<4x72xf32>
    %115 = tpu.matmul %112, %114, %cst_103 {dimension_numbers = #tpu.dot_dimension_numbers<[1], [0], [0], [1], [0, 0, 1, 1], [], []>} : vector<4x32xbf16>, vector<32x72xbf16>, vector<4x72xf32> -> vector<4x72xf32>
    %116 = arith.addf %107, %115 : vector<4x72xf32>
    %c1_i32_104 = arith.constant 1 : i32
    %117 = arith.addi %0, %c1_i32_104 : i32
    %c1_i32_105 = arith.constant 1 : i32
    %118 = arith.addi %117, %c1_i32_105 : i32
    %c0_106 = arith.constant 0 : index
    %119 = arith.index_cast %118 : i32 to index
    %c0_107 = arith.constant 0 : index
    %c0_108 = arith.constant 0 : index
    %120 = vector.load %arg2[%c0_106, %119, %c0_107, %c0_108] : memref<1x4x6x32xbf16, #tpu.memory_space<vmem>>, vector<1x1x4x32xbf16>
    %121 = vector.shape_cast %120 : vector<1x1x4x32xbf16> to vector<4x32xbf16>
    %c3_109 = arith.constant 3 : index
    %c0_110 = arith.constant 0 : index
    %c0_111 = arith.constant 0 : index
    %122 = vector.load %arg3[%c3_109, %c0_110, %c0_111] : memref<9x32x72xbf16, #tpu.memory_space<vmem>>, vector<1x32x72xbf16>
    %123 = vector.shape_cast %122 : vector<1x32x72xbf16> to vector<32x72xbf16>
    %cst_112 = arith.constant dense<0.000000e+00> : vector<4x72xf32>
    %124 = tpu.matmul %121, %123, %cst_112 {dimension_numbers = #tpu.dot_dimension_numbers<[1], [0], [0], [1], [0, 0, 1, 1], [], []>} : vector<4x32xbf16>, vector<32x72xbf16>, vector<4x72xf32> -> vector<4x72xf32>
    %125 = arith.addf %116, %124 : vector<4x72xf32>
    %c1_i32_113 = arith.constant 1 : i32
    %126 = arith.addi %0, %c1_i32_113 : i32
    %c1_i32_114 = arith.constant 1 : i32
    %127 = arith.addi %126, %c1_i32_114 : i32
    %c0_115 = arith.constant 0 : index
    %128 = arith.index_cast %127 : i32 to index
    %c1_116 = arith.constant 1 : index
    %c0_117 = arith.constant 0 : index
    %129 = vector.load %arg2[%c0_115, %128, %c1_116, %c0_117] : memref<1x4x6x32xbf16, #tpu.memory_space<vmem>>, vector<1x1x4x32xbf16>
    %130 = vector.shape_cast %129 : vector<1x1x4x32xbf16> to vector<4x32xbf16>
    %c4_118 = arith.constant 4 : index
    %c0_119 = arith.constant 0 : index
    %c0_120 = arith.constant 0 : index
    %131 = vector.load %arg3[%c4_118, %c0_119, %c0_120] : memref<9x32x72xbf16, #tpu.memory_space<vmem>>, vector<1x32x72xbf16>
    %132 = vector.shape_cast %131 : vector<1x32x72xbf16> to vector<32x72xbf16>
    %cst_121 = arith.constant dense<0.000000e+00> : vector<4x72xf32>
    %133 = tpu.matmul %130, %132, %cst_121 {dimension_numbers = #tpu.dot_dimension_numbers<[1], [0], [0], [1], [0, 0, 1, 1], [], []>} : vector<4x32xbf16>, vector<32x72xbf16>, vector<4x72xf32> -> vector<4x72xf32>
    %134 = arith.addf %125, %133 : vector<4x72xf32>
    %c1_i32_122 = arith.constant 1 : i32
    %135 = arith.addi %0, %c1_i32_122 : i32
    %c1_i32_123 = arith.constant 1 : i32
    %136 = arith.addi %135, %c1_i32_123 : i32
    %c0_124 = arith.constant 0 : index
    %137 = arith.index_cast %136 : i32 to index
    %c2_125 = arith.constant 2 : index
    %c0_126 = arith.constant 0 : index
    %138 = vector.load %arg2[%c0_124, %137, %c2_125, %c0_126] : memref<1x4x6x32xbf16, #tpu.memory_space<vmem>>, vector<1x1x4x32xbf16>
    %139 = vector.shape_cast %138 : vector<1x1x4x32xbf16> to vector<4x32xbf16>
    %c5_127 = arith.constant 5 : index
    %c0_128 = arith.constant 0 : index
    %c0_129 = arith.constant 0 : index
    %140 = vector.load %arg3[%c5_127, %c0_128, %c0_129] : memref<9x32x72xbf16, #tpu.memory_space<vmem>>, vector<1x32x72xbf16>
    %141 = vector.shape_cast %140 : vector<1x32x72xbf16> to vector<32x72xbf16>
    %cst_130 = arith.constant dense<0.000000e+00> : vector<4x72xf32>
    %142 = tpu.matmul %139, %141, %cst_130 {dimension_numbers = #tpu.dot_dimension_numbers<[1], [0], [0], [1], [0, 0, 1, 1], [], []>} : vector<4x32xbf16>, vector<32x72xbf16>, vector<4x72xf32> -> vector<4x72xf32>
    %143 = arith.addf %134, %142 : vector<4x72xf32>
    %c1_i32_131 = arith.constant 1 : i32
    %144 = arith.addi %0, %c1_i32_131 : i32
    %c2_i32_132 = arith.constant 2 : i32
    %145 = arith.addi %144, %c2_i32_132 : i32
    %c0_133 = arith.constant 0 : index
    %146 = arith.index_cast %145 : i32 to index
    %c0_134 = arith.constant 0 : index
    %c0_135 = arith.constant 0 : index
    %147 = vector.load %arg2[%c0_133, %146, %c0_134, %c0_135] : memref<1x4x6x32xbf16, #tpu.memory_space<vmem>>, vector<1x1x4x32xbf16>
    %148 = vector.shape_cast %147 : vector<1x1x4x32xbf16> to vector<4x32xbf16>
    %c6_136 = arith.constant 6 : index
    %c0_137 = arith.constant 0 : index
    %c0_138 = arith.constant 0 : index
    %149 = vector.load %arg3[%c6_136, %c0_137, %c0_138] : memref<9x32x72xbf16, #tpu.memory_space<vmem>>, vector<1x32x72xbf16>
    %150 = vector.shape_cast %149 : vector<1x32x72xbf16> to vector<32x72xbf16>
    %cst_139 = arith.constant dense<0.000000e+00> : vector<4x72xf32>
    %151 = tpu.matmul %148, %150, %cst_139 {dimension_numbers = #tpu.dot_dimension_numbers<[1], [0], [0], [1], [0, 0, 1, 1], [], []>} : vector<4x32xbf16>, vector<32x72xbf16>, vector<4x72xf32> -> vector<4x72xf32>
    %152 = arith.addf %143, %151 : vector<4x72xf32>
    %c1_i32_140 = arith.constant 1 : i32
    %153 = arith.addi %0, %c1_i32_140 : i32
    %c2_i32_141 = arith.constant 2 : i32
    %154 = arith.addi %153, %c2_i32_141 : i32
    %c0_142 = arith.constant 0 : index
    %155 = arith.index_cast %154 : i32 to index
    %c1_143 = arith.constant 1 : index
    %c0_144 = arith.constant 0 : index
    %156 = vector.load %arg2[%c0_142, %155, %c1_143, %c0_144] : memref<1x4x6x32xbf16, #tpu.memory_space<vmem>>, vector<1x1x4x32xbf16>
    %157 = vector.shape_cast %156 : vector<1x1x4x32xbf16> to vector<4x32xbf16>
    %c7_145 = arith.constant 7 : index
    %c0_146 = arith.constant 0 : index
    %c0_147 = arith.constant 0 : index
    %158 = vector.load %arg3[%c7_145, %c0_146, %c0_147] : memref<9x32x72xbf16, #tpu.memory_space<vmem>>, vector<1x32x72xbf16>
    %159 = vector.shape_cast %158 : vector<1x32x72xbf16> to vector<32x72xbf16>
    %cst_148 = arith.constant dense<0.000000e+00> : vector<4x72xf32>
    %160 = tpu.matmul %157, %159, %cst_148 {dimension_numbers = #tpu.dot_dimension_numbers<[1], [0], [0], [1], [0, 0, 1, 1], [], []>} : vector<4x32xbf16>, vector<32x72xbf16>, vector<4x72xf32> -> vector<4x72xf32>
    %161 = arith.addf %152, %160 : vector<4x72xf32>
    %c1_i32_149 = arith.constant 1 : i32
    %162 = arith.addi %0, %c1_i32_149 : i32
    %c2_i32_150 = arith.constant 2 : i32
    %163 = arith.addi %162, %c2_i32_150 : i32
    %c0_151 = arith.constant 0 : index
    %164 = arith.index_cast %163 : i32 to index
    %c2_152 = arith.constant 2 : index
    %c0_153 = arith.constant 0 : index
    %165 = vector.load %arg2[%c0_151, %164, %c2_152, %c0_153] : memref<1x4x6x32xbf16, #tpu.memory_space<vmem>>, vector<1x1x4x32xbf16>
    %166 = vector.shape_cast %165 : vector<1x1x4x32xbf16> to vector<4x32xbf16>
    %c8_154 = arith.constant 8 : index
    %c0_155 = arith.constant 0 : index
    %c0_156 = arith.constant 0 : index
    %167 = vector.load %arg3[%c8_154, %c0_155, %c0_156] : memref<9x32x72xbf16, #tpu.memory_space<vmem>>, vector<1x32x72xbf16>
    %168 = vector.shape_cast %167 : vector<1x32x72xbf16> to vector<32x72xbf16>
    %cst_157 = arith.constant dense<0.000000e+00> : vector<4x72xf32>
    %169 = tpu.matmul %166, %168, %cst_157 {dimension_numbers = #tpu.dot_dimension_numbers<[1], [0], [0], [1], [0, 0, 1, 1], [], []>} : vector<4x32xbf16>, vector<32x72xbf16>, vector<4x72xf32> -> vector<4x72xf32>
    %170 = arith.addf %161, %169 : vector<4x72xf32>
    %171 = vector.broadcast %1 : vector<1x72xf32> to vector<4x72xf32>
    %172 = arith.addf %170, %171 : vector<4x72xf32>
    %c0_158 = arith.constant 0 : index
    %c1_159 = arith.constant 1 : index
    %c0_160 = arith.constant 0 : index
    %c0_161 = arith.constant 0 : index
    %173 = vector.load %arg5[%c0_158, %c1_159, %c0_160, %c0_161] : memref<1x2x4x72xf32, #tpu.memory_space<vmem>>, vector<1x1x4x72xf32>
    %174 = vector.shape_cast %173 : vector<1x1x4x72xf32> to vector<4x72xf32>
    %175 = vector.shape_cast %172 : vector<4x72xf32> to vector<1x1x4x72xf32>
    tpu.vector_store %arg5[%c0_158, %c1_159, %c0_160, %c0_161], %175 {strides = array<i32>} : memref<1x2x4x72xf32, #tpu.memory_space<vmem>>, vector<1x1x4x72xf32>,
    return
  }
  func.func @transform_0(%arg0: i32, %arg1: i32) -> (i32, i32, i32, i32) {
    %c0_i32 = arith.constant 0 : i32
    %c0_i32_0 = arith.constant 0 : i32
    %c0_i32_1 = arith.constant 0 : i32
    %c0_i32_2 = arith.constant 0 : i32
    return %arg0, %c0_i32, %c0_i32_0, %c0_i32_1 : i32, i32, i32, i32
  }
  func.func @transform_1(%arg0: i32, %arg1: i32) -> (i32, i32, i32) {
    %c0_i32 = arith.constant 0 : i32
    %c0_i32_0 = arith.constant 0 : i32
    %c0_i32_1 = arith.constant 0 : i32
    %c0_i32_2 = arith.constant 0 : i32
    return %c0_i32, %c0_i32_0, %c0_i32_1 : i32, i32, i32
  }
  func.func @transform_2(%arg0: i32, %arg1: i32) -> (i32, i32) {
    %c0_i32 = arith.constant 0 : i32
    %c0_i32_0 = arith.constant 0 : i32
    %c0_i32_1 = arith.constant 0 : i32
    return %c0_i32, %c0_i32_0 : i32, i32
  }
  func.func @transform_3(%arg0: i32, %arg1: i32) -> (i32, i32, i32, i32) {
    %c0_i32 = arith.constant 0 : i32
    %c0_i32_0 = arith.constant 0 : i32
    %c0_i32_1 = arith.constant 0 : i32
    return %arg0, %arg1, %c0_i32, %c0_i32_0 : i32, i32, i32, i32
  }
}

module attributes {stable_mosaic.version = 11 : i64} {
  func.func @_conv_kernel(%arg0: i32, %arg1: i32, %arg2: memref<1x2x3x128xbf16, #tpu.memory_space<vmem>>, %arg3: memref<4x128x48xbf16, #tpu.memory_space<vmem>>, %arg4: memref<1x48xf32, #tpu.memory_space<vmem>>, %arg5: memref<1x1x2x48xbf16, #tpu.memory_space<vmem>>) attributes {dimension_semantics = [#tpu.dimension_semantics<parallel>, #tpu.dimension_semantics<parallel>], iteration_bounds = array<i64: 2, 1>, scalar_prefetch = 0 : i64, scratch_operands = 0 : i64, tpu.core_type = #tpu.core_type<tc>, window_params = [{transform_indices = @transform_0, window_bounds = array<i64: 1, 2, 3, 128>}, {pipeline_mode = #tpu.pipeline_mode<synchronous>, transform_indices = @transform_1, window_bounds = array<i64: 4, 128, 48>}, {pipeline_mode = #tpu.pipeline_mode<synchronous>, transform_indices = @transform_2, window_bounds = array<i64: 1, 48>}, {transform_indices = @transform_3, window_bounds = array<i64: 1, 1, 2, 48>}]} {
    %c1_i32 = arith.constant 1 : i32
    %0 = arith.muli %arg1, %c1_i32 : i32
    %c0 = arith.constant 0 : index
    %c0_0 = arith.constant 0 : index
    %1 = vector.load %arg4[%c0, %c0_0] : memref<1x48xf32, #tpu.memory_space<vmem>>, vector<1x48xf32>
    %cst = arith.constant 0.000000e+00 : f32
    %2 = vector.broadcast %cst : f32 to vector<2x48xf32>
    %c0_i32 = arith.constant 0 : i32
    %3 = arith.addi %0, %c0_i32 : i32
    %c0_i32_1 = arith.constant 0 : i32
    %4 = arith.addi %3, %c0_i32_1 : i32
    %c0_2 = arith.constant 0 : index
    %5 = arith.index_cast %4 : i32 to index
    %c0_3 = arith.constant 0 : index
    %c0_4 = arith.constant 0 : index
    %6 = vector.load %arg2[%c0_2, %5, %c0_3, %c0_4] : memref<1x2x3x128xbf16, #tpu.memory_space<vmem>>, vector<1x1x2x128xbf16>
    %7 = vector.shape_cast %6 : vector<1x1x2x128xbf16> to vector<2x128xbf16>
    %c0_5 = arith.constant 0 : index
    %c0_6 = arith.constant 0 : index
    %c0_7 = arith.constant 0 : index
    %8 = vector.load %arg3[%c0_5, %c0_6, %c0_7] : memref<4x128x48xbf16, #tpu.memory_space<vmem>>, vector<1x128x48xbf16>
    %9 = vector.shape_cast %8 : vector<1x128x48xbf16> to vector<128x48xbf16>
    %cst_8 = arith.constant dense<0.000000e+00> : vector<2x48xf32>
    %10 = tpu.matmul %7, %9, %cst_8 {dimension_numbers = #tpu.dot_dimension_numbers<[1], [0], [0], [1], [0, 0, 1, 1], [], []>} : vector<2x128xbf16>, vector<128x48xbf16>, vector<2x48xf32> -> vector<2x48xf32>
    %11 = arith.addf %2, %10 : vector<2x48xf32>
    %c0_i32_9 = arith.constant 0 : i32
    %12 = arith.addi %0, %c0_i32_9 : i32
    %c0_i32_10 = arith.constant 0 : i32
    %13 = arith.addi %12, %c0_i32_10 : i32
    %c0_11 = arith.constant 0 : index
    %14 = arith.index_cast %13 : i32 to index
    %c1 = arith.constant 1 : index
    %c0_12 = arith.constant 0 : index
    %15 = vector.load %arg2[%c0_11, %14, %c1, %c0_12] : memref<1x2x3x128xbf16, #tpu.memory_space<vmem>>, vector<1x1x2x128xbf16>
    %16 = vector.shape_cast %15 : vector<1x1x2x128xbf16> to vector<2x128xbf16>
    %c1_13 = arith.constant 1 : index
    %c0_14 = arith.constant 0 : index
    %c0_15 = arith.constant 0 : index
    %17 = vector.load %arg3[%c1_13, %c0_14, %c0_15] : memref<4x128x48xbf16, #tpu.memory_space<vmem>>, vector<1x128x48xbf16>
    %18 = vector.shape_cast %17 : vector<1x128x48xbf16> to vector<128x48xbf16>
    %cst_16 = arith.constant dense<0.000000e+00> : vector<2x48xf32>
    %19 = tpu.matmul %16, %18, %cst_16 {dimension_numbers = #tpu.dot_dimension_numbers<[1], [0], [0], [1], [0, 0, 1, 1], [], []>} : vector<2x128xbf16>, vector<128x48xbf16>, vector<2x48xf32> -> vector<2x48xf32>
    %20 = arith.addf %11, %19 : vector<2x48xf32>
    %c0_i32_17 = arith.constant 0 : i32
    %21 = arith.addi %0, %c0_i32_17 : i32
    %c1_i32_18 = arith.constant 1 : i32
    %22 = arith.addi %21, %c1_i32_18 : i32
    %c0_19 = arith.constant 0 : index
    %23 = arith.index_cast %22 : i32 to index
    %c0_20 = arith.constant 0 : index
    %c0_21 = arith.constant 0 : index
    %24 = vector.load %arg2[%c0_19, %23, %c0_20, %c0_21] : memref<1x2x3x128xbf16, #tpu.memory_space<vmem>>, vector<1x1x2x128xbf16>
    %25 = vector.shape_cast %24 : vector<1x1x2x128xbf16> to vector<2x128xbf16>
    %c2 = arith.constant 2 : index
    %c0_22 = arith.constant 0 : index
    %c0_23 = arith.constant 0 : index
    %26 = vector.load %arg3[%c2, %c0_22, %c0_23] : memref<4x128x48xbf16, #tpu.memory_space<vmem>>, vector<1x128x48xbf16>
    %27 = vector.shape_cast %26 : vector<1x128x48xbf16> to vector<128x48xbf16>
    %cst_24 = arith.constant dense<0.000000e+00> : vector<2x48xf32>
    %28 = tpu.matmul %25, %27, %cst_24 {dimension_numbers = #tpu.dot_dimension_numbers<[1], [0], [0], [1], [0, 0, 1, 1], [], []>} : vector<2x128xbf16>, vector<128x48xbf16>, vector<2x48xf32> -> vector<2x48xf32>
    %29 = arith.addf %20, %28 : vector<2x48xf32>
    %c0_i32_25 = arith.constant 0 : i32
    %30 = arith.addi %0, %c0_i32_25 : i32
    %c1_i32_26 = arith.constant 1 : i32
    %31 = arith.addi %30, %c1_i32_26 : i32
    %c0_27 = arith.constant 0 : index
    %32 = arith.index_cast %31 : i32 to index
    %c1_28 = arith.constant 1 : index
    %c0_29 = arith.constant 0 : index
    %33 = vector.load %arg2[%c0_27, %32, %c1_28, %c0_29] : memref<1x2x3x128xbf16, #tpu.memory_space<vmem>>, vector<1x1x2x128xbf16>
    %34 = vector.shape_cast %33 : vector<1x1x2x128xbf16> to vector<2x128xbf16>
    %c3 = arith.constant 3 : index
    %c0_30 = arith.constant 0 : index
    %c0_31 = arith.constant 0 : index
    %35 = vector.load %arg3[%c3, %c0_30, %c0_31] : memref<4x128x48xbf16, #tpu.memory_space<vmem>>, vector<1x128x48xbf16>
    %36 = vector.shape_cast %35 : vector<1x128x48xbf16> to vector<128x48xbf16>
    %cst_32 = arith.constant dense<0.000000e+00> : vector<2x48xf32>
    %37 = tpu.matmul %34, %36, %cst_32 {dimension_numbers = #tpu.dot_dimension_numbers<[1], [0], [0], [1], [0, 0, 1, 1], [], []>} : vector<2x128xbf16>, vector<128x48xbf16>, vector<2x48xf32> -> vector<2x48xf32>
    %38 = arith.addf %29, %37 : vector<2x48xf32>
    %39 = vector.broadcast %1 : vector<1x48xf32> to vector<2x48xf32>
    %40 = arith.addf %38, %39 : vector<2x48xf32>
    %cst_33 = arith.constant 0.000000e+00 : f32
    %41 = vector.broadcast %cst_33 : f32 to vector<2x48xf32>
    %42 = arith.maximumf %40, %41 : vector<2x48xf32>
    %43 = arith.truncf %42 : vector<2x48xf32> to vector<2x48xbf16>
    %c0_34 = arith.constant 0 : index
    %c0_35 = arith.constant 0 : index
    %c0_36 = arith.constant 0 : index
    %c0_37 = arith.constant 0 : index
    %44 = vector.load %arg5[%c0_34, %c0_35, %c0_36, %c0_37] : memref<1x1x2x48xbf16, #tpu.memory_space<vmem>>, vector<1x1x2x48xbf16>
    %45 = vector.shape_cast %44 : vector<1x1x2x48xbf16> to vector<2x48xbf16>
    %46 = vector.shape_cast %43 : vector<2x48xbf16> to vector<1x1x2x48xbf16>
    tpu.vector_store %arg5[%c0_34, %c0_35, %c0_36, %c0_37], %46 {strides = array<i32>} : memref<1x1x2x48xbf16, #tpu.memory_space<vmem>>, vector<1x1x2x48xbf16>,
    return
  }
  func.func @transform_0(%arg0: i32, %arg1: i32) -> (i32, i32, i32, i32) {
    %c0_i32 = arith.constant 0 : i32
    %c0_i32_0 = arith.constant 0 : i32
    %c0_i32_1 = arith.constant 0 : i32
    %c0_i32_2 = arith.constant 0 : i32
    return %arg0, %c0_i32, %c0_i32_0, %c0_i32_1 : i32, i32, i32, i32
  }
  func.func @transform_1(%arg0: i32, %arg1: i32) -> (i32, i32, i32) {
    %c0_i32 = arith.constant 0 : i32
    %c0_i32_0 = arith.constant 0 : i32
    %c0_i32_1 = arith.constant 0 : i32
    %c0_i32_2 = arith.constant 0 : i32
    return %c0_i32, %c0_i32_0, %c0_i32_1 : i32, i32, i32
  }
  func.func @transform_2(%arg0: i32, %arg1: i32) -> (i32, i32) {
    %c0_i32 = arith.constant 0 : i32
    %c0_i32_0 = arith.constant 0 : i32
    %c0_i32_1 = arith.constant 0 : i32
    return %c0_i32, %c0_i32_0 : i32, i32
  }
  func.func @transform_3(%arg0: i32, %arg1: i32) -> (i32, i32, i32, i32) {
    %c0_i32 = arith.constant 0 : i32
    %c0_i32_0 = arith.constant 0 : i32
    %c0_i32_1 = arith.constant 0 : i32
    return %arg0, %arg1, %c0_i32, %c0_i32_0 : i32, i32, i32, i32
  }
}

module attributes {stable_mosaic.version = 11 : i64} {
  func.func @_conv_kernel(%arg0: i32, %arg1: i32, %arg2: memref<1x1x2x48xbf16, #tpu.memory_space<vmem>>, %arg3: memref<1x48x64xbf16, #tpu.memory_space<vmem>>, %arg4: memref<1x64xf32, #tpu.memory_space<vmem>>, %arg5: memref<1x1x2x64xbf16, #tpu.memory_space<vmem>>) attributes {dimension_semantics = [#tpu.dimension_semantics<parallel>, #tpu.dimension_semantics<parallel>], iteration_bounds = array<i64: 2, 1>, scalar_prefetch = 0 : i64, scratch_operands = 0 : i64, tpu.core_type = #tpu.core_type<tc>, window_params = [{transform_indices = @transform_0, window_bounds = array<i64: 1, 1, 2, 48>}, {pipeline_mode = #tpu.pipeline_mode<synchronous>, transform_indices = @transform_1, window_bounds = array<i64: 1, 48, 64>}, {pipeline_mode = #tpu.pipeline_mode<synchronous>, transform_indices = @transform_2, window_bounds = array<i64: 1, 64>}, {transform_indices = @transform_3, window_bounds = array<i64: 1, 1, 2, 64>}]} {
    %c1_i32 = arith.constant 1 : i32
    %0 = arith.muli %arg1, %c1_i32 : i32
    %c0 = arith.constant 0 : index
    %c0_0 = arith.constant 0 : index
    %1 = vector.load %arg4[%c0, %c0_0] : memref<1x64xf32, #tpu.memory_space<vmem>>, vector<1x64xf32>
    %cst = arith.constant 0.000000e+00 : f32
    %2 = vector.broadcast %cst : f32 to vector<2x64xf32>
    %c0_i32 = arith.constant 0 : i32
    %3 = arith.addi %0, %c0_i32 : i32
    %c0_i32_1 = arith.constant 0 : i32
    %4 = arith.addi %3, %c0_i32_1 : i32
    %c0_2 = arith.constant 0 : index
    %5 = arith.index_cast %4 : i32 to index
    %c0_3 = arith.constant 0 : index
    %c0_4 = arith.constant 0 : index
    %6 = vector.load %arg2[%c0_2, %5, %c0_3, %c0_4] : memref<1x1x2x48xbf16, #tpu.memory_space<vmem>>, vector<1x1x2x48xbf16>
    %7 = vector.shape_cast %6 : vector<1x1x2x48xbf16> to vector<2x48xbf16>
    %c0_5 = arith.constant 0 : index
    %c0_6 = arith.constant 0 : index
    %c0_7 = arith.constant 0 : index
    %8 = vector.load %arg3[%c0_5, %c0_6, %c0_7] : memref<1x48x64xbf16, #tpu.memory_space<vmem>>, vector<1x48x64xbf16>
    %9 = vector.shape_cast %8 : vector<1x48x64xbf16> to vector<48x64xbf16>
    %cst_8 = arith.constant dense<0.000000e+00> : vector<2x64xf32>
    %10 = tpu.matmul %7, %9, %cst_8 {dimension_numbers = #tpu.dot_dimension_numbers<[1], [0], [0], [1], [0, 0, 1, 1], [], []>} : vector<2x48xbf16>, vector<48x64xbf16>, vector<2x64xf32> -> vector<2x64xf32>
    %11 = arith.addf %2, %10 : vector<2x64xf32>
    %12 = vector.broadcast %1 : vector<1x64xf32> to vector<2x64xf32>
    %13 = arith.addf %11, %12 : vector<2x64xf32>
    %cst_9 = arith.constant 0.000000e+00 : f32
    %14 = vector.broadcast %cst_9 : f32 to vector<2x64xf32>
    %15 = arith.maximumf %13, %14 : vector<2x64xf32>
    %16 = arith.truncf %15 : vector<2x64xf32> to vector<2x64xbf16>
    %c0_10 = arith.constant 0 : index
    %c0_11 = arith.constant 0 : index
    %c0_12 = arith.constant 0 : index
    %c0_13 = arith.constant 0 : index
    %17 = vector.load %arg5[%c0_10, %c0_11, %c0_12, %c0_13] : memref<1x1x2x64xbf16, #tpu.memory_space<vmem>>, vector<1x1x2x64xbf16>
    %18 = vector.shape_cast %17 : vector<1x1x2x64xbf16> to vector<2x64xbf16>
    %19 = vector.shape_cast %16 : vector<2x64xbf16> to vector<1x1x2x64xbf16>
    tpu.vector_store %arg5[%c0_10, %c0_11, %c0_12, %c0_13], %19 {strides = array<i32>} : memref<1x1x2x64xbf16, #tpu.memory_space<vmem>>, vector<1x1x2x64xbf16>,
    return
  }
  func.func @transform_0(%arg0: i32, %arg1: i32) -> (i32, i32, i32, i32) {
    %c0_i32 = arith.constant 0 : i32
    %c0_i32_0 = arith.constant 0 : i32
    %c0_i32_1 = arith.constant 0 : i32
    %c0_i32_2 = arith.constant 0 : i32
    return %arg0, %c0_i32, %c0_i32_0, %c0_i32_1 : i32, i32, i32, i32
  }
  func.func @transform_1(%arg0: i32, %arg1: i32) -> (i32, i32, i32) {
    %c0_i32 = arith.constant 0 : i32
    %c0_i32_0 = arith.constant 0 : i32
    %c0_i32_1 = arith.constant 0 : i32
    %c0_i32_2 = arith.constant 0 : i32
    return %c0_i32, %c0_i32_0, %c0_i32_1 : i32, i32, i32
  }
  func.func @transform_2(%arg0: i32, %arg1: i32) -> (i32, i32) {
    %c0_i32 = arith.constant 0 : i32
    %c0_i32_0 = arith.constant 0 : i32
    %c0_i32_1 = arith.constant 0 : i32
    return %c0_i32, %c0_i32_0 : i32, i32
  }
  func.func @transform_3(%arg0: i32, %arg1: i32) -> (i32, i32, i32, i32) {
    %c0_i32 = arith.constant 0 : i32
    %c0_i32_0 = arith.constant 0 : i32
    %c0_i32_1 = arith.constant 0 : i32
    return %arg0, %arg1, %c0_i32, %c0_i32_0 : i32, i32, i32, i32
  }
}

module attributes {stable_mosaic.version = 11 : i64} {
  func.func @_conv_kernel(%arg0: i32, %arg1: i32, %arg2: memref<1x3x4x64xbf16, #tpu.memory_space<vmem>>, %arg3: memref<9x64x72xbf16, #tpu.memory_space<vmem>>, %arg4: memref<1x72xf32, #tpu.memory_space<vmem>>, %arg5: memref<1x1x2x72xf32, #tpu.memory_space<vmem>>) attributes {dimension_semantics = [#tpu.dimension_semantics<parallel>, #tpu.dimension_semantics<parallel>], iteration_bounds = array<i64: 2, 1>, scalar_prefetch = 0 : i64, scratch_operands = 0 : i64, tpu.core_type = #tpu.core_type<tc>, window_params = [{transform_indices = @transform_0, window_bounds = array<i64: 1, 3, 4, 64>}, {pipeline_mode = #tpu.pipeline_mode<synchronous>, transform_indices = @transform_1, window_bounds = array<i64: 9, 64, 72>}, {pipeline_mode = #tpu.pipeline_mode<synchronous>, transform_indices = @transform_2, window_bounds = array<i64: 1, 72>}, {transform_indices = @transform_3, window_bounds = array<i64: 1, 1, 2, 72>}]} {
    %c1_i32 = arith.constant 1 : i32
    %0 = arith.muli %arg1, %c1_i32 : i32
    %c0 = arith.constant 0 : index
    %c0_0 = arith.constant 0 : index
    %1 = vector.load %arg4[%c0, %c0_0] : memref<1x72xf32, #tpu.memory_space<vmem>>, vector<1x72xf32>
    %cst = arith.constant 0.000000e+00 : f32
    %2 = vector.broadcast %cst : f32 to vector<2x72xf32>
    %c0_i32 = arith.constant 0 : i32
    %3 = arith.addi %0, %c0_i32 : i32
    %c0_i32_1 = arith.constant 0 : i32
    %4 = arith.addi %3, %c0_i32_1 : i32
    %c0_2 = arith.constant 0 : index
    %5 = arith.index_cast %4 : i32 to index
    %c0_3 = arith.constant 0 : index
    %c0_4 = arith.constant 0 : index
    %6 = vector.load %arg2[%c0_2, %5, %c0_3, %c0_4] : memref<1x3x4x64xbf16, #tpu.memory_space<vmem>>, vector<1x1x2x64xbf16>
    %7 = vector.shape_cast %6 : vector<1x1x2x64xbf16> to vector<2x64xbf16>
    %c0_5 = arith.constant 0 : index
    %c0_6 = arith.constant 0 : index
    %c0_7 = arith.constant 0 : index
    %8 = vector.load %arg3[%c0_5, %c0_6, %c0_7] : memref<9x64x72xbf16, #tpu.memory_space<vmem>>, vector<1x64x72xbf16>
    %9 = vector.shape_cast %8 : vector<1x64x72xbf16> to vector<64x72xbf16>
    %cst_8 = arith.constant dense<0.000000e+00> : vector<2x72xf32>
    %10 = tpu.matmul %7, %9, %cst_8 {dimension_numbers = #tpu.dot_dimension_numbers<[1], [0], [0], [1], [0, 0, 1, 1], [], []>} : vector<2x64xbf16>, vector<64x72xbf16>, vector<2x72xf32> -> vector<2x72xf32>
    %11 = arith.addf %2, %10 : vector<2x72xf32>
    %c0_i32_9 = arith.constant 0 : i32
    %12 = arith.addi %0, %c0_i32_9 : i32
    %c0_i32_10 = arith.constant 0 : i32
    %13 = arith.addi %12, %c0_i32_10 : i32
    %c0_11 = arith.constant 0 : index
    %14 = arith.index_cast %13 : i32 to index
    %c1 = arith.constant 1 : index
    %c0_12 = arith.constant 0 : index
    %15 = vector.load %arg2[%c0_11, %14, %c1, %c0_12] : memref<1x3x4x64xbf16, #tpu.memory_space<vmem>>, vector<1x1x2x64xbf16>
    %16 = vector.shape_cast %15 : vector<1x1x2x64xbf16> to vector<2x64xbf16>
    %c1_13 = arith.constant 1 : index
    %c0_14 = arith.constant 0 : index
    %c0_15 = arith.constant 0 : index
    %17 = vector.load %arg3[%c1_13, %c0_14, %c0_15] : memref<9x64x72xbf16, #tpu.memory_space<vmem>>, vector<1x64x72xbf16>
    %18 = vector.shape_cast %17 : vector<1x64x72xbf16> to vector<64x72xbf16>
    %cst_16 = arith.constant dense<0.000000e+00> : vector<2x72xf32>
    %19 = tpu.matmul %16, %18, %cst_16 {dimension_numbers = #tpu.dot_dimension_numbers<[1], [0], [0], [1], [0, 0, 1, 1], [], []>} : vector<2x64xbf16>, vector<64x72xbf16>, vector<2x72xf32> -> vector<2x72xf32>
    %20 = arith.addf %11, %19 : vector<2x72xf32>
    %c0_i32_17 = arith.constant 0 : i32
    %21 = arith.addi %0, %c0_i32_17 : i32
    %c0_i32_18 = arith.constant 0 : i32
    %22 = arith.addi %21, %c0_i32_18 : i32
    %c0_19 = arith.constant 0 : index
    %23 = arith.index_cast %22 : i32 to index
    %c2 = arith.constant 2 : index
    %c0_20 = arith.constant 0 : index
    %24 = vector.load %arg2[%c0_19, %23, %c2, %c0_20] : memref<1x3x4x64xbf16, #tpu.memory_space<vmem>>, vector<1x1x2x64xbf16>
    %25 = vector.shape_cast %24 : vector<1x1x2x64xbf16> to vector<2x64xbf16>
    %c2_21 = arith.constant 2 : index
    %c0_22 = arith.constant 0 : index
    %c0_23 = arith.constant 0 : index
    %26 = vector.load %arg3[%c2_21, %c0_22, %c0_23] : memref<9x64x72xbf16, #tpu.memory_space<vmem>>, vector<1x64x72xbf16>
    %27 = vector.shape_cast %26 : vector<1x64x72xbf16> to vector<64x72xbf16>
    %cst_24 = arith.constant dense<0.000000e+00> : vector<2x72xf32>
    %28 = tpu.matmul %25, %27, %cst_24 {dimension_numbers = #tpu.dot_dimension_numbers<[1], [0], [0], [1], [0, 0, 1, 1], [], []>} : vector<2x64xbf16>, vector<64x72xbf16>, vector<2x72xf32> -> vector<2x72xf32>
    %29 = arith.addf %20, %28 : vector<2x72xf32>
    %c0_i32_25 = arith.constant 0 : i32
    %30 = arith.addi %0, %c0_i32_25 : i32
    %c1_i32_26 = arith.constant 1 : i32
    %31 = arith.addi %30, %c1_i32_26 : i32
    %c0_27 = arith.constant 0 : index
    %32 = arith.index_cast %31 : i32 to index
    %c0_28 = arith.constant 0 : index
    %c0_29 = arith.constant 0 : index
    %33 = vector.load %arg2[%c0_27, %32, %c0_28, %c0_29] : memref<1x3x4x64xbf16, #tpu.memory_space<vmem>>, vector<1x1x2x64xbf16>
    %34 = vector.shape_cast %33 : vector<1x1x2x64xbf16> to vector<2x64xbf16>
    %c3 = arith.constant 3 : index
    %c0_30 = arith.constant 0 : index
    %c0_31 = arith.constant 0 : index
    %35 = vector.load %arg3[%c3, %c0_30, %c0_31] : memref<9x64x72xbf16, #tpu.memory_space<vmem>>, vector<1x64x72xbf16>
    %36 = vector.shape_cast %35 : vector<1x64x72xbf16> to vector<64x72xbf16>
    %cst_32 = arith.constant dense<0.000000e+00> : vector<2x72xf32>
    %37 = tpu.matmul %34, %36, %cst_32 {dimension_numbers = #tpu.dot_dimension_numbers<[1], [0], [0], [1], [0, 0, 1, 1], [], []>} : vector<2x64xbf16>, vector<64x72xbf16>, vector<2x72xf32> -> vector<2x72xf32>
    %38 = arith.addf %29, %37 : vector<2x72xf32>
    %c0_i32_33 = arith.constant 0 : i32
    %39 = arith.addi %0, %c0_i32_33 : i32
    %c1_i32_34 = arith.constant 1 : i32
    %40 = arith.addi %39, %c1_i32_34 : i32
    %c0_35 = arith.constant 0 : index
    %41 = arith.index_cast %40 : i32 to index
    %c1_36 = arith.constant 1 : index
    %c0_37 = arith.constant 0 : index
    %42 = vector.load %arg2[%c0_35, %41, %c1_36, %c0_37] : memref<1x3x4x64xbf16, #tpu.memory_space<vmem>>, vector<1x1x2x64xbf16>
    %43 = vector.shape_cast %42 : vector<1x1x2x64xbf16> to vector<2x64xbf16>
    %c4 = arith.constant 4 : index
    %c0_38 = arith.constant 0 : index
    %c0_39 = arith.constant 0 : index
    %44 = vector.load %arg3[%c4, %c0_38, %c0_39] : memref<9x64x72xbf16, #tpu.memory_space<vmem>>, vector<1x64x72xbf16>
    %45 = vector.shape_cast %44 : vector<1x64x72xbf16> to vector<64x72xbf16>
    %cst_40 = arith.constant dense<0.000000e+00> : vector<2x72xf32>
    %46 = tpu.matmul %43, %45, %cst_40 {dimension_numbers = #tpu.dot_dimension_numbers<[1], [0], [0], [1], [0, 0, 1, 1], [], []>} : vector<2x64xbf16>, vector<64x72xbf16>, vector<2x72xf32> -> vector<2x72xf32>
    %47 = arith.addf %38, %46 : vector<2x72xf32>
    %c0_i32_41 = arith.constant 0 : i32
    %48 = arith.addi %0, %c0_i32_41 : i32
    %c1_i32_42 = arith.constant 1 : i32
    %49 = arith.addi %48, %c1_i32_42 : i32
    %c0_43 = arith.constant 0 : index
    %50 = arith.index_cast %49 : i32 to index
    %c2_44 = arith.constant 2 : index
    %c0_45 = arith.constant 0 : index
    %51 = vector.load %arg2[%c0_43, %50, %c2_44, %c0_45] : memref<1x3x4x64xbf16, #tpu.memory_space<vmem>>, vector<1x1x2x64xbf16>
    %52 = vector.shape_cast %51 : vector<1x1x2x64xbf16> to vector<2x64xbf16>
    %c5 = arith.constant 5 : index
    %c0_46 = arith.constant 0 : index
    %c0_47 = arith.constant 0 : index
    %53 = vector.load %arg3[%c5, %c0_46, %c0_47] : memref<9x64x72xbf16, #tpu.memory_space<vmem>>, vector<1x64x72xbf16>
    %54 = vector.shape_cast %53 : vector<1x64x72xbf16> to vector<64x72xbf16>
    %cst_48 = arith.constant dense<0.000000e+00> : vector<2x72xf32>
    %55 = tpu.matmul %52, %54, %cst_48 {dimension_numbers = #tpu.dot_dimension_numbers<[1], [0], [0], [1], [0, 0, 1, 1], [], []>} : vector<2x64xbf16>, vector<64x72xbf16>, vector<2x72xf32> -> vector<2x72xf32>
    %56 = arith.addf %47, %55 : vector<2x72xf32>
    %c0_i32_49 = arith.constant 0 : i32
    %57 = arith.addi %0, %c0_i32_49 : i32
    %c2_i32 = arith.constant 2 : i32
    %58 = arith.addi %57, %c2_i32 : i32
    %c0_50 = arith.constant 0 : index
    %59 = arith.index_cast %58 : i32 to index
    %c0_51 = arith.constant 0 : index
    %c0_52 = arith.constant 0 : index
    %60 = vector.load %arg2[%c0_50, %59, %c0_51, %c0_52] : memref<1x3x4x64xbf16, #tpu.memory_space<vmem>>, vector<1x1x2x64xbf16>
    %61 = vector.shape_cast %60 : vector<1x1x2x64xbf16> to vector<2x64xbf16>
    %c6 = arith.constant 6 : index
    %c0_53 = arith.constant 0 : index
    %c0_54 = arith.constant 0 : index
    %62 = vector.load %arg3[%c6, %c0_53, %c0_54] : memref<9x64x72xbf16, #tpu.memory_space<vmem>>, vector<1x64x72xbf16>
    %63 = vector.shape_cast %62 : vector<1x64x72xbf16> to vector<64x72xbf16>
    %cst_55 = arith.constant dense<0.000000e+00> : vector<2x72xf32>
    %64 = tpu.matmul %61, %63, %cst_55 {dimension_numbers = #tpu.dot_dimension_numbers<[1], [0], [0], [1], [0, 0, 1, 1], [], []>} : vector<2x64xbf16>, vector<64x72xbf16>, vector<2x72xf32> -> vector<2x72xf32>
    %65 = arith.addf %56, %64 : vector<2x72xf32>
    %c0_i32_56 = arith.constant 0 : i32
    %66 = arith.addi %0, %c0_i32_56 : i32
    %c2_i32_57 = arith.constant 2 : i32
    %67 = arith.addi %66, %c2_i32_57 : i32
    %c0_58 = arith.constant 0 : index
    %68 = arith.index_cast %67 : i32 to index
    %c1_59 = arith.constant 1 : index
    %c0_60 = arith.constant 0 : index
    %69 = vector.load %arg2[%c0_58, %68, %c1_59, %c0_60] : memref<1x3x4x64xbf16, #tpu.memory_space<vmem>>, vector<1x1x2x64xbf16>
    %70 = vector.shape_cast %69 : vector<1x1x2x64xbf16> to vector<2x64xbf16>
    %c7 = arith.constant 7 : index
    %c0_61 = arith.constant 0 : index
    %c0_62 = arith.constant 0 : index
    %71 = vector.load %arg3[%c7, %c0_61, %c0_62] : memref<9x64x72xbf16, #tpu.memory_space<vmem>>, vector<1x64x72xbf16>
    %72 = vector.shape_cast %71 : vector<1x64x72xbf16> to vector<64x72xbf16>
    %cst_63 = arith.constant dense<0.000000e+00> : vector<2x72xf32>
    %73 = tpu.matmul %70, %72, %cst_63 {dimension_numbers = #tpu.dot_dimension_numbers<[1], [0], [0], [1], [0, 0, 1, 1], [], []>} : vector<2x64xbf16>, vector<64x72xbf16>, vector<2x72xf32> -> vector<2x72xf32>
    %74 = arith.addf %65, %73 : vector<2x72xf32>
    %c0_i32_64 = arith.constant 0 : i32
    %75 = arith.addi %0, %c0_i32_64 : i32
    %c2_i32_65 = arith.constant 2 : i32
    %76 = arith.addi %75, %c2_i32_65 : i32
    %c0_66 = arith.constant 0 : index
    %77 = arith.index_cast %76 : i32 to index
    %c2_67 = arith.constant 2 : index
    %c0_68 = arith.constant 0 : index
    %78 = vector.load %arg2[%c0_66, %77, %c2_67, %c0_68] : memref<1x3x4x64xbf16, #tpu.memory_space<vmem>>, vector<1x1x2x64xbf16>
    %79 = vector.shape_cast %78 : vector<1x1x2x64xbf16> to vector<2x64xbf16>
    %c8 = arith.constant 8 : index
    %c0_69 = arith.constant 0 : index
    %c0_70 = arith.constant 0 : index
    %80 = vector.load %arg3[%c8, %c0_69, %c0_70] : memref<9x64x72xbf16, #tpu.memory_space<vmem>>, vector<1x64x72xbf16>
    %81 = vector.shape_cast %80 : vector<1x64x72xbf16> to vector<64x72xbf16>
    %cst_71 = arith.constant dense<0.000000e+00> : vector<2x72xf32>
    %82 = tpu.matmul %79, %81, %cst_71 {dimension_numbers = #tpu.dot_dimension_numbers<[1], [0], [0], [1], [0, 0, 1, 1], [], []>} : vector<2x64xbf16>, vector<64x72xbf16>, vector<2x72xf32> -> vector<2x72xf32>
    %83 = arith.addf %74, %82 : vector<2x72xf32>
    %84 = vector.broadcast %1 : vector<1x72xf32> to vector<2x72xf32>
    %85 = arith.addf %83, %84 : vector<2x72xf32>
    %c0_72 = arith.constant 0 : index
    %c0_73 = arith.constant 0 : index
    %c0_74 = arith.constant 0 : index
    %c0_75 = arith.constant 0 : index
    %86 = vector.load %arg5[%c0_72, %c0_73, %c0_74, %c0_75] : memref<1x1x2x72xf32, #tpu.memory_space<vmem>>, vector<1x1x2x72xf32>
    %87 = vector.shape_cast %86 : vector<1x1x2x72xf32> to vector<2x72xf32>
    %88 = vector.shape_cast %85 : vector<2x72xf32> to vector<1x1x2x72xf32>
    tpu.vector_store %arg5[%c0_72, %c0_73, %c0_74, %c0_75], %88 {strides = array<i32>} : memref<1x1x2x72xf32, #tpu.memory_space<vmem>>, vector<1x1x2x72xf32>,
    return
  }
  func.func @transform_0(%arg0: i32, %arg1: i32) -> (i32, i32, i32, i32) {
    %c0_i32 = arith.constant 0 : i32
    %c0_i32_0 = arith.constant 0 : i32
    %c0_i32_1 = arith.constant 0 : i32
    %c0_i32_2 = arith.constant 0 : i32
    return %arg0, %c0_i32, %c0_i32_0, %c0_i32_1 : i32, i32, i32, i32
  }
  func.func @transform_1(%arg0: i32, %arg1: i32) -> (i32, i32, i32) {
    %c0_i32 = arith.constant 0 : i32
    %c0_i32_0 = arith.constant 0 : i32
    %c0_i32_1 = arith.constant 0 : i32
    %c0_i32_2 = arith.constant 0 : i32
    return %c0_i32, %c0_i32_0, %c0_i32_1 : i32, i32, i32
  }
  func.func @transform_2(%arg0: i32, %arg1: i32) -> (i32, i32) {
    %c0_i32 = arith.constant 0 : i32
    %c0_i32_0 = arith.constant 0 : i32
    %c0_i32_1 = arith.constant 0 : i32
    return %c0_i32, %c0_i32_0 : i32, i32
  }
  func.func @transform_3(%arg0: i32, %arg1: i32) -> (i32, i32, i32, i32) {
    %c0_i32 = arith.constant 0 : i32
    %c0_i32_0 = arith.constant 0 : i32
    %c0_i32_1 = arith.constant 0 : i32
    return %arg0, %arg1, %c0_i32, %c0_i32_0 : i32, i32, i32, i32
  }
}

module attributes {stable_mosaic.version = 11 : i64} {
  func.func @_conv_kernel(%arg0: i32, %arg1: i32, %arg2: memref<1x1x2x64xbf16, #tpu.memory_space<vmem>>, %arg3: memref<1x64x32xbf16, #tpu.memory_space<vmem>>, %arg4: memref<1x32xf32, #tpu.memory_space<vmem>>, %arg5: memref<1x1x2x32xbf16, #tpu.memory_space<vmem>>) attributes {dimension_semantics = [#tpu.dimension_semantics<parallel>, #tpu.dimension_semantics<parallel>], iteration_bounds = array<i64: 2, 1>, scalar_prefetch = 0 : i64, scratch_operands = 0 : i64, tpu.core_type = #tpu.core_type<tc>, window_params = [{transform_indices = @transform_0, window_bounds = array<i64: 1, 1, 2, 64>}, {pipeline_mode = #tpu.pipeline_mode<synchronous>, transform_indices = @transform_1, window_bounds = array<i64: 1, 64, 32>}, {pipeline_mode = #tpu.pipeline_mode<synchronous>, transform_indices = @transform_2, window_bounds = array<i64: 1, 32>}, {transform_indices = @transform_3, window_bounds = array<i64: 1, 1, 2, 32>}]} {
    %c1_i32 = arith.constant 1 : i32
    %0 = arith.muli %arg1, %c1_i32 : i32
    %c0 = arith.constant 0 : index
    %c0_0 = arith.constant 0 : index
    %1 = vector.load %arg4[%c0, %c0_0] : memref<1x32xf32, #tpu.memory_space<vmem>>, vector<1x32xf32>
    %cst = arith.constant 0.000000e+00 : f32
    %2 = vector.broadcast %cst : f32 to vector<2x32xf32>
    %c0_i32 = arith.constant 0 : i32
    %3 = arith.addi %0, %c0_i32 : i32
    %c0_i32_1 = arith.constant 0 : i32
    %4 = arith.addi %3, %c0_i32_1 : i32
    %c0_2 = arith.constant 0 : index
    %5 = arith.index_cast %4 : i32 to index
    %c0_3 = arith.constant 0 : index
    %c0_4 = arith.constant 0 : index
    %6 = vector.load %arg2[%c0_2, %5, %c0_3, %c0_4] : memref<1x1x2x64xbf16, #tpu.memory_space<vmem>>, vector<1x1x2x64xbf16>
    %7 = vector.shape_cast %6 : vector<1x1x2x64xbf16> to vector<2x64xbf16>
    %c0_5 = arith.constant 0 : index
    %c0_6 = arith.constant 0 : index
    %c0_7 = arith.constant 0 : index
    %8 = vector.load %arg3[%c0_5, %c0_6, %c0_7] : memref<1x64x32xbf16, #tpu.memory_space<vmem>>, vector<1x64x32xbf16>
    %9 = vector.shape_cast %8 : vector<1x64x32xbf16> to vector<64x32xbf16>
    %cst_8 = arith.constant dense<0.000000e+00> : vector<2x32xf32>
    %10 = tpu.matmul %7, %9, %cst_8 {dimension_numbers = #tpu.dot_dimension_numbers<[1], [0], [0], [1], [0, 0, 1, 1], [], []>} : vector<2x64xbf16>, vector<64x32xbf16>, vector<2x32xf32> -> vector<2x32xf32>
    %11 = arith.addf %2, %10 : vector<2x32xf32>
    %12 = vector.broadcast %1 : vector<1x32xf32> to vector<2x32xf32>
    %13 = arith.addf %11, %12 : vector<2x32xf32>
    %cst_9 = arith.constant 0.000000e+00 : f32
    %14 = vector.broadcast %cst_9 : f32 to vector<2x32xf32>
    %15 = arith.maximumf %13, %14 : vector<2x32xf32>
    %16 = arith.truncf %15 : vector<2x32xf32> to vector<2x32xbf16>
    %c0_10 = arith.constant 0 : index
    %c0_11 = arith.constant 0 : index
    %c0_12 = arith.constant 0 : index
    %c0_13 = arith.constant 0 : index
    %17 = vector.load %arg5[%c0_10, %c0_11, %c0_12, %c0_13] : memref<1x1x2x32xbf16, #tpu.memory_space<vmem>>, vector<1x1x2x32xbf16>
    %18 = vector.shape_cast %17 : vector<1x1x2x32xbf16> to vector<2x32xbf16>
    %19 = vector.shape_cast %16 : vector<2x32xbf16> to vector<1x1x2x32xbf16>
    tpu.vector_store %arg5[%c0_10, %c0_11, %c0_12, %c0_13], %19 {strides = array<i32>} : memref<1x1x2x32xbf16, #tpu.memory_space<vmem>>, vector<1x1x2x32xbf16>,
    return
  }
  func.func @transform_0(%arg0: i32, %arg1: i32) -> (i32, i32, i32, i32) {
    %c0_i32 = arith.constant 0 : i32
    %c0_i32_0 = arith.constant 0 : i32
    %c0_i32_1 = arith.constant 0 : i32
    %c0_i32_2 = arith.constant 0 : i32
    return %arg0, %c0_i32, %c0_i32_0, %c0_i32_1 : i32, i32, i32, i32
  }
  func.func @transform_1(%arg0: i32, %arg1: i32) -> (i32, i32, i32) {
    %c0_i32 = arith.constant 0 : i32
    %c0_i32_0 = arith.constant 0 : i32
    %c0_i32_1 = arith.constant 0 : i32
    %c0_i32_2 = arith.constant 0 : i32
    return %c0_i32, %c0_i32_0, %c0_i32_1 : i32, i32, i32
  }
  func.func @transform_2(%arg0: i32, %arg1: i32) -> (i32, i32) {
    %c0_i32 = arith.constant 0 : i32
    %c0_i32_0 = arith.constant 0 : i32
    %c0_i32_1 = arith.constant 0 : i32
    return %c0_i32, %c0_i32_0 : i32, i32
  }
  func.func @transform_3(%arg0: i32, %arg1: i32) -> (i32, i32, i32, i32) {
    %c0_i32 = arith.constant 0 : i32
    %c0_i32_0 = arith.constant 0 : i32
    %c0_i32_1 = arith.constant 0 : i32
    return %arg0, %arg1, %c0_i32, %c0_i32_0 : i32, i32, i32, i32
  }
}

module attributes {stable_mosaic.version = 11 : i64} {
  func.func @_conv_kernel(%arg0: i32, %arg1: i32, %arg2: memref<1x3x3x64xbf16, #tpu.memory_space<vmem>>, %arg3: memref<9x64x72xbf16, #tpu.memory_space<vmem>>, %arg4: memref<1x72xf32, #tpu.memory_space<vmem>>, %arg5: memref<1x1x1x72xf32, #tpu.memory_space<vmem>>) attributes {dimension_semantics = [#tpu.dimension_semantics<parallel>, #tpu.dimension_semantics<parallel>], iteration_bounds = array<i64: 2, 1>, scalar_prefetch = 0 : i64, scratch_operands = 0 : i64, tpu.core_type = #tpu.core_type<tc>, window_params = [{transform_indices = @transform_0, window_bounds = array<i64: 1, 3, 3, 64>}, {pipeline_mode = #tpu.pipeline_mode<synchronous>, transform_indices = @transform_1, window_bounds = array<i64: 9, 64, 72>}, {pipeline_mode = #tpu.pipeline_mode<synchronous>, transform_indices = @transform_2, window_bounds = array<i64: 1, 72>}, {transform_indices = @transform_3, window_bounds = array<i64: 1, 1, 1, 72>}]} {
    %c1_i32 = arith.constant 1 : i32
    %0 = arith.muli %arg1, %c1_i32 : i32
    %c0 = arith.constant 0 : index
    %c0_0 = arith.constant 0 : index
    %1 = vector.load %arg4[%c0, %c0_0] : memref<1x72xf32, #tpu.memory_space<vmem>>, vector<1x72xf32>
    %cst = arith.constant 0.000000e+00 : f32
    %2 = vector.broadcast %cst : f32 to vector<1x72xf32>
    %c0_i32 = arith.constant 0 : i32
    %3 = arith.addi %0, %c0_i32 : i32
    %c0_i32_1 = arith.constant 0 : i32
    %4 = arith.addi %3, %c0_i32_1 : i32
    %c0_2 = arith.constant 0 : index
    %5 = arith.index_cast %4 : i32 to index
    %c0_3 = arith.constant 0 : index
    %c0_4 = arith.constant 0 : index
    %6 = vector.load %arg2[%c0_2, %5, %c0_3, %c0_4] : memref<1x3x3x64xbf16, #tpu.memory_space<vmem>>, vector<1x1x1x64xbf16>
    %7 = vector.shape_cast %6 : vector<1x1x1x64xbf16> to vector<1x64xbf16>
    %c0_5 = arith.constant 0 : index
    %c0_6 = arith.constant 0 : index
    %c0_7 = arith.constant 0 : index
    %8 = vector.load %arg3[%c0_5, %c0_6, %c0_7] : memref<9x64x72xbf16, #tpu.memory_space<vmem>>, vector<1x64x72xbf16>
    %9 = vector.shape_cast %8 : vector<1x64x72xbf16> to vector<64x72xbf16>
    %cst_8 = arith.constant dense<0.000000e+00> : vector<1x72xf32>
    %10 = tpu.matmul %7, %9, %cst_8 {dimension_numbers = #tpu.dot_dimension_numbers<[1], [0], [0], [1], [0, 0, 1, 1], [], []>} : vector<1x64xbf16>, vector<64x72xbf16>, vector<1x72xf32> -> vector<1x72xf32>
    %11 = arith.addf %2, %10 : vector<1x72xf32>
    %c0_i32_9 = arith.constant 0 : i32
    %12 = arith.addi %0, %c0_i32_9 : i32
    %c0_i32_10 = arith.constant 0 : i32
    %13 = arith.addi %12, %c0_i32_10 : i32
    %c0_11 = arith.constant 0 : index
    %14 = arith.index_cast %13 : i32 to index
    %c1 = arith.constant 1 : index
    %c0_12 = arith.constant 0 : index
    %15 = vector.load %arg2[%c0_11, %14, %c1, %c0_12] : memref<1x3x3x64xbf16, #tpu.memory_space<vmem>>, vector<1x1x1x64xbf16>
    %16 = vector.shape_cast %15 : vector<1x1x1x64xbf16> to vector<1x64xbf16>
    %c1_13 = arith.constant 1 : index
    %c0_14 = arith.constant 0 : index
    %c0_15 = arith.constant 0 : index
    %17 = vector.load %arg3[%c1_13, %c0_14, %c0_15] : memref<9x64x72xbf16, #tpu.memory_space<vmem>>, vector<1x64x72xbf16>
    %18 = vector.shape_cast %17 : vector<1x64x72xbf16> to vector<64x72xbf16>
    %cst_16 = arith.constant dense<0.000000e+00> : vector<1x72xf32>
    %19 = tpu.matmul %16, %18, %cst_16 {dimension_numbers = #tpu.dot_dimension_numbers<[1], [0], [0], [1], [0, 0, 1, 1], [], []>} : vector<1x64xbf16>, vector<64x72xbf16>, vector<1x72xf32> -> vector<1x72xf32>
    %20 = arith.addf %11, %19 : vector<1x72xf32>
    %c0_i32_17 = arith.constant 0 : i32
    %21 = arith.addi %0, %c0_i32_17 : i32
    %c0_i32_18 = arith.constant 0 : i32
    %22 = arith.addi %21, %c0_i32_18 : i32
    %c0_19 = arith.constant 0 : index
    %23 = arith.index_cast %22 : i32 to index
    %c2 = arith.constant 2 : index
    %c0_20 = arith.constant 0 : index
    %24 = vector.load %arg2[%c0_19, %23, %c2, %c0_20] : memref<1x3x3x64xbf16, #tpu.memory_space<vmem>>, vector<1x1x1x64xbf16>
    %25 = vector.shape_cast %24 : vector<1x1x1x64xbf16> to vector<1x64xbf16>
    %c2_21 = arith.constant 2 : index
    %c0_22 = arith.constant 0 : index
    %c0_23 = arith.constant 0 : index
    %26 = vector.load %arg3[%c2_21, %c0_22, %c0_23] : memref<9x64x72xbf16, #tpu.memory_space<vmem>>, vector<1x64x72xbf16>
    %27 = vector.shape_cast %26 : vector<1x64x72xbf16> to vector<64x72xbf16>
    %cst_24 = arith.constant dense<0.000000e+00> : vector<1x72xf32>
    %28 = tpu.matmul %25, %27, %cst_24 {dimension_numbers = #tpu.dot_dimension_numbers<[1], [0], [0], [1], [0, 0, 1, 1], [], []>} : vector<1x64xbf16>, vector<64x72xbf16>, vector<1x72xf32> -> vector<1x72xf32>
    %29 = arith.addf %20, %28 : vector<1x72xf32>
    %c0_i32_25 = arith.constant 0 : i32
    %30 = arith.addi %0, %c0_i32_25 : i32
    %c1_i32_26 = arith.constant 1 : i32
    %31 = arith.addi %30, %c1_i32_26 : i32
    %c0_27 = arith.constant 0 : index
    %32 = arith.index_cast %31 : i32 to index
    %c0_28 = arith.constant 0 : index
    %c0_29 = arith.constant 0 : index
    %33 = vector.load %arg2[%c0_27, %32, %c0_28, %c0_29] : memref<1x3x3x64xbf16, #tpu.memory_space<vmem>>, vector<1x1x1x64xbf16>
    %34 = vector.shape_cast %33 : vector<1x1x1x64xbf16> to vector<1x64xbf16>
    %c3 = arith.constant 3 : index
    %c0_30 = arith.constant 0 : index
    %c0_31 = arith.constant 0 : index
    %35 = vector.load %arg3[%c3, %c0_30, %c0_31] : memref<9x64x72xbf16, #tpu.memory_space<vmem>>, vector<1x64x72xbf16>
    %36 = vector.shape_cast %35 : vector<1x64x72xbf16> to vector<64x72xbf16>
    %cst_32 = arith.constant dense<0.000000e+00> : vector<1x72xf32>
    %37 = tpu.matmul %34, %36, %cst_32 {dimension_numbers = #tpu.dot_dimension_numbers<[1], [0], [0], [1], [0, 0, 1, 1], [], []>} : vector<1x64xbf16>, vector<64x72xbf16>, vector<1x72xf32> -> vector<1x72xf32>
    %38 = arith.addf %29, %37 : vector<1x72xf32>
    %c0_i32_33 = arith.constant 0 : i32
    %39 = arith.addi %0, %c0_i32_33 : i32
    %c1_i32_34 = arith.constant 1 : i32
    %40 = arith.addi %39, %c1_i32_34 : i32
    %c0_35 = arith.constant 0 : index
    %41 = arith.index_cast %40 : i32 to index
    %c1_36 = arith.constant 1 : index
    %c0_37 = arith.constant 0 : index
    %42 = vector.load %arg2[%c0_35, %41, %c1_36, %c0_37] : memref<1x3x3x64xbf16, #tpu.memory_space<vmem>>, vector<1x1x1x64xbf16>
    %43 = vector.shape_cast %42 : vector<1x1x1x64xbf16> to vector<1x64xbf16>
    %c4 = arith.constant 4 : index
    %c0_38 = arith.constant 0 : index
    %c0_39 = arith.constant 0 : index
    %44 = vector.load %arg3[%c4, %c0_38, %c0_39] : memref<9x64x72xbf16, #tpu.memory_space<vmem>>, vector<1x64x72xbf16>
    %45 = vector.shape_cast %44 : vector<1x64x72xbf16> to vector<64x72xbf16>
    %cst_40 = arith.constant dense<0.000000e+00> : vector<1x72xf32>
    %46 = tpu.matmul %43, %45, %cst_40 {dimension_numbers = #tpu.dot_dimension_numbers<[1], [0], [0], [1], [0, 0, 1, 1], [], []>} : vector<1x64xbf16>, vector<64x72xbf16>, vector<1x72xf32> -> vector<1x72xf32>
    %47 = arith.addf %38, %46 : vector<1x72xf32>
    %c0_i32_41 = arith.constant 0 : i32
    %48 = arith.addi %0, %c0_i32_41 : i32
    %c1_i32_42 = arith.constant 1 : i32
    %49 = arith.addi %48, %c1_i32_42 : i32
    %c0_43 = arith.constant 0 : index
    %50 = arith.index_cast %49 : i32 to index
    %c2_44 = arith.constant 2 : index
    %c0_45 = arith.constant 0 : index
    %51 = vector.load %arg2[%c0_43, %50, %c2_44, %c0_45] : memref<1x3x3x64xbf16, #tpu.memory_space<vmem>>, vector<1x1x1x64xbf16>
    %52 = vector.shape_cast %51 : vector<1x1x1x64xbf16> to vector<1x64xbf16>
    %c5 = arith.constant 5 : index
    %c0_46 = arith.constant 0 : index
    %c0_47 = arith.constant 0 : index
    %53 = vector.load %arg3[%c5, %c0_46, %c0_47] : memref<9x64x72xbf16, #tpu.memory_space<vmem>>, vector<1x64x72xbf16>
    %54 = vector.shape_cast %53 : vector<1x64x72xbf16> to vector<64x72xbf16>
    %cst_48 = arith.constant dense<0.000000e+00> : vector<1x72xf32>
    %55 = tpu.matmul %52, %54, %cst_48 {dimension_numbers = #tpu.dot_dimension_numbers<[1], [0], [0], [1], [0, 0, 1, 1], [], []>} : vector<1x64xbf16>, vector<64x72xbf16>, vector<1x72xf32> -> vector<1x72xf32>
    %56 = arith.addf %47, %55 : vector<1x72xf32>
    %c0_i32_49 = arith.constant 0 : i32
    %57 = arith.addi %0, %c0_i32_49 : i32
    %c2_i32 = arith.constant 2 : i32
    %58 = arith.addi %57, %c2_i32 : i32
    %c0_50 = arith.constant 0 : index
    %59 = arith.index_cast %58 : i32 to index
    %c0_51 = arith.constant 0 : index
    %c0_52 = arith.constant 0 : index
    %60 = vector.load %arg2[%c0_50, %59, %c0_51, %c0_52] : memref<1x3x3x64xbf16, #tpu.memory_space<vmem>>, vector<1x1x1x64xbf16>
    %61 = vector.shape_cast %60 : vector<1x1x1x64xbf16> to vector<1x64xbf16>
    %c6 = arith.constant 6 : index
    %c0_53 = arith.constant 0 : index
    %c0_54 = arith.constant 0 : index
    %62 = vector.load %arg3[%c6, %c0_53, %c0_54] : memref<9x64x72xbf16, #tpu.memory_space<vmem>>, vector<1x64x72xbf16>
    %63 = vector.shape_cast %62 : vector<1x64x72xbf16> to vector<64x72xbf16>
    %cst_55 = arith.constant dense<0.000000e+00> : vector<1x72xf32>
    %64 = tpu.matmul %61, %63, %cst_55 {dimension_numbers = #tpu.dot_dimension_numbers<[1], [0], [0], [1], [0, 0, 1, 1], [], []>} : vector<1x64xbf16>, vector<64x72xbf16>, vector<1x72xf32> -> vector<1x72xf32>
    %65 = arith.addf %56, %64 : vector<1x72xf32>
    %c0_i32_56 = arith.constant 0 : i32
    %66 = arith.addi %0, %c0_i32_56 : i32
    %c2_i32_57 = arith.constant 2 : i32
    %67 = arith.addi %66, %c2_i32_57 : i32
    %c0_58 = arith.constant 0 : index
    %68 = arith.index_cast %67 : i32 to index
    %c1_59 = arith.constant 1 : index
    %c0_60 = arith.constant 0 : index
    %69 = vector.load %arg2[%c0_58, %68, %c1_59, %c0_60] : memref<1x3x3x64xbf16, #tpu.memory_space<vmem>>, vector<1x1x1x64xbf16>
    %70 = vector.shape_cast %69 : vector<1x1x1x64xbf16> to vector<1x64xbf16>
    %c7 = arith.constant 7 : index
    %c0_61 = arith.constant 0 : index
    %c0_62 = arith.constant 0 : index
    %71 = vector.load %arg3[%c7, %c0_61, %c0_62] : memref<9x64x72xbf16, #tpu.memory_space<vmem>>, vector<1x64x72xbf16>
    %72 = vector.shape_cast %71 : vector<1x64x72xbf16> to vector<64x72xbf16>
    %cst_63 = arith.constant dense<0.000000e+00> : vector<1x72xf32>
    %73 = tpu.matmul %70, %72, %cst_63 {dimension_numbers = #tpu.dot_dimension_numbers<[1], [0], [0], [1], [0, 0, 1, 1], [], []>} : vector<1x64xbf16>, vector<64x72xbf16>, vector<1x72xf32> -> vector<1x72xf32>
    %74 = arith.addf %65, %73 : vector<1x72xf32>
    %c0_i32_64 = arith.constant 0 : i32
    %75 = arith.addi %0, %c0_i32_64 : i32
    %c2_i32_65 = arith.constant 2 : i32
    %76 = arith.addi %75, %c2_i32_65 : i32
    %c0_66 = arith.constant 0 : index
    %77 = arith.index_cast %76 : i32 to index
    %c2_67 = arith.constant 2 : index
    %c0_68 = arith.constant 0 : index
    %78 = vector.load %arg2[%c0_66, %77, %c2_67, %c0_68] : memref<1x3x3x64xbf16, #tpu.memory_space<vmem>>, vector<1x1x1x64xbf16>
    %79 = vector.shape_cast %78 : vector<1x1x1x64xbf16> to vector<1x64xbf16>
    %c8 = arith.constant 8 : index
    %c0_69 = arith.constant 0 : index
    %c0_70 = arith.constant 0 : index
    %80 = vector.load %arg3[%c8, %c0_69, %c0_70] : memref<9x64x72xbf16, #tpu.memory_space<vmem>>, vector<1x64x72xbf16>
    %81 = vector.shape_cast %80 : vector<1x64x72xbf16> to vector<64x72xbf16>
    %cst_71 = arith.constant dense<0.000000e+00> : vector<1x72xf32>
    %82 = tpu.matmul %79, %81, %cst_71 {dimension_numbers = #tpu.dot_dimension_numbers<[1], [0], [0], [1], [0, 0, 1, 1], [], []>} : vector<1x64xbf16>, vector<64x72xbf16>, vector<1x72xf32> -> vector<1x72xf32>
    %83 = arith.addf %74, %82 : vector<1x72xf32>
    %84 = arith.addf %83, %1 : vector<1x72xf32>
    %c0_72 = arith.constant 0 : index
    %c0_73 = arith.constant 0 : index
    %c0_74 = arith.constant 0 : index
    %c0_75 = arith.constant 0 : index
    %85 = vector.load %arg5[%c0_72, %c0_73, %c0_74, %c0_75] : memref<1x1x1x72xf32, #tpu.memory_space<vmem>>, vector<1x1x1x72xf32>
    %86 = vector.shape_cast %85 : vector<1x1x1x72xf32> to vector<1x72xf32>
    %87 = vector.shape_cast %84 : vector<1x72xf32> to vector<1x1x1x72xf32>
    tpu.vector_store %arg5[%c0_72, %c0_73, %c0_74, %c0_75], %87 {strides = array<i32>} : memref<1x1x1x72xf32, #tpu.memory_space<vmem>>, vector<1x1x1x72xf32>,
    return
  }
  func.func @transform_0(%arg0: i32, %arg1: i32) -> (i32, i32, i32, i32) {
    %c0_i32 = arith.constant 0 : i32
    %c0_i32_0 = arith.constant 0 : i32
    %c0_i32_1 = arith.constant 0 : i32
    %c0_i32_2 = arith.constant 0 : i32
    return %arg0, %c0_i32, %c0_i32_0, %c0_i32_1 : i32, i32, i32, i32
  }
  func.func @transform_1(%arg0: i32, %arg1: i32) -> (i32, i32, i32) {
    %c0_i32 = arith.constant 0 : i32
    %c0_i32_0 = arith.constant 0 : i32
    %c0_i32_1 = arith.constant 0 : i32
    %c0_i32_2 = arith.constant 0 : i32
    return %c0_i32, %c0_i32_0, %c0_i32_1 : i32, i32, i32
  }
  func.func @transform_2(%arg0: i32, %arg1: i32) -> (i32, i32) {
    %c0_i32 = arith.constant 0 : i32
    %c0_i32_0 = arith.constant 0 : i32
    %c0_i32_1 = arith.constant 0 : i32
    return %c0_i32, %c0_i32_0 : i32, i32
  }
  func.func @transform_3(%arg0: i32, %arg1: i32) -> (i32, i32, i32, i32) {
    %c0_i32 = arith.constant 0 : i32
    %c0_i32_0 = arith.constant 0 : i32
    %c0_i32_1 = arith.constant 0 : i32
    return %arg0, %arg1, %c0_i32, %c0_i32_0 : i32, i32, i32, i32
  }
}

module attributes {stable_mosaic.version = 11 : i64} {
  func.func @_conv_kernel(%arg0: i32, %arg1: i32, %arg2: memref<1x2x2x128xbf16, #tpu.memory_space<vmem>>, %arg3: memref<4x128x64xbf16, #tpu.memory_space<vmem>>, %arg4: memref<1x64xf32, #tpu.memory_space<vmem>>, %arg5: memref<1x1x1x64xbf16, #tpu.memory_space<vmem>>) attributes {dimension_semantics = [#tpu.dimension_semantics<parallel>, #tpu.dimension_semantics<parallel>], iteration_bounds = array<i64: 2, 1>, scalar_prefetch = 0 : i64, scratch_operands = 0 : i64, tpu.core_type = #tpu.core_type<tc>, window_params = [{transform_indices = @transform_0, window_bounds = array<i64: 1, 2, 2, 128>}, {pipeline_mode = #tpu.pipeline_mode<synchronous>, transform_indices = @transform_1, window_bounds = array<i64: 4, 128, 64>}, {pipeline_mode = #tpu.pipeline_mode<synchronous>, transform_indices = @transform_2, window_bounds = array<i64: 1, 64>}, {transform_indices = @transform_3, window_bounds = array<i64: 1, 1, 1, 64>}]} {
    %c1_i32 = arith.constant 1 : i32
    %0 = arith.muli %arg1, %c1_i32 : i32
    %c0 = arith.constant 0 : index
    %c0_0 = arith.constant 0 : index
    %1 = vector.load %arg4[%c0, %c0_0] : memref<1x64xf32, #tpu.memory_space<vmem>>, vector<1x64xf32>
    %cst = arith.constant 0.000000e+00 : f32
    %2 = vector.broadcast %cst : f32 to vector<1x64xf32>
    %c0_i32 = arith.constant 0 : i32
    %3 = arith.addi %0, %c0_i32 : i32
    %c0_i32_1 = arith.constant 0 : i32
    %4 = arith.addi %3, %c0_i32_1 : i32
    %c0_2 = arith.constant 0 : index
    %5 = arith.index_cast %4 : i32 to index
    %c0_3 = arith.constant 0 : index
    %c0_4 = arith.constant 0 : index
    %6 = vector.load %arg2[%c0_2, %5, %c0_3, %c0_4] : memref<1x2x2x128xbf16, #tpu.memory_space<vmem>>, vector<1x1x1x128xbf16>
    %7 = vector.shape_cast %6 : vector<1x1x1x128xbf16> to vector<1x128xbf16>
    %c0_5 = arith.constant 0 : index
    %c0_6 = arith.constant 0 : index
    %c0_7 = arith.constant 0 : index
    %8 = vector.load %arg3[%c0_5, %c0_6, %c0_7] : memref<4x128x64xbf16, #tpu.memory_space<vmem>>, vector<1x128x64xbf16>
    %9 = vector.shape_cast %8 : vector<1x128x64xbf16> to vector<128x64xbf16>
    %cst_8 = arith.constant dense<0.000000e+00> : vector<1x64xf32>
    %10 = tpu.matmul %7, %9, %cst_8 {dimension_numbers = #tpu.dot_dimension_numbers<[1], [0], [0], [1], [0, 0, 1, 1], [], []>} : vector<1x128xbf16>, vector<128x64xbf16>, vector<1x64xf32> -> vector<1x64xf32>
    %11 = arith.addf %2, %10 : vector<1x64xf32>
    %c0_i32_9 = arith.constant 0 : i32
    %12 = arith.addi %0, %c0_i32_9 : i32
    %c0_i32_10 = arith.constant 0 : i32
    %13 = arith.addi %12, %c0_i32_10 : i32
    %c0_11 = arith.constant 0 : index
    %14 = arith.index_cast %13 : i32 to index
    %c1 = arith.constant 1 : index
    %c0_12 = arith.constant 0 : index
    %15 = vector.load %arg2[%c0_11, %14, %c1, %c0_12] : memref<1x2x2x128xbf16, #tpu.memory_space<vmem>>, vector<1x1x1x128xbf16>
    %16 = vector.shape_cast %15 : vector<1x1x1x128xbf16> to vector<1x128xbf16>
    %c1_13 = arith.constant 1 : index
    %c0_14 = arith.constant 0 : index
    %c0_15 = arith.constant 0 : index
    %17 = vector.load %arg3[%c1_13, %c0_14, %c0_15] : memref<4x128x64xbf16, #tpu.memory_space<vmem>>, vector<1x128x64xbf16>
    %18 = vector.shape_cast %17 : vector<1x128x64xbf16> to vector<128x64xbf16>
    %cst_16 = arith.constant dense<0.000000e+00> : vector<1x64xf32>
    %19 = tpu.matmul %16, %18, %cst_16 {dimension_numbers = #tpu.dot_dimension_numbers<[1], [0], [0], [1], [0, 0, 1, 1], [], []>} : vector<1x128xbf16>, vector<128x64xbf16>, vector<1x64xf32> -> vector<1x64xf32>
    %20 = arith.addf %11, %19 : vector<1x64xf32>
    %c0_i32_17 = arith.constant 0 : i32
    %21 = arith.addi %0, %c0_i32_17 : i32
    %c1_i32_18 = arith.constant 1 : i32
    %22 = arith.addi %21, %c1_i32_18 : i32
    %c0_19 = arith.constant 0 : index
    %23 = arith.index_cast %22 : i32 to index
    %c0_20 = arith.constant 0 : index
    %c0_21 = arith.constant 0 : index
    %24 = vector.load %arg2[%c0_19, %23, %c0_20, %c0_21] : memref<1x2x2x128xbf16, #tpu.memory_space<vmem>>, vector<1x1x1x128xbf16>
    %25 = vector.shape_cast %24 : vector<1x1x1x128xbf16> to vector<1x128xbf16>
    %c2 = arith.constant 2 : index
    %c0_22 = arith.constant 0 : index
    %c0_23 = arith.constant 0 : index
    %26 = vector.load %arg3[%c2, %c0_22, %c0_23] : memref<4x128x64xbf16, #tpu.memory_space<vmem>>, vector<1x128x64xbf16>
    %27 = vector.shape_cast %26 : vector<1x128x64xbf16> to vector<128x64xbf16>
    %cst_24 = arith.constant dense<0.000000e+00> : vector<1x64xf32>
    %28 = tpu.matmul %25, %27, %cst_24 {dimension_numbers = #tpu.dot_dimension_numbers<[1], [0], [0], [1], [0, 0, 1, 1], [], []>} : vector<1x128xbf16>, vector<128x64xbf16>, vector<1x64xf32> -> vector<1x64xf32>
    %29 = arith.addf %20, %28 : vector<1x64xf32>
    %c0_i32_25 = arith.constant 0 : i32
    %30 = arith.addi %0, %c0_i32_25 : i32
    %c1_i32_26 = arith.constant 1 : i32
    %31 = arith.addi %30, %c1_i32_26 : i32
    %c0_27 = arith.constant 0 : index
    %32 = arith.index_cast %31 : i32 to index
    %c1_28 = arith.constant 1 : index
    %c0_29 = arith.constant 0 : index
    %33 = vector.load %arg2[%c0_27, %32, %c1_28, %c0_29] : memref<1x2x2x128xbf16, #tpu.memory_space<vmem>>, vector<1x1x1x128xbf16>
    %34 = vector.shape_cast %33 : vector<1x1x1x128xbf16> to vector<1x128xbf16>
    %c3 = arith.constant 3 : index
    %c0_30 = arith.constant 0 : index
    %c0_31 = arith.constant 0 : index
    %35 = vector.load %arg3[%c3, %c0_30, %c0_31] : memref<4x128x64xbf16, #tpu.memory_space<vmem>>, vector<1x128x64xbf16>
    %36 = vector.shape_cast %35 : vector<1x128x64xbf16> to vector<128x64xbf16>
    %cst_32 = arith.constant dense<0.000000e+00> : vector<1x64xf32>
    %37 = tpu.matmul %34, %36, %cst_32 {dimension_numbers = #tpu.dot_dimension_numbers<[1], [0], [0], [1], [0, 0, 1, 1], [], []>} : vector<1x128xbf16>, vector<128x64xbf16>, vector<1x64xf32> -> vector<1x64xf32>
    %38 = arith.addf %29, %37 : vector<1x64xf32>
    %39 = arith.addf %38, %1 : vector<1x64xf32>
    %cst_33 = arith.constant 0.000000e+00 : f32
    %40 = vector.broadcast %cst_33 : f32 to vector<1x64xf32>
    %41 = arith.maximumf %39, %40 : vector<1x64xf32>
    %42 = arith.truncf %41 : vector<1x64xf32> to vector<1x64xbf16>
    %c0_34 = arith.constant 0 : index
    %c0_35 = arith.constant 0 : index
    %c0_36 = arith.constant 0 : index
    %c0_37 = arith.constant 0 : index
    %43 = vector.load %arg5[%c0_34, %c0_35, %c0_36, %c0_37] : memref<1x1x1x64xbf16, #tpu.memory_space<vmem>>, vector<1x1x1x64xbf16>
    %44 = vector.shape_cast %43 : vector<1x1x1x64xbf16> to vector<1x64xbf16>
    %45 = vector.shape_cast %42 : vector<1x64xbf16> to vector<1x1x1x64xbf16>
    tpu.vector_store %arg5[%c0_34, %c0_35, %c0_36, %c0_37], %45 {strides = array<i32>} : memref<1x1x1x64xbf16, #tpu.memory_space<vmem>>, vector<1x1x1x64xbf16>,
    return
  }
  func.func @transform_0(%arg0: i32, %arg1: i32) -> (i32, i32, i32, i32) {
    %c0_i32 = arith.constant 0 : i32
    %c0_i32_0 = arith.constant 0 : i32
    %c0_i32_1 = arith.constant 0 : i32
    %c0_i32_2 = arith.constant 0 : i32
    return %arg0, %c0_i32, %c0_i32_0, %c0_i32_1 : i32, i32, i32, i32
  }
  func.func @transform_1(%arg0: i32, %arg1: i32) -> (i32, i32, i32) {
    %c0_i32 = arith.constant 0 : i32
    %c0_i32_0 = arith.constant 0 : i32
    %c0_i32_1 = arith.constant 0 : i32
    %c0_i32_2 = arith.constant 0 : i32
    return %c0_i32, %c0_i32_0, %c0_i32_1 : i32, i32, i32
  }
  func.func @transform_2(%arg0: i32, %arg1: i32) -> (i32, i32) {
    %c0_i32 = arith.constant 0 : i32
    %c0_i32_0 = arith.constant 0 : i32
    %c0_i32_1 = arith.constant 0 : i32
    return %c0_i32, %c0_i32_0 : i32, i32
  }
  func.func @transform_3(%arg0: i32, %arg1: i32) -> (i32, i32, i32, i32) {
    %c0_i32 = arith.constant 0 : i32
    %c0_i32_0 = arith.constant 0 : i32
    %c0_i32_1 = arith.constant 0 : i32
    return %arg0, %arg1, %c0_i32, %c0_i32_0 : i32, i32, i32, i32
  }
}

module attributes {stable_mosaic.version = 11 : i64} {
  func.func @_conv_kernel(%arg0: i32, %arg1: i32, %arg2: memref<1x1x1x64xbf16, #tpu.memory_space<vmem>>, %arg3: memref<1x64x16xbf16, #tpu.memory_space<vmem>>, %arg4: memref<1x16xf32, #tpu.memory_space<vmem>>, %arg5: memref<1x1x1x16xbf16, #tpu.memory_space<vmem>>) attributes {dimension_semantics = [#tpu.dimension_semantics<parallel>, #tpu.dimension_semantics<parallel>], iteration_bounds = array<i64: 2, 1>, scalar_prefetch = 0 : i64, scratch_operands = 0 : i64, tpu.core_type = #tpu.core_type<tc>, window_params = [{transform_indices = @transform_0, window_bounds = array<i64: 1, 1, 1, 64>}, {pipeline_mode = #tpu.pipeline_mode<synchronous>, transform_indices = @transform_1, window_bounds = array<i64: 1, 64, 16>}, {pipeline_mode = #tpu.pipeline_mode<synchronous>, transform_indices = @transform_2, window_bounds = array<i64: 1, 16>}, {transform_indices = @transform_3, window_bounds = array<i64: 1, 1, 1, 16>}]} {
    %c1_i32 = arith.constant 1 : i32
    %0 = arith.muli %arg1, %c1_i32 : i32
    %c0 = arith.constant 0 : index
    %c0_0 = arith.constant 0 : index
    %1 = vector.load %arg4[%c0, %c0_0] : memref<1x16xf32, #tpu.memory_space<vmem>>, vector<1x16xf32>
    %cst = arith.constant 0.000000e+00 : f32
    %2 = vector.broadcast %cst : f32 to vector<1x16xf32>
    %c0_i32 = arith.constant 0 : i32
    %3 = arith.addi %0, %c0_i32 : i32
    %c0_i32_1 = arith.constant 0 : i32
    %4 = arith.addi %3, %c0_i32_1 : i32
    %c0_2 = arith.constant 0 : index
    %5 = arith.index_cast %4 : i32 to index
    %c0_3 = arith.constant 0 : index
    %c0_4 = arith.constant 0 : index
    %6 = vector.load %arg2[%c0_2, %5, %c0_3, %c0_4] : memref<1x1x1x64xbf16, #tpu.memory_space<vmem>>, vector<1x1x1x64xbf16>
    %7 = vector.shape_cast %6 : vector<1x1x1x64xbf16> to vector<1x64xbf16>
    %c0_5 = arith.constant 0 : index
    %c0_6 = arith.constant 0 : index
    %c0_7 = arith.constant 0 : index
    %8 = vector.load %arg3[%c0_5, %c0_6, %c0_7] : memref<1x64x16xbf16, #tpu.memory_space<vmem>>, vector<1x64x16xbf16>
    %9 = vector.shape_cast %8 : vector<1x64x16xbf16> to vector<64x16xbf16>
    %cst_8 = arith.constant dense<0.000000e+00> : vector<1x16xf32>
    %10 = tpu.matmul %7, %9, %cst_8 {dimension_numbers = #tpu.dot_dimension_numbers<[1], [0], [0], [1], [0, 0, 1, 1], [], []>} : vector<1x64xbf16>, vector<64x16xbf16>, vector<1x16xf32> -> vector<1x16xf32>
    %11 = arith.addf %2, %10 : vector<1x16xf32>
    %12 = arith.addf %11, %1 : vector<1x16xf32>
    %cst_9 = arith.constant 0.000000e+00 : f32
    %13 = vector.broadcast %cst_9 : f32 to vector<1x16xf32>
    %14 = arith.maximumf %12, %13 : vector<1x16xf32>
    %15 = arith.truncf %14 : vector<1x16xf32> to vector<1x16xbf16>
    %c0_10 = arith.constant 0 : index
    %c0_11 = arith.constant 0 : index
    %c0_12 = arith.constant 0 : index
    %c0_13 = arith.constant 0 : index
    %16 = vector.load %arg5[%c0_10, %c0_11, %c0_12, %c0_13] : memref<1x1x1x16xbf16, #tpu.memory_space<vmem>>, vector<1x1x1x16xbf16>
    %17 = vector.shape_cast %16 : vector<1x1x1x16xbf16> to vector<1x16xbf16>
    %18 = vector.shape_cast %15 : vector<1x16xbf16> to vector<1x1x1x16xbf16>
    tpu.vector_store %arg5[%c0_10, %c0_11, %c0_12, %c0_13], %18 {strides = array<i32>} : memref<1x1x1x16xbf16, #tpu.memory_space<vmem>>, vector<1x1x1x16xbf16>,
    return
  }
  func.func @transform_0(%arg0: i32, %arg1: i32) -> (i32, i32, i32, i32) {
    %c0_i32 = arith.constant 0 : i32
    %c0_i32_0 = arith.constant 0 : i32
    %c0_i32_1 = arith.constant 0 : i32
    %c0_i32_2 = arith.constant 0 : i32
    return %arg0, %c0_i32, %c0_i32_0, %c0_i32_1 : i32, i32, i32, i32
  }
  func.func @transform_1(%arg0: i32, %arg1: i32) -> (i32, i32, i32) {
    %c0_i32 = arith.constant 0 : i32
    %c0_i32_0 = arith.constant 0 : i32
    %c0_i32_1 = arith.constant 0 : i32
    %c0_i32_2 = arith.constant 0 : i32
    return %c0_i32, %c0_i32_0, %c0_i32_1 : i32, i32, i32
  }
  func.func @transform_2(%arg0: i32, %arg1: i32) -> (i32, i32) {
    %c0_i32 = arith.constant 0 : i32
    %c0_i32_0 = arith.constant 0 : i32
    %c0_i32_1 = arith.constant 0 : i32
    return %c0_i32, %c0_i32_0 : i32, i32
  }
  func.func @transform_3(%arg0: i32, %arg1: i32) -> (i32, i32, i32, i32) {
    %c0_i32 = arith.constant 0 : i32
    %c0_i32_0 = arith.constant 0 : i32
    %c0_i32_1 = arith.constant 0 : i32
    return %arg0, %arg1, %c0_i32, %c0_i32_0 : i32, i32, i32, i32
  }
}

module attributes {stable_mosaic.version = 11 : i64} {
  func.func @_conv_kernel(%arg0: i32, %arg1: i32, %arg2: memref<1x2x2x64xbf16, #tpu.memory_space<vmem>>, %arg3: memref<4x64x32xbf16, #tpu.memory_space<vmem>>, %arg4: memref<1x32xf32, #tpu.memory_space<vmem>>, %arg5: memref<1x1x1x32xbf16, #tpu.memory_space<vmem>>) attributes {dimension_semantics = [#tpu.dimension_semantics<parallel>, #tpu.dimension_semantics<parallel>], iteration_bounds = array<i64: 2, 1>, scalar_prefetch = 0 : i64, scratch_operands = 0 : i64, tpu.core_type = #tpu.core_type<tc>, window_params = [{transform_indices = @transform_0, window_bounds = array<i64: 1, 2, 2, 64>}, {pipeline_mode = #tpu.pipeline_mode<synchronous>, transform_indices = @transform_1, window_bounds = array<i64: 4, 64, 32>}, {pipeline_mode = #tpu.pipeline_mode<synchronous>, transform_indices = @transform_2, window_bounds = array<i64: 1, 32>}, {transform_indices = @transform_3, window_bounds = array<i64: 1, 1, 1, 32>}]} {
    %c1_i32 = arith.constant 1 : i32
    %0 = arith.muli %arg1, %c1_i32 : i32
    %c0 = arith.constant 0 : index
    %c0_0 = arith.constant 0 : index
    %1 = vector.load %arg4[%c0, %c0_0] : memref<1x32xf32, #tpu.memory_space<vmem>>, vector<1x32xf32>
    %cst = arith.constant 0.000000e+00 : f32
    %2 = vector.broadcast %cst : f32 to vector<1x32xf32>
    %c0_i32 = arith.constant 0 : i32
    %3 = arith.addi %0, %c0_i32 : i32
    %c0_i32_1 = arith.constant 0 : i32
    %4 = arith.addi %3, %c0_i32_1 : i32
    %c0_2 = arith.constant 0 : index
    %5 = arith.index_cast %4 : i32 to index
    %c0_3 = arith.constant 0 : index
    %c0_4 = arith.constant 0 : index
    %6 = vector.load %arg2[%c0_2, %5, %c0_3, %c0_4] : memref<1x2x2x64xbf16, #tpu.memory_space<vmem>>, vector<1x1x1x64xbf16>
    %7 = vector.shape_cast %6 : vector<1x1x1x64xbf16> to vector<1x64xbf16>
    %c0_5 = arith.constant 0 : index
    %c0_6 = arith.constant 0 : index
    %c0_7 = arith.constant 0 : index
    %8 = vector.load %arg3[%c0_5, %c0_6, %c0_7] : memref<4x64x32xbf16, #tpu.memory_space<vmem>>, vector<1x64x32xbf16>
    %9 = vector.shape_cast %8 : vector<1x64x32xbf16> to vector<64x32xbf16>
    %cst_8 = arith.constant dense<0.000000e+00> : vector<1x32xf32>
    %10 = tpu.matmul %7, %9, %cst_8 {dimension_numbers = #tpu.dot_dimension_numbers<[1], [0], [0], [1], [0, 0, 1, 1], [], []>} : vector<1x64xbf16>, vector<64x32xbf16>, vector<1x32xf32> -> vector<1x32xf32>
    %11 = arith.addf %2, %10 : vector<1x32xf32>
    %c0_i32_9 = arith.constant 0 : i32
    %12 = arith.addi %0, %c0_i32_9 : i32
    %c0_i32_10 = arith.constant 0 : i32
    %13 = arith.addi %12, %c0_i32_10 : i32
    %c0_11 = arith.constant 0 : index
    %14 = arith.index_cast %13 : i32 to index
    %c1 = arith.constant 1 : index
    %c0_12 = arith.constant 0 : index
    %15 = vector.load %arg2[%c0_11, %14, %c1, %c0_12] : memref<1x2x2x64xbf16, #tpu.memory_space<vmem>>, vector<1x1x1x64xbf16>
    %16 = vector.shape_cast %15 : vector<1x1x1x64xbf16> to vector<1x64xbf16>
    %c1_13 = arith.constant 1 : index
    %c0_14 = arith.constant 0 : index
    %c0_15 = arith.constant 0 : index
    %17 = vector.load %arg3[%c1_13, %c0_14, %c0_15] : memref<4x64x32xbf16, #tpu.memory_space<vmem>>, vector<1x64x32xbf16>
    %18 = vector.shape_cast %17 : vector<1x64x32xbf16> to vector<64x32xbf16>
    %cst_16 = arith.constant dense<0.000000e+00> : vector<1x32xf32>
    %19 = tpu.matmul %16, %18, %cst_16 {dimension_numbers = #tpu.dot_dimension_numbers<[1], [0], [0], [1], [0, 0, 1, 1], [], []>} : vector<1x64xbf16>, vector<64x32xbf16>, vector<1x32xf32> -> vector<1x32xf32>
    %20 = arith.addf %11, %19 : vector<1x32xf32>
    %c0_i32_17 = arith.constant 0 : i32
    %21 = arith.addi %0, %c0_i32_17 : i32
    %c1_i32_18 = arith.constant 1 : i32
    %22 = arith.addi %21, %c1_i32_18 : i32
    %c0_19 = arith.constant 0 : index
    %23 = arith.index_cast %22 : i32 to index
    %c0_20 = arith.constant 0 : index
    %c0_21 = arith.constant 0 : index
    %24 = vector.load %arg2[%c0_19, %23, %c0_20, %c0_21] : memref<1x2x2x64xbf16, #tpu.memory_space<vmem>>, vector<1x1x1x64xbf16>
    %25 = vector.shape_cast %24 : vector<1x1x1x64xbf16> to vector<1x64xbf16>
    %c2 = arith.constant 2 : index
    %c0_22 = arith.constant 0 : index
    %c0_23 = arith.constant 0 : index
    %26 = vector.load %arg3[%c2, %c0_22, %c0_23] : memref<4x64x32xbf16, #tpu.memory_space<vmem>>, vector<1x64x32xbf16>
    %27 = vector.shape_cast %26 : vector<1x64x32xbf16> to vector<64x32xbf16>
    %cst_24 = arith.constant dense<0.000000e+00> : vector<1x32xf32>
    %28 = tpu.matmul %25, %27, %cst_24 {dimension_numbers = #tpu.dot_dimension_numbers<[1], [0], [0], [1], [0, 0, 1, 1], [], []>} : vector<1x64xbf16>, vector<64x32xbf16>, vector<1x32xf32> -> vector<1x32xf32>
    %29 = arith.addf %20, %28 : vector<1x32xf32>
    %c0_i32_25 = arith.constant 0 : i32
    %30 = arith.addi %0, %c0_i32_25 : i32
    %c1_i32_26 = arith.constant 1 : i32
    %31 = arith.addi %30, %c1_i32_26 : i32
    %c0_27 = arith.constant 0 : index
    %32 = arith.index_cast %31 : i32 to index
    %c1_28 = arith.constant 1 : index
    %c0_29 = arith.constant 0 : index
    %33 = vector.load %arg2[%c0_27, %32, %c1_28, %c0_29] : memref<1x2x2x64xbf16, #tpu.memory_space<vmem>>, vector<1x1x1x64xbf16>
    %34 = vector.shape_cast %33 : vector<1x1x1x64xbf16> to vector<1x64xbf16>
    %c3 = arith.constant 3 : index
    %c0_30 = arith.constant 0 : index
    %c0_31 = arith.constant 0 : index
    %35 = vector.load %arg3[%c3, %c0_30, %c0_31] : memref<4x64x32xbf16, #tpu.memory_space<vmem>>, vector<1x64x32xbf16>
    %36 = vector.shape_cast %35 : vector<1x64x32xbf16> to vector<64x32xbf16>
    %cst_32 = arith.constant dense<0.000000e+00> : vector<1x32xf32>
    %37 = tpu.matmul %34, %36, %cst_32 {dimension_numbers = #tpu.dot_dimension_numbers<[1], [0], [0], [1], [0, 0, 1, 1], [], []>} : vector<1x64xbf16>, vector<64x32xbf16>, vector<1x32xf32> -> vector<1x32xf32>
    %38 = arith.addf %29, %37 : vector<1x32xf32>
    %39 = arith.addf %38, %1 : vector<1x32xf32>
    %cst_33 = arith.constant 0.000000e+00 : f32
    %40 = vector.broadcast %cst_33 : f32 to vector<1x32xf32>
    %41 = arith.maximumf %39, %40 : vector<1x32xf32>
    %42 = arith.truncf %41 : vector<1x32xf32> to vector<1x32xbf16>
    %c0_34 = arith.constant 0 : index
    %c0_35 = arith.constant 0 : index
    %c0_36 = arith.constant 0 : index
    %c0_37 = arith.constant 0 : index
    %43 = vector.load %arg5[%c0_34, %c0_35, %c0_36, %c0_37] : memref<1x1x1x32xbf16, #tpu.memory_space<vmem>>, vector<1x1x1x32xbf16>
    %44 = vector.shape_cast %43 : vector<1x1x1x32xbf16> to vector<1x32xbf16>
    %45 = vector.shape_cast %42 : vector<1x32xbf16> to vector<1x1x1x32xbf16>
    tpu.vector_store %arg5[%c0_34, %c0_35, %c0_36, %c0_37], %45 {strides = array<i32>} : memref<1x1x1x32xbf16, #tpu.memory_space<vmem>>, vector<1x1x1x32xbf16>,
    return
  }
  func.func @transform_0(%arg0: i32, %arg1: i32) -> (i32, i32, i32, i32) {
    %c0_i32 = arith.constant 0 : i32
    %c0_i32_0 = arith.constant 0 : i32
    %c0_i32_1 = arith.constant 0 : i32
    %c0_i32_2 = arith.constant 0 : i32
    return %arg0, %c0_i32, %c0_i32_0, %c0_i32_1 : i32, i32, i32, i32
  }
  func.func @transform_1(%arg0: i32, %arg1: i32) -> (i32, i32, i32) {
    %c0_i32 = arith.constant 0 : i32
    %c0_i32_0 = arith.constant 0 : i32
    %c0_i32_1 = arith.constant 0 : i32
    %c0_i32_2 = arith.constant 0 : i32
    return %c0_i32, %c0_i32_0, %c0_i32_1 : i32, i32, i32
  }
  func.func @transform_2(%arg0: i32, %arg1: i32) -> (i32, i32) {
    %c0_i32 = arith.constant 0 : i32
    %c0_i32_0 = arith.constant 0 : i32
    %c0_i32_1 = arith.constant 0 : i32
    return %c0_i32, %c0_i32_0 : i32, i32
  }
  func.func @transform_3(%arg0: i32, %arg1: i32) -> (i32, i32, i32, i32) {
    %c0_i32 = arith.constant 0 : i32
    %c0_i32_0 = arith.constant 0 : i32
    %c0_i32_1 = arith.constant 0 : i32
    return %arg0, %arg1, %c0_i32, %c0_i32_0 : i32, i32, i32, i32
  }
}

module attributes {stable_mosaic.version = 11 : i64} {
  func.func @_conv_kernel(%arg0: i32, %arg1: i32, %arg2: memref<1x1x1x32xbf16, #tpu.memory_space<vmem>>, %arg3: memref<1x32x16xbf16, #tpu.memory_space<vmem>>, %arg4: memref<1x16xf32, #tpu.memory_space<vmem>>, %arg5: memref<1x1x1x16xbf16, #tpu.memory_space<vmem>>) attributes {dimension_semantics = [#tpu.dimension_semantics<parallel>, #tpu.dimension_semantics<parallel>], iteration_bounds = array<i64: 2, 1>, scalar_prefetch = 0 : i64, scratch_operands = 0 : i64, tpu.core_type = #tpu.core_type<tc>, window_params = [{transform_indices = @transform_0, window_bounds = array<i64: 1, 1, 1, 32>}, {pipeline_mode = #tpu.pipeline_mode<synchronous>, transform_indices = @transform_1, window_bounds = array<i64: 1, 32, 16>}, {pipeline_mode = #tpu.pipeline_mode<synchronous>, transform_indices = @transform_2, window_bounds = array<i64: 1, 16>}, {transform_indices = @transform_3, window_bounds = array<i64: 1, 1, 1, 16>}]} {
    %c1_i32 = arith.constant 1 : i32
    %0 = arith.muli %arg1, %c1_i32 : i32
    %c0 = arith.constant 0 : index
    %c0_0 = arith.constant 0 : index
    %1 = vector.load %arg4[%c0, %c0_0] : memref<1x16xf32, #tpu.memory_space<vmem>>, vector<1x16xf32>
    %cst = arith.constant 0.000000e+00 : f32
    %2 = vector.broadcast %cst : f32 to vector<1x16xf32>
    %c0_i32 = arith.constant 0 : i32
    %3 = arith.addi %0, %c0_i32 : i32
    %c0_i32_1 = arith.constant 0 : i32
    %4 = arith.addi %3, %c0_i32_1 : i32
    %c0_2 = arith.constant 0 : index
    %5 = arith.index_cast %4 : i32 to index
    %c0_3 = arith.constant 0 : index
    %c0_4 = arith.constant 0 : index
    %6 = vector.load %arg2[%c0_2, %5, %c0_3, %c0_4] : memref<1x1x1x32xbf16, #tpu.memory_space<vmem>>, vector<1x1x1x32xbf16>
    %7 = vector.shape_cast %6 : vector<1x1x1x32xbf16> to vector<1x32xbf16>
    %c0_5 = arith.constant 0 : index
    %c0_6 = arith.constant 0 : index
    %c0_7 = arith.constant 0 : index
    %8 = vector.load %arg3[%c0_5, %c0_6, %c0_7] : memref<1x32x16xbf16, #tpu.memory_space<vmem>>, vector<1x32x16xbf16>
    %9 = vector.shape_cast %8 : vector<1x32x16xbf16> to vector<32x16xbf16>
    %cst_8 = arith.constant dense<0.000000e+00> : vector<1x16xf32>
    %10 = tpu.matmul %7, %9, %cst_8 {dimension_numbers = #tpu.dot_dimension_numbers<[1], [0], [0], [1], [0, 0, 1, 1], [], []>} : vector<1x32xbf16>, vector<32x16xbf16>, vector<1x16xf32> -> vector<1x16xf32>
    %11 = arith.addf %2, %10 : vector<1x16xf32>
    %12 = arith.addf %11, %1 : vector<1x16xf32>
    %cst_9 = arith.constant 0.000000e+00 : f32
    %13 = vector.broadcast %cst_9 : f32 to vector<1x16xf32>
    %14 = arith.maximumf %12, %13 : vector<1x16xf32>
    %15 = arith.truncf %14 : vector<1x16xf32> to vector<1x16xbf16>
    %c0_10 = arith.constant 0 : index
    %c0_11 = arith.constant 0 : index
    %c0_12 = arith.constant 0 : index
    %c0_13 = arith.constant 0 : index
    %16 = vector.load %arg5[%c0_10, %c0_11, %c0_12, %c0_13] : memref<1x1x1x16xbf16, #tpu.memory_space<vmem>>, vector<1x1x1x16xbf16>
    %17 = vector.shape_cast %16 : vector<1x1x1x16xbf16> to vector<1x16xbf16>
    %18 = vector.shape_cast %15 : vector<1x16xbf16> to vector<1x1x1x16xbf16>
    tpu.vector_store %arg5[%c0_10, %c0_11, %c0_12, %c0_13], %18 {strides = array<i32>} : memref<1x1x1x16xbf16, #tpu.memory_space<vmem>>, vector<1x1x1x16xbf16>,
    return
  }
  func.func @transform_0(%arg0: i32, %arg1: i32) -> (i32, i32, i32, i32) {
    %c0_i32 = arith.constant 0 : i32
    %c0_i32_0 = arith.constant 0 : i32
    %c0_i32_1 = arith.constant 0 : i32
    %c0_i32_2 = arith.constant 0 : i32
    return %arg0, %c0_i32, %c0_i32_0, %c0_i32_1 : i32, i32, i32, i32
  }
  func.func @transform_1(%arg0: i32, %arg1: i32) -> (i32, i32, i32) {
    %c0_i32 = arith.constant 0 : i32
    %c0_i32_0 = arith.constant 0 : i32
    %c0_i32_1 = arith.constant 0 : i32
    %c0_i32_2 = arith.constant 0 : i32
    return %c0_i32, %c0_i32_0, %c0_i32_1 : i32, i32, i32
  }
  func.func @transform_2(%arg0: i32, %arg1: i32) -> (i32, i32) {
    %c0_i32 = arith.constant 0 : i32
    %c0_i32_0 = arith.constant 0 : i32
    %c0_i32_1 = arith.constant 0 : i32
    return %c0_i32, %c0_i32_0 : i32, i32
  }
  func.func @transform_3(%arg0: i32, %arg1: i32) -> (i32, i32, i32, i32) {
    %c0_i32 = arith.constant 0 : i32
    %c0_i32_0 = arith.constant 0 : i32
    %c0_i32_1 = arith.constant 0 : i32
    return %arg0, %arg1, %c0_i32, %c0_i32_0 : i32, i32, i32, i32
  }
}

module attributes {stable_mosaic.version = 11 : i64} {
  func.func @_conv_kernel(%arg0: i32, %arg1: i32, %arg2: memref<1x3x3x32xbf16, #tpu.memory_space<vmem>>, %arg3: memref<9x32x72xbf16, #tpu.memory_space<vmem>>, %arg4: memref<1x72xf32, #tpu.memory_space<vmem>>, %arg5: memref<1x1x1x72xf32, #tpu.memory_space<vmem>>) attributes {dimension_semantics = [#tpu.dimension_semantics<parallel>, #tpu.dimension_semantics<parallel>], iteration_bounds = array<i64: 2, 1>, scalar_prefetch = 0 : i64, scratch_operands = 0 : i64, tpu.core_type = #tpu.core_type<tc>, window_params = [{transform_indices = @transform_0, window_bounds = array<i64: 1, 3, 3, 32>}, {pipeline_mode = #tpu.pipeline_mode<synchronous>, transform_indices = @transform_1, window_bounds = array<i64: 9, 32, 72>}, {pipeline_mode = #tpu.pipeline_mode<synchronous>, transform_indices = @transform_2, window_bounds = array<i64: 1, 72>}, {transform_indices = @transform_3, window_bounds = array<i64: 1, 1, 1, 72>}]} {
    %c1_i32 = arith.constant 1 : i32
    %0 = arith.muli %arg1, %c1_i32 : i32
    %c0 = arith.constant 0 : index
    %c0_0 = arith.constant 0 : index
    %1 = vector.load %arg4[%c0, %c0_0] : memref<1x72xf32, #tpu.memory_space<vmem>>, vector<1x72xf32>
    %cst = arith.constant 0.000000e+00 : f32
    %2 = vector.broadcast %cst : f32 to vector<1x72xf32>
    %c0_i32 = arith.constant 0 : i32
    %3 = arith.addi %0, %c0_i32 : i32
    %c0_i32_1 = arith.constant 0 : i32
    %4 = arith.addi %3, %c0_i32_1 : i32
    %c0_2 = arith.constant 0 : index
    %5 = arith.index_cast %4 : i32 to index
    %c0_3 = arith.constant 0 : index
    %c0_4 = arith.constant 0 : index
    %6 = vector.load %arg2[%c0_2, %5, %c0_3, %c0_4] : memref<1x3x3x32xbf16, #tpu.memory_space<vmem>>, vector<1x1x1x32xbf16>
    %7 = vector.shape_cast %6 : vector<1x1x1x32xbf16> to vector<1x32xbf16>
    %c0_5 = arith.constant 0 : index
    %c0_6 = arith.constant 0 : index
    %c0_7 = arith.constant 0 : index
    %8 = vector.load %arg3[%c0_5, %c0_6, %c0_7] : memref<9x32x72xbf16, #tpu.memory_space<vmem>>, vector<1x32x72xbf16>
    %9 = vector.shape_cast %8 : vector<1x32x72xbf16> to vector<32x72xbf16>
    %cst_8 = arith.constant dense<0.000000e+00> : vector<1x72xf32>
    %10 = tpu.matmul %7, %9, %cst_8 {dimension_numbers = #tpu.dot_dimension_numbers<[1], [0], [0], [1], [0, 0, 1, 1], [], []>} : vector<1x32xbf16>, vector<32x72xbf16>, vector<1x72xf32> -> vector<1x72xf32>
    %11 = arith.addf %2, %10 : vector<1x72xf32>
    %c0_i32_9 = arith.constant 0 : i32
    %12 = arith.addi %0, %c0_i32_9 : i32
    %c0_i32_10 = arith.constant 0 : i32
    %13 = arith.addi %12, %c0_i32_10 : i32
    %c0_11 = arith.constant 0 : index
    %14 = arith.index_cast %13 : i32 to index
    %c1 = arith.constant 1 : index
    %c0_12 = arith.constant 0 : index
    %15 = vector.load %arg2[%c0_11, %14, %c1, %c0_12] : memref<1x3x3x32xbf16, #tpu.memory_space<vmem>>, vector<1x1x1x32xbf16>
    %16 = vector.shape_cast %15 : vector<1x1x1x32xbf16> to vector<1x32xbf16>
    %c1_13 = arith.constant 1 : index
    %c0_14 = arith.constant 0 : index
    %c0_15 = arith.constant 0 : index
    %17 = vector.load %arg3[%c1_13, %c0_14, %c0_15] : memref<9x32x72xbf16, #tpu.memory_space<vmem>>, vector<1x32x72xbf16>
    %18 = vector.shape_cast %17 : vector<1x32x72xbf16> to vector<32x72xbf16>
    %cst_16 = arith.constant dense<0.000000e+00> : vector<1x72xf32>
    %19 = tpu.matmul %16, %18, %cst_16 {dimension_numbers = #tpu.dot_dimension_numbers<[1], [0], [0], [1], [0, 0, 1, 1], [], []>} : vector<1x32xbf16>, vector<32x72xbf16>, vector<1x72xf32> -> vector<1x72xf32>
    %20 = arith.addf %11, %19 : vector<1x72xf32>
    %c0_i32_17 = arith.constant 0 : i32
    %21 = arith.addi %0, %c0_i32_17 : i32
    %c0_i32_18 = arith.constant 0 : i32
    %22 = arith.addi %21, %c0_i32_18 : i32
    %c0_19 = arith.constant 0 : index
    %23 = arith.index_cast %22 : i32 to index
    %c2 = arith.constant 2 : index
    %c0_20 = arith.constant 0 : index
    %24 = vector.load %arg2[%c0_19, %23, %c2, %c0_20] : memref<1x3x3x32xbf16, #tpu.memory_space<vmem>>, vector<1x1x1x32xbf16>
    %25 = vector.shape_cast %24 : vector<1x1x1x32xbf16> to vector<1x32xbf16>
    %c2_21 = arith.constant 2 : index
    %c0_22 = arith.constant 0 : index
    %c0_23 = arith.constant 0 : index
    %26 = vector.load %arg3[%c2_21, %c0_22, %c0_23] : memref<9x32x72xbf16, #tpu.memory_space<vmem>>, vector<1x32x72xbf16>
    %27 = vector.shape_cast %26 : vector<1x32x72xbf16> to vector<32x72xbf16>
    %cst_24 = arith.constant dense<0.000000e+00> : vector<1x72xf32>
    %28 = tpu.matmul %25, %27, %cst_24 {dimension_numbers = #tpu.dot_dimension_numbers<[1], [0], [0], [1], [0, 0, 1, 1], [], []>} : vector<1x32xbf16>, vector<32x72xbf16>, vector<1x72xf32> -> vector<1x72xf32>
    %29 = arith.addf %20, %28 : vector<1x72xf32>
    %c0_i32_25 = arith.constant 0 : i32
    %30 = arith.addi %0, %c0_i32_25 : i32
    %c1_i32_26 = arith.constant 1 : i32
    %31 = arith.addi %30, %c1_i32_26 : i32
    %c0_27 = arith.constant 0 : index
    %32 = arith.index_cast %31 : i32 to index
    %c0_28 = arith.constant 0 : index
    %c0_29 = arith.constant 0 : index
    %33 = vector.load %arg2[%c0_27, %32, %c0_28, %c0_29] : memref<1x3x3x32xbf16, #tpu.memory_space<vmem>>, vector<1x1x1x32xbf16>
    %34 = vector.shape_cast %33 : vector<1x1x1x32xbf16> to vector<1x32xbf16>
    %c3 = arith.constant 3 : index
    %c0_30 = arith.constant 0 : index
    %c0_31 = arith.constant 0 : index
    %35 = vector.load %arg3[%c3, %c0_30, %c0_31] : memref<9x32x72xbf16, #tpu.memory_space<vmem>>, vector<1x32x72xbf16>
    %36 = vector.shape_cast %35 : vector<1x32x72xbf16> to vector<32x72xbf16>
    %cst_32 = arith.constant dense<0.000000e+00> : vector<1x72xf32>
    %37 = tpu.matmul %34, %36, %cst_32 {dimension_numbers = #tpu.dot_dimension_numbers<[1], [0], [0], [1], [0, 0, 1, 1], [], []>} : vector<1x32xbf16>, vector<32x72xbf16>, vector<1x72xf32> -> vector<1x72xf32>
    %38 = arith.addf %29, %37 : vector<1x72xf32>
    %c0_i32_33 = arith.constant 0 : i32
    %39 = arith.addi %0, %c0_i32_33 : i32
    %c1_i32_34 = arith.constant 1 : i32
    %40 = arith.addi %39, %c1_i32_34 : i32
    %c0_35 = arith.constant 0 : index
    %41 = arith.index_cast %40 : i32 to index
    %c1_36 = arith.constant 1 : index
    %c0_37 = arith.constant 0 : index
    %42 = vector.load %arg2[%c0_35, %41, %c1_36, %c0_37] : memref<1x3x3x32xbf16, #tpu.memory_space<vmem>>, vector<1x1x1x32xbf16>
    %43 = vector.shape_cast %42 : vector<1x1x1x32xbf16> to vector<1x32xbf16>
    %c4 = arith.constant 4 : index
    %c0_38 = arith.constant 0 : index
    %c0_39 = arith.constant 0 : index
    %44 = vector.load %arg3[%c4, %c0_38, %c0_39] : memref<9x32x72xbf16, #tpu.memory_space<vmem>>, vector<1x32x72xbf16>
    %45 = vector.shape_cast %44 : vector<1x32x72xbf16> to vector<32x72xbf16>
    %cst_40 = arith.constant dense<0.000000e+00> : vector<1x72xf32>
    %46 = tpu.matmul %43, %45, %cst_40 {dimension_numbers = #tpu.dot_dimension_numbers<[1], [0], [0], [1], [0, 0, 1, 1], [], []>} : vector<1x32xbf16>, vector<32x72xbf16>, vector<1x72xf32> -> vector<1x72xf32>
    %47 = arith.addf %38, %46 : vector<1x72xf32>
    %c0_i32_41 = arith.constant 0 : i32
    %48 = arith.addi %0, %c0_i32_41 : i32
    %c1_i32_42 = arith.constant 1 : i32
    %49 = arith.addi %48, %c1_i32_42 : i32
    %c0_43 = arith.constant 0 : index
    %50 = arith.index_cast %49 : i32 to index
    %c2_44 = arith.constant 2 : index
    %c0_45 = arith.constant 0 : index
    %51 = vector.load %arg2[%c0_43, %50, %c2_44, %c0_45] : memref<1x3x3x32xbf16, #tpu.memory_space<vmem>>, vector<1x1x1x32xbf16>
    %52 = vector.shape_cast %51 : vector<1x1x1x32xbf16> to vector<1x32xbf16>
    %c5 = arith.constant 5 : index
    %c0_46 = arith.constant 0 : index
    %c0_47 = arith.constant 0 : index
    %53 = vector.load %arg3[%c5, %c0_46, %c0_47] : memref<9x32x72xbf16, #tpu.memory_space<vmem>>, vector<1x32x72xbf16>
    %54 = vector.shape_cast %53 : vector<1x32x72xbf16> to vector<32x72xbf16>
    %cst_48 = arith.constant dense<0.000000e+00> : vector<1x72xf32>
    %55 = tpu.matmul %52, %54, %cst_48 {dimension_numbers = #tpu.dot_dimension_numbers<[1], [0], [0], [1], [0, 0, 1, 1], [], []>} : vector<1x32xbf16>, vector<32x72xbf16>, vector<1x72xf32> -> vector<1x72xf32>
    %56 = arith.addf %47, %55 : vector<1x72xf32>
    %c0_i32_49 = arith.constant 0 : i32
    %57 = arith.addi %0, %c0_i32_49 : i32
    %c2_i32 = arith.constant 2 : i32
    %58 = arith.addi %57, %c2_i32 : i32
    %c0_50 = arith.constant 0 : index
    %59 = arith.index_cast %58 : i32 to index
    %c0_51 = arith.constant 0 : index
    %c0_52 = arith.constant 0 : index
    %60 = vector.load %arg2[%c0_50, %59, %c0_51, %c0_52] : memref<1x3x3x32xbf16, #tpu.memory_space<vmem>>, vector<1x1x1x32xbf16>
    %61 = vector.shape_cast %60 : vector<1x1x1x32xbf16> to vector<1x32xbf16>
    %c6 = arith.constant 6 : index
    %c0_53 = arith.constant 0 : index
    %c0_54 = arith.constant 0 : index
    %62 = vector.load %arg3[%c6, %c0_53, %c0_54] : memref<9x32x72xbf16, #tpu.memory_space<vmem>>, vector<1x32x72xbf16>
    %63 = vector.shape_cast %62 : vector<1x32x72xbf16> to vector<32x72xbf16>
    %cst_55 = arith.constant dense<0.000000e+00> : vector<1x72xf32>
    %64 = tpu.matmul %61, %63, %cst_55 {dimension_numbers = #tpu.dot_dimension_numbers<[1], [0], [0], [1], [0, 0, 1, 1], [], []>} : vector<1x32xbf16>, vector<32x72xbf16>, vector<1x72xf32> -> vector<1x72xf32>
    %65 = arith.addf %56, %64 : vector<1x72xf32>
    %c0_i32_56 = arith.constant 0 : i32
    %66 = arith.addi %0, %c0_i32_56 : i32
    %c2_i32_57 = arith.constant 2 : i32
    %67 = arith.addi %66, %c2_i32_57 : i32
    %c0_58 = arith.constant 0 : index
    %68 = arith.index_cast %67 : i32 to index
    %c1_59 = arith.constant 1 : index
    %c0_60 = arith.constant 0 : index
    %69 = vector.load %arg2[%c0_58, %68, %c1_59, %c0_60] : memref<1x3x3x32xbf16, #tpu.memory_space<vmem>>, vector<1x1x1x32xbf16>
    %70 = vector.shape_cast %69 : vector<1x1x1x32xbf16> to vector<1x32xbf16>
    %c7 = arith.constant 7 : index
    %c0_61 = arith.constant 0 : index
    %c0_62 = arith.constant 0 : index
    %71 = vector.load %arg3[%c7, %c0_61, %c0_62] : memref<9x32x72xbf16, #tpu.memory_space<vmem>>, vector<1x32x72xbf16>
    %72 = vector.shape_cast %71 : vector<1x32x72xbf16> to vector<32x72xbf16>
    %cst_63 = arith.constant dense<0.000000e+00> : vector<1x72xf32>
    %73 = tpu.matmul %70, %72, %cst_63 {dimension_numbers = #tpu.dot_dimension_numbers<[1], [0], [0], [1], [0, 0, 1, 1], [], []>} : vector<1x32xbf16>, vector<32x72xbf16>, vector<1x72xf32> -> vector<1x72xf32>
    %74 = arith.addf %65, %73 : vector<1x72xf32>
    %c0_i32_64 = arith.constant 0 : i32
    %75 = arith.addi %0, %c0_i32_64 : i32
    %c2_i32_65 = arith.constant 2 : i32
    %76 = arith.addi %75, %c2_i32_65 : i32
    %c0_66 = arith.constant 0 : index
    %77 = arith.index_cast %76 : i32 to index
    %c2_67 = arith.constant 2 : index
    %c0_68 = arith.constant 0 : index
    %78 = vector.load %arg2[%c0_66, %77, %c2_67, %c0_68] : memref<1x3x3x32xbf16, #tpu.memory_space<vmem>>, vector<1x1x1x32xbf16>
    %79 = vector.shape_cast %78 : vector<1x1x1x32xbf16> to vector<1x32xbf16>
    %c8 = arith.constant 8 : index
    %c0_69 = arith.constant 0 : index
    %c0_70 = arith.constant 0 : index
    %80 = vector.load %arg3[%c8, %c0_69, %c0_70] : memref<9x32x72xbf16, #tpu.memory_space<vmem>>, vector<1x32x72xbf16>
    %81 = vector.shape_cast %80 : vector<1x32x72xbf16> to vector<32x72xbf16>
    %cst_71 = arith.constant dense<0.000000e+00> : vector<1x72xf32>
    %82 = tpu.matmul %79, %81, %cst_71 {dimension_numbers = #tpu.dot_dimension_numbers<[1], [0], [0], [1], [0, 0, 1, 1], [], []>} : vector<1x32xbf16>, vector<32x72xbf16>, vector<1x72xf32> -> vector<1x72xf32>
    %83 = arith.addf %74, %82 : vector<1x72xf32>
    %84 = arith.addf %83, %1 : vector<1x72xf32>
    %c0_72 = arith.constant 0 : index
    %c0_73 = arith.constant 0 : index
    %c0_74 = arith.constant 0 : index
    %c0_75 = arith.constant 0 : index
    %85 = vector.load %arg5[%c0_72, %c0_73, %c0_74, %c0_75] : memref<1x1x1x72xf32, #tpu.memory_space<vmem>>, vector<1x1x1x72xf32>
    %86 = vector.shape_cast %85 : vector<1x1x1x72xf32> to vector<1x72xf32>
    %87 = vector.shape_cast %84 : vector<1x72xf32> to vector<1x1x1x72xf32>
    tpu.vector_store %arg5[%c0_72, %c0_73, %c0_74, %c0_75], %87 {strides = array<i32>} : memref<1x1x1x72xf32, #tpu.memory_space<vmem>>, vector<1x1x1x72xf32>,
    return
  }
  func.func @transform_0(%arg0: i32, %arg1: i32) -> (i32, i32, i32, i32) {
    %c0_i32 = arith.constant 0 : i32
    %c0_i32_0 = arith.constant 0 : i32
    %c0_i32_1 = arith.constant 0 : i32
    %c0_i32_2 = arith.constant 0 : i32
    return %arg0, %c0_i32, %c0_i32_0, %c0_i32_1 : i32, i32, i32, i32
  }
  func.func @transform_1(%arg0: i32, %arg1: i32) -> (i32, i32, i32) {
    %c0_i32 = arith.constant 0 : i32
    %c0_i32_0 = arith.constant 0 : i32
    %c0_i32_1 = arith.constant 0 : i32
    %c0_i32_2 = arith.constant 0 : i32
    return %c0_i32, %c0_i32_0, %c0_i32_1 : i32, i32, i32
  }
  func.func @transform_2(%arg0: i32, %arg1: i32) -> (i32, i32) {
    %c0_i32 = arith.constant 0 : i32
    %c0_i32_0 = arith.constant 0 : i32
    %c0_i32_1 = arith.constant 0 : i32
    return %c0_i32, %c0_i32_0 : i32, i32
  }
  func.func @transform_3(%arg0: i32, %arg1: i32) -> (i32, i32, i32, i32) {
    %c0_i32 = arith.constant 0 : i32
    %c0_i32_0 = arith.constant 0 : i32
    %c0_i32_1 = arith.constant 0 : i32
    return %arg0, %arg1, %c0_i32, %c0_i32_0 : i32, i32, i32, i32
  }
}

</mosaic_0001>

<bundles_post_ra>
// kernel: ssd_forward.17
= control target key start
LH: loop header
LB: loop body
LE: loop exit
PB: predicated region body
PF: predicated region fallthrough
CT: control target
= control target key end

     0   :  { %s3287_s12 = smov 0   ;;  %s3289_s13 = smov 0   ;;  %s3934_s0 = inlined_call_operand.vmem [shape: bf16[2,17,33,12], index: 0, kind: input, shape index: {}]   ;;  %s3935_s1 = inlined_call_operand.vmem [shape: bf16[4,12,8], index: 1, kind: input, shape index: {}]   ;;  %s3936_s2 = inlined_call_operand.vmem [shape: f32[1,8], index: 2, kind: input, shape index: {}]   ;;  %s3937_s3 = inlined_call_operand.vmem [shape: bf16[2,16,32,8], index: 3, kind: output, shape index: {}]  }
   0x1   :  { %s3291_s14 = smov 0   ;;  %s3293_s15 = smov 0  }
   0x2   :  { %s3295_s16 = smov 0  }
   0x3 LB: > { %s22_s17 = sadd.s32 1, %s3257_s14  ;;  %s25_s18 = sadd.s32 1, %s3261_s15  ;;  %s3265_s16 = sphi %s3295_s16, %s13_s16   ;;  %s3261_s15 = sphi %s3293_s15, %s3944_s15   ;;  %s3257_s14 = sphi %s3291_s14, %s3943_s14   ;;  %s3253_s13 = sphi %s3289_s13, %s3942_s13   ;;  %s3249_s12 = sphi %s3287_s12, %s3941_s12  }
   0x4   : > { %p23_p0 = scmp.ge.s32.totalorder %s22_s17, 2  ;;  %p2557_p1 = scmp.ge.s32.totalorder %s3265_s16, 1 }
   0x5   : > { %p151_p2 = scmp.lt.s32.totalorder %s3265_s16, 5 }
   0x6   : > { %s3946_s17 = smov (%p23_p0, %s22_s17), 0  ;;  %s3948_s18 = smov (!%p23_p0, %s25_s18), %s3261_s15 }
   0x7   : > { %p152_p3 = pnand %p2557_p1, %p151_p2  ;;  %p27_p4 = scmp.ge.s32.totalorder %s3948_s18, 2 }
   0x8   : > { %vm704_vm0 = vcmask (!%p152_p3), 1045504   ;;  %p180_p5 = scmp.lt.s32.totalorder (!%p152_p3), %s3253_s13, 1  ;;  %v3191_v0 = vld [vmem:[%s3935_s1 + $0x10] sm:$0x3f] (!%p152_p3)   ;;  %v3194_v1 = vld [vmem:[%s3935_s1 + $0x8] sm:$0x3f] (!%p152_p3)  }
   0x9   : > { %s3950_s18 = smov (%p27_p4, %s3948_s18), 0  ;;  %155 = sbr.rel (%p152_p3) target bundleno = 390 (0x186), region = 32 }
   0xa   : > { %3148 = vmatprep.subr.msk.bf16.mxu0 (!%p152_p3), %vm704_vm0, %v3191_v0  ;;  %v1339_v2 = vsel (!%p152_p3), %vm704_vm0, %v3191_v0, 0  ;;  %s2813_s23 = smul.u32 (!%p152_p3), 160, %s3249_s12  ;;  %3146 = vmatprep.subr.msk.bf16.mxu1 (!%p152_p3), %vm704_vm0, %v3194_v1  ;;  %v706_v3 = vsel (!%p152_p3), %vm704_vm0, %v3194_v1, 0  ;;  %v3197_v4 = vld [vmem:[%s3935_s1] sm:$0x3f] (!%p152_p3)   ;;  %vm655_vm1 = vcmask (!%p152_p3), 97280  }
   0xb   : > { %2983 = vmatpush3.bf16.msra.mxu0 (!%p152_p3), %v1339_v2  ;;  %2915 = vmatpush3.bf16.msra.mxu1 (!%p152_p3), %v706_v3  ;;  %v3199_v5 = vld [vmem:[%s3935_s1 + $0x18] sm:$0x3f] (!%p152_p3)   ;;  %vm244_vm2 = vsmask.f32 (!%p152_p3), 3328  ;;  %vm245_vm3 = vsmask.f32 (!%p152_p3), 7440 }
   0xc   : > { %3147 = vmatprep.subr.msk.bf16.mxu1 (!%p152_p3), %vm704_vm0, %v3197_v4  ;;  %3149 = vmatprep.subr.msk.bf16.mxu0 (!%p152_p3), %vm704_vm0, %v3199_v5  ;;  %v2031_v8 = vsel (!%p152_p3), %vm704_vm0, %v3199_v5, 0  ;;  %v3352_v10 = vsel (!%p152_p3), %vm704_vm0, %v3197_v4, 0  ;;  %vm3385_vm4 = vmor (!%p152_p3), %vm244_vm2, %vm245_vm3  ;;  %s2559_s6 = sshll.u32 (!%p152_p3), %s3249_s12, 3  ;;  %vm2424_vm5 = vcmask (!%p152_p3), 60416  }
   0xd   : > { %p188_p6 = scmp.lt.s32.totalorder (!%p152_p3), %s2559_s6, 15 }
  0x10   : > { %s3952_s13 = smov (!%p180_p5, %s3253_s13), 1  ;;  %s3954_s6 = smov (!%p188_p6, %s2559_s6), 15 }
  0x11   : > { %s3150_s24 = smul.u32 340, %s3952_s13  ;;  %s2560_s7 = sshll.u32 %s3954_s6, 2 }
  0x12   : > { %s2561_s8 = sshll.u32 %s3952_s13, 6 }
  0x13   : > { %s184_s29 = scalar_lea.vmem %s3934_s0, %s3150_s24  ;;  %s192_s9 = sadd.s32 %s2561_s8, %s2560_s7 }
  0x14   : > { %s3342_s5 = scalar_lea.vmem %s184_s29, %s2813_s23  ;;  %s2562_s12 = sshll.u32 %s192_s9, 2 }
  0x15   : > { %v3192_v6 = vld [vmem:[%s3342_s5 + $0x14] sm:$0xff]   ;;  %v3193_v7 = vld [vmem:[%s3342_s5 + $0x1c] sm:$0xff]   ;;  %v3195_v9 = vld [vmem:[%s3342_s5 + $0x28] sm:$0xff]   ;;  %s3824_s20 = scalar_lea.vmem %s3937_s3, %s2562_s12 }
  0x16   : > { %2984 = vmatprep.mubr.msk.bf16.mxu0 %vm655_vm1, %v3192_v6  ;;  %v3356_v11 = vld [vmem:[%s3342_s5] sm:$0xf]  ;;  %v3359_v12 = vld [vmem:[%s3342_s5 + $0x4] sm:$0xf]  ;;  %v3362_v13 = vld [vmem:[%s3342_s5 + $0x8] sm:$0xf] }
  0x17   : > { %2985 = vmatmul.mubr.msk.bf16.vlgmr.msra.gmra.mrb[0].mxu0 %vm655_vm1, %v3193_v7  ;;  %v3366_v14 = vld [vmem:[%s3342_s5 + $0xc] sm:$0xf]  ;;  %v248_v15 = vshrl.u32 %v3356_v11, 16  ;;  %v251_v16 = vshll.u32 %v3356_v11, 16  ;;  %v257_v17 = vshll.u32 %v3359_v12, 16  ;;  %v261_v18 = vshrl.u32 %v3359_v12, 16 }
  0x18   : > { %2988 = vmatprep.mubr.msk.bf16.mxu0 %vm655_vm1, %v3195_v9  ;;  %3017 = vmatpush3.bf16.msra.mxu0 %v2031_v8  ;;  %v267_v19 = vshll.u32 %v3362_v13, 16  ;;  %v271_v20 = vshrl.u32 %v3362_v13, 16  ;;  %v2601_v22 = vcombine.low %v3356_v11, %v3359_v12  ;;  %v3198_v27 = vld [vmem:[%s3342_s5 + $0x30] sm:$0xff]   ;;  %v277_v31 = vshll.u32 %v3366_v14, 16  ;;  %v3200_v36 = vld [vmem:[%s3342_s5 + $0x3c] sm:$0xff]   ;;  %v3201_v4 = vld [vmem:[%s3342_s5 + $0x44] sm:$0xff]  }
  0x19   : > { %v250_v23 = vrot.slane %v248_v15, 4  ;;  %v253_v24 = vrot.slane %v251_v16, 5  ;;  %v259_v25 = vrot.slane %v257_v17, 5  ;;  %v263_v26 = vrot.slane %v261_v18, 4  ;;  %v236_v30 = vld [vmem:[%s3342_s5 + $0x10] sm:$0x1] }
  0x1a   : > { %v269_v28 = vrot.slane %v267_v19, 5  ;;  %v273_v29 = vrot.slane %v271_v20, 4  ;;  %v281_v32 = vshrl.u32 %v3366_v14, 16  ;;  %v287_v35 = vshll.u32 %v236_v30, 16  ;;  %v3390_v41 = vld [vmem:[%s3342_s5 + $0x14] sm:$0xf] }
  0x1b   : > { %v254_v33 = vor.u32 %v253_v24, %v250_v23  ;;  %v264_v34 = vor.u32 %v263_v26, %v259_v25  ;;  %v279_v39 = vrot.slane %v277_v31, 5  ;;  %v3393_v42 = vld [vmem:[%s3342_s5 + $0x18] sm:$0xf]  ;;  %v3396_v46 = vld [vmem:[%s3342_s5 + $0x1c] sm:$0xf]  ;;  %v292_v47 = vshrl.u32 %v3390_v41, 16 }
  0x1c   : > { %v274_v38 = vor.u32 %v273_v29, %v269_v28  ;;  %v283_v40 = vrot.slane %v281_v32, 4  ;;  %v289_v45 = vrot.slane %v287_v35, 5  ;;  %v295_v50 = vshll.u32 %v3390_v41, 16  ;;  %v3409_v56 = vld [vmem:[%s3342_s5 + $0x20] sm:$0xf]  ;;  %v3202_v7 = vld [vmem:[%s3342_s5 + $0x50] sm:$0xff]  }
  0x1d   : > { %v255_v43 = vrot.slane %v254_v33, 4  ;;  %v265_v44 = vrot.slane %v264_v34, 4  ;;  %v301_v51 = vshll.u32 %v3393_v42, 16  ;;  %v294_v54 = vrot.slane %v292_v47, 4  ;;  %v237_v61 = vld [vmem:[%s3342_s5 + $0x24] sm:$0x1] }
  0x1e   : > { %v275_v48 = vrot.slane %v274_v38, 4  ;;  %v284_v49 = vor.u32 %v283_v40, %v279_v39  ;;  %v305_v55 = vshrl.u32 %v3393_v42, 16  ;;  %v297_v60 = vrot.slane %v295_v50, 5  ;;  %v3424_v8 = vld [vmem:[%s3342_s5 + $0x28] sm:$0xf] }
  0x1f   : > { %2989 = vmatmul.mubr.msk.bf16.gmra.mrb[4].mxu0 %vm655_vm1, %v3198_v27  ;;  %v260_v52 = vsel %vm3385_vm4, %v255_v43, %v259_v25  ;;  %v270_v53 = vsel %vm3385_vm4, %v265_v44, %v269_v28  ;;  %v303_v62 = vrot.slane %v301_v51, 5  ;;  %v311_v0 = vshll.u32 %v3396_v46, 16  ;;  %v3427_v18 = vld [vmem:[%s3342_s5 + $0x2c] sm:$0xf]  ;;  %v3431_v27 = vld [vmem:[%s3342_s5 + $0x30] sm:$0xf] }
  0x20   : > { %2992 = vmatprep.mubr.msk.bf16.mxu0 %vm655_vm1, %v3200_v36  ;;  %v2568_v57 = vcombine.low %v260_v52, %v270_v53  ;;  %v280_v58 = vsel %vm3385_vm4, %v275_v48, %v279_v39  ;;  %v285_v59 = vrot.slane %v284_v49, 4  ;;  %v307_v63 = vrot.slane %v305_v55, 4  ;;  %v3441_v34 = vld [vmem:[%s3342_s5 + $0x34] sm:$0xf]  ;;  %v3453_v51 = vld [vmem:[%s3342_s5 + $0x3c] sm:$0xf] }
  0x21   : > { %v315_v1 = vshrl.u32 %v3396_v46, 16  ;;  %v298_v3 = vor.u32 %v297_v60, %v294_v54  ;;  %v321_v5 = vshll.u32 %v3409_v56, 16  ;;  %v325_v6 = vshrl.u32 %v3409_v56, 16  ;;  %v3456_v52 = vld [vmem:[%s3342_s5 + $0x40] sm:$0xf]  ;;  %v3203_v55 = vld [vmem:[%s3342_s5 + $0x58] sm:$0xff]  }
  0x22   : > { %2916 = vmatprep.mubr.msk.bf16.mxu1 %vm655_vm1, %v2568_v57  ;;  %v290_v2 = vsel %vm3385_vm4, %v285_v59, %v289_v45  ;;  %v308_v15 = vor.u32 %v307_v63, %v303_v62  ;;  %v313_v16 = vrot.slane %v311_v0, 5  ;;  %v331_v24 = vshll.u32 %v237_v61, 16  ;;  %v238_v45 = vld [vmem:[%s3342_s5 + $0x38] sm:$0x1]  ;;  %v3204_v63 = vld [vmem:[%s3342_s5 + $0x64] sm:$0xff]  }
  0x23   : > { %v2569_v9 = vcombine.low %v280_v58, %v290_v2  ;;  %v317_v17 = vrot.slane %v315_v1, 4  ;;  %v299_v19 = vrot.slane %v298_v3, 4  ;;  %v323_v20 = vrot.slane %v321_v5, 5 }
  0x24   : > { %v327_v23 = vrot.slane %v325_v6, 4  ;;  %v309_v25 = vrot.slane %v308_v15, 4  ;;  %v336_v28 = vshrl.u32 %v3424_v8, 16  ;;  %v339_v29 = vshll.u32 %v3424_v8, 16  ;;  %v3469_v6 = vld [vmem:[%s3342_s5 + $0x44] sm:$0xf] }
  0x25   : > { %2917 = vmatmul.mubr.msk.bf16.vlgmr.msra.gmra.mrb[0].mxu1 %vm655_vm1, %v2569_v9  ;;  %v318_v26 = vor.u32 %v317_v17, %v313_v16  ;;  %v304_v30 = vsel %vm3385_vm4, %v299_v19, %v303_v62  ;;  %v333_v32 = vrot.slane %v331_v24, 5  ;;  %v345_v33 = vshll.u32 %v3427_v18, 16 }
  0x26   : > { %2949 = vmatpush3.bf16.msra.mxu1 %v3352_v10  ;;  %v328_v31 = vor.u32 %v327_v23, %v323_v20  ;;  %v314_v35 = vsel %vm3385_vm4, %v309_v25, %v313_v16  ;;  %v338_v10 = vrot.slane %v336_v28, 4  ;;  %v341_v38 = vrot.slane %v339_v29, 5 }
  0x27   : > { %2993 = vmatmul.mubr.msk.bf16.gmra.mrb[8].mxu0 %vm655_vm1, %v3201_v4  ;;  %v319_v36 = vrot.slane %v318_v26, 4  ;;  %v2570_v39 = vcombine.low %v304_v30, %v314_v35  ;;  %v347_v43 = vrot.slane %v345_v33, 5  ;;  %v349_v44 = vshrl.u32 %v3427_v18, 16  ;;  %v3478_v26 = vld [vmem:[%s3342_s5 + $0x48] sm:$0xf] }
  0x28   : > { %2996 = vmatprep.mubr.msk.bf16.mxu0 %vm655_vm1, %v3202_v7  ;;  %v329_v40 = vrot.slane %v328_v31, 4  ;;  %v342_v48 = vor.u32 %v341_v38, %v338_v10  ;;  %v355_v49 = vshll.u32 %v3431_v27, 16  ;;  %v359_v50 = vshrl.u32 %v3431_v27, 16  ;;  %v3205_v38 = vld [vmem:[%s3342_s5 + $0x6c] sm:$0xff]  }
  0x29   : > { %v324_v47 = vsel %vm3385_vm4, %v319_v36, %v323_v20  ;;  %2920 = vmatprep.mubr.msk.bf16.mxu1 %vm655_vm1, %v2570_v39  ;;  %v351_v54 = vrot.slane %v349_v44, 4  ;;  %v365_v57 = vshll.u32 %v3441_v34, 16  ;;  %v369_v58 = vshrl.u32 %v3441_v34, 16  ;;  %v3488_v39 = vld [vmem:[%s3342_s5 + $0x50] sm:$0xf] }
  0x2a   : > { %v334_v53 = vsel %vm3385_vm4, %v329_v40, %v333_v32  ;;  %v343_v60 = vrot.slane %v342_v48, 4  ;;  %v357_v61 = vrot.slane %v355_v49, 5  ;;  %v361_v62 = vrot.slane %v359_v50, 4  ;;  %v239_v32 = vld [vmem:[%s3342_s5 + $0x4c] sm:$0x1] }
  0x2b   : > { %v2571_v59 = vcombine.low %v324_v47, %v334_v53  ;;  %v352_v0 = vor.u32 %v351_v54, %v347_v43  ;;  %v367_v1 = vrot.slane %v365_v57, 5  ;;  %v371_v2 = vrot.slane %v369_v58, 4  ;;  %v3206_v47 = vld [vmem:[%s3342_s5 + $0x78] sm:$0xff]   ;;  %v3498_v54 = vld [vmem:[%s3342_s5 + $0x54] sm:$0xf] }
  0x2c   : > { %v375_v3 = vshll.u32 %v238_v45, 16  ;;  %v348_v4 = vsel %vm3385_vm4, %v343_v60, %v347_v43  ;;  %v362_v5 = vor.u32 %v361_v62, %v357_v61  ;;  %v380_v7 = vshrl.u32 %v3453_v51, 16 }
  0x2d   : > { %2921 = vmatmul.mubr.msk.bf16.gmra.mrb[4].mxu1 %vm655_vm1, %v2571_v59  ;;  %v383_v9 = vshll.u32 %v3453_v51, 16  ;;  %v353_v15 = vrot.slane %v352_v0, 4  ;;  %v372_v16 = vor.u32 %v371_v2, %v367_v1  ;;  %v389_v19 = vshll.u32 %v3456_v52, 16 }
  0x2e   : > { %v377_v17 = vrot.slane %v375_v3, 5  ;;  %v363_v20 = vrot.slane %v362_v5, 4  ;;  %v382_v23 = vrot.slane %v380_v7, 4  ;;  %v393_v25 = vshrl.u32 %v3456_v52, 16 }
  0x2f   : > { %2997 = vmatmul.mubr.msk.bf16.gmra.mrb[12].mxu0 %vm655_vm1, %v3203_v55  ;;  %v385_v24 = vrot.slane %v383_v9, 5  ;;  %v358_v28 = vsel %vm3385_vm4, %v353_v15, %v357_v61  ;;  %v373_v29 = vrot.slane %v372_v16, 4  ;;  %v391_v30 = vrot.slane %v389_v19, 5  ;;  %v3501_v55 = vld [vmem:[%s3342_s5 + $0x58] sm:$0xf] }
  0x30   : > { %3000 = vmatprep.mubr.msk.bf16.mxu0 %vm655_vm1, %v3204_v63  ;;  %v399_v31 = vshll.u32 %v3469_v6, 16  ;;  %v2572_v33 = vcombine.low %v348_v4, %v358_v28  ;;  %v368_v35 = vsel %vm3385_vm4, %v363_v20, %v367_v1  ;;  %v395_v10 = vrot.slane %v393_v25, 4  ;;  %v3515_v16 = vld [vmem:[%s3342_s5 + $0x5c] sm:$0xf] }
  0x31   : > { %v386_v36 = vor.u32 %v385_v24, %v382_v23  ;;  %v378_v40 = vsel %vm3385_vm4, %v373_v29, %v377_v17  ;;  %v403_v44 = vshrl.u32 %v3469_v6, 16  ;;  %v409_v45 = vshll.u32 %v3478_v26, 16  ;;  %v240_v17 = vld [vmem:[%s3342_s5 + $0x60] sm:$0x1] }
  0x32   : > { %v401_v43 = vrot.slane %v399_v31, 5  ;;  %2924 = vmatprep.mubr.msk.bf16.mxu1 %vm655_vm1, %v2572_v33  ;;  %v2573_v48 = vcombine.low %v368_v35, %v378_v40  ;;  %v396_v50 = vor.u32 %v395_v10, %v391_v30  ;;  %v413_v53 = vshrl.u32 %v3478_v26, 16  ;;  %v3208_v10 = vld [vmem:[%s3342_s5 + $0x8c] sm:$0xff]  }
  0x33   : > { %v387_v49 = vrot.slane %v386_v36, 4  ;;  %v405_v57 = vrot.slane %v403_v44, 4  ;;  %v411_v58 = vrot.slane %v409_v45, 5  ;;  %v419_v59 = vshll.u32 %v239_v32, 16 }
  0x34   : > { %v424_v60 = vshrl.u32 %v3488_v39, 16  ;;  %v397_v62 = vrot.slane %v396_v50, 4  ;;  %v415_v63 = vrot.slane %v413_v53, 4  ;;  %v427_v0 = vshll.u32 %v3488_v39, 16 }
  0x35   : > { %2925 = vmatmul.mubr.msk.bf16.gmra.mrb[8].mxu1 %vm655_vm1, %v2573_v48  ;;  %v392_v61 = vsel %vm3385_vm4, %v387_v49, %v391_v30  ;;  %v406_v1 = vor.u32 %v405_v57, %v401_v43  ;;  %v421_v2 = vrot.slane %v419_v59, 5  ;;  %v433_v4 = vshll.u32 %v3498_v54, 16  ;;  %v3207_v30 = vld [vmem:[%s3342_s5 + $0x80] sm:$0xff]  }
  0x36   : > { %v426_v3 = vrot.slane %v424_v60, 4  ;;  %v402_v5 = vsel %vm3385_vm4, %v397_v62, %v401_v43  ;;  %v416_v7 = vor.u32 %v415_v63, %v411_v58  ;;  %v429_v9 = vrot.slane %v427_v0, 5  ;;  %v3538_v60 = vld [vmem:[%s3342_s5 + $0x6c] sm:$0xf] }
  0x37   : > { %3001 = vmatmul.mubr.msk.bf16.gmra.mrb[16].mxu0 %vm655_vm1, %v3205_v38  ;;  %v437_v15 = vshrl.u32 %v3498_v54, 16  ;;  %v2574_v19 = vcombine.low %v392_v61, %v402_v5  ;;  %v407_v20 = vrot.slane %v406_v1, 4  ;;  %v435_v23 = vrot.slane %v433_v4, 5  ;;  %v3528_v38 = vld [vmem:[%s3342_s5 + $0x64] sm:$0xf] }
  0x38   : > { %3004 = vmatprep.mubr.msk.bf16.mxu0 %vm655_vm1, %v3206_v47  ;;  %v443_v24 = vshll.u32 %v3501_v55, 16  ;;  %v417_v25 = vrot.slane %v416_v7, 4  ;;  %v430_v28 = vor.u32 %v429_v9, %v426_v3  ;;  %v447_v31 = vshrl.u32 %v3501_v55, 16  ;;  %v3533_v47 = vld [vmem:[%s3342_s5 + $0x68] sm:$0xf] }
  0x39   : > { %v439_v29 = vrot.slane %v437_v15, 4  ;;  %2928 = vmatprep.mubr.msk.bf16.mxu1 %vm655_vm1, %v2574_v19  ;;  %v412_v32 = vsel %vm3385_vm4, %v407_v20, %v411_v58  ;;  %v453_v35 = vshll.u32 %v3515_v16, 16  ;;  %v457_v36 = vshrl.u32 %v3515_v16, 16 }
  0x3a   : > { %v445_v33 = vrot.slane %v443_v24, 5  ;;  %v422_v40 = vsel %vm3385_vm4, %v417_v25, %v421_v2  ;;  %v431_v43 = vrot.slane %v430_v28, 4  ;;  %v449_v45 = vrot.slane %v447_v31, 4  ;;  %v3546_v2 = vld [vmem:[%s3342_s5 + $0x70] sm:$0xf]  ;;  %v3209_v31 = vld [vmem:[%s3342_s5 + $0x94] sm:$0xff]  }
  0x3b   : > { %v440_v44 = vor.u32 %v439_v29, %v435_v23  ;;  %v2575_v48 = vcombine.low %v412_v32, %v422_v40  ;;  %v455_v49 = vrot.slane %v453_v35, 5  ;;  %v459_v50 = vrot.slane %v457_v36, 4  ;;  %v241_v25 = vld [vmem:[%s3342_s5 + $0x74] sm:$0x1]  ;;  %v3564_v35 = vld [vmem:[%s3342_s5 + $0x78] sm:$0xf] }
  0x3c   : > { %v463_v53 = vshll.u32 %v240_v17, 16  ;;  %v436_v57 = vsel %vm3385_vm4, %v431_v43, %v435_v23  ;;  %v450_v59 = vor.u32 %v449_v45, %v445_v33  ;;  %v468_v61 = vshrl.u32 %v3528_v38, 16  ;;  %v3568_v45 = vld [vmem:[%s3342_s5 + $0x7c] sm:$0xf] }
  0x3d   : > { %v441_v58 = vrot.slane %v440_v44, 4  ;;  %2929 = vmatmul.mubr.msk.bf16.gmra.mrb[12].mxu1 %vm655_vm1, %v2575_v48  ;;  %v460_v62 = vor.u32 %v459_v50, %v455_v49  ;;  %v471_v0 = vshll.u32 %v3528_v38, 16  ;;  %v477_v1 = vshll.u32 %v3533_v47, 16  ;;  %v3210_v44 = vld [vmem:[%s3342_s5 + $0xa0] sm:$0xff]  }
  0x3e   : > { %v465_v63 = vrot.slane %v463_v53, 5  ;;  %v451_v4 = vrot.slane %v450_v59, 4  ;;  %v470_v5 = vrot.slane %v468_v61, 4  ;;  %v481_v7 = vshrl.u32 %v3533_v47, 16 }
  0x3f   : > { %3005 = vmatmul.mubr.msk.bf16.gmra.mrb[20].mxu0 %vm655_vm1, %v3207_v30  ;;  %v446_v3 = vsel %vm3385_vm4, %v441_v58, %v445_v33  ;;  %v461_v15 = vrot.slane %v460_v62, 4  ;;  %v473_v17 = vrot.slane %v471_v0, 5  ;;  %v479_v19 = vrot.slane %v477_v1, 5  ;;  %v3577_v1 = vld [vmem:[%s3342_s5 + $0x80] sm:$0xf] }
  0x40   : > { %3008 = vmatprep.mubr.msk.bf16.mxu0 %vm655_vm1, %v3208_v10  ;;  %v2576_v9 = vcombine.low %v436_v57, %v446_v3  ;;  %v456_v20 = vsel %vm3385_vm4, %v451_v4, %v455_v49  ;;  %v483_v23 = vrot.slane %v481_v7, 4  ;;  %v487_v24 = vshll.u32 %v3538_v60, 16 }
  0x41   : > { %v491_v28 = vshrl.u32 %v3538_v60, 16  ;;  %v466_v29 = vsel %vm3385_vm4, %v461_v15, %v465_v63  ;;  %v474_v30 = vor.u32 %v473_v17, %v470_v5  ;;  %v497_v32 = vshll.u32 %v3546_v2, 16  ;;  %v3584_v15 = vld [vmem:[%s3342_s5 + $0x84] sm:$0xf] }
  0x42   : > { %2932 = vmatprep.mubr.msk.bf16.mxu1 %vm655_vm1, %v2576_v9  ;;  %v501_v33 = vshrl.u32 %v3546_v2, 16  ;;  %v2577_v36 = vcombine.low %v456_v20, %v466_v29  ;;  %v484_v10 = vor.u32 %v483_v23, %v479_v19  ;;  %v489_v40 = vrot.slane %v487_v24, 5  ;;  %v242_v29 = vld [vmem:[%s3342_s5 + $0x88] sm:$0x1] }
  0x43   : > { %v493_v43 = vrot.slane %v491_v28, 4  ;;  %v475_v48 = vrot.slane %v474_v30, 4  ;;  %v499_v49 = vrot.slane %v497_v32, 5  ;;  %v507_v53 = vshll.u32 %v241_v25, 16 }
  0x44   : > { %v503_v50 = vrot.slane %v501_v33, 4  ;;  %v485_v57 = vrot.slane %v484_v10, 4  ;;  %v512_v59 = vshrl.u32 %v3564_v35, 16  ;;  %v515_v61 = vshll.u32 %v3564_v35, 16  ;;  %v3211_v33 = vld [vmem:[%s3342_s5 + $0xa8] sm:$0xff]  }
  0x45   : > { %v494_v58 = vor.u32 %v493_v43, %v489_v40  ;;  %2933 = vmatmul.mubr.msk.bf16.gmra.mrb[16].mxu1 %vm655_vm1, %v2577_v36  ;;  %v480_v62 = vsel %vm3385_vm4, %v475_v48, %v479_v19  ;;  %v509_v0 = vrot.slane %v507_v53, 5  ;;  %v521_v3 = vshll.u32 %v3568_v45, 16 }
  0x46   : > { %v504_v63 = vor.u32 %v503_v50, %v499_v49  ;;  %v490_v4 = vsel %vm3385_vm4, %v485_v57, %v489_v40  ;;  %v514_v7 = vrot.slane %v512_v59, 4  ;;  %v517_v9 = vrot.slane %v515_v61, 5  ;;  %v2703_v40 = vld [vmem:[%s3342_s5 + $0x14] sm:$0xf]  ;;  %v2704_v50 = vld [vmem:[%s3342_s5 + $0x18] sm:$0xf] }
  0x47   : > { %3009 = vmatmul.mubr.msk.bf16.gmra.mrb[24].mxu0 %vm655_vm1, %v3209_v31  ;;  %v495_v5 = vrot.slane %v494_v58, 4  ;;  %v2578_v17 = vcombine.low %v480_v62, %v490_v4  ;;  %v523_v20 = vrot.slane %v521_v3, 5  ;;  %v525_v23 = vshrl.u32 %v3568_v45, 16 }
  0x48   : > { %3012 = vmatprep.mubr.msk.bf16.mxu0 %vm655_vm1, %v3210_v44  ;;  %v505_v19 = vrot.slane %v504_v63, 4  ;;  %v518_v25 = vor.u32 %v517_v9, %v514_v7  ;;  %v531_v28 = vshll.u32 %v3577_v1, 16  ;;  %v535_v30 = vshrl.u32 %v3577_v1, 16  ;;  %v2705_v63 = vld [vmem:[%s3342_s5 + $0x1c] sm:$0xf] }
  0x49   : > { %v500_v24 = vsel %vm3385_vm4, %v495_v5, %v499_v49  ;;  %2936 = vmatprep.mubr.msk.bf16.mxu1 %vm655_vm1, %v2578_v17  ;;  %v527_v32 = vrot.slane %v525_v23, 4  ;;  %v541_v36 = vshll.u32 %v3584_v15, 16  ;;  %v545_v10 = vshrl.u32 %v3584_v15, 16 }
  0x4a   : > { %v510_v31 = vsel %vm3385_vm4, %v505_v19, %v509_v0  ;;  %v519_v44 = vrot.slane %v518_v25, 4  ;;  %v533_v48 = vrot.slane %v531_v28, 5  ;;  %v537_v49 = vrot.slane %v535_v30, 4  ;;  %v3606_v25 = vld [vmem:[%s3342_s5 + $0x8c] sm:$0xf] }
  0x4b   : > { %v2579_v43 = vcombine.low %v500_v24, %v510_v31  ;;  %v528_v53 = vor.u32 %v527_v32, %v523_v20  ;;  %v543_v57 = vrot.slane %v541_v36, 5  ;;  %v547_v58 = vrot.slane %v545_v10, 4  ;;  %v3613_v10 = vld [vmem:[%s3342_s5 + $0x90] sm:$0xf] }
  0x4c   : > { %v551_v59 = vshll.u32 %v242_v29, 16  ;;  %v524_v61 = vsel %vm3385_vm4, %v519_v44, %v523_v20  ;;  %v538_v62 = vor.u32 %v537_v49, %v533_v48  ;;  %v1575_v0 = vshrl.u32 %v2703_v40, 16  ;;  %v3618_v49 = vld [vmem:[%s3342_s5 + $0x94] sm:$0xf] }
  0x4d   : > { %v1578_v3 = vshll.u32 %v2703_v40, 16  ;;  %2937 = vmatmul.mubr.msk.bf16.gmra.mrb[20].mxu1 %vm655_vm1, %v2579_v43  ;;  %v529_v4 = vrot.slane %v528_v53, 4  ;;  %v548_v5 = vor.u32 %v547_v58, %v543_v57  ;;  %v1584_v9 = vshll.u32 %v2704_v50, 16 }
  0x4e   : > { %v553_v7 = vrot.slane %v551_v59, 5  ;;  %v539_v17 = vrot.slane %v538_v62, 4  ;;  %v1577_v19 = vrot.slane %v1575_v0, 4  ;;  %v1588_v24 = vshrl.u32 %v2704_v50, 16  ;;  %v2706_v59 = vld [vmem:[%s3342_s5 + $0x20] sm:$0xf] }
  0x4f   : > { %3013 = vmatmul.mubr.msk.bf16.gmra.mrb[28].mxu0 %vm655_vm1, %v3211_v33  ;;  %v1580_v23 = vrot.slane %v1578_v3, 5  ;;  %v534_v20 = vsel %vm3385_vm4, %v529_v4, %v533_v48  ;;  %v549_v28 = vrot.slane %v548_v5, 4  ;;  %v1586_v29 = vrot.slane %v1584_v9, 5 }
  0x50   : > { %v1594_v30 = vshll.u32 %v2705_v63, 16  ;;  %v2580_v31 = vcombine.low %v524_v61, %v534_v20  ;;  %v544_v32 = vsel %vm3385_vm4, %v539_v17, %v543_v57  ;;  %v1590_v36 = vrot.slane %v1588_v24, 4 }
  0x51   : > { %v1581_v33 = vor.u32 %v1580_v23, %v1577_v19  ;;  %v554_v40 = vsel %vm3385_vm4, %v549_v28, %v553_v7  ;;  %v1598_v44 = vshrl.u32 %v2705_v63, 16  ;;  %v556_v48 = vshrl.u32 %v3606_v25, 16  ;;  %v2707_v23 = vld [vmem:[%s3342_s5 + $0x24] sm:$0x1] }
  0x52   : > { %v1596_v43 = vrot.slane %v1594_v30, 5  ;;  %2940 = vmatprep.mubr.msk.bf16.mxu1 %vm655_vm1, %v2580_v31  ;;  %v2581_v50 = vcombine.low %v544_v32, %v554_v40  ;;  %v1591_v58 = vor.u32 %v1590_v36, %v1586_v29  ;;  %v559_v57 = vshll.u32 %v3606_v25, 16 }
  0x53   : > { %v1582_v53 = vrot.slane %v1581_v33, 4  ;;  %v1600_v61 = vrot.slane %v1598_v44, 4  ;;  %v558_v62 = vrot.slane %v556_v48, 4  ;;  %v565_v0 = vshll.u32 %v3613_v10, 16 }
  0x54   : > { %v569_v63 = vshrl.u32 %v3613_v10, 16  ;;  %v1592_v4 = vrot.slane %v1591_v58, 4  ;;  %v561_v5 = vrot.slane %v559_v57, 5  ;;  %v575_v7 = vshll.u32 %v3618_v49, 16 }
  0x55   : > { %v1587_v3 = vsel %vm3385_vm4, %v1582_v53, %v1586_v29  ;;  %2941 = vmatmul.mubr.msk.bf16.gmra.mrb[24].mxu1 %vm655_vm1, %v2581_v50  ;;  %v1601_v9 = vor.u32 %v1600_v61, %v1596_v43  ;;  %v567_v17 = vrot.slane %v565_v0, 5  ;;  %v1604_v24 = vshll.u32 %v2706_v59, 16  ;;  %v3634_v29 = vld [vmem:[%s3342_s5 + $0x98] sm:$0xf]  ;;  %v243_v53 = vld [vmem:[%s3342_s5 + $0x9c] sm:$0x1] }
  0x56   : > { %v571_v19 = vrot.slane %v569_v63, 4  ;;  %v1597_v20 = vsel %vm3385_vm4, %v1592_v4, %v1596_v43  ;;  %v562_v28 = vor.u32 %v561_v5, %v558_v62  ;;  %v577_v30 = vrot.slane %v575_v7, 5  ;;  %v2708_v62 = vld [vmem:[%s3342_s5 + $0x28] sm:$0xf]  ;;  %v2709_v5 = vld [vmem:[%s3342_s5 + $0x2c] sm:$0xf] }
  0x57   : > { %v1608_v31 = vshrl.u32 %v2706_v59, 16  ;;  %v1602_v32 = vrot.slane %v1601_v9, 4  ;;  %v2745_v33 = vcombine.low %v1587_v3, %v1597_v20  ;;  %v1606_v40 = vrot.slane %v1604_v24, 5 }
  0x58   : > { %v572_v36 = vor.u32 %v571_v19, %v567_v17  ;;  %v563_v44 = vrot.slane %v562_v28, 4  ;;  %v1614_v50 = vshll.u32 %v2707_v23, 16  ;;  %v579_v58 = vshrl.u32 %v3618_v49, 16 }
  0x59   : > { %v1610_v48 = vrot.slane %v1608_v31, 4  ;;  %3018 = vmatprep.mubr.msk.bf16.mxu0 %vm655_vm1, %v2745_v33  ;;  %v1607_v57 = vsel %vm3385_vm4, %v1602_v32, %v1606_v40  ;;  %v585_v59 = vshll.u32 %v3634_v29, 16  ;;  %v589_v61 = vshrl.u32 %v3634_v29, 16 }
  0x5a   : > { %v573_v43 = vrot.slane %v572_v36, 4  ;;  %v568_v0 = vsel %vm3385_vm4, %v563_v44, %v567_v17  ;;  %v1616_v3 = vrot.slane %v1614_v50, 5  ;;  %v581_v4 = vrot.slane %v579_v58, 4  ;;  %v2710_v36 = vld [vmem:[%s3342_s5 + $0x30] sm:$0xf] }
  0x5b   : > { %v1611_v63 = vor.u32 %v1610_v48, %v1606_v40  ;;  %v587_v9 = vrot.slane %v585_v59, 5  ;;  %v591_v19 = vrot.slane %v589_v61, 4  ;;  %v595_v23 = vshll.u32 %v243_v53, 16  ;;  %v2711_v53 = vld [vmem:[%s3342_s5 + $0x34] sm:$0xf] }
  0x5c   : > { %v578_v7 = vsel %vm3385_vm4, %v573_v43, %v577_v30  ;;  %v582_v28 = vor.u32 %v581_v4, %v577_v30  ;;  %v1619_v31 = vshrl.u32 %v2708_v62, 16  ;;  %v1622_v21 = vshll.u32 %v2708_v62, 16  ;;  %v2712_v4 = vld [vmem:[%s3342_s5 + $0x38] sm:$0x1] }
  0x5d   : > { %v2582_v24 = vcombine.low %v568_v0, %v578_v7  ;;  %v1612_v20 = vrot.slane %v1611_v63, 4  ;;  %v592_v32 = vor.u32 %v591_v19, %v587_v9  ;;  %v597_v33 = vrot.slane %v595_v23, 5 }
  0x5e   : > { %v1628_v17 = vshll.u32 %v2709_v5, 16  ;;  %v583_v44 = vrot.slane %v582_v28, 4  ;;  %v1621_v48 = vrot.slane %v1619_v31, 4  ;;  %v1632_v50 = vshrl.u32 %v2709_v5, 16  ;;  %v2714_v28 = vld [vmem:[%s3342_s5 + $0x40] sm:$0xf] }
  0x5f   : > { %2944 = vmatprep.mubr.msk.bf16.mxu1 %vm655_vm1, %v2582_v24  ;;  %v1617_v40 = vsel %vm3385_vm4, %v1612_v20, %v1616_v3  ;;  %v593_v43 = vrot.slane %v592_v32, 4  ;;  %v1624_v30 = vrot.slane %v1622_v21, 5  ;;  %v1638_v0 = vshll.u32 %v2710_v36, 16 }
  0x60   : > { %v2746_v58 = vcombine.low %v1607_v57, %v1617_v40  ;;  %v1630_v59 = vrot.slane %v1628_v17, 5  ;;  %v588_v61 = vsel %vm3385_vm4, %v583_v44, %v587_v9  ;;  %v1634_v62 = vrot.slane %v1632_v50, 4  ;;  %v2713_v57 = vld [vmem:[%s3342_s5 + $0x3c] sm:$0xf] }
  0x61   : > { %v1642_v63 = vshrl.u32 %v2710_v36, 16  ;;  %v598_v3 = vsel %vm3385_vm4, %v593_v43, %v597_v33  ;;  %v1625_v5 = vor.u32 %v1624_v30, %v1621_v48  ;;  %v1648_v7 = vshll.u32 %v2711_v53, 16 }
  0x62   : > { %3019 = vmatmul.mubr.msk.bf16.vlgmr.msra.gmra.mrb[0].mxu0 %vm655_vm1, %v2746_v58  ;;  %v1652_v19 = vshrl.u32 %v2711_v53, 16  ;;  %v2583_v23 = vcombine.low %v588_v61, %v598_v3  ;;  %v1635_v21 = vor.u32 %v1634_v62, %v1630_v59  ;;  %v1640_v24 = vrot.slane %v1638_v0, 5  ;;  %v2715_v58 = vld [vmem:[%s3342_s5 + $0x44] sm:$0xf] }
  0x63   : > { %v1644_v20 = vrot.slane %v1642_v63, 4  ;;  %v1626_v9 = vrot.slane %v1625_v5, 4  ;;  %v1650_v31 = vrot.slane %v1648_v7, 5  ;;  %v1658_v36 = vshll.u32 %v2712_v4, 16  ;;  %v2716_v63 = vld [vmem:[%s3342_s5 + $0x48] sm:$0xf] }
  0x64   : > { %v1654_v32 = vrot.slane %v1652_v19, 4  ;;  %2945 = vmatmul.mubr.msk.bf16.gmra.mrb[28].mxu1 %vm655_vm1, %v2583_v23  ;;  %v1636_v17 = vrot.slane %v1635_v21, 4  ;;  %v1663_v33 = vshrl.u32 %v2713_v57, 16  ;;  %v1666_v44 = vshll.u32 %v2713_v57, 16  ;;  %v2717_v19 = vld [vmem:[%s3342_s5 + $0x4c] sm:$0x1] }
  0x65   : > { %v1645_v40 = vor.u32 %v1644_v20, %v1640_v24  ;;  %v1631_v48 = vsel %vm3385_vm4, %v1626_v9, %v1630_v59  ;;  %2950 = vmatprep.mubr.msk.bf16.mxu1 %vm655_vm1, %v2601_v22  ;;  %v1660_v53 = vrot.slane %v1658_v36, 5  ;;  %v1672_v43 = vshll.u32 %v2714_v28, 16  ;;  %v2718_v20 = vld [vmem:[%s3342_s5 + $0x50] sm:$0xf] }
  0x66   : > { %v1655_v50 = vor.u32 %v1654_v32, %v1650_v31  ;;  %v1641_v30 = vsel %vm3385_vm4, %v1636_v17, %v1640_v24  ;;  %v1665_v62 = vrot.slane %v1663_v33, 4  ;;  %v1668_v0 = vrot.slane %v1666_v44, 5  ;;  %v2719_v44 = vld [vmem:[%s3342_s5 + $0x54] sm:$0xf] }
  0x67   : > { %v1646_v61 = vrot.slane %v1645_v40, 4  ;;  %v2747_v4 = vcombine.low %v1631_v48, %v1641_v30  ;;  %v1674_v3 = vrot.slane %v1672_v43, 5  ;;  %v1676_v5 = vshrl.u32 %v2714_v28, 16 }
  0x68   : > { %v1656_v59 = vrot.slane %v1655_v50, 4  ;;  %v1669_v12 = vor.u32 %v1668_v0, %v1665_v62  ;;  %v1682_v22 = vshll.u32 %v2715_v58, 16  ;;  %v1686_v7 = vshrl.u32 %v2715_v58, 16 }
  0x69   : > { %v1651_v11 = vsel %vm3385_vm4, %v1646_v61, %v1650_v31  ;;  %3022 = vmatprep.mubr.msk.bf16.mxu0 %vm655_vm1, %v2747_v4  ;;  %v1678_v23 = vrot.slane %v1676_v5, 4  ;;  %v2603_v21 = vcombine.low %v3390_v41, %v3393_v42  ;;  %v1692_v24 = vshll.u32 %v2716_v63, 16 }
  0x6a   : > { %v1661_v57 = vsel %vm3385_vm4, %v1656_v59, %v1660_v53  ;;  %v1670_v9 = vrot.slane %v1669_v12, 4  ;;  %v1684_v31 = vrot.slane %v1682_v22, 5  ;;  %v1688_v32 = vrot.slane %v1686_v7, 4  ;;  %v2720_v53 = vld [vmem:[%s3342_s5 + $0x58] sm:$0xf] }
  0x6b   : > { %v2748_v28 = vcombine.low %v1651_v11, %v1661_v57  ;;  %v1679_v36 = vor.u32 %v1678_v23, %v1674_v3  ;;  %v1694_v17 = vrot.slane %v1692_v24, 5  ;;  %v1696_v40 = vshrl.u32 %v2716_v63, 16  ;;  %v2722_v7 = vld [vmem:[%s3342_s5 + $0x60] sm:$0x1] }
  0x6c   : > { %v1702_v33 = vshll.u32 %v2717_v19, 16  ;;  %v3940_v48 = vcombine.low %v3362_v13, %v3366_v14  ;;  %v1675_v41 = vsel %vm3385_vm4, %v1670_v9, %v1674_v3  ;;  %v1689_v42 = vor.u32 %v1688_v32, %v1684_v31 }
  0x6d   : > { %3023 = vmatmul.mubr.msk.bf16.gmra.mrb[4].mxu0 %vm655_vm1, %v2748_v28  ;;  %v2604_v50 = vcombine.low %v3396_v46, %v3409_v56  ;;  %v1707_v58 = vshrl.u32 %v2718_v20, 16  ;;  %v1680_v43 = vrot.slane %v1679_v36, 4  ;;  %v1698_v30 = vrot.slane %v1696_v40, 4  ;;  %v2721_v56 = vld [vmem:[%s3342_s5 + $0x5c] sm:$0xf] }
  0x6e   : > { %2951 = vmatmul.mubr.msk.bf16.vlgmr.msra.gmra.mrb[0].mxu1 %vm655_vm1, %v3940_v48  ;;  %v1704_v61 = vrot.slane %v1702_v33, 5  ;;  %v1710_v62 = vshll.u32 %v2718_v20, 16  ;;  %v1690_v13 = vrot.slane %v1689_v42, 4  ;;  %v1716_v0 = vshll.u32 %v2719_v44, 16  ;;  %v2723_v40 = vld [vmem:[%s3342_s5 + $0x64] sm:$0xf] }
  0x6f   : > { %2954 = vmatprep.mubr.msk.bf16.mxu1 %vm655_vm1, %v2603_v21  ;;  %v1709_v14 = vrot.slane %v1707_v58, 4  ;;  %v1720_v63 = vshrl.u32 %v2719_v44, 16  ;;  %v1685_v4 = vsel %vm3385_vm4, %v1680_v43, %v1684_v31  ;;  %v1699_v59 = vor.u32 %v1698_v30, %v1694_v17  ;;  %v2724_v42 = vld [vmem:[%s3342_s5 + $0x68] sm:$0xf]  ;;  %v2725_v43 = vld [vmem:[%s3342_s5 + $0x6c] sm:$0xf] }
  0x70   : > { %v1712_v3 = vrot.slane %v1710_v62, 5  ;;  %v1726_v46 = vshll.u32 %v2720_v53, 16  ;;  %v2749_v5 = vcombine.low %v1675_v41, %v1685_v4  ;;  %v1695_v11 = vsel %vm3385_vm4, %v1690_v13, %v1694_v17 }
  0x71   : > { %v1718_v12 = vrot.slane %v1716_v0, 5  ;;  %v1722_v22 = vrot.slane %v1720_v63, 4  ;;  %v1700_v19 = vrot.slane %v1699_v59, 4  ;;  %v1730_v21 = vshrl.u32 %v2720_v53, 16 }
  0x72   : > { %v1713_v57 = vor.u32 %v1712_v3, %v1709_v14  ;;  %v1728_v23 = vrot.slane %v1726_v46, 5  ;;  %3026 = vmatprep.mubr.msk.bf16.mxu0 %vm655_vm1, %v2749_v5  ;;  %v2605_v20 = vcombine.low %v3424_v8, %v3427_v18  ;;  %v1736_v28 = vshll.u32 %v2721_v56, 16 }
  0x73   : > { %v1723_v24 = vor.u32 %v1722_v22, %v1718_v12  ;;  %v1740_v9 = vshrl.u32 %v2721_v56, 16  ;;  %v1705_v31 = vsel %vm3385_vm4, %v1700_v19, %v1704_v61  ;;  %v1732_v36 = vrot.slane %v1730_v21, 4 }
  0x74   : > { %v1714_v32 = vrot.slane %v1713_v57, 4  ;;  %v1746_v17 = vshll.u32 %v2722_v7, 16  ;;  %v2750_v33 = vcombine.low %v1695_v11, %v1705_v31  ;;  %v1738_v48 = vrot.slane %v1736_v28, 5 }
  0x75   : > { %v1724_v44 = vrot.slane %v1723_v24, 4  ;;  %v1742_v41 = vrot.slane %v1740_v9, 4  ;;  %v1733_v18 = vor.u32 %v1732_v36, %v1728_v23  ;;  %v2606_v58 = vcombine.low %v3431_v27, %v3441_v34  ;;  %v2726_v27 = vld [vmem:[%s3342_s5 + $0x70] sm:$0xf] }
  0x76   : > { %2955 = vmatmul.mubr.msk.bf16.gmra.mrb[4].mxu1 %vm655_vm1, %v2604_v50  ;;  %v1719_v8 = vsel %vm3385_vm4, %v1714_v32, %v1718_v12  ;;  %v1748_v53 = vrot.slane %v1746_v17, 5  ;;  %3027 = vmatmul.mubr.msk.bf16.gmra.mrb[8].mxu0 %vm655_vm1, %v2750_v33  ;;  %v1751_v61 = vshrl.u32 %v2723_v40, 16  ;;  %v1754_v62 = vshll.u32 %v2723_v40, 16  ;;  %v2727_v12 = vld [vmem:[%s3342_s5 + $0x74] sm:$0x1] }
  0x77   : > { %2958 = vmatprep.mubr.msk.bf16.mxu1 %vm655_vm1, %v2605_v20  ;;  %v1729_v50 = vsel %vm3385_vm4, %v1724_v44, %v1728_v23  ;;  %v1743_v30 = vor.u32 %v1742_v41, %v1738_v48  ;;  %v1734_v14 = vrot.slane %v1733_v18, 4  ;;  %v1760_v0 = vshll.u32 %v2724_v42, 16  ;;  %v2728_v23 = vld [vmem:[%s3342_s5 + $0x78] sm:$0xf]  ;;  %v2729_v17 = vld [vmem:[%s3342_s5 + $0x7c] sm:$0xf] }
  0x78   : > { %v2751_v13 = vcombine.low %v1719_v8, %v1729_v50  ;;  %v1764_v63 = vshrl.u32 %v2724_v42, 16  ;;  %v1753_v59 = vrot.slane %v1751_v61, 4  ;;  %v1756_v3 = vrot.slane %v1754_v62, 5  ;;  %v2730_v42 = vld [vmem:[%s3342_s5 + $0x80] sm:$0xf] }
  0x79   : > { %v1744_v4 = vrot.slane %v1743_v30, 4  ;;  %v1770_v46 = vshll.u32 %v2725_v43, 16  ;;  %v1739_v34 = vsel %vm3385_vm4, %v1734_v14, %v1738_v48  ;;  %v1762_v56 = vrot.slane %v1760_v0, 5  ;;  %v2731_v61 = vld [vmem:[%s3342_s5 + $0x84] sm:$0xf] }
  0x7a   : > { %3030 = vmatprep.mubr.msk.bf16.mxu0 %vm655_vm1, %v2751_v13  ;;  %v1766_v5 = vrot.slane %v1764_v63, 4  ;;  %v1774_v11 = vshrl.u32 %v2725_v43, 16  ;;  %v1757_v7 = vor.u32 %v1756_v3, %v1753_v59  ;;  %v2607_v57 = vcombine.low %v3453_v51, %v3456_v52  ;;  %v2732_v63 = vld [vmem:[%s3342_s5 + $0x88] sm:$0x1] }
  0x7b   : > { %v1749_v22 = vsel %vm3385_vm4, %v1744_v4, %v1748_v53  ;;  %v1772_v19 = vrot.slane %v1770_v46, 5  ;;  %v1780_v28 = vshll.u32 %v2726_v27, 16  ;;  %v1784_v31 = vshrl.u32 %v2726_v27, 16 }
  0x7c   : > { %v2752_v21 = vcombine.low %v1739_v34, %v1749_v22  ;;  %v1767_v24 = vor.u32 %v1766_v5, %v1762_v56  ;;  %v1776_v20 = vrot.slane %v1774_v11, 4  ;;  %v1758_v9 = vrot.slane %v1757_v7, 4 }
  0x7d   : > { %v1790_v32 = vshll.u32 %v2727_v12, 16  ;;  %v2608_v36 = vcombine.low %v3469_v6, %v3478_v26  ;;  %v1782_v51 = vrot.slane %v1780_v28, 5  ;;  %v1795_v52 = vshrl.u32 %v2728_v23, 16 }
  0x7e   : > { %2959 = vmatmul.mubr.msk.bf16.gmra.mrb[8].mxu1 %vm655_vm1, %v2606_v58  ;;  %v1768_v40 = vrot.slane %v1767_v24, 4  ;;  %v1777_v33 = vor.u32 %v1776_v20, %v1772_v19  ;;  %3031 = vmatmul.mubr.msk.bf16.gmra.mrb[12].mxu0 %vm655_vm1, %v2752_v21  ;;  %v1763_v44 = vsel %vm3385_vm4, %v1758_v9, %v1762_v56  ;;  %v1786_v48 = vrot.slane %v1784_v31, 4  ;;  %v2734_v21 = vld [vmem:[%s3342_s5 + $0x90] sm:$0xf]  ;;  %v2735_v24 = vld [vmem:[%s3342_s5 + $0x94] sm:$0xf] }
  0x7f   : > { %2962 = vmatprep.mubr.msk.bf16.mxu1 %vm655_vm1, %v2607_v57  ;;  %v1792_v41 = vrot.slane %v1790_v32, 5  ;;  %v1798_v8 = vshll.u32 %v2728_v23, 16  ;;  %v1797_v18 = vrot.slane %v1795_v52, 4  ;;  %v1804_v53 = vshll.u32 %v2729_v17, 16 }
  0x80   : > { %v1773_v6 = vsel %vm3385_vm4, %v1768_v40, %v1772_v19  ;;  %v1778_v26 = vrot.slane %v1777_v33, 4  ;;  %v1787_v43 = vor.u32 %v1786_v48, %v1782_v51  ;;  %v1808_v30 = vshrl.u32 %v2729_v17, 16  ;;  %v2733_v19 = vld [vmem:[%s3342_s5 + $0x8c] sm:$0xf]  ;;  %v2736_v48 = vld [vmem:[%s3342_s5 + $0x98] sm:$0xf] }
  0x81   : > { %v2753_v58 = vcombine.low %v1763_v44, %v1773_v6  ;;  %v1800_v50 = vrot.slane %v1798_v8, 5  ;;  %v1806_v13 = vrot.slane %v1804_v53, 5  ;;  %v1814_v14 = vshll.u32 %v2730_v42, 16  ;;  %v2737_v53 = vld [vmem:[%s3342_s5 + $0x9c] sm:$0x1] }
  0x82   : > { %v1783_v62 = vsel %vm3385_vm4, %v1778_v26, %v1782_v51  ;;  %v1818_v0 = vshrl.u32 %v2730_v42, 16  ;;  %v1788_v4 = vrot.slane %v1787_v43, 4  ;;  %v1810_v3 = vrot.slane %v1808_v30, 4 }
  0x83   : > { %3034 = vmatprep.mubr.msk.bf16.mxu0 %vm655_vm1, %v2753_v58  ;;  %v1801_v59 = vor.u32 %v1800_v50, %v1797_v18  ;;  %v2609_v46 = vcombine.low %v3488_v39, %v3498_v54  ;;  %v1816_v27 = vrot.slane %v1814_v14, 5  ;;  %v1824_v56 = vshll.u32 %v2731_v61, 16 }
  0x84   : > { %v1820_v34 = vrot.slane %v1818_v0, 4  ;;  %v1828_v5 = vshrl.u32 %v2731_v61, 16  ;;  %v1793_v11 = vsel %vm3385_vm4, %v1788_v4, %v1792_v41  ;;  %v1811_v22 = vor.u32 %v1810_v3, %v1806_v13  ;;  %v2738_v61 = vld [vmem:[%s3342_s5 + $0xa0] sm:$0xf] }
  0x85   : > { %v1802_v12 = vrot.slane %v1801_v59, 4  ;;  %v1834_v7 = vshll.u32 %v2732_v63, 16  ;;  %v2754_v57 = vcombine.low %v1783_v62, %v1793_v11  ;;  %v1826_v39 = vrot.slane %v1824_v56, 5  ;;  %v2739_v63 = vld [vmem:[%s3342_s5 + $0xa4] sm:$0xf] }
  0x86   : > { %2963 = vmatmul.mubr.msk.bf16.gmra.mrb[12].mxu1 %vm655_vm1, %v2608_v36  ;;  %v1821_v23 = vor.u32 %v1820_v34, %v1816_v27  ;;  %v1830_v54 = vrot.slane %v1828_v5, 4  ;;  %v1812_v28 = vrot.slane %v1811_v22, 4  ;;  %v2610_v31 = vcombine.low %v3501_v55, %v3515_v16  ;;  %v2740_v11 = vld [vmem:[%s3342_s5 + $0xa8] sm:$0xf] }
  0x87   : > { %2966 = vmatprep.mubr.msk.bf16.mxu1 %vm655_vm1, %v2609_v46  ;;  %v1807_v20 = vsel %vm3385_vm4, %v1802_v12, %v1806_v13  ;;  %v1836_v9 = vrot.slane %v1834_v7, 5  ;;  %3035 = vmatmul.mubr.msk.bf16.gmra.mrb[16].mxu0 %vm655_vm1, %v2754_v57  ;;  %v1839_v17 = vshrl.u32 %v2733_v19, 16  ;;  %v1842_v40 = vshll.u32 %v2733_v19, 16 }
  0x88   : > { %v1822_v32 = vrot.slane %v1821_v23, 4  ;;  %v1831_v36 = vor.u32 %v1830_v54, %v1826_v39  ;;  %v1817_v33 = vsel %vm3385_vm4, %v1812_v28, %v1816_v27  ;;  %v1848_v51 = vshll.u32 %v2734_v21, 16 }
  0x89   : > { %v1852_v52 = vshrl.u32 %v2734_v21, 16  ;;  %v1858_v44 = vshll.u32 %v2735_v24, 16  ;;  %v2755_v41 = vcombine.low %v1807_v20, %v1817_v33  ;;  %v1841_v16 = vrot.slane %v1839_v17, 4  ;;  %v2742_v17 = vld [vmem:[%s3342_s5 + $0xb0] sm:$0x1] }
  0x8a   : > { %v1827_v42 = vsel %vm3385_vm4, %v1822_v32, %v1826_v39  ;;  %v1832_v55 = vrot.slane %v1831_v36, 4  ;;  %v1844_v8 = vrot.slane %v1842_v40, 5  ;;  %v1850_v6 = vrot.slane %v1848_v51, 5 }
  0x8b   : > { %v1854_v26 = vrot.slane %v1852_v52, 4  ;;  %v1860_v18 = vrot.slane %v1858_v44, 5  ;;  %3038 = vmatprep.mubr.msk.bf16.mxu0 %vm655_vm1, %v2755_v41  ;;  %v1862_v43 = vshrl.u32 %v2735_v24, 16  ;;  %v2611_v50 = vcombine.low %v3528_v38, %v3533_v47 }
  0x8c   : > { %v1837_v58 = vsel %vm3385_vm4, %v1832_v55, %v1836_v9  ;;  %v1868_v30 = vshll.u32 %v2736_v48, 16  ;;  %v1845_v13 = vor.u32 %v1844_v8, %v1841_v16  ;;  %v1872_v0 = vshrl.u32 %v2736_v48, 16 }
  0x8d   : > { %v2756_v62 = vcombine.low %v1827_v42, %v1837_v58  ;;  %v1855_v14 = vor.u32 %v1854_v26, %v1850_v6  ;;  %v1864_v4 = vrot.slane %v1862_v43, 4  ;;  %v1878_v3 = vshll.u32 %v2737_v53, 16 }
  0x8e   : > { %2967 = vmatmul.mubr.msk.bf16.gmra.mrb[16].mxu1 %vm655_vm1, %v2610_v31  ;;  %v1870_v59 = vrot.slane %v1868_v30, 5  ;;  %v2612_v46 = vcombine.low %v3538_v60, %v3546_v2  ;;  %v1846_v38 = vrot.slane %v1845_v13, 4  ;;  %v1874_v27 = vrot.slane %v1872_v0, 4  ;;  %v2741_v2 = vld [vmem:[%s3342_s5 + $0xac] sm:$0xf] }
  0x8f   : > { %2970 = vmatprep.mubr.msk.bf16.mxu1 %vm655_vm1, %v2611_v50  ;;  %v1856_v47 = vrot.slane %v1855_v14, 4  ;;  %v1883_v34 = vshrl.u32 %v2738_v61, 16  ;;  %3039 = vmatmul.mubr.msk.bf16.gmra.mrb[20].mxu0 %vm655_vm1, %v2756_v62  ;;  %v1865_v56 = vor.u32 %v1864_v4, %v1860_v18  ;;  %v1880_v5 = vrot.slane %v1878_v3, 5  ;;  %v3816_v4 = vld [vmem:[%s3936_s2] ss:$0 sm:$0xff] }
  0x90   : > { %v1886_v12 = vshll.u32 %v2738_v61, 16  ;;  %v1892_v22 = vshll.u32 %v2739_v63, 16  ;;  %v1851_v7 = vsel %vm3385_vm4, %v1846_v38, %v1850_v6  ;;  %v1875_v57 = vor.u32 %v1874_v27, %v1870_v59 }
  0x91   : > { %v1861_v19 = vsel %vm3385_vm4, %v1856_v47, %v1860_v18  ;;  %v1885_v60 = vrot.slane %v1883_v34, 4  ;;  %v1866_v39 = vrot.slane %v1865_v56, 4  ;;  %v1896_v20 = vshrl.u32 %v2739_v63, 16 }
  0x92   : > { %v2757_v23 = vcombine.low %v1851_v7, %v1861_v19  ;;  %v1888_v54 = vrot.slane %v1886_v12, 5  ;;  %v1894_v21 = vrot.slane %v1892_v22, 5  ;;  %v1876_v24 = vrot.slane %v1875_v57, 4 }
  0x93   : > { %v1902_v28 = vshll.u32 %v2740_v11, 16  ;;  %v1906_v9 = vshrl.u32 %v2740_v11, 16  ;;  %v1871_v31 = vsel %vm3385_vm4, %v1866_v39, %v1870_v59  ;;  %v2613_v36 = vcombine.low %v3564_v35, %v3568_v45 }
  0x94   : > { %3042 = vmatprep.mubr.msk.bf16.mxu0 %vm655_vm1, %v2757_v23  ;;  %v1889_v32 = vor.u32 %v1888_v54, %v1885_v60  ;;  %v1912_v40 = vshll.u32 %v2741_v2, 16  ;;  %v1881_v33 = vsel %vm3385_vm4, %v1876_v24, %v1880_v5  ;;  %v1898_v51 = vrot.slane %v1896_v20, 4 }
  0x95   : > { %v1904_v52 = vrot.slane %v1902_v28, 5  ;;  %v1908_v44 = vrot.slane %v1906_v9, 4  ;;  %v2758_v48 = vcombine.low %v1871_v31, %v1881_v33  ;;  %v1916_v55 = vshrl.u32 %v2741_v2, 16 }
  0x96   : > { %2971 = vmatmul.mubr.msk.bf16.gmra.mrb[20].mxu1 %vm655_vm1, %v2612_v46  ;;  %v1890_v41 = vrot.slane %v1889_v32, 4  ;;  %v1914_v42 = vrot.slane %v1912_v40, 5  ;;  %v1899_v16 = vor.u32 %v1898_v51, %v1894_v21  ;;  %v1922_v6 = vshll.u32 %v2742_v17, 16 }
  0x97   : > { %2974 = vmatprep.mubr.msk.bf16.mxu1 %vm655_vm1, %v2613_v36  ;;  %v1909_v8 = vor.u32 %v1908_v44, %v1904_v52  ;;  %3043 = vmatmul.mubr.msk.bf16.gmra.mrb[24].mxu0 %vm655_vm1, %v2758_v48  ;;  %v1918_v35 = vrot.slane %v1916_v55, 4  ;;  %v2614_v53 = vcombine.low %v3577_v1, %v3584_v15  ;;  %v2615_v50 = vcombine.low %v3606_v25, %v3613_v10 }
  0x98   : > { %v1895_v45 = vsel %vm3385_vm4, %v1890_v41, %v1894_v21  ;;  %v1900_v26 = vrot.slane %v1899_v16, 4  ;;  %v1924_v43 = vrot.slane %v1922_v6, 5  ;;  %v2616_v25 = vcombine.low %v3618_v49, %v3634_v29 }
  0x99   : > { %v1910_v18 = vrot.slane %v1909_v8, 4  ;;  %v1919_v58 = vor.u32 %v1918_v35, %v1914_v42 }
  0x9a   : > { %v1905_v30 = vsel %vm3385_vm4, %v1900_v26, %v1904_v52 }
  0x9b   : > { %v2759_v61 = vcombine.low %v1895_v45, %v1905_v30  ;;  %v1915_v62 = vsel %vm3385_vm4, %v1910_v18, %v1914_v42  ;;  %v1920_v13 = vrot.slane %v1919_v58, 4 }
  0x9d   : > { %3046 = vmatprep.mubr.msk.bf16.mxu0 %vm655_vm1, %v2759_v61  ;;  %v1925_v1 = vsel %vm3385_vm4, %v1920_v13, %v1924_v43 }
  0x9e   : > { %2975 = vmatmul.mubr.msk.bf16.gmra.mrb[24].mxu1 %vm655_vm1, %v2614_v53  ;;  %v2760_v15 = vcombine.low %v1915_v62, %v1925_v1 }
  0x9f   : > { %2978 = vmatprep.mubr.msk.bf16.mxu1 %vm655_vm1, %v2615_v50 }
  0xa0   : > { %3047 = vmatmul.mubr.msk.bf16.gmra.mrb[28].mxu0 %vm655_vm1, %v2760_v15 }
  0xa6   : > { %2979 = vmatmul.mubr.msk.bf16.gmra.mrb[28].mxu1 %vm655_vm1, %v2616_v25 }
 0x135   : > { %v3020_v10 = vpop.f32.mrb[0].mxu0 }
 0x136   : > { %v2067_v14 = vpop.f32.mrb[1].mxu0 }
 0x137   : > { %v3021_v0 = vpop.f32.mrb[2].mxu0 }
 0x138   : > { %v2070_v63 = vpop.f32.mrb[3].mxu0 }
 0x140   : > { %v3024_v37 = vpop.f32.mrb[4].mxu0 }
 0x141   : > { %v2952_v59 = vpop.f32.mrb[0].mxu1  ;;  %v2083_v29 = vpop.f32.mrb[5].mxu0 }
 0x142   : > { %v3050_v49 = vadd.f32 %v3020_v10, %v2952_v59  ;;  %v1039_v3 = vpop.f32.mrb[1].mxu1  ;;  %v3025_v38 = vpop.f32.mrb[6].mxu0 }
 0x143   : > { %v3051_v46 = vadd.f32 %v2067_v14, %v1039_v3  ;;  %v2953_v47 = vpop.f32.mrb[2].mxu1  ;;  %v2086_v56 = vpop.f32.mrb[7].mxu0 }
 0x144   : > { %v2234_v27 = vadd.f32 %v3050_v49, %v3816_v4  ;;  %v3052_v34 = vadd.f32 %v3021_v0, %v2953_v47  ;;  %v1042_v5 = vpop.f32.mrb[3].mxu1 }
 0x145   : > { %v2232_v11 = vadd.f32 %v3051_v46, %v3816_v4  ;;  %v3053_v12 = vadd.f32 %v2070_v63, %v1042_v5 }
 0x146   : > { %v2266_v22 = vmax.f32 %v2234_v27, 0.0  ;;  %v2235_v7 = vadd.f32 %v3052_v34, %v3816_v4 }
 0x147   : > { %v2264_v19 = vmax.f32 %v2232_v11, 0.0  ;;  %v2233_v57 = vadd.f32 %v3053_v12, %v3816_v4 }
 0x148   : > { %v2816_v60 = vpack.c.bf16 %v2266_v22, %v2266_v22  ;;  %v2267_v2 = vmax.f32 %v2235_v7, 0.0 }
 0x149   : > { %v2814_v23 = vpack.c.bf16 %v2264_v19, %v2264_v19  ;;  %v2265_v39 = vmax.f32 %v2233_v57, 0.0  ;;  %v2956_v54 = vpop.f32.mrb[4].mxu1  ;;  %v3028_v9 = vpop.f32.mrb[8].mxu0 }
 0x14a   : > { %2427 = vst.msk [vmem:[%s3824_s20 + $0x8] sm:$0xf] %vm2424_vm5, %v2816_v60  ;;  %v2817_v21 = vpack.c.bf16 %v2267_v2, %v2267_v2  ;;  %v3054_v24 = vadd.f32 %v3024_v37, %v2956_v54  ;;  %v1055_v20 = vpop.f32.mrb[5].mxu1  ;;  %v2099_v17 = vpop.f32.mrb[9].mxu0 }
 0x14b   : > { %2425 = vst.msk [vmem:[%s3824_s20] sm:$0xf] %vm2424_vm5, %v2814_v23  ;;  %v2815_v28 = vpack.c.bf16 %v2265_v39, %v2265_v39  ;;  %v3055_v31 = vadd.f32 %v2083_v29, %v1055_v20  ;;  %v2957_v32 = vpop.f32.mrb[6].mxu1  ;;  %v3029_v52 = vpop.f32.mrb[10].mxu0 }
 0x14c   : > { %2428 = vst.msk [vmem:[%s3824_s20 + $0xc] sm:$0xf] %vm2424_vm5, %v2817_v21  ;;  %v2238_v36 = vadd.f32 %v3054_v24, %v3816_v4  ;;  %v3056_v40 = vadd.f32 %v3025_v38, %v2957_v32  ;;  %v1058_v33 = vpop.f32.mrb[7].mxu1  ;;  %v2102_v42 = vpop.f32.mrb[11].mxu0 }
 0x14d   : > { %2426 = vst.msk [vmem:[%s3824_s20 + $0x4] sm:$0xf] %vm2424_vm5, %v2815_v28  ;;  %v2236_v51 = vadd.f32 %v3055_v31, %v3816_v4  ;;  %v3057_v44 = vadd.f32 %v2086_v56, %v1058_v33 }
 0x14e   : > { %v2270_v48 = vmax.f32 %v2238_v36, 0.0  ;;  %v2239_v41 = vadd.f32 %v3056_v40, %v3816_v4 }
 0x14f   : > { %v2268_v55 = vmax.f32 %v2236_v51, 0.0  ;;  %v2237_v16 = vadd.f32 %v3057_v44, %v3816_v4 }
 0x150   : > { %v2820_v8 = vpack.c.bf16 %v2270_v48, %v2270_v48  ;;  %v2271_v6 = vmax.f32 %v2239_v41, 0.0 }
 0x151   : > { %v2818_v35 = vpack.c.bf16 %v2268_v55, %v2268_v55  ;;  %v2269_v45 = vmax.f32 %v2237_v16, 0.0  ;;  %v2960_v26 = vpop.f32.mrb[8].mxu1  ;;  %v3032_v50 = vpop.f32.mrb[12].mxu0 }
 0x152   : > { %2431 = vst.msk [vmem:[%s3824_s20 + $0x18] sm:$0xf] %vm2424_vm5, %v2820_v8  ;;  %v2821_v18 = vpack.c.bf16 %v2271_v6, %v2271_v6  ;;  %v3058_v53 = vadd.f32 %v3028_v9, %v2960_v26  ;;  %v1071_v58 = vpop.f32.mrb[9].mxu1  ;;  %v2115_v13 = vpop.f32.mrb[13].mxu0 }
 0x153   : > { %2429 = vst.msk [vmem:[%s3824_s20 + $0x10] sm:$0xf] %vm2424_vm5, %v2818_v35  ;;  %v2819_v43 = vpack.c.bf16 %v2269_v45, %v2269_v45  ;;  %v3059_v30 = vadd.f32 %v2099_v17, %v1071_v58  ;;  %v2961_v61 = vpop.f32.mrb[10].mxu1  ;;  %v3033_v10 = vpop.f32.mrb[14].mxu0 }
 0x154   : > { %2432 = vst.msk [vmem:[%s3824_s20 + $0x1c] sm:$0xf] %vm2424_vm5, %v2821_v18  ;;  %v2242_v62 = vadd.f32 %v3058_v53, %v3816_v4  ;;  %v3060_v1 = vadd.f32 %v3029_v52, %v2961_v61  ;;  %v1074_v15 = vpop.f32.mrb[11].mxu1  ;;  %v2118_v37 = vpop.f32.mrb[15].mxu0 }
 0x155   : > { %2430 = vst.msk [vmem:[%s3824_s20 + $0x14] sm:$0xf] %vm2424_vm5, %v2819_v43  ;;  %v2240_v25 = vadd.f32 %v3059_v30, %v3816_v4  ;;  %v3061_v14 = vadd.f32 %v2102_v42, %v1074_v15 }
 0x156   : > { %v2274_v0 = vmax.f32 %v2242_v62, 0.0  ;;  %v2243_v63 = vadd.f32 %v3060_v1, %v3816_v4 }
 0x157   : > { %v2272_v59 = vmax.f32 %v2240_v25, 0.0  ;;  %v2241_v49 = vadd.f32 %v3061_v14, %v3816_v4 }
 0x158   : > { %v2824_v29 = vpack.c.bf16 %v2274_v0, %v2274_v0  ;;  %v2275_v3 = vmax.f32 %v2243_v63, 0.0 }
 0x159   : > { %v2822_v46 = vpack.c.bf16 %v2272_v59, %v2272_v59  ;;  %v2273_v38 = vmax.f32 %v2241_v49, 0.0  ;;  %v2964_v47 = vpop.f32.mrb[12].mxu1 }
 0x15a   : > { %2435 = vst.msk [vmem:[%s3824_s20 + $0x28] sm:$0xf] %vm2424_vm5, %v2824_v29  ;;  %v2825_v27 = vpack.c.bf16 %v2275_v3, %v2275_v3  ;;  %v3062_v34 = vadd.f32 %v3032_v50, %v2964_v47  ;;  %v1087_v56 = vpop.f32.mrb[13].mxu1  ;;  %v3036_v22 = vpop.f32.mrb[16].mxu0 }
 0x15b   : > { %2433 = vst.msk [vmem:[%s3824_s20 + $0x20] sm:$0xf] %vm2424_vm5, %v2822_v46  ;;  %v2823_v5 = vpack.c.bf16 %v2273_v38, %v2273_v38  ;;  %v3063_v11 = vadd.f32 %v2115_v13, %v1087_v56  ;;  %v2965_v12 = vpop.f32.mrb[14].mxu1  ;;  %v2131_v60 = vpop.f32.mrb[17].mxu0 }
 0x15c   : > { %2436 = vst.msk [vmem:[%s3824_s20 + $0x2c] sm:$0xf] %vm2424_vm5, %v2825_v27  ;;  %v2246_v7 = vadd.f32 %v3062_v34, %v3816_v4  ;;  %v3064_v19 = vadd.f32 %v3033_v10, %v2965_v12  ;;  %v1090_v57 = vpop.f32.mrb[15].mxu1  ;;  %v3037_v54 = vpop.f32.mrb[18].mxu0 }
 0x15d   : > { %2434 = vst.msk [vmem:[%s3824_s20 + $0x24] sm:$0xf] %vm2424_vm5, %v2823_v5  ;;  %v2244_v2 = vadd.f32 %v3063_v11, %v3816_v4  ;;  %v3065_v23 = vadd.f32 %v2118_v37, %v1090_v57  ;;  %v2134_v20 = vpop.f32.mrb[19].mxu0 }
 0x15e   : > { %v2278_v39 = vmax.f32 %v2246_v7, 0.0  ;;  %v2247_v21 = vadd.f32 %v3064_v19, %v3816_v4 }
 0x15f   : > { %v2276_v24 = vmax.f32 %v2244_v2, 0.0  ;;  %v2245_v28 = vadd.f32 %v3065_v23, %v3816_v4 }
 0x160   : > { %v2828_v9 = vpack.c.bf16 %v2278_v39, %v2278_v39  ;;  %v2279_v31 = vmax.f32 %v2247_v21, 0.0 }
 0x161   : > { %v2826_v32 = vpack.c.bf16 %v2276_v24, %v2276_v24  ;;  %v2277_v36 = vmax.f32 %v2245_v28, 0.0  ;;  %v2968_v17 = vpop.f32.mrb[16].mxu1 }
 0x162   : > { %2439 = vst.msk [vmem:[%s3824_s20 + $0x38] sm:$0xf] %vm2424_vm5, %v2828_v9  ;;  %v2829_v40 = vpack.c.bf16 %v2279_v31, %v2279_v31  ;;  %v3066_v33 = vadd.f32 %v3036_v22, %v2968_v17  ;;  %v1103_v51 = vpop.f32.mrb[17].mxu1  ;;  %v3040_v41 = vpop.f32.mrb[20].mxu0 }
 0x163   : > { %2437 = vst.msk [vmem:[%s3824_s20 + $0x30] sm:$0xf] %vm2424_vm5, %v2826_v32  ;;  %v2827_v52 = vpack.c.bf16 %v2277_v36, %v2277_v36  ;;  %v3067_v44 = vadd.f32 %v2131_v60, %v1103_v51  ;;  %v2969_v48 = vpop.f32.mrb[18].mxu1  ;;  %v2147_v8 = vpop.f32.mrb[21].mxu0 }
 0x164   : > { %2440 = vst.msk [vmem:[%s3824_s20 + $0x3c] sm:$0xf] %vm2424_vm5, %v2829_v40  ;;  %v2250_v42 = vadd.f32 %v3066_v33, %v3816_v4  ;;  %v3068_v55 = vadd.f32 %v3037_v54, %v2969_v48  ;;  %v1106_v16 = vpop.f32.mrb[19].mxu1  ;;  %v3041_v26 = vpop.f32.mrb[22].mxu0 }
 0x165   : > { %2438 = vst.msk [vmem:[%s3824_s20 + $0x34] sm:$0xf] %vm2424_vm5, %v2827_v52  ;;  %v2248_v6 = vadd.f32 %v3067_v44, %v3816_v4  ;;  %v3069_v35 = vadd.f32 %v2134_v20, %v1106_v16  ;;  %v2150_v58 = vpop.f32.mrb[23].mxu0 }
 0x166   : > { %v2282_v45 = vmax.f32 %v2250_v42, 0.0  ;;  %v2251_v18 = vadd.f32 %v3068_v55, %v3816_v4 }
 0x167   : > { %v2280_v53 = vmax.f32 %v2248_v6, 0.0  ;;  %v2249_v43 = vadd.f32 %v3069_v35, %v3816_v4 }
 0x168   : > { %v2832_v50 = vpack.c.bf16 %v2282_v45, %v2282_v45  ;;  %v2283_v30 = vmax.f32 %v2251_v18, 0.0 }
 0x169   : > { %v2830_v61 = vpack.c.bf16 %v2280_v53, %v2280_v53  ;;  %v2281_v62 = vmax.f32 %v2249_v43, 0.0  ;;  %v2972_v13 = vpop.f32.mrb[20].mxu1 }
 0x16a   : > { %2443 = vst.msk [vmem:[%s3824_s20 + $0x48] sm:$0xf] %vm2424_vm5, %v2832_v50  ;;  %v2833_v1 = vpack.c.bf16 %v2283_v30, %v2283_v30  ;;  %v3070_v15 = vadd.f32 %v3040_v41, %v2972_v13  ;;  %v1119_v25 = vpop.f32.mrb[21].mxu1  ;;  %v3044_v63 = vpop.f32.mrb[24].mxu0 }
 0x16b   : > { %2441 = vst.msk [vmem:[%s3824_s20 + $0x40] sm:$0xf] %vm2424_vm5, %v2830_v61  ;;  %v2831_v10 = vpack.c.bf16 %v2281_v62, %v2281_v62  ;;  %v3071_v14 = vadd.f32 %v2147_v8, %v1119_v25  ;;  %v2973_v0 = vpop.f32.mrb[22].mxu1  ;;  %v2163_v29 = vpop.f32.mrb[25].mxu0 }
 0x16c   : > { %2444 = vst.msk [vmem:[%s3824_s20 + $0x4c] sm:$0xf] %vm2424_vm5, %v2833_v1  ;;  %v2254_v37 = vadd.f32 %v3070_v15, %v3816_v4  ;;  %v3072_v59 = vadd.f32 %v3041_v26, %v2973_v0  ;;  %v1122_v49 = vpop.f32.mrb[23].mxu1  ;;  %v3045_v47 = vpop.f32.mrb[26].mxu0 }
 0x16d   : > { %2442 = vst.msk [vmem:[%s3824_s20 + $0x44] sm:$0xf] %vm2424_vm5, %v2831_v10  ;;  %v2252_v3 = vadd.f32 %v3071_v14, %v3816_v4  ;;  %v3073_v46 = vadd.f32 %v2150_v58, %v1122_v49  ;;  %v2166_v56 = vpop.f32.mrb[27].mxu0 }
 0x16e   : > { %v2286_v38 = vmax.f32 %v2254_v37, 0.0  ;;  %v2255_v27 = vadd.f32 %v3072_v59, %v3816_v4 }
 0x16f   : > { %v2284_v34 = vmax.f32 %v2252_v3, 0.0  ;;  %v2253_v5 = vadd.f32 %v3073_v46, %v3816_v4 }
 0x170   : > { %v2836_v11 = vpack.c.bf16 %v2286_v38, %v2286_v38  ;;  %v2287_v12 = vmax.f32 %v2255_v27, 0.0 }
 0x171   : > { %v2834_v22 = vpack.c.bf16 %v2284_v34, %v2284_v34  ;;  %v2285_v7 = vmax.f32 %v2253_v5, 0.0  ;;  %v2976_v19 = vpop.f32.mrb[24].mxu1 }
 0x172   : > { %2447 = vst.msk [vmem:[%s3824_s20 + $0x58] sm:$0xf] %vm2424_vm5, %v2836_v11  ;;  %v2837_v57 = vpack.c.bf16 %v2287_v12, %v2287_v12  ;;  %v3074_v60 = vadd.f32 %v3044_v63, %v2976_v19  ;;  %v1135_v2 = vpop.f32.mrb[25].mxu1 }
 0x173   : > { %2445 = vst.msk [vmem:[%s3824_s20 + $0x50] sm:$0xf] %vm2424_vm5, %v2834_v22  ;;  %v2835_v23 = vpack.c.bf16 %v2285_v7, %v2285_v7  ;;  %v3075_v39 = vadd.f32 %v2163_v29, %v1135_v2  ;;  %v2977_v54 = vpop.f32.mrb[26].mxu1  ;;  %v3048_v28 = vpop.f32.mrb[28].mxu0 }
 0x174   : > { %2448 = vst.msk [vmem:[%s3824_s20 + $0x5c] sm:$0xf] %vm2424_vm5, %v2837_v57  ;;  %v2258_v21 = vadd.f32 %v3074_v60, %v3816_v4  ;;  %v3076_v24 = vadd.f32 %v3045_v47, %v2977_v54  ;;  %v1138_v20 = vpop.f32.mrb[27].mxu1  ;;  %v2179_v36 = vpop.f32.mrb[29].mxu0 }
 0x175   : > { %2446 = vst.msk [vmem:[%s3824_s20 + $0x54] sm:$0xf] %vm2424_vm5, %v2835_v23  ;;  %v2256_v9 = vadd.f32 %v3075_v39, %v3816_v4  ;;  %v3077_v31 = vadd.f32 %v2166_v56, %v1138_v20  ;;  %v3049_v33 = vpop.f32.mrb[30].mxu0 }
 0x176   : > { %v2290_v32 = vmax.f32 %v2258_v21, 0.0  ;;  %v2259_v17 = vadd.f32 %v3076_v24, %v3816_v4  ;;  %v2182_v48 = vpop.f32.mrb[31].mxu0 }
 0x177   : > { %v2288_v40 = vmax.f32 %v2256_v9, 0.0  ;;  %v2257_v51 = vadd.f32 %v3077_v31, %v3816_v4 }
 0x178   : > { %v2840_v52 = vpack.c.bf16 %v2290_v32, %v2290_v32  ;;  %v2291_v44 = vmax.f32 %v2259_v17, 0.0 }
 0x179   : > { %v2838_v41 = vpack.c.bf16 %v2288_v40, %v2288_v40  ;;  %v2289_v42 = vmax.f32 %v2257_v51, 0.0  ;;  %v2980_v55 = vpop.f32.mrb[28].mxu1 }
 0x17a   : > { %2451 = vst.msk [vmem:[%s3824_s20 + $0x68] sm:$0xf] %vm2424_vm5, %v2840_v52  ;;  %v2841_v16 = vpack.c.bf16 %v2291_v44, %v2291_v44  ;;  %v3078_v8 = vadd.f32 %v3048_v28, %v2980_v55  ;;  %v1151_v6 = vpop.f32.mrb[29].mxu1 }
 0x17b   : > { %2449 = vst.msk [vmem:[%s3824_s20 + $0x60] sm:$0xf] %vm2424_vm5, %v2838_v41  ;;  %v2839_v35 = vpack.c.bf16 %v2289_v42, %v2289_v42  ;;  %v3079_v45 = vadd.f32 %v2179_v36, %v1151_v6  ;;  %v2981_v26 = vpop.f32.mrb[30].mxu1 }
 0x17c   : > { %2452 = vst.msk [vmem:[%s3824_s20 + $0x6c] sm:$0xf] %vm2424_vm5, %v2841_v16  ;;  %v2262_v18 = vadd.f32 %v3078_v8, %v3816_v4  ;;  %v3080_v53 = vadd.f32 %v3049_v33, %v2981_v26  ;;  %v1154_v58 = vpop.f32.mrb[31].mxu1 }
 0x17d   : > { %2450 = vst.msk [vmem:[%s3824_s20 + $0x64] sm:$0xf] %vm2424_vm5, %v2839_v35  ;;  %v2260_v43 = vadd.f32 %v3079_v45, %v3816_v4  ;;  %v3081_v50 = vadd.f32 %v2182_v48, %v1154_v58 }
 0x17e   : > { %v2294_v30 = vmax.f32 %v2262_v18, 0.0  ;;  %v2263_v61 = vadd.f32 %v3080_v53, %v3816_v4 }
 0x17f   : > { %v2292_v62 = vmax.f32 %v2260_v43, 0.0  ;;  %v2261_v13 = vadd.f32 %v3081_v50, %v3816_v4 }
 0x180   : > { %v2844_v1 = vpack.c.bf16 %v2294_v30, %v2294_v30  ;;  %v2295_v15 = vmax.f32 %v2263_v61, 0.0 }
 0x181   : > { %v2842_v25 = vpack.c.bf16 %v2292_v62, %v2292_v62  ;;  %v2293_v10 = vmax.f32 %v2261_v13, 0.0 }
 0x182   : > { %2455 = vst.msk [vmem:[%s3824_s20 + $0x78] sm:$0xf] %vm2424_vm5, %v2844_v1  ;;  %v2845_v14 = vpack.c.bf16 %v2295_v15, %v2295_v15 }
 0x183   : > { %2453 = vst.msk [vmem:[%s3824_s20 + $0x70] sm:$0xf] %vm2424_vm5, %v2842_v25  ;;  %v2843_v0 = vpack.c.bf16 %v2293_v10, %v2293_v10 }
 0x184   : > { %2456 = vst.msk [vmem:[%s3824_s20 + $0x7c] sm:$0xf] %vm2424_vm5, %v2845_v14 }
 0x185   : > { %2454 = vst.msk [vmem:[%s3824_s20 + $0x74] sm:$0xf] %vm2424_vm5, %v2843_v0 }
 0x186 PF: > { %s13_s16 = sadd.s32 1, %s3265_s16   ;;  %s3941_s12 = smov %s3257_s14 }
 0x187   : > { %p10_p7 = scmp.ge.s32.totalorder %s13_s16, 6   ;;  %s3942_s13 = smov %s3261_s15 }
 0x188   : > { %s3943_s14 = smov %s3946_s17  ;;  %s3944_s15 = smov %s3950_s18 }
 0x189   :  { %12 = sbr.rel (!%p10_p7) target bundleno = 3 (0x3), region = 67 }

// kernel: ssd_forward.18
= control target key start
LH: loop header
LB: loop body
LE: loop exit
PB: predicated region body
PF: predicated region fallthrough
CT: control target
= control target key end

     0   :  { %s2010_s12 = smov 0   ;;  %s2012_s13 = smov 0   ;;  %s2379_s0 = inlined_call_operand.vmem [shape: bf16[2,9,17,32], index: 0, kind: input, shape index: {}]   ;;  %s2380_s1 = inlined_call_operand.vmem [shape: bf16[4,32,16], index: 1, kind: input, shape index: {}]   ;;  %s2381_s2 = inlined_call_operand.vmem [shape: f32[1,16], index: 2, kind: input, shape index: {}]   ;;  %s2382_s3 = inlined_call_operand.vmem [shape: bf16[2,8,16,16], index: 3, kind: output, shape index: {}]  }
   0x1   :  { %s2014_s14 = smov 0  }
   0x2 LB: > { %s25_s15 = sadd.s32 1, %s1984_s13  ;;  %p1585_p0 = scmp.ge.s32.totalorder %s1988_s14, 1  ;;  %s1988_s14 = sphi %s2014_s14, %s13_s14   ;;  %s1984_s13 = sphi %s2012_s13, %s2386_s13   ;;  %s1980_s12 = sphi %s2010_s12, %s2385_s12  }
   0x3   : > { %p27_p1 = scmp.ge.s32.totalorder %s25_s15, 2  ;;  %p151_p2 = scmp.lt.s32.totalorder %s1988_s14, 3 }
   0x5   : > { %s2388_s15 = smov (%p27_p1, %s25_s15), 0  ;;  %p152_p3 = pnand %p1585_p0, %p151_p2 }
   0x6   : > { %v1942_v0 = vld [vmem:[%s2380_s1 + $0x20] sm:$0xff] (!%p152_p3)   ;;  %p180_p4 = scmp.lt.s32.totalorder (!%p152_p3), %s1980_s12, 1  ;;  %v1943_v1 = vld [vmem:[%s2380_s1 + $0x28] sm:$0xff] (!%p152_p3)   ;;  %v1945_v2 = vld [vmem:[%s2380_s1 + $0x10] sm:$0xff] (!%p152_p3)   ;;  %vm230_vm0 = vsmask.f32 (!%p152_p3), 3328 }
   0x7   : > { %155 = sbr.rel (%p152_p3) target bundleno = 327 (0x147), region = 32  ;;  %1829 = vmatprep.subr.bf16.mxu0 (!%p152_p3), %v1942_v0  ;;  %v1947_v3 = vld [vmem:[%s2380_s1 + $0x18] sm:$0xff] (!%p152_p3)   ;;  %1789 = vmatprep.subr.bf16.mxu1 (!%p152_p3), %v1945_v2  ;;  %vm231_vm1 = vsmask.f32 (!%p152_p3), 7440  ;;  %v2046_v4 = vld [vmem:[%s2380_s1] sm:$0xff] (!%p152_p3)   ;;  %vm466_vm2 = vcmask (!%p152_p3), 261120  }
   0x8   : > { %1830 = vmatpush3.bf16.msra.mxu0 (!%p152_p3), %v1942_v0  ;;  %1790 = vmatpush3.bf16.msra.mxu1 (!%p152_p3), %v1945_v2  ;;  %v1951_v5 = vld [vmem:[%s2380_s1 + $0x30] sm:$0xff] (!%p152_p3)   ;;  %vm2090_vm3 = vmor (!%p152_p3), %vm230_vm0, %vm231_vm1  ;;  %vm1471_vm4 = vcmask (!%p152_p3), 125952  }
   0x9   : > { %1831 = vmatprep.subr.bf16.mxu0 (!%p152_p3), %v1943_v1  ;;  %1791 = vmatprep.subr.bf16.mxu1 (!%p152_p3), %v1947_v3 }
   0xc   : > { %1832 = vmatpush3.bf16.msra.mxu0 (!%p152_p3), %v1943_v1  ;;  %1792 = vmatpush3.bf16.msra.mxu1 (!%p152_p3), %v1947_v3 }
   0xd   : > { %1849 = vmatprep.subr.bf16.mxu0 (!%p152_p3), %v1951_v5  ;;  %1809 = vmatprep.subr.bf16.mxu1 (!%p152_p3), %v2046_v4 }
   0xe   : > { %s2390_s12 = smov (!%p180_p4, %s1980_s12), 1 }
   0xf   : > { %s1917_s24 = smul.u32 108, %s2390_s12  ;;  %s1732_s11 = sshll.u32 %s2390_s12, 6 }
  0x10   : > { %s2323_s18 = scalar_lea.vmem %s2382_s3, %s1732_s11 }
  0x11   : > { %s2051_s29 = scalar_lea.vmem %s2379_s0, %s1917_s24 }
  0x12   : > { %v1944_v6 = vld [vmem:[%s2051_s29 + $0xc] sm:$0xff]   ;;  %v1946_v7 = vld [vmem:[%s2051_s29 + $0x18] sm:$0xff]   ;;  %v1948_v8 = vld [vmem:[%s2051_s29 + $0x24] sm:$0xff]  }
  0x13   : > { %1833 = vmatprep.mubr.msk.bf16.mxu0 %vm466_vm2, %v1944_v6  ;;  %v2062_v9 = vld [vmem:[%s2051_s29] sm:$0xf]  ;;  %v2065_v10 = vld [vmem:[%s2051_s29 + $0x4] sm:$0xf]  ;;  %v222_v11 = vld [vmem:[%s2051_s29 + $0x8] sm:$0x1] }
  0x14   : > { %1834 = vmatmul.mubr.msk.bf16.vlgmr.msra.gmra.mrb[0].mxu0 %vm466_vm2, %v1946_v7  ;;  %v234_v12 = vshrl.u32 %v2062_v9, 16  ;;  %v237_v13 = vshll.u32 %v2062_v9, 16  ;;  %v243_v14 = vshll.u32 %v2065_v10, 16  ;;  %v247_v15 = vshrl.u32 %v2065_v10, 16  ;;  %v1950_v17 = vld [vmem:[%s2051_s29 + $0x30] sm:$0xff]   ;;  %v1952_v38 = vld [vmem:[%s2051_s29 + $0x3c] sm:$0xff]  }
  0x15   : > { %1837 = vmatprep.mubr.msk.bf16.mxu0 %vm466_vm2, %v1948_v8  ;;  %1850 = vmatpush3.bf16.msra.mxu0 %v1951_v5  ;;  %v253_v16 = vshll.u32 %v222_v11, 16  ;;  %v2076_v18 = vld [vmem:[%s2051_s29 + $0xc] sm:$0xf]  ;;  %v1611_v19 = vcombine.low %v2062_v9, %v2065_v10  ;;  %v2081_v24 = vld [vmem:[%s2051_s29 + $0x10] sm:$0xf]  ;;  %v1954_v2 = vld [vmem:[%s2051_s29 + $0x54] sm:$0xff]  }
  0x16   : > { %v236_v20 = vrot.slane %v234_v12, 4  ;;  %v239_v21 = vrot.slane %v237_v13, 5  ;;  %v245_v22 = vrot.slane %v243_v14, 5  ;;  %v249_v23 = vrot.slane %v247_v15, 4  ;;  %v223_v26 = vld [vmem:[%s2051_s29 + $0x14] sm:$0x1] }
  0x17   : > { %v255_v25 = vrot.slane %v253_v16, 5  ;;  %v258_v27 = vshrl.u32 %v2076_v18, 16  ;;  %v261_v28 = vshll.u32 %v2076_v18, 16  ;;  %v267_v29 = vshll.u32 %v2081_v24, 16  ;;  %v2096_v39 = vld [vmem:[%s2051_s29 + $0x18] sm:$0xf] }
  0x18   : > { %v240_v30 = vor.u32 %v239_v21, %v236_v20  ;;  %v250_v31 = vor.u32 %v249_v23, %v245_v22  ;;  %v271_v32 = vshrl.u32 %v2081_v24, 16  ;;  %v277_v33 = vshll.u32 %v223_v26, 16  ;;  %v2101_v45 = vld [vmem:[%s2051_s29 + $0x1c] sm:$0xf]  ;;  %v224_v47 = vld [vmem:[%s2051_s29 + $0x20] sm:$0x1] }
  0x19   : > { %v260_v35 = vrot.slane %v258_v27, 4  ;;  %v263_v36 = vrot.slane %v261_v28, 5  ;;  %v269_v37 = vrot.slane %v267_v29, 5  ;;  %v1612_v40 = vcombine.low %v2076_v18, %v2081_v24  ;;  %v1953_v59 = vld [vmem:[%s2051_s29 + $0x48] sm:$0xff]   ;;  %v2116_v60 = vld [vmem:[%s2051_s29 + $0x24] sm:$0xf] }
  0x1a   : > { %v241_v41 = vrot.slane %v240_v30, 4  ;;  %v251_v42 = vrot.slane %v250_v31, 4  ;;  %v273_v43 = vrot.slane %v271_v32, 4  ;;  %v279_v44 = vrot.slane %v277_v33, 5  ;;  %v2119_v1 = vld [vmem:[%s2051_s29 + $0x28] sm:$0xf] }
  0x1b   : > { %v264_v46 = vor.u32 %v263_v36, %v260_v35  ;;  %v282_v48 = vshrl.u32 %v2096_v39, 16  ;;  %v285_v49 = vshll.u32 %v2096_v39, 16  ;;  %v291_v50 = vshll.u32 %v2101_v45, 16  ;;  %v225_v6 = vld [vmem:[%s2051_s29 + $0x2c] sm:$0x1] }
  0x1c   : > { %1838 = vmatmul.mubr.msk.bf16.gmra.mrb[4].mxu0 %vm466_vm2, %v1950_v17  ;;  %v246_v51 = vsel %vm2090_vm3, %v241_v41, %v245_v22  ;;  %v256_v52 = vsel %vm2090_vm3, %v251_v42, %v255_v25  ;;  %v274_v53 = vor.u32 %v273_v43, %v269_v37  ;;  %v295_v54 = vshrl.u32 %v2101_v45, 16  ;;  %v2132_v15 = vld [vmem:[%s2051_s29 + $0x30] sm:$0xf]  ;;  %v2135_v22 = vld [vmem:[%s2051_s29 + $0x34] sm:$0xf]  ;;  %v1955_v23 = vld [vmem:[%s2380_s1 + $0x8] sm:$0xff]  }
  0x1d   : > { %1841 = vmatprep.mubr.msk.bf16.mxu0 %vm466_vm2, %v1952_v38  ;;  %v1593_v55 = vcombine.low %v246_v51, %v256_v52  ;;  %v265_v56 = vrot.slane %v264_v46, 4  ;;  %v284_v57 = vrot.slane %v282_v48, 4  ;;  %v287_v58 = vrot.slane %v285_v49, 5  ;;  %v226_v29 = vld [vmem:[%s2051_s29 + $0x38] sm:$0x1] }
  0x1e   : > { %v275_v61 = vrot.slane %v274_v53, 4  ;;  %v293_v62 = vrot.slane %v291_v50, 5  ;;  %v297_v63 = vrot.slane %v295_v54, 4  ;;  %v301_v0 = vshll.u32 %v224_v47, 16  ;;  %v1957_v41 = vld [vmem:[%s2380_s1 + $0x38] sm:$0xff]   ;;  %v1956_v50 = vld [vmem:[%s2051_s29 + $0x60] sm:$0xff]  }
  0x1f   : > { %1793 = vmatprep.mubr.msk.bf16.mxu1 %vm466_vm2, %v1593_v55  ;;  %v270_v3 = vsel %vm2090_vm3, %v265_v56, %v269_v37  ;;  %v288_v5 = vor.u32 %v287_v58, %v284_v57  ;;  %v306_v7 = vshrl.u32 %v2116_v60, 16  ;;  %v309_v8 = vshll.u32 %v2116_v60, 16  ;;  %1851 = vmatprep.subr.bf16.mxu0 %v1957_v41  ;;  %v2162_v53 = vld [vmem:[%s2051_s29 + $0x3c] sm:$0xf]  ;;  %v2165_v54 = vld [vmem:[%s2051_s29 + $0x40] sm:$0xf] }
  0x20   : > { %v280_v11 = vsel %vm2090_vm3, %v275_v61, %v279_v44  ;;  %v298_v12 = vor.u32 %v297_v63, %v293_v62  ;;  %v303_v13 = vrot.slane %v301_v0, 5  ;;  %v315_v14 = vshll.u32 %v2119_v1, 16  ;;  %1852 = vmatpush3.bf16.msra.mxu0 %v1957_v41  ;;  %v1688_v24 = vld [vmem:[%s2051_s29 + $0x60] sm:$0xf] }
  0x21   : > { %v1594_v16 = vcombine.low %v270_v3, %v280_v11  ;;  %v289_v17 = vrot.slane %v288_v5, 4  ;;  %v308_v20 = vrot.slane %v306_v7, 4  ;;  %v311_v21 = vrot.slane %v309_v8, 5  ;;  %v1667_v3 = vld [vmem:[%s2051_s29 + $0xc] sm:$0xf] }
  0x22   : > { %v299_v25 = vrot.slane %v298_v12, 4  ;;  %v317_v26 = vrot.slane %v315_v14, 5  ;;  %v319_v27 = vshrl.u32 %v2119_v1, 16  ;;  %v325_v28 = vshll.u32 %v225_v6, 16  ;;  %v1668_v11 = vld [vmem:[%s2051_s29 + $0x10] sm:$0xf] }
  0x23   : > { %1794 = vmatmul.mubr.msk.bf16.vlgmr.msra.gmra.mrb[0].mxu1 %vm466_vm2, %v1594_v16  ;;  %v294_v30 = vsel %vm2090_vm3, %v289_v17, %v293_v62  ;;  %v312_v31 = vor.u32 %v311_v21, %v308_v20  ;;  %v330_v32 = vshrl.u32 %v2132_v15, 16  ;;  %v333_v33 = vshll.u32 %v2132_v15, 16  ;;  %v1669_v17 = vld [vmem:[%s2051_s29 + $0x14] sm:$0x1] }
  0x24   : > { %1842 = vmatmul.mubr.msk.bf16.gmra.mrb[8].mxu0 %vm466_vm2, %v1953_v59  ;;  %1810 = vmatpush3.bf16.msra.mxu1 %v2046_v4  ;;  %v304_v35 = vsel %vm2090_vm3, %v299_v25, %v303_v13  ;;  %v321_v36 = vrot.slane %v319_v27, 4  ;;  %v327_v37 = vrot.slane %v325_v28, 5  ;;  %v339_v38 = vshll.u32 %v2135_v22, 16  ;;  %v227_v59 = vld [vmem:[%s2051_s29 + $0x44] sm:$0x1] }
  0x25   : > { %1845 = vmatprep.mubr.msk.bf16.mxu0 %vm466_vm2, %v1954_v2  ;;  %v1595_v42 = vcombine.low %v294_v30, %v304_v35  ;;  %v313_v43 = vrot.slane %v312_v31, 4  ;;  %v332_v44 = vrot.slane %v330_v32, 4  ;;  %v335_v4 = vrot.slane %v333_v33, 5  ;;  %1811 = vmatprep.subr.bf16.mxu1 %v1955_v23  ;;  %v2184_v30 = vld [vmem:[%s2051_s29 + $0x48] sm:$0xf] }
  0x26   : > { %v322_v46 = vor.u32 %v321_v36, %v317_v26  ;;  %v341_v47 = vrot.slane %v339_v38, 5  ;;  %v343_v48 = vshrl.u32 %v2135_v22, 16  ;;  %v349_v49 = vshll.u32 %v226_v29, 16  ;;  %v2189_v36 = vld [vmem:[%s2051_s29 + $0x4c] sm:$0xf] }
  0x27   : > { %1797 = vmatprep.mubr.msk.bf16.mxu1 %vm466_vm2, %v1595_v42  ;;  %v318_v51 = vsel %vm2090_vm3, %v313_v43, %v317_v26  ;;  %v336_v52 = vor.u32 %v335_v4, %v332_v44  ;;  %v1613_v55 = vcombine.low %v2096_v39, %v2101_v45  ;;  %v354_v61 = vshrl.u32 %v2162_v53, 16 }
  0x28   : > { %v323_v56 = vrot.slane %v322_v46, 4  ;;  %v345_v57 = vrot.slane %v343_v48, 4  ;;  %v351_v58 = vrot.slane %v349_v49, 5  ;;  %1812 = vmatpush3.bf16.msra.mxu1 %v1955_v23  ;;  %v357_v63 = vshll.u32 %v2162_v53, 16  ;;  %v228_v49 = vld [vmem:[%s2051_s29 + $0x50] sm:$0x1] }
  0x29   : > { %v337_v62 = vrot.slane %v336_v52, 4  ;;  %v363_v0 = vshll.u32 %v2165_v54, 16  ;;  %v367_v2 = vshrl.u32 %v2165_v54, 16  ;;  %v356_v7 = vrot.slane %v354_v61, 4  ;;  %v1670_v52 = vld [vmem:[%s2051_s29 + $0x18] sm:$0xf] }
  0x2a   : > { %v328_v5 = vsel %vm2090_vm3, %v323_v56, %v327_v37  ;;  %v346_v6 = vor.u32 %v345_v57, %v341_v47  ;;  %v373_v8 = vshll.u32 %v227_v59, 16  ;;  %v359_v14 = vrot.slane %v357_v63, 5  ;;  %v1671_v61 = vld [vmem:[%s2051_s29 + $0x1c] sm:$0xf] }
  0x2b   : > { %v1596_v12 = vcombine.low %v318_v51, %v328_v5  ;;  %v342_v13 = vsel %vm2090_vm3, %v337_v62, %v341_v47  ;;  %v365_v16 = vrot.slane %v363_v0, 5  ;;  %v369_v21 = vrot.slane %v367_v2, 4 }
  0x2c   : > { %1846 = vmatmul.mubr.msk.bf16.gmra.mrb[12].mxu0 %vm466_vm2, %v1956_v50  ;;  %v347_v20 = vrot.slane %v346_v6, 4  ;;  %v375_v23 = vrot.slane %v373_v8, 5  ;;  %v1000_v25 = vshrl.u32 %v1667_v3, 16  ;;  %v360_v26 = vor.u32 %v359_v14, %v356_v7 }
  0x2d   : > { %1798 = vmatmul.mubr.msk.bf16.gmra.mrb[4].mxu1 %vm466_vm2, %v1596_v12  ;;  %v1003_v27 = vshll.u32 %v1667_v3, 16  ;;  %v1009_v28 = vshll.u32 %v1668_v11, 16  ;;  %v1013_v29 = vshrl.u32 %v1668_v11, 16  ;;  %v370_v32 = vor.u32 %v369_v21, %v365_v16  ;;  %v1672_v12 = vld [vmem:[%s2051_s29 + $0x20] sm:$0x1] }
  0x2e   : > { %v352_v31 = vsel %vm2090_vm3, %v347_v20, %v351_v58  ;;  %v1002_v33 = vrot.slane %v1000_v25, 4  ;;  %v1019_v35 = vshll.u32 %v1669_v17, 16  ;;  %v361_v38 = vrot.slane %v360_v26, 4  ;;  %v2213_v25 = vld [vmem:[%s2051_s29 + $0x58] sm:$0xf] }
  0x2f   : > { %v1597_v37 = vcombine.low %v342_v13, %v352_v31  ;;  %v1005_v41 = vrot.slane %v1003_v27, 5  ;;  %v1011_v42 = vrot.slane %v1009_v28, 5  ;;  %v371_v43 = vrot.slane %v370_v32, 4 }
  0x30   : > { %v1015_v44 = vrot.slane %v1013_v29, 4  ;;  %v1021_v4 = vrot.slane %v1019_v35, 5  ;;  %v378_v46 = vshrl.u32 %v2184_v30, 16  ;;  %v366_v47 = vsel %vm2090_vm3, %v361_v38, %v365_v16  ;;  %v2208_v16 = vld [vmem:[%s2051_s29 + $0x54] sm:$0xf] }
  0x31   : > { %1801 = vmatprep.mubr.msk.bf16.mxu1 %vm466_vm2, %v1597_v37  ;;  %v1006_v48 = vor.u32 %v1005_v41, %v1002_v33  ;;  %v381_v50 = vshll.u32 %v2184_v30, 16  ;;  %v387_v51 = vshll.u32 %v2189_v36, 16  ;;  %v376_v56 = vsel %vm2090_vm3, %v371_v43, %v375_v23  ;;  %v229_v41 = vld [vmem:[%s2051_s29 + $0x5c] sm:$0x1] }
  0x32   : > { %v1016_v57 = vor.u32 %v1015_v44, %v1011_v42  ;;  %v380_v58 = vrot.slane %v378_v46, 4  ;;  %v391_v59 = vshrl.u32 %v2189_v36, 16  ;;  %v1598_v62 = vcombine.low %v366_v47, %v376_v56  ;;  %v1673_v44 = vld [vmem:[%s2051_s29 + $0x24] sm:$0xf] }
  0x33   : > { %v1007_v63 = vrot.slane %v1006_v48, 4  ;;  %v383_v0 = vrot.slane %v381_v50, 5  ;;  %v389_v2 = vrot.slane %v387_v51, 5  ;;  %v397_v6 = vshll.u32 %v228_v49, 16  ;;  %v1674_v49 = vld [vmem:[%s2051_s29 + $0x28] sm:$0xf] }
  0x34   : > { %v1017_v3 = vrot.slane %v1016_v57, 4  ;;  %v393_v5 = vrot.slane %v391_v59, 4  ;;  %v1024_v7 = vshrl.u32 %v1670_v52, 16  ;;  %v1027_v13 = vshll.u32 %v1670_v52, 16 }
  0x35   : > { %1802 = vmatmul.mubr.msk.bf16.gmra.mrb[8].mxu1 %vm466_vm2, %v1598_v62  ;;  %v1012_v8 = vsel %vm2090_vm3, %v1007_v63, %v1011_v42  ;;  %v384_v11 = vor.u32 %v383_v0, %v380_v58  ;;  %v1033_v14 = vshll.u32 %v1671_v61, 16  ;;  %v399_v21 = vrot.slane %v397_v6, 5  ;;  %v1675_v0 = vld [vmem:[%s2051_s29 + $0x2c] sm:$0x1] }
  0x36   : > { %v1022_v17 = vsel %vm2090_vm3, %v1017_v3, %v1021_v4  ;;  %v394_v20 = vor.u32 %v393_v5, %v389_v2  ;;  %v1026_v23 = vrot.slane %v1024_v7, 4  ;;  %v1029_v28 = vrot.slane %v1027_v13, 5  ;;  %v1676_v5 = vld [vmem:[%s2051_s29 + $0x30] sm:$0xf] }
  0x37   : > { %v1695_v26 = vcombine.low %v1012_v8, %v1022_v17  ;;  %v385_v27 = vrot.slane %v384_v11, 4  ;;  %v1035_v29 = vrot.slane %v1033_v14, 5  ;;  %v1037_v32 = vshrl.u32 %v1671_v61, 16 }
  0x38   : > { %v395_v31 = vrot.slane %v394_v20, 4  ;;  %v1043_v33 = vshll.u32 %v1672_v12, 16  ;;  %v402_v35 = vshrl.u32 %v2208_v16, 16  ;;  %v1030_v38 = vor.u32 %v1029_v28, %v1026_v23 }
  0x39   : > { %1853 = vmatprep.mubr.msk.bf16.mxu0 %vm466_vm2, %v1695_v26  ;;  %v390_v37 = vsel %vm2090_vm3, %v385_v27, %v389_v2  ;;  %v405_v42 = vshll.u32 %v2208_v16, 16  ;;  %v411_v43 = vshll.u32 %v2213_v25, 16  ;;  %v1039_v46 = vrot.slane %v1037_v32, 4  ;;  %v1677_v26 = vld [vmem:[%s2051_s29 + $0x34] sm:$0xf] }
  0x3a   : > { %v400_v4 = vsel %vm2090_vm3, %v395_v31, %v399_v21  ;;  %v1045_v47 = vrot.slane %v1043_v33, 5  ;;  %v404_v48 = vrot.slane %v402_v35, 4  ;;  %v1031_v51 = vrot.slane %v1030_v38, 4  ;;  %v1678_v33 = vld [vmem:[%s2051_s29 + $0x38] sm:$0x1] }
  0x3b   : > { %v1599_v50 = vcombine.low %v390_v37, %v400_v4  ;;  %v407_v52 = vrot.slane %v405_v42, 5  ;;  %v413_v56 = vrot.slane %v411_v43, 5  ;;  %v1040_v57 = vor.u32 %v1039_v46, %v1035_v29  ;;  %v1679_v35 = vld [vmem:[%s2051_s29 + $0x3c] sm:$0xf] }
  0x3c   : > { %v415_v58 = vshrl.u32 %v2213_v25, 16  ;;  %v421_v59 = vshll.u32 %v229_v41, 16  ;;  %v1048_v61 = vshrl.u32 %v1673_v44, 16  ;;  %v1036_v62 = vsel %vm2090_vm3, %v1031_v51, %v1035_v29 }
  0x3d   : > { %1805 = vmatprep.mubr.msk.bf16.mxu1 %vm466_vm2, %v1599_v50  ;;  %v408_v63 = vor.u32 %v407_v52, %v404_v48  ;;  %v1051_v2 = vshll.u32 %v1673_v44, 16  ;;  %v1057_v3 = vshll.u32 %v1674_v49, 16  ;;  %v1041_v6 = vrot.slane %v1040_v57, 4  ;;  %v1680_v50 = vld [vmem:[%s2051_s29 + $0x40] sm:$0xf] }
  0x3e   : > { %v417_v7 = vrot.slane %v415_v58, 4  ;;  %v423_v8 = vrot.slane %v421_v59, 5  ;;  %v1050_v11 = vrot.slane %v1048_v61, 4  ;;  %v1061_v17 = vshrl.u32 %v1674_v49, 16  ;;  %v1681_v59 = vld [vmem:[%s2051_s29 + $0x44] sm:$0x1] }
  0x3f   : > { %v409_v12 = vrot.slane %v408_v63, 4  ;;  %v1053_v13 = vrot.slane %v1051_v2, 5  ;;  %v1059_v14 = vrot.slane %v1057_v3, 5  ;;  %v1046_v20 = vsel %vm2090_vm3, %v1041_v6, %v1045_v47  ;;  %v1682_v2 = vld [vmem:[%s2051_s29 + $0x48] sm:$0xf] }
  0x40   : > { %v418_v21 = vor.u32 %v417_v7, %v413_v56  ;;  %v1067_v23 = vshll.u32 %v1675_v0, 16  ;;  %v1072_v27 = vshrl.u32 %v1676_v5, 16  ;;  %v1696_v28 = vcombine.low %v1036_v62, %v1046_v20 }
  0x41   : > { %v414_v29 = vsel %vm2090_vm3, %v409_v12, %v413_v56  ;;  %v1054_v31 = vor.u32 %v1053_v13, %v1050_v11  ;;  %v1063_v32 = vrot.slane %v1061_v17, 4  ;;  %v1075_v42 = vshll.u32 %v1676_v5, 16 }
  0x42   : > { %v419_v37 = vrot.slane %v418_v21, 4  ;;  %v1069_v38 = vrot.slane %v1067_v23, 5  ;;  %v1074_v41 = vrot.slane %v1072_v27, 4  ;;  %1854 = vmatmul.mubr.msk.bf16.vlgmr.msra.gmra.mrb[0].mxu0 %vm466_vm2, %v1696_v28  ;;  %v1081_v4 = vshll.u32 %v1677_v26, 16  ;;  %v1684_v23 = vld [vmem:[%s2051_s29 + $0x50] sm:$0x1] }
  0x43   : > { %v1055_v43 = vrot.slane %v1054_v31, 4  ;;  %v1064_v44 = vor.u32 %v1063_v32, %v1059_v14  ;;  %v1085_v46 = vshrl.u32 %v1677_v26, 16  ;;  %v1077_v48 = vrot.slane %v1075_v42, 5 }
  0x44   : > { %v424_v47 = vsel %vm2090_vm3, %v419_v37, %v423_v8  ;;  %v1091_v49 = vshll.u32 %v1678_v33, 16  ;;  %v1096_v51 = vshrl.u32 %v1679_v35, 16  ;;  %v1083_v58 = vrot.slane %v1081_v4, 5 }
  0x45   : > { %v1600_v52 = vcombine.low %v414_v29, %v424_v47  ;;  %v1060_v56 = vsel %vm2090_vm3, %v1055_v43, %v1059_v14  ;;  %v1065_v57 = vrot.slane %v1064_v44, 4  ;;  %v1078_v61 = vor.u32 %v1077_v48, %v1074_v41  ;;  %v1683_v14 = vld [vmem:[%s2051_s29 + $0x4c] sm:$0xf]  ;;  %v1685_v41 = vld [vmem:[%s2051_s29 + $0x54] sm:$0xf] }
  0x46   : > { %v1087_v62 = vrot.slane %v1085_v46, 4  ;;  %v1093_v63 = vrot.slane %v1091_v49, 5  ;;  %v1098_v0 = vrot.slane %v1096_v51, 4  ;;  %v1099_v5 = vshll.u32 %v1679_v35, 16  ;;  %v1686_v46 = vld [vmem:[%s2051_s29 + $0x58] sm:$0xf] }
  0x47   : > { %1806 = vmatmul.mubr.msk.bf16.gmra.mrb[12].mxu1 %vm466_vm2, %v1600_v52  ;;  %v1070_v3 = vsel %vm2090_vm3, %v1065_v57, %v1069_v38  ;;  %v1105_v6 = vshll.u32 %v1680_v50, 16  ;;  %v1109_v7 = vshrl.u32 %v1680_v50, 16  ;;  %v1079_v11 = vrot.slane %v1078_v61, 4  ;;  %v1687_v51 = vld [vmem:[%s2051_s29 + $0x5c] sm:$0x1] }
  0x48   : > { %v1697_v8 = vcombine.low %v1060_v56, %v1070_v3  ;;  %1813 = vmatprep.mubr.msk.bf16.mxu1 %vm466_vm2, %v1611_v19  ;;  %v1088_v12 = vor.u32 %v1087_v62, %v1083_v58  ;;  %v1115_v13 = vshll.u32 %v1681_v59, 16  ;;  %v1101_v17 = vrot.slane %v1099_v5, 5 }
  0x49   : > { %v1107_v20 = vrot.slane %v1105_v6, 5  ;;  %v1111_v21 = vrot.slane %v1109_v7, 4  ;;  %v1120_v26 = vshrl.u32 %v1682_v2, 16  ;;  %v1084_v27 = vsel %vm2090_vm3, %v1079_v11, %v1083_v58  ;;  %v1690_v7 = vld [vmem:[%s2051_s29 + $0x68] sm:$0x1] }
  0x4a   : > { %1857 = vmatprep.mubr.msk.bf16.mxu0 %vm466_vm2, %v1697_v8  ;;  %v1089_v28 = vrot.slane %v1088_v12, 4  ;;  %v1117_v9 = vrot.slane %v1115_v13, 5  ;;  %v1123_v10 = vshll.u32 %v1682_v2, 16  ;;  %v1102_v19 = vor.u32 %v1101_v17, %v1098_v0  ;;  %v1689_v0 = vld [vmem:[%s2051_s29 + $0x64] sm:$0xf] }
  0x4b   : > { %v1112_v29 = vor.u32 %v1111_v21, %v1107_v20  ;;  %v1122_v31 = vrot.slane %v1120_v26, 4  ;;  %v1129_v32 = vshll.u32 %v1683_v14, 16  ;;  %v1133_v37 = vshrl.u32 %v1683_v14, 16 }
  0x4c   : > { %v1094_v33 = vsel %vm2090_vm3, %v1089_v28, %v1093_v63  ;;  %v1125_v35 = vrot.slane %v1123_v10, 5  ;;  %v1139_v38 = vshll.u32 %v1684_v23, 16  ;;  %v1103_v43 = vrot.slane %v1102_v19, 4 }
  0x4d   : > { %v1698_v42 = vcombine.low %v1084_v27, %v1094_v33  ;;  %v1113_v44 = vrot.slane %v1112_v29, 4  ;;  %v1131_v4 = vrot.slane %v1129_v32, 5  ;;  %v1135_v48 = vrot.slane %v1133_v37, 4 }
  0x4e   : > { %v1126_v47 = vor.u32 %v1125_v35, %v1122_v31  ;;  %v1141_v49 = vrot.slane %v1139_v38, 5  ;;  %v1614_v50 = vcombine.low %v2116_v60, %v2119_v1  ;;  %v1108_v52 = vsel %vm2090_vm3, %v1103_v43, %v1107_v20 }
  0x4f   : > { %1858 = vmatmul.mubr.msk.bf16.gmra.mrb[4].mxu0 %vm466_vm2, %v1698_v42  ;;  %1814 = vmatmul.mubr.msk.bf16.vlgmr.msra.gmra.mrb[0].mxu1 %vm466_vm2, %v1612_v40  ;;  %v1118_v56 = vsel %vm2090_vm3, %v1113_v44, %v1117_v9  ;;  %v1144_v57 = vshrl.u32 %v1685_v41, 16  ;;  %v1147_v58 = vshll.u32 %v1685_v41, 16  ;;  %v1136_v1 = vor.u32 %v1135_v48, %v1131_v4 }
  0x50   : > { %v1699_v59 = vcombine.low %v1108_v52, %v1118_v56  ;;  %1817 = vmatprep.mubr.msk.bf16.mxu1 %vm466_vm2, %v1613_v55  ;;  %v1127_v60 = vrot.slane %v1126_v47, 4  ;;  %v1153_v18 = vshll.u32 %v1686_v46, 16  ;;  %v1157_v62 = vshrl.u32 %v1686_v46, 16 }
  0x51   : > { %v1146_v40 = vrot.slane %v1144_v57, 4  ;;  %v1149_v61 = vrot.slane %v1147_v58, 5  ;;  %v1163_v63 = vshll.u32 %v1687_v51, 16  ;;  %v1137_v3 = vrot.slane %v1136_v1, 4 }
  0x52   : > { %1861 = vmatprep.mubr.msk.bf16.mxu0 %vm466_vm2, %v1699_v59  ;;  %v1132_v2 = vsel %vm2090_vm3, %v1127_v60, %v1131_v4  ;;  %v1155_v5 = vrot.slane %v1153_v18, 5  ;;  %v1615_v39 = vcombine.low %v2132_v15, %v2135_v22  ;;  %v1159_v55 = vrot.slane %v1157_v62, 4 }
  0x53   : > { %v1150_v45 = vor.u32 %v1149_v61, %v1146_v40  ;;  %v1165_v6 = vrot.slane %v1163_v63, 5  ;;  %v1168_v8 = vshrl.u32 %v1688_v24, 16  ;;  %v1142_v11 = vsel %vm2090_vm3, %v1137_v3, %v1141_v49 }
  0x54   : > { %v1171_v12 = vshll.u32 %v1688_v24, 16  ;;  %v1177_v13 = vshll.u32 %v1689_v0, 16  ;;  %v1181_v14 = vshrl.u32 %v1689_v0, 16  ;;  %v1700_v17 = vcombine.low %v1132_v2, %v1142_v11 }
  0x55   : > { %v1151_v20 = vrot.slane %v1150_v45, 4  ;;  %v1160_v21 = vor.u32 %v1159_v55, %v1155_v5  ;;  %v1170_v23 = vrot.slane %v1168_v8, 4  ;;  %v1187_v9 = vshll.u32 %v1690_v7, 16 }
  0x56   : > { %v1173_v26 = vrot.slane %v1171_v12, 5  ;;  %v1179_v27 = vrot.slane %v1177_v13, 5  ;;  %v1183_v28 = vrot.slane %v1181_v14, 4  ;;  %v1616_v37 = vcombine.low %v2162_v53, %v2165_v54 }
  0x57   : > { %1862 = vmatmul.mubr.msk.bf16.gmra.mrb[8].mxu0 %vm466_vm2, %v1700_v17  ;;  %1818 = vmatmul.mubr.msk.bf16.gmra.mrb[4].mxu1 %vm466_vm2, %v1614_v50  ;;  %v1156_v15 = vsel %vm2090_vm3, %v1151_v20, %v1155_v5  ;;  %v1161_v22 = vrot.slane %v1160_v21, 4  ;;  %v1189_v29 = vrot.slane %v1187_v9, 5  ;;  %v1617_v42 = vcombine.low %v2184_v30, %v2189_v36  ;;  %v2314_v30 = vld [vmem:[%s2381_s2] ss:$0 sm:$0xff] }
  0x58   : > { %1821 = vmatprep.mubr.msk.bf16.mxu1 %vm466_vm2, %v1615_v39  ;;  %v1174_v10 = vor.u32 %v1173_v26, %v1170_v23  ;;  %v1184_v19 = vor.u32 %v1183_v28, %v1179_v27  ;;  %v1618_v53 = vcombine.low %v2208_v16, %v2213_v25 }
  0x59   : > { %v1166_v31 = vsel %vm2090_vm3, %v1161_v22, %v1165_v6 }
  0x5a   : > { %v1701_v32 = vcombine.low %v1156_v15, %v1166_v31  ;;  %v1175_v33 = vrot.slane %v1174_v10, 4  ;;  %v1185_v35 = vrot.slane %v1184_v19, 4 }
  0x5c   : > { %1865 = vmatprep.mubr.msk.bf16.mxu0 %vm466_vm2, %v1701_v32  ;;  %v1180_v38 = vsel %vm2090_vm3, %v1175_v33, %v1179_v27  ;;  %v1190_v41 = vsel %vm2090_vm3, %v1185_v35, %v1189_v29 }
  0x5d   : > { %v1702_v43 = vcombine.low %v1180_v38, %v1190_v41 }
  0x5f   : > { %1866 = vmatmul.mubr.msk.bf16.gmra.mrb[12].mxu0 %vm466_vm2, %v1702_v43  ;;  %1822 = vmatmul.mubr.msk.bf16.gmra.mrb[8].mxu1 %vm466_vm2, %v1616_v37 }
  0x60   : > { %1825 = vmatprep.mubr.msk.bf16.mxu1 %vm466_vm2, %v1617_v42 }
  0x67   : > { %1826 = vmatmul.mubr.msk.bf16.gmra.mrb[12].mxu1 %vm466_vm2, %v1618_v53 }
 0x115   : > { %v1855_v54 = vpop.f32.mrb[0].mxu0 }
 0x116   : > { %v1290_v44 = vpop.f32.mrb[1].mxu0 }
 0x117   : > { %v1856_v34 = vpop.f32.mrb[2].mxu0 }
 0x118   : > { %v1293_v4 = vpop.f32.mrb[3].mxu0 }
 0x122   : > { %v1859_v46 = vpop.f32.mrb[4].mxu0  ;;  %v1815_v36 = vpop.f32.mrb[0].mxu1 }
 0x123   : > { %v1869_v47 = vadd.f32 %v1855_v54, %v1815_v36  ;;  %v1306_v48 = vpop.f32.mrb[5].mxu0  ;;  %v698_v49 = vpop.f32.mrb[1].mxu1 }
 0x124   : > { %v1870_v50 = vadd.f32 %v1290_v44, %v698_v49  ;;  %v1860_v51 = vpop.f32.mrb[6].mxu0  ;;  %v1816_v52 = vpop.f32.mrb[2].mxu1 }
 0x125   : > { %v1377_v16 = vadd.f32 %v1869_v47, %v2314_v30  ;;  %v1871_v25 = vadd.f32 %v1856_v34, %v1816_v52  ;;  %v1309_v56 = vpop.f32.mrb[7].mxu0  ;;  %v701_v57 = vpop.f32.mrb[3].mxu1 }
 0x126   : > { %v1375_v58 = vadd.f32 %v1870_v50, %v2314_v30  ;;  %v1872_v59 = vadd.f32 %v1293_v4, %v701_v57 }
 0x127   : > { %v1393_v60 = vmax.f32 %v1377_v16, 0.0  ;;  %v1378_v1 = vadd.f32 %v1871_v25, %v2314_v30 }
 0x128   : > { %v1391_v18 = vmax.f32 %v1375_v58, 0.0  ;;  %v1376_v24 = vadd.f32 %v1872_v59, %v2314_v30 }
 0x129   : > { %v1735_v40 = vpack.c.bf16 %v1393_v60, %v1393_v60  ;;  %v1394_v61 = vmax.f32 %v1378_v1, 0.0 }
 0x12a   : > { %v1733_v62 = vpack.c.bf16 %v1391_v18, %v1391_v18  ;;  %v1392_v63 = vmax.f32 %v1376_v24, 0.0  ;;  %v1863_v0 = vpop.f32.mrb[8].mxu0  ;;  %v1819_v2 = vpop.f32.mrb[4].mxu1 }
 0x12b   : > { %1474 = vst.msk [vmem:[%s2323_s18 + $0x8] sm:$0xf] %vm1471_vm4, %v1735_v40  ;;  %v1736_v3 = vpack.c.bf16 %v1394_v61, %v1394_v61  ;;  %v1873_v5 = vadd.f32 %v1859_v46, %v1819_v2  ;;  %v1322_v39 = vpop.f32.mrb[9].mxu0  ;;  %v714_v45 = vpop.f32.mrb[5].mxu1 }
 0x12c   : > { %1472 = vst.msk [vmem:[%s2323_s18] sm:$0xf] %vm1471_vm4, %v1733_v62  ;;  %v1734_v55 = vpack.c.bf16 %v1392_v63, %v1392_v63  ;;  %v1874_v6 = vadd.f32 %v1306_v48, %v714_v45  ;;  %v1864_v7 = vpop.f32.mrb[10].mxu0  ;;  %v1820_v8 = vpop.f32.mrb[6].mxu1 }
 0x12d   : > { %1475 = vst.msk [vmem:[%s2323_s18 + $0xc] sm:$0xf] %vm1471_vm4, %v1736_v3  ;;  %v1381_v11 = vadd.f32 %v1873_v5, %v2314_v30  ;;  %v1875_v12 = vadd.f32 %v1860_v51, %v1820_v8  ;;  %v1325_v13 = vpop.f32.mrb[11].mxu0  ;;  %v717_v14 = vpop.f32.mrb[7].mxu1 }
 0x12e   : > { %1473 = vst.msk [vmem:[%s2323_s18 + $0x4] sm:$0xf] %vm1471_vm4, %v1734_v55  ;;  %v1379_v17 = vadd.f32 %v1874_v6, %v2314_v30  ;;  %v1876_v20 = vadd.f32 %v1309_v56, %v717_v14 }
 0x12f   : > { %v1397_v21 = vmax.f32 %v1381_v11, 0.0  ;;  %v1382_v23 = vadd.f32 %v1875_v12, %v2314_v30 }
 0x130   : > { %v1395_v26 = vmax.f32 %v1379_v17, 0.0  ;;  %v1380_v27 = vadd.f32 %v1876_v20, %v2314_v30 }
 0x131   : > { %v1739_v28 = vpack.c.bf16 %v1397_v21, %v1397_v21  ;;  %v1398_v9 = vmax.f32 %v1382_v23, 0.0 }
 0x132   : > { %v1737_v15 = vpack.c.bf16 %v1395_v26, %v1395_v26  ;;  %v1396_v22 = vmax.f32 %v1380_v27, 0.0  ;;  %v1867_v10 = vpop.f32.mrb[12].mxu0  ;;  %v1823_v19 = vpop.f32.mrb[8].mxu1 }
 0x133   : > { %1478 = vst.msk [vmem:[%s2323_s18 + $0x18] sm:$0xf] %vm1471_vm4, %v1739_v28  ;;  %v1740_v29 = vpack.c.bf16 %v1398_v9, %v1398_v9  ;;  %v1877_v31 = vadd.f32 %v1863_v0, %v1823_v19  ;;  %v1338_v32 = vpop.f32.mrb[13].mxu0  ;;  %v730_v33 = vpop.f32.mrb[9].mxu1 }
 0x134   : > { %1476 = vst.msk [vmem:[%s2323_s18 + $0x10] sm:$0xf] %vm1471_vm4, %v1737_v15  ;;  %v1738_v35 = vpack.c.bf16 %v1396_v22, %v1396_v22  ;;  %v1878_v37 = vadd.f32 %v1322_v39, %v730_v33  ;;  %v1868_v38 = vpop.f32.mrb[14].mxu0  ;;  %v1824_v41 = vpop.f32.mrb[10].mxu1 }
 0x135   : > { %1479 = vst.msk [vmem:[%s2323_s18 + $0x1c] sm:$0xf] %vm1471_vm4, %v1740_v29  ;;  %v1385_v42 = vadd.f32 %v1877_v31, %v2314_v30  ;;  %v1879_v43 = vadd.f32 %v1864_v7, %v1824_v41  ;;  %v1341_v53 = vpop.f32.mrb[15].mxu0  ;;  %v733_v54 = vpop.f32.mrb[11].mxu1 }
 0x136   : > { %1477 = vst.msk [vmem:[%s2323_s18 + $0x14] sm:$0xf] %vm1471_vm4, %v1738_v35  ;;  %v1383_v44 = vadd.f32 %v1878_v37, %v2314_v30  ;;  %v1880_v34 = vadd.f32 %v1325_v13, %v733_v54 }
 0x137   : > { %v1401_v4 = vmax.f32 %v1385_v42, 0.0  ;;  %v1386_v46 = vadd.f32 %v1879_v43, %v2314_v30 }
 0x138   : > { %v1399_v36 = vmax.f32 %v1383_v44, 0.0  ;;  %v1384_v47 = vadd.f32 %v1880_v34, %v2314_v30 }
 0x139   : > { %v1743_v48 = vpack.c.bf16 %v1401_v4, %v1401_v4  ;;  %v1402_v49 = vmax.f32 %v1386_v46, 0.0 }
 0x13a   : > { %v1741_v50 = vpack.c.bf16 %v1399_v36, %v1399_v36  ;;  %v1400_v51 = vmax.f32 %v1384_v47, 0.0  ;;  %v1827_v52 = vpop.f32.mrb[12].mxu1 }
 0x13b   : > { %1482 = vst.msk [vmem:[%s2323_s18 + $0x28] sm:$0xf] %vm1471_vm4, %v1743_v48  ;;  %v1744_v16 = vpack.c.bf16 %v1402_v49, %v1402_v49  ;;  %v1881_v25 = vadd.f32 %v1867_v10, %v1827_v52  ;;  %v746_v56 = vpop.f32.mrb[13].mxu1 }
 0x13c   : > { %1480 = vst.msk [vmem:[%s2323_s18 + $0x20] sm:$0xf] %vm1471_vm4, %v1741_v50  ;;  %v1742_v57 = vpack.c.bf16 %v1400_v51, %v1400_v51  ;;  %v1882_v58 = vadd.f32 %v1338_v32, %v746_v56  ;;  %v1828_v59 = vpop.f32.mrb[14].mxu1 }
 0x13d   : > { %1483 = vst.msk [vmem:[%s2323_s18 + $0x2c] sm:$0xf] %vm1471_vm4, %v1744_v16  ;;  %v1389_v60 = vadd.f32 %v1881_v25, %v2314_v30  ;;  %v1883_v1 = vadd.f32 %v1868_v38, %v1828_v59  ;;  %v749_v18 = vpop.f32.mrb[15].mxu1 }
 0x13e   : > { %1481 = vst.msk [vmem:[%s2323_s18 + $0x24] sm:$0xf] %vm1471_vm4, %v1742_v57  ;;  %v1387_v24 = vadd.f32 %v1882_v58, %v2314_v30  ;;  %v1884_v40 = vadd.f32 %v1341_v53, %v749_v18 }
 0x13f   : > { %v1405_v61 = vmax.f32 %v1389_v60, 0.0  ;;  %v1390_v62 = vadd.f32 %v1883_v1, %v2314_v30 }
 0x140   : > { %v1403_v63 = vmax.f32 %v1387_v24, 0.0  ;;  %v1388_v0 = vadd.f32 %v1884_v40, %v2314_v30 }
 0x141   : > { %v1747_v2 = vpack.c.bf16 %v1405_v61, %v1405_v61  ;;  %v1406_v3 = vmax.f32 %v1390_v62, 0.0 }
 0x142   : > { %v1745_v5 = vpack.c.bf16 %v1403_v63, %v1403_v63  ;;  %v1404_v39 = vmax.f32 %v1388_v0, 0.0 }
 0x143   : > { %1486 = vst.msk [vmem:[%s2323_s18 + $0x38] sm:$0xf] %vm1471_vm4, %v1747_v2  ;;  %v1748_v45 = vpack.c.bf16 %v1406_v3, %v1406_v3 }
 0x144   : > { %1484 = vst.msk [vmem:[%s2323_s18 + $0x30] sm:$0xf] %vm1471_vm4, %v1745_v5  ;;  %v1746_v55 = vpack.c.bf16 %v1404_v39, %v1404_v39 }
 0x145   : > { %1487 = vst.msk [vmem:[%s2323_s18 + $0x3c] sm:$0xf] %vm1471_vm4, %v1748_v45 }
 0x146   : > { %1485 = vst.msk [vmem:[%s2323_s18 + $0x34] sm:$0xf] %vm1471_vm4, %v1746_v55 }
 0x147 PF: > { %s13_s14 = sadd.s32 1, %s1988_s14   ;;  %s2385_s12 = smov %s1984_s13 }
 0x148   : > { %p10_p5 = scmp.ge.s32.totalorder %s13_s14, 4   ;;  %s2386_s13 = smov %s2388_s15 }
 0x14a   :  { %12 = sbr.rel (!%p10_p5) target bundleno = 2 (0x2), region = 67 }

// kernel: ssd_forward.19
= control target key start
LH: loop header
LB: loop body
LE: loop exit
PB: predicated region body
PF: predicated region fallthrough
CT: control target
= control target key end

     0   :  { %s886_s12 = smov 0   ;;  %s888_s13 = smov 0   ;;  %s1035_s0 = inlined_call_operand.vmem [shape: bf16[2,5,9,64], index: 0, kind: input, shape index: {}]   ;;  %s1036_s1 = inlined_call_operand.vmem [shape: bf16[4,64,24], index: 1, kind: input, shape index: {}]   ;;  %s1037_s2 = inlined_call_operand.vmem [shape: f32[1,24], index: 2, kind: input, shape index: {}]   ;;  %s1038_s3 = inlined_call_operand.vmem [shape: bf16[2,4,8,24], index: 3, kind: output, shape index: {}]  }
   0x1   :  { %s890_s14 = smov 0   ;;  %s892_s15 = smov 0  }
   0x2   :  { %s894_s16 = smov 0  }
   0x3 LB: > { %s22_s17 = sadd.s32 1, %s854_s14  ;;  %s25_s18 = sadd.s32 1, %s858_s15  ;;  %s862_s16 = sphi %s894_s16, %s13_s16   ;;  %s858_s15 = sphi %s892_s15, %s1042_s15   ;;  %s854_s14 = sphi %s890_s14, %s1041_s14   ;;  %s850_s13 = sphi %s888_s13, %s1040_s13   ;;  %s846_s12 = sphi %s886_s12, %s1039_s12  }
   0x4   : > { %p23_p0 = scmp.ge.s32.totalorder %s22_s17, 4  ;;  %p635_p1 = scmp.ge.s32.totalorder %s862_s16, 1 }
   0x5   : > { %p151_p2 = scmp.lt.s32.totalorder %s862_s16, 9 }
   0x6   : > { %s1044_s17 = smov (%p23_p0, %s22_s17), 0  ;;  %s1046_s18 = smov (!%p23_p0, %s25_s18), %s858_s15 }
   0x7   : > { %p152_p3 = pnand %p635_p1, %p151_p2  ;;  %p27_p4 = scmp.ge.s32.totalorder %s1046_s18, 2 }
   0x8   : > { %v806_v0 = vld [vmem:[%s1036_s1 + $0x20] sm:$0xff] (!%p152_p3)   ;;  %v864_v1 = vmov (!%p152_p3), 0.0   ;;  %v808_v3 = vld [vmem:[%s1036_s1 + $0x28] sm:$0xff] (!%p152_p3)   ;;  %vm865_vm0 = vmmov (!%p152_p3), 0   ;;  %p178_p5 = scmp.lt.s32.totalorder (!%p152_p3), %s850_s13, 1  ;;  %s694_s27 = sshll.u32 (!%p152_p3), %s846_s12, 3 }
   0x9   : > { %s1048_s18 = smov (%p27_p4, %s1046_s18), 0  ;;  %155 = sbr.rel (%p152_p3) target bundleno = 269 (0x10d), region = 32 }
   0xa   : > { %715 = vmatprep.subr.bf16.mxu0 (!%p152_p3), %v864_v1  ;;  %727 = vmatprep.subr.bf16.mxu1 (!%p152_p3), %v864_v1  ;;  %v807_v2 = vld [vmem:[%s1036_s1] sm:$0xff] (!%p152_p3)   ;;  %v809_v4 = vld [vmem:[%s1036_s1 + $0x8] sm:$0xff] (!%p152_p3)   ;;  %v810_v5 = vld [vmem:[%s1036_s1 + $0x30] sm:$0xff] (!%p152_p3)   ;;  %vm251_vm1 = vcmask (!%p152_p3), 523264   ;;  %p185_p6 = scmp.lt.s32.totalorder (!%p152_p3), %s846_s12, 3  ;;  %vm544_vm2 = vcmask (!%p152_p3), 191488  }
   0xb   : > { %716 = vmatpush3.bf16.msra.mxu0 (!%p152_p3), %v806_v0  ;;  %723 = vmatprep.mubr.msk.bf16.mxu0 (!%p152_p3), %vm865_vm0, %v864_v1  ;;  %v811_v6 = vld [vmem:[%s1036_s1 + $0x10] sm:$0xff] (!%p152_p3)   ;;  %v812_v7 = vld [vmem:[%s1036_s1 + $0x38] sm:$0xff] (!%p152_p3)   ;;  %v816_v15 = vld [vmem:[%s1036_s1 + $0x60] sm:$0xff] (!%p152_p3)  }
   0xc   : > { %728 = vmatpush3.bf16.msra.mxu1 (!%p152_p3), %v807_v2  ;;  %717 = vmatprep.subr.bf16.mxu0 (!%p152_p3), %v864_v1  ;;  %v813_v10 = vld [vmem:[%s1036_s1 + $0x18] sm:$0xff] (!%p152_p3)   ;;  %v815_v16 = vld [vmem:[%s1036_s1 + $0x40] sm:$0xff] (!%p152_p3)   ;;  %v818_v19 = vld [vmem:[%s1036_s1 + $0x68] sm:$0xff] (!%p152_p3)  }
   0xd   : > { %729 = vmatprep.subr.bf16.mxu1 (!%p152_p3), %v864_v1  ;;  %735 = vmatprep.mubr.msk.bf16.mxu1 (!%p152_p3), %vm865_vm0, %v864_v1  ;;  %v817_v20 = vld [vmem:[%s1036_s1 + $0x48] sm:$0xff] (!%p152_p3)   ;;  %v820_v22 = vld [vmem:[%s1036_s1 + $0x70] sm:$0xff] (!%p152_p3)   ;;  %v822_v26 = vld [vmem:[%s1036_s1 + $0x78] sm:$0xff] (!%p152_p3)  }
   0xe   : > { %v819_v23 = vld [vmem:[%s1036_s1 + $0x50] sm:$0xff] (!%p152_p3)   ;;  %v821_v27 = vld [vmem:[%s1036_s1 + $0x58] sm:$0xff] (!%p152_p3)   ;;  %v691_v45 = vld [vmem:[%s1037_s2] ss:$0 sm:$0xff] (!%p152_p3) }
   0xf   : > { %718 = vmatpush3.bf16.msra.mxu0 (!%p152_p3), %v808_v3 }
  0x10   : > { %s1050_s13 = smov (!%p178_p5, %s850_s13), 1  ;;  %730 = vmatpush3.bf16.msra.mxu1 %v809_v4  ;;  %719 = vmatprep.subr.bf16.mxu0 %v864_v1  ;;  %s1052_s12 = smov (!%p185_p6, %s846_s12), 3 }
  0x11   : > { %s763_s30 = smul.u32 40, %s1050_s13  ;;  %731 = vmatprep.subr.bf16.mxu1 %v864_v1  ;;  %s637_s10 = sshll.u32 %s1050_s13, 2 }
  0x13   : > { %s182_s8 = scalar_lea.vmem %s1035_s0, %s763_s30  ;;  %720 = vmatpush3.bf16.msra.mxu0 %v810_v5 }
  0x14   : > { %s960_s11 = scalar_lea.vmem %s182_s8, %s694_s27  ;;  %732 = vmatpush3.bf16.msra.mxu1 %v811_v6  ;;  %721 = vmatprep.subr.bf16.mxu0 %v864_v1 }
  0x15   : > { %v196_v8 = vld [vmem:[%s960_s11] sm:$0xf]  ;;  %v205_v9 = vld [vmem:[%s960_s11 + $0x4] sm:$0x1]  ;;  %733 = vmatprep.subr.bf16.mxu1 %v864_v1  ;;  %v823_v18 = vld [vmem:[%s960_s11 + $0x8] sm:$0x1f]  }
  0x16   : > { %v649_v11 = vcombine.low %v196_v8, %v205_v9  ;;  %v463_v21 = vshll.u32 %v823_v18, 16  ;;  %v461_v24 = vshrl.u32 %v823_v18, 16  ;;  %v661_v29 = vld [vmem:[%s960_s11 + $0x8] sm:$0xf]  ;;  %s188_s11 = sadd.s32 %s637_s10, %s1052_s12 }
  0x17   : > { %722 = vmatpush3.bf16.msra.mxu0 %v812_v7  ;;  %s638_s21 = sshll.u32 %s188_s11, 2 }
  0x18   : > { %v221_v12 = vshrl.u32 %v649_v11, 16  ;;  %v223_v13 = vshll.u32 %v649_v11, 16  ;;  %734 = vmatpush3.bf16.msra.mxu1 %v813_v10  ;;  %739 = vmatprep.subr.bf16.mxu0 %v864_v1  ;;  %v465_v25 = vrot.slane %v463_v21, 1  ;;  %s190_s23 = scalar_lea.vmem %s1038_s3, %s638_s21 }
  0x19   : > { %751 = vmatprep.subr.bf16.mxu1 %v864_v1 }
  0x1a   : > { %v225_v14 = vrot.slane %v223_v13, 1  ;;  %v466_v28 = vor.u32 %v465_v25, %v461_v24 }
  0x1b   : > { %736 = vmatmul.mubr.msk.bf16.vlgmr.msra.gmra.mrb[0].mxu1 %vm251_vm1, %v196_v8 }
  0x1c   : > { %v226_v17 = vor.u32 %v225_v14, %v221_v12  ;;  %752 = vmatpush3.bf16.msra.mxu1 %v816_v15  ;;  %759 = vmatprep.mubr.msk.bf16.mxu1 %vm865_vm0, %v864_v1 }
  0x1d   : > { %753 = vmatprep.subr.bf16.mxu1 %v864_v1 }
  0x1e   : > { %724 = vmatmul.mubr.msk.bf16.vlgmr.msra.gmra.mrb[0].mxu0 %vm251_vm1, %v226_v17 }
  0x1f   : > { %740 = vmatpush3.bf16.msra.mxu0 %v815_v16  ;;  %747 = vmatprep.mubr.msk.bf16.mxu0 %vm865_vm0, %v864_v1 }
  0x20   : > { %741 = vmatprep.subr.bf16.mxu0 %v864_v1  ;;  %754 = vmatpush3.bf16.msra.mxu1 %v818_v19 }
  0x21   : > { %755 = vmatprep.subr.bf16.mxu1 %v864_v1 }
  0x23   : > { %742 = vmatpush3.bf16.msra.mxu0 %v817_v20 }
  0x24   : > { %743 = vmatprep.subr.bf16.mxu0 %v864_v1  ;;  %756 = vmatpush3.bf16.msra.mxu1 %v820_v22 }
  0x25   : > { %757 = vmatprep.subr.bf16.mxu1 %v864_v1 }
  0x27   : > { %744 = vmatpush3.bf16.msra.mxu0 %v819_v23 }
  0x28   : > { %745 = vmatprep.subr.bf16.mxu0 %v864_v1  ;;  %758 = vmatpush3.bf16.msra.mxu1 %v822_v26 }
  0x2b   : > { %746 = vmatpush3.bf16.msra.mxu0 %v821_v27  ;;  %760 = vmatmul.mubr.msk.bf16.vlgmr.msra.gmra.mrb[4].mxu1 %vm251_vm1, %v466_v28 }
  0x2e   : > { %748 = vmatmul.mubr.msk.bf16.vlgmr.msra.gmra.mrb[4].mxu0 %vm251_vm1, %v661_v29 }
  0xee   : > { %v356_v30 = vpop.f32.mrb[0].mxu1 }
  0xef   : > { %v737_v32 = vpop.f32.mrb[1].mxu1 }
  0xf0   : > { %v359_v35 = vpop.f32.mrb[2].mxu1 }
  0xf1   : > { %v289_v31 = vpop.f32.mrb[0].mxu0  ;;  %v738_v37 = vpop.f32.mrb[3].mxu1 }
  0xf2   : > { %v357_v33 = vadd.f32 %v356_v30, %v289_v31  ;;  %v725_v34 = vpop.f32.mrb[1].mxu0 }
  0xf3   : > { %v292_v36 = vpop.f32.mrb[2].mxu0 }
  0xf4   : > { %v726_v38 = vpop.f32.mrb[3].mxu0 }
  0xfe   : > { %v528_v39 = vpop.f32.mrb[4].mxu1 }
  0xff   : > { %v761_v41 = vpop.f32.mrb[5].mxu1 }
 0x100   : > { %v531_v44 = vpop.f32.mrb[6].mxu1 }
 0x101   : > { %v437_v40 = vpop.f32.mrb[4].mxu0  ;;  %v762_v47 = vpop.f32.mrb[7].mxu1 }
 0x102   : > { %v443_v42 = vadd.f32 %v437_v40, %v357_v33  ;;  %v749_v43 = vpop.f32.mrb[5].mxu0 }
 0x103   : > { %v440_v46 = vpop.f32.mrb[6].mxu0 }
 0x104   : > { %v534_v48 = vadd.f32 %v528_v39, %v443_v42  ;;  %v750_v49 = vpop.f32.mrb[7].mxu0 }
 0x106   : > { %v541_v50 = vadd.f32 %v691_v45, %v534_v48 }
 0x108   : > { %v542_v51 = vmax.f32 %v541_v50, 0.0 }
 0x10a   : > { %v543_v52 = vpack.c.bf16 %v542_v51, %v542_v51 }
 0x10c   : > { %545 = vst.msk [vmem:[%s190_s23] sm:$0xf] %vm544_vm2, %v543_v52 }
 0x10d PF: > { %s13_s16 = sadd.s32 1, %s862_s16   ;;  %s1039_s12 = smov %s854_s14 }
 0x10e   : > { %p10_p7 = scmp.ge.s32.totalorder %s13_s16, 10   ;;  %s1040_s13 = smov %s858_s15 }
 0x10f   : > { %s1041_s14 = smov %s1044_s17  ;;  %s1042_s15 = smov %s1048_s18 }
 0x110   :  { %12 = sbr.rel (!%p10_p7) target bundleno = 3 (0x3), region = 67 }

// kernel: ssd_forward.20
= control target key start
LH: loop header
LB: loop body
LE: loop exit
PB: predicated region body
PF: predicated region fallthrough
CT: control target
= control target key end

     0   :  { %s1556_s12 = smov 0   ;;  %s1558_s13 = smov 0   ;;  %s1824_s0 = inlined_call_operand.vmem [shape: bf16[2,3,5,96], index: 0, kind: input, shape index: {}]   ;;  %s1825_s1 = inlined_call_operand.vmem [shape: bf16[4,96,32], index: 1, kind: input, shape index: {}]   ;;  %s1826_s2 = inlined_call_operand.vmem [shape: f32[1,32], index: 2, kind: input, shape index: {}]   ;;  %s1827_s3 = inlined_call_operand.vmem [shape: bf16[2,2,4,32], index: 3, kind: output, shape index: {}]  }
   0x1   :  { %s1560_s14 = smov 0  }
   0x2 LB: > { %s25_s15 = sadd.s32 1, %s1528_s13  ;;  %p1100_p0 = scmp.ge.s32.totalorder %s1532_s14, 1  ;;  %s1532_s14 = sphi %s1560_s14, %s13_s14   ;;  %s1528_s13 = sphi %s1558_s13, %s1829_s13   ;;  %s1524_s12 = sphi %s1556_s12, %s1828_s12  }
   0x3   : > { %p27_p1 = scmp.ge.s32.totalorder %s25_s15, 2  ;;  %p151_p2 = scmp.lt.s32.totalorder %s1532_s14, 3 }
   0x5   : > { %s1831_s15 = smov (%p27_p1, %s25_s15), 0  ;;  %p152_p3 = pnand %p1100_p0, %p151_p2 }
   0x6   : > { %v1458_v0 = vld [vmem:[%s1825_s1 + $0x30] sm:$0xff] (!%p152_p3)   ;;  %v1534_v1 = vmov (!%p152_p3), 0.0   ;;  %v1459_v2 = vld [vmem:[%s1825_s1] sm:$0xff] (!%p152_p3)   ;;  %v1460_v3 = vld [vmem:[%s1825_s1 + $0x38] sm:$0xff] (!%p152_p3)   ;;  %vm1535_vm0 = vmmov (!%p152_p3), 0   ;;  %p179_p4 = scmp.lt.s32.totalorder (!%p152_p3), %s1524_s12, 1 }
   0x7   : > { %155 = sbr.rel (%p152_p3) target bundleno = 326 (0x146), region = 32  ;;  %1303 = vmatprep.subr.bf16.mxu0 (!%p152_p3), %v1534_v1  ;;  %1319 = vmatprep.subr.bf16.mxu1 (!%p152_p3), %v1534_v1  ;;  %v1461_v4 = vld [vmem:[%s1825_s1 + $0x8] sm:$0xff] (!%p152_p3)   ;;  %v1462_v5 = vld [vmem:[%s1825_s1 + $0x40] sm:$0xff] (!%p152_p3)   ;;  %v1463_v6 = vld [vmem:[%s1825_s1 + $0x10] sm:$0xff] (!%p152_p3)   ;;  %vm272_vm1 = vcmask (!%p152_p3), 785408   ;;  %vm605_vm2 = vcmask (!%p152_p3), 254976  }
   0x8   : > { %1304 = vmatpush3.bf16.msra.mxu0 (!%p152_p3), %v1458_v0  ;;  %1315 = vmatprep.mubr.msk.bf16.mxu0 (!%p152_p3), %vm1535_vm0, %v1534_v1  ;;  %v1464_v7 = vld [vmem:[%s1825_s1 + $0x48] sm:$0xff] (!%p152_p3)   ;;  %v1465_v8 = vld [vmem:[%s1825_s1 + $0x18] sm:$0xff] (!%p152_p3)   ;;  %v1466_v10 = vld [vmem:[%s1825_s1 + $0x50] sm:$0xff] (!%p152_p3)  }
   0x9   : > { %1320 = vmatpush3.bf16.msra.mxu1 (!%p152_p3), %v1459_v2  ;;  %1305 = vmatprep.subr.bf16.mxu0 (!%p152_p3), %v1534_v1  ;;  %v1467_v12 = vld [vmem:[%s1825_s1 + $0x20] sm:$0xff] (!%p152_p3)   ;;  %v1468_v15 = vld [vmem:[%s1825_s1 + $0x58] sm:$0xff] (!%p152_p3)   ;;  %v1469_v16 = vld [vmem:[%s1825_s1 + $0x28] sm:$0xff] (!%p152_p3)  }
   0xa   : > { %1321 = vmatprep.subr.bf16.mxu1 (!%p152_p3), %v1534_v1  ;;  %1331 = vmatprep.mubr.msk.bf16.mxu1 (!%p152_p3), %vm1535_vm0, %v1534_v1  ;;  %v1471_v18 = vld [vmem:[%s1825_s1 + $0x60] sm:$0xff] (!%p152_p3)   ;;  %v1472_v20 = vld [vmem:[%s1825_s1 + $0x90] sm:$0xff] (!%p152_p3)   ;;  %v1473_v21 = vld [vmem:[%s1825_s1 + $0x68] sm:$0xff] (!%p152_p3)  }
   0xb   : > { %v1474_v22 = vld [vmem:[%s1825_s1 + $0x98] sm:$0xff] (!%p152_p3)   ;;  %v1475_v23 = vld [vmem:[%s1825_s1 + $0x70] sm:$0xff] (!%p152_p3)   ;;  %v1476_v24 = vld [vmem:[%s1825_s1 + $0xa0] sm:$0xff] (!%p152_p3)  }
   0xc   : > { %1306 = vmatpush3.bf16.msra.mxu0 (!%p152_p3), %v1460_v3  ;;  %v1477_v26 = vld [vmem:[%s1825_s1 + $0x78] sm:$0xff] (!%p152_p3)   ;;  %v1478_v27 = vld [vmem:[%s1825_s1 + $0xa8] sm:$0xff] (!%p152_p3)   ;;  %v1479_v28 = vld [vmem:[%s1825_s1 + $0x80] sm:$0xff] (!%p152_p3)  }
   0xd   : > { %1322 = vmatpush3.bf16.msra.mxu1 (!%p152_p3), %v1461_v4  ;;  %1307 = vmatprep.subr.bf16.mxu0 (!%p152_p3), %v1534_v1  ;;  %v1480_v30 = vld [vmem:[%s1825_s1 + $0xb0] sm:$0xff] (!%p152_p3)   ;;  %v1481_v31 = vld [vmem:[%s1825_s1 + $0x88] sm:$0xff] (!%p152_p3)   ;;  %v1482_v34 = vld [vmem:[%s1825_s1 + $0xb8] sm:$0xff] (!%p152_p3)  }
   0xe   : > { %s1833_s12 = smov (!%p179_p4, %s1524_s12), 1  ;;  %1323 = vmatprep.subr.bf16.mxu1 %v1534_v1  ;;  %v1484_v37 = vld [vmem:[%s1825_s1 + $0x30] sm:$0xff]   ;;  %v1485_v38 = vld [vmem:[%s1825_s1] sm:$0xff]   ;;  %v1486_v39 = vld [vmem:[%s1825_s1 + $0x38] sm:$0xff]  }
   0xf   : > { %s1431_s26 = smul.u32 12, %s1833_s12  ;;  %v1487_v40 = vld [vmem:[%s1825_s1 + $0x8] sm:$0xff]   ;;  %v1488_v41 = vld [vmem:[%s1825_s1 + $0x40] sm:$0xff]   ;;  %v1489_v42 = vld [vmem:[%s1825_s1 + $0x10] sm:$0xff]   ;;  %s1246_s28 = sshll.u32 %s1833_s12, 2 }
  0x10   : > { %1308 = vmatpush3.bf16.msra.mxu0 %v1462_v5  ;;  %v1490_v44 = vld [vmem:[%s1825_s1 + $0x48] sm:$0xff]   ;;  %v1491_v45 = vld [vmem:[%s1825_s1 + $0x18] sm:$0xff]   ;;  %v1492_v47 = vld [vmem:[%s1825_s1 + $0x50] sm:$0xff]   ;;  %s192_s5 = scalar_lea.vmem %s1827_s3, %s1246_s28 }
  0x11   : > { %s1608_s4 = scalar_lea.vmem %s1824_s0, %s1431_s26  ;;  %1324 = vmatpush3.bf16.msra.mxu1 %v1463_v6  ;;  %1309 = vmatprep.subr.bf16.mxu0 %v1534_v1  ;;  %v1493_v48 = vld [vmem:[%s1825_s1 + $0x20] sm:$0xff]   ;;  %v1494_v51 = vld [vmem:[%s1825_s1 + $0x58] sm:$0xff]   ;;  %v1495_v52 = vld [vmem:[%s1825_s1 + $0x28] sm:$0xff]  }
  0x12   : > { %1325 = vmatprep.subr.bf16.mxu1 %v1534_v1  ;;  %v1470_v9 = vld [vmem:[%s1608_s4] ss:$0 sps:$4 sm:$0x77]   ;;  %v1483_v25 = vld [vmem:[%s1608_s4 + $0x4] ss:$0 sps:$4 sm:$0x77]  }
  0x13   : > { %v232_v11 = vshll.u32 %v1470_v9, 16  ;;  %v230_v13 = vshrl.u32 %v1470_v9, 16  ;;  %v199_v19 = vld [vmem:[%s1608_s4] sm:$0x3]  ;;  %v512_v29 = vshll.u32 %v1483_v25, 16  ;;  %v510_v32 = vshrl.u32 %v1483_v25, 16 }
  0x14   : > { %1310 = vmatpush3.bf16.msra.mxu0 %v1464_v7  ;;  %v1131_v35 = vld [vmem:[%s1608_s4 + $0x4] sm:$0x3]  ;;  %v1498_v56 = vld [vmem:[%s1825_s1 + $0x90] sm:$0xff]   ;;  %v1499_v57 = vld [vmem:[%s1825_s1 + $0x68] sm:$0xff]  }
  0x15   : > { %1326 = vmatpush3.bf16.msra.mxu1 %v1465_v8  ;;  %1311 = vmatprep.subr.bf16.mxu0 %v1534_v1  ;;  %v234_v14 = vrot.slane %v232_v11, 1  ;;  %v514_v33 = vrot.slane %v512_v29, 1  ;;  %v1496_v43 = vld [vmem:[%s1608_s4 + $0x4] ss:$0 sps:$4 sm:$0x77]   ;;  %v1500_v58 = vld [vmem:[%s1825_s1 + $0x98] sm:$0xff]  }
  0x16   : > { %1327 = vmatprep.subr.bf16.mxu1 %v1534_v1  ;;  %v639_v46 = vshll.u32 %v1496_v43, 16  ;;  %v637_v49 = vshrl.u32 %v1496_v43, 16  ;;  %v1497_v54 = vld [vmem:[%s1825_s1 + $0x60] sm:$0xff]   ;;  %v1501_v59 = vld [vmem:[%s1825_s1 + $0x70] sm:$0xff]   ;;  %v1503_v61 = vld [vmem:[%s1825_s1 + $0x78] sm:$0xff]  }
  0x17   : > { %v235_v17 = vor.u32 %v234_v14, %v230_v13  ;;  %v515_v36 = vor.u32 %v514_v33, %v510_v32  ;;  %v1173_v55 = vld [vmem:[%s1608_s4 + $0x4] sm:$0x3]  ;;  %v1509_v62 = vld [vmem:[%s1608_s4 + $0x8] ss:$0 sps:$4 sm:$0x77]   ;;  %v1506_v3 = vld [vmem:[%s1825_s1 + $0xb0] sm:$0xff]  }
  0x18   : > { %1312 = vmatpush3.bf16.msra.mxu0 %v1466_v10  ;;  %v641_v50 = vrot.slane %v639_v46, 1  ;;  %v1502_v60 = vld [vmem:[%s1825_s1 + $0xa0] sm:$0xff]   ;;  %v1504_v63 = vld [vmem:[%s1825_s1 + $0xa8] sm:$0xff]   ;;  %v916_v2 = vshll.u32 %v1509_v62, 16  ;;  %v914_v5 = vshrl.u32 %v1509_v62, 16  ;;  %v1508_v7 = vld [vmem:[%s1825_s1 + $0xb8] sm:$0xff]  }
  0x19   : > { %1328 = vmatpush3.bf16.msra.mxu1 %v1467_v12  ;;  %1313 = vmatprep.subr.bf16.mxu0 %v1534_v1  ;;  %v1505_v0 = vld [vmem:[%s1825_s1 + $0x80] sm:$0xff]   ;;  %v1507_v4 = vld [vmem:[%s1825_s1 + $0x88] sm:$0xff]  }
  0x1a   : > { %1329 = vmatprep.subr.bf16.mxu1 %v1534_v1  ;;  %v642_v53 = vor.u32 %v641_v50, %v637_v49  ;;  %v918_v6 = vrot.slane %v916_v2, 1  ;;  %v1202_v8 = vld [vmem:[%s1608_s4 + $0x8] sm:$0x3] }
  0x1c   : > { %1314 = vmatpush3.bf16.msra.mxu0 %v1468_v15  ;;  %v919_v9 = vor.u32 %v918_v6, %v914_v5 }
  0x1d   : > { %1330 = vmatpush3.bf16.msra.mxu1 %v1469_v16  ;;  %1335 = vmatprep.subr.bf16.mxu0 %v1534_v1 }
  0x1e   : > { %1351 = vmatprep.subr.bf16.mxu1 %v1534_v1 }
  0x1f   : > { %1316 = vmatmul.mubr.msk.bf16.vlgmr.msra.gmra.mrb[0].mxu0 %vm272_vm1, %v235_v17 }
  0x20   : > { %1332 = vmatmul.mubr.msk.bf16.vlgmr.msra.gmra.mrb[0].mxu1 %vm272_vm1, %v199_v19  ;;  %1336 = vmatpush3.bf16.msra.mxu0 %v1471_v18 }
  0x21   : > { %1352 = vmatpush3.bf16.msra.mxu1 %v1472_v20  ;;  %1337 = vmatprep.subr.bf16.mxu0 %v1534_v1 }
  0x22   : > { %1353 = vmatprep.subr.bf16.mxu1 %v1534_v1  ;;  %1347 = vmatprep.mubr.msk.bf16.mxu0 %vm1535_vm0, %v1534_v1 }
  0x23   : > { %1363 = vmatprep.mubr.msk.bf16.mxu1 %vm1535_vm0, %v1534_v1 }
  0x24   : > { %1338 = vmatpush3.bf16.msra.mxu0 %v1473_v21 }
  0x25   : > { %1354 = vmatpush3.bf16.msra.mxu1 %v1474_v22  ;;  %1339 = vmatprep.subr.bf16.mxu0 %v1534_v1  ;;  %v1172_v22 = vld [vmem:[%s1826_s2] ss:$0 sm:$0xff] }
  0x26   : > { %1355 = vmatprep.subr.bf16.mxu1 %v1534_v1 }
  0x28   : > { %1340 = vmatpush3.bf16.msra.mxu0 %v1475_v23 }
  0x29   : > { %1356 = vmatpush3.bf16.msra.mxu1 %v1476_v24  ;;  %1341 = vmatprep.subr.bf16.mxu0 %v1534_v1 }
  0x2a   : > { %1357 = vmatprep.subr.bf16.mxu1 %v1534_v1 }
  0x2c   : > { %1342 = vmatpush3.bf16.msra.mxu0 %v1477_v26 }
  0x2d   : > { %1358 = vmatpush3.bf16.msra.mxu1 %v1478_v27  ;;  %1343 = vmatprep.subr.bf16.mxu0 %v1534_v1 }
  0x2e   : > { %1359 = vmatprep.subr.bf16.mxu1 %v1534_v1 }
  0x30   : > { %1344 = vmatpush3.bf16.msra.mxu0 %v1479_v28 }
  0x31   : > { %1360 = vmatpush3.bf16.msra.mxu1 %v1480_v30  ;;  %1345 = vmatprep.subr.bf16.mxu0 %v1534_v1 }
  0x32   : > { %1361 = vmatprep.subr.bf16.mxu1 %v1534_v1 }
  0x34   : > { %1346 = vmatpush3.bf16.msra.mxu0 %v1481_v31 }
  0x35   : > { %1362 = vmatpush3.bf16.msra.mxu1 %v1482_v34  ;;  %1367 = vmatprep.subr.bf16.mxu0 %v1534_v1 }
  0x36   : > { %1383 = vmatprep.subr.bf16.mxu1 %v1534_v1 }
  0x37   : > { %1348 = vmatmul.mubr.msk.bf16.vlgmr.msra.gmra.mrb[4].mxu0 %vm272_vm1, %v1131_v35 }
  0x38   : > { %1364 = vmatmul.mubr.msk.bf16.vlgmr.msra.gmra.mrb[4].mxu1 %vm272_vm1, %v515_v36  ;;  %1368 = vmatpush3.bf16.msra.mxu0 %v1484_v37 }
  0x39   : > { %1384 = vmatpush3.bf16.msra.mxu1 %v1485_v38  ;;  %1369 = vmatprep.subr.bf16.mxu0 %v1534_v1 }
  0x3a   : > { %1385 = vmatprep.subr.bf16.mxu1 %v1534_v1  ;;  %1379 = vmatprep.mubr.msk.bf16.mxu0 %vm1535_vm0, %v1534_v1 }
  0x3b   : > { %1395 = vmatprep.mubr.msk.bf16.mxu1 %vm1535_vm0, %v1534_v1 }
  0x3c   : > { %1370 = vmatpush3.bf16.msra.mxu0 %v1486_v39 }
  0x3d   : > { %1386 = vmatpush3.bf16.msra.mxu1 %v1487_v40  ;;  %1371 = vmatprep.subr.bf16.mxu0 %v1534_v1 }
  0x3e   : > { %1387 = vmatprep.subr.bf16.mxu1 %v1534_v1 }
  0x40   : > { %1372 = vmatpush3.bf16.msra.mxu0 %v1488_v41 }
  0x41   : > { %1388 = vmatpush3.bf16.msra.mxu1 %v1489_v42  ;;  %1373 = vmatprep.subr.bf16.mxu0 %v1534_v1 }
  0x42   : > { %1389 = vmatprep.subr.bf16.mxu1 %v1534_v1 }
  0x44   : > { %1374 = vmatpush3.bf16.msra.mxu0 %v1490_v44 }
  0x45   : > { %1390 = vmatpush3.bf16.msra.mxu1 %v1491_v45  ;;  %1375 = vmatprep.subr.bf16.mxu0 %v1534_v1 }
  0x46   : > { %1391 = vmatprep.subr.bf16.mxu1 %v1534_v1 }
  0x48   : > { %1376 = vmatpush3.bf16.msra.mxu0 %v1492_v47 }
  0x49   : > { %1392 = vmatpush3.bf16.msra.mxu1 %v1493_v48  ;;  %1377 = vmatprep.subr.bf16.mxu0 %v1534_v1 }
  0x4a   : > { %1393 = vmatprep.subr.bf16.mxu1 %v1534_v1 }
  0x4c   : > { %1378 = vmatpush3.bf16.msra.mxu0 %v1494_v51 }
  0x4d   : > { %1394 = vmatpush3.bf16.msra.mxu1 %v1495_v52  ;;  %1399 = vmatprep.subr.bf16.mxu0 %v1534_v1 }
  0x4e   : > { %1415 = vmatprep.subr.bf16.mxu1 %v1534_v1 }
  0x4f   : > { %1380 = vmatmul.mubr.msk.bf16.vlgmr.msra.gmra.mrb[8].mxu0 %vm272_vm1, %v642_v53 }
  0x50   : > { %1396 = vmatmul.mubr.msk.bf16.vlgmr.msra.gmra.mrb[8].mxu1 %vm272_vm1, %v1173_v55  ;;  %1400 = vmatpush3.bf16.msra.mxu0 %v1497_v54 }
  0x51   : > { %1416 = vmatpush3.bf16.msra.mxu1 %v1498_v56  ;;  %1401 = vmatprep.subr.bf16.mxu0 %v1534_v1 }
  0x52   : > { %1417 = vmatprep.subr.bf16.mxu1 %v1534_v1  ;;  %1411 = vmatprep.mubr.msk.bf16.mxu0 %vm1535_vm0, %v1534_v1 }
  0x53   : > { %1427 = vmatprep.mubr.msk.bf16.mxu1 %vm1535_vm0, %v1534_v1 }
  0x54   : > { %1402 = vmatpush3.bf16.msra.mxu0 %v1499_v57 }
  0x55   : > { %1418 = vmatpush3.bf16.msra.mxu1 %v1500_v58  ;;  %1403 = vmatprep.subr.bf16.mxu0 %v1534_v1 }
  0x56   : > { %1419 = vmatprep.subr.bf16.mxu1 %v1534_v1 }
  0x58   : > { %1404 = vmatpush3.bf16.msra.mxu0 %v1501_v59 }
  0x59   : > { %1420 = vmatpush3.bf16.msra.mxu1 %v1502_v60  ;;  %1405 = vmatprep.subr.bf16.mxu0 %v1534_v1 }
  0x5a   : > { %1421 = vmatprep.subr.bf16.mxu1 %v1534_v1 }
  0x5c   : > { %1406 = vmatpush3.bf16.msra.mxu0 %v1503_v61 }
  0x5d   : > { %1422 = vmatpush3.bf16.msra.mxu1 %v1504_v63  ;;  %1407 = vmatprep.subr.bf16.mxu0 %v1534_v1 }
  0x5e   : > { %1423 = vmatprep.subr.bf16.mxu1 %v1534_v1 }
  0x60   : > { %1408 = vmatpush3.bf16.msra.mxu0 %v1505_v0 }
  0x61   : > { %1424 = vmatpush3.bf16.msra.mxu1 %v1506_v3  ;;  %1409 = vmatprep.subr.bf16.mxu0 %v1534_v1 }
  0x62   : > { %1425 = vmatprep.subr.bf16.mxu1 %v1534_v1 }
  0x64   : > { %1410 = vmatpush3.bf16.msra.mxu0 %v1507_v4 }
  0x65   : > { %1426 = vmatpush3.bf16.msra.mxu1 %v1508_v7 }
  0x67   : > { %1412 = vmatmul.mubr.msk.bf16.vlgmr.msra.gmra.mrb[12].mxu0 %vm272_vm1, %v1202_v8 }
  0x68   : > { %1428 = vmatmul.mubr.msk.bf16.vlgmr.msra.gmra.mrb[12].mxu1 %vm272_vm1, %v919_v9 }
  0xf2   : > { %v310_v10 = vpop.f32.mrb[0].mxu0 }
  0xf3   : > { %v389_v11 = vpop.f32.mrb[0].mxu1  ;;  %v1317_v12 = vpop.f32.mrb[1].mxu0 }
  0xf4   : > { %v390_v13 = vadd.f32 %v389_v11, %v310_v10  ;;  %v1333_v14 = vpop.f32.mrb[1].mxu1  ;;  %v313_v15 = vpop.f32.mrb[2].mxu0 }
  0xf5   : > { %v392_v16 = vpop.f32.mrb[2].mxu1  ;;  %v1318_v17 = vpop.f32.mrb[3].mxu0 }
  0xf6   : > { %v1334_v18 = vpop.f32.mrb[3].mxu1 }
 0x10a   : > { %v485_v19 = vpop.f32.mrb[4].mxu0 }
 0x10b   : > { %v491_v1 = vadd.f32 %v485_v19, %v390_v13  ;;  %v589_v20 = vpop.f32.mrb[4].mxu1  ;;  %v1349_v21 = vpop.f32.mrb[5].mxu0 }
 0x10c   : > { %v1365_v23 = vpop.f32.mrb[5].mxu1  ;;  %v488_v24 = vpop.f32.mrb[6].mxu0 }
 0x10d   : > { %v595_v25 = vadd.f32 %v589_v20, %v491_v1  ;;  %v592_v26 = vpop.f32.mrb[6].mxu1  ;;  %v1350_v27 = vpop.f32.mrb[7].mxu0 }
 0x10e   : > { %v1366_v28 = vpop.f32.mrb[7].mxu1 }
 0x10f   : > { %v602_v29 = vadd.f32 %v1172_v22, %v595_v25 }
 0x111   : > { %v603_v30 = vmax.f32 %v602_v29, 0.0 }
 0x113   : > { %v604_v31 = vpack.c.bf16 %v603_v30, %v603_v30 }
 0x115   : > { %606 = vst.msk [vmem:[%s192_s5] sm:$0x3] %vm605_vm2, %v604_v31 }
 0x122   : > { %v716_v32 = vpop.f32.mrb[8].mxu0 }
 0x123   : > { %v795_v33 = vpop.f32.mrb[8].mxu1  ;;  %v1381_v34 = vpop.f32.mrb[9].mxu0 }
 0x124   : > { %v796_v35 = vadd.f32 %v795_v33, %v716_v32  ;;  %v1397_v36 = vpop.f32.mrb[9].mxu1  ;;  %v719_v37 = vpop.f32.mrb[10].mxu0 }
 0x125   : > { %v798_v38 = vpop.f32.mrb[10].mxu1  ;;  %v1382_v39 = vpop.f32.mrb[11].mxu0 }
 0x126   : > { %v1398_v40 = vpop.f32.mrb[11].mxu1 }
 0x13a   : > { %v890_v41 = vpop.f32.mrb[12].mxu0 }
 0x13b   : > { %v896_v42 = vadd.f32 %v890_v41, %v796_v35  ;;  %v993_v43 = vpop.f32.mrb[12].mxu1  ;;  %v1413_v44 = vpop.f32.mrb[13].mxu0 }
 0x13c   : > { %v1429_v45 = vpop.f32.mrb[13].mxu1  ;;  %v893_v46 = vpop.f32.mrb[14].mxu0 }
 0x13d   : > { %v999_v47 = vadd.f32 %v993_v43, %v896_v42  ;;  %v996_v48 = vpop.f32.mrb[14].mxu1  ;;  %v1414_v49 = vpop.f32.mrb[15].mxu0 }
 0x13e   : > { %v1430_v50 = vpop.f32.mrb[15].mxu1 }
 0x13f   : > { %v1000_v51 = vadd.f32 %v1172_v22, %v999_v47 }
 0x141   : > { %v1001_v52 = vmax.f32 %v1000_v51, 0.0 }
 0x143   : > { %v1002_v53 = vpack.c.bf16 %v1001_v52, %v1001_v52 }
 0x145   : > { %1243 = vst.msk [vmem:[%s192_s5 + $0x2] sm:$0x3] %vm605_vm2, %v1002_v53 }
 0x146 PF: > { %s13_s14 = sadd.s32 1, %s1532_s14   ;;  %s1828_s12 = smov %s1528_s13 }
 0x147   : > { %p10_p5 = scmp.ge.s32.totalorder %s13_s14, 4   ;;  %s1829_s13 = smov %s1831_s15 }
 0x149   :  { %12 = sbr.rel (!%p10_p5) target bundleno = 2 (0x2), region = 69 }

// kernel: ssd_forward.29
= control target key start
LH: loop header
LB: loop body
LE: loop exit
PB: predicated region body
PF: predicated region fallthrough
CT: control target
= control target key end

     0   :  { %s1980_s12 = smov 0   ;;  %s1982_s13 = smov 0   ;;  %s2244_s0 = inlined_call_operand.vmem [shape: bf16[2,4,6,32], index: 0, kind: input, shape index: {}]   ;;  %s2245_s1 = inlined_call_operand.vmem [shape: bf16[9,32,72], index: 1, kind: input, shape index: {}]   ;;  %s2246_s2 = inlined_call_operand.vmem [shape: f32[1,72], index: 2, kind: input, shape index: {}]   ;;  %s2247_s3 = inlined_call_operand.vmem [shape: f32[2,2,4,72], index: 3, kind: output, shape index: {}]  }
   0x1   :  { %s1984_s14 = smov 0  }
   0x2 LB: > { %s25_s15 = sadd.s32 1, %s1952_s13  ;;  %p1506_p0 = scmp.ge.s32.totalorder %s1956_s14, 1  ;;  %s1956_s14 = sphi %s1984_s14, %s13_s14   ;;  %s1952_s13 = sphi %s1982_s13, %s2249_s13   ;;  %s1948_s12 = sphi %s1980_s12, %s2248_s12  }
   0x3   : > { %p27_p1 = scmp.ge.s32.totalorder %s25_s15, 2  ;;  %p151_p2 = scmp.lt.s32.totalorder %s1956_s14, 3 }
   0x5   : > { %s2251_s15 = smov (%p27_p1, %s25_s15), 0  ;;  %p152_p3 = pnand %p1506_p0, %p151_p2 }
   0x6   : > { %v1886_v0 = vld [vmem:[%s2245_s1 + $0x10] sm:$0xff] (!%p152_p3)   ;;  %v1958_v1 = vmov (!%p152_p3), 0.0   ;;  %v1887_v2 = vld [vmem:[%s2245_s1] sm:$0xff] (!%p152_p3)   ;;  %v1888_v3 = vld [vmem:[%s2245_s1 + $0x18] sm:$0xff] (!%p152_p3)   ;;  %vm1959_vm0 = vmmov (!%p152_p3), 0   ;;  %p179_p4 = scmp.lt.s32.totalorder (!%p152_p3), %s1948_s12, 1 }
   0x7   : > { %155 = sbr.rel (%p152_p3) target bundleno = 308 (0x134), region = 32  ;;  %1716 = vmatprep.subr.bf16.mxu0 (!%p152_p3), %v1958_v1  ;;  %1724 = vmatprep.subr.bf16.mxu1 (!%p152_p3), %v1958_v1  ;;  %v1889_v4 = vld [vmem:[%s2245_s1 + $0x8] sm:$0xff] (!%p152_p3)   ;;  %vm232_vm1 = vcmask (!%p152_p3), 261120   ;;  %v1892_v5 = vld [vmem:[%s2245_s1 + $0x30] sm:$0xff] (!%p152_p3)   ;;  %v1894_v8 = vld [vmem:[%s2245_s1 + $0x38] sm:$0xff] (!%p152_p3)   ;;  %vm810_vm2 = vcmask (!%p152_p3), 584704  }
   0x8   : > { %1717 = vmatpush3.bf16.msra.mxu0 (!%p152_p3), %v1886_v0  ;;  %1728 = vmatprep.mubr.msk.bf16.mxu1 (!%p152_p3), %vm1959_vm0, %v1958_v1  ;;  %v1891_v12 = vld [vmem:[%s2245_s1 + $0x20] sm:$0xff] (!%p152_p3)   ;;  %v1897_v16 = vld [vmem:[%s2245_s1 + $0x50] sm:$0xff] (!%p152_p3)   ;;  %v1893_v18 = vld [vmem:[%s2245_s1 + $0x28] sm:$0xff] (!%p152_p3)  }
   0x9   : > { %1725 = vmatpush3.bf16.msra.mxu1 (!%p152_p3), %v1887_v2  ;;  %1718 = vmatprep.subr.bf16.mxu0 (!%p152_p3), %v1958_v1  ;;  %v1899_v20 = vld [vmem:[%s2245_s1 + $0x58] sm:$0xff] (!%p152_p3)   ;;  %v1896_v24 = vld [vmem:[%s2245_s1 + $0x40] sm:$0xff] (!%p152_p3)   ;;  %v1903_v27 = vld [vmem:[%s2245_s1 + $0x70] sm:$0xff] (!%p152_p3)  }
   0xa   : > { %1726 = vmatprep.subr.bf16.mxu1 (!%p152_p3), %v1958_v1  ;;  %1720 = vmatprep.mubr.msk.bf16.mxu0 (!%p152_p3), %vm1959_vm0, %v1958_v1  ;;  %v1898_v30 = vld [vmem:[%s2245_s1 + $0x48] sm:$0xff] (!%p152_p3)   ;;  %v1905_v34 = vld [vmem:[%s2245_s1 + $0x78] sm:$0xff] (!%p152_p3)   ;;  %v1902_v36 = vld [vmem:[%s2245_s1 + $0x60] sm:$0xff] (!%p152_p3)  }
   0xb   : > { %v1908_v39 = vld [vmem:[%s2245_s1 + $0x10] sm:$0xff] (!%p152_p3)   ;;  %v1904_v40 = vld [vmem:[%s2245_s1 + $0x68] sm:$0xff] (!%p152_p3)   ;;  %v1910_v43 = vld [vmem:[%s2245_s1 + $0x18] sm:$0xff] (!%p152_p3)  }
   0xc   : > { %1719 = vmatpush3.bf16.msra.mxu0 (!%p152_p3), %v1888_v3  ;;  %v1907_v45 = vld [vmem:[%s2245_s1 + $0x80] sm:$0xff] (!%p152_p3)   ;;  %v1909_v50 = vld [vmem:[%s2245_s1 + $0x88] sm:$0xff] (!%p152_p3)   ;;  %v1918_v63 = vld [vmem:[%s2245_s1 + $0x30] sm:$0xff] (!%p152_p3)  }
   0xd   : > { %1727 = vmatpush3.bf16.msra.mxu1 (!%p152_p3), %v1889_v4  ;;  %1732 = vmatprep.subr.bf16.mxu0 (!%p152_p3), %v1958_v1  ;;  %v1914_v48 = vld [vmem:[%s2245_s1 + $0x20] sm:$0xff] (!%p152_p3)   ;;  %v1916_v52 = vld [vmem:[%s2245_s1 + $0x28] sm:$0xff] (!%p152_p3)   ;;  %v1920_v3 = vld [vmem:[%s2245_s1 + $0x38] sm:$0xff] (!%p152_p3)  }
   0xe   : > { %s2253_s12 = smov (!%p179_p4, %s1948_s12), 1  ;;  %1740 = vmatprep.subr.bf16.mxu1 %v1958_v1  ;;  %v1913_v54 = vld [vmem:[%s2245_s1] sm:$0xff]   ;;  %v1915_v58 = vld [vmem:[%s2245_s1 + $0x8] sm:$0xff]  }
   0xf   : > { %s1660_s24 = sshll.u32 %s2253_s12, 4  ;;  %v1919_v57 = vld [vmem:[%s2245_s1 + $0x40] sm:$0xff]   ;;  %v1921_v61 = vld [vmem:[%s2245_s1 + $0x48] sm:$0xff]  }
  0x10   : > { %s2024_s27 = scalar_lea.vmem %s2244_s0, %s1660_s24  ;;  %v1924_v2 = vld [vmem:[%s2245_s1 + $0x60] sm:$0xff]   ;;  %v1926_v4 = vld [vmem:[%s2245_s1 + $0x68] sm:$0xff]   ;;  %s1661_s24 = sshll.u32 %s2253_s12, 3 }
  0x11   : > { %v199_v6 = vld [vmem:[%s2024_s27] sm:$0x3]  ;;  %v1530_v14 = vld [vmem:[%s2024_s27 + $0x4] sm:$0x3]  ;;  %v1556_v44 = vld [vmem:[%s2024_s27 + $0x8] sm:$0x3]  ;;  %s2229_s30 = scalar_lea.vmem %s2247_s3, %s1661_s24 }
  0x12   : > { %v1890_v7 = vld [vmem:[%s2024_s27] ss:$0 sps:$4 sm:$0x77]   ;;  %1729 = vmatmul.mubr.msk.bf16.vlgmr.msra.gmra.mrb[0].mxu1 %vm232_vm1, %v199_v6  ;;  %v1900_v17 = vld [vmem:[%s2024_s27 + $0x4] ss:$0 sps:$4 sm:$0x66]  }
  0x13   : > { %v214_v9 = vshrl.u32 %v1890_v7, 16  ;;  %v216_v10 = vshll.u32 %v1890_v7, 16  ;;  %1741 = vmatpush3.bf16.msra.mxu1 %v1892_v5  ;;  %1744 = vmatprep.mubr.msk.bf16.mxu1 %vm1959_vm0, %v1958_v1  ;;  %v1895_v15 = vld [vmem:[%s2024_s27] ss:$0 sps:$4 sm:$0x66]   ;;  %v543_v25 = vrot.slane %v1900_v17, 1 }
  0x14   : > { %1742 = vmatprep.subr.bf16.mxu1 %v1958_v1  ;;  %v1901_v19 = vld [vmem:[%s2024_s27 + $0x4] ss:$0 sps:$4 sm:$0x77]   ;;  %v1906_v21 = vld [vmem:[%s2024_s27 + $0x8] ss:$0 sps:$4 sm:$0x77]  }
  0x15   : > { %v218_v11 = vrot.slane %v216_v10, 1  ;;  %v340_v22 = vrot.slane %v1895_v15, 1  ;;  %v474_v23 = vshll.u32 %v1901_v19, 16  ;;  %v677_v26 = vshll.u32 %v1906_v21, 16  ;;  %v1583_v62 = vld [vmem:[%s2024_s27 + $0x4] sm:$0x3] }
  0x16   : > { %v472_v28 = vshrl.u32 %v1901_v19, 16  ;;  %v1911_v31 = vld [vmem:[%s2024_s27 + $0x4] ss:$0 sps:$4 sm:$0x77]   ;;  %v675_v32 = vshrl.u32 %v1906_v21, 16  ;;  %v1923_v6 = vld [vmem:[%s2245_s1 + $0x50] sm:$0xff]  }
  0x17   : > { %v219_v13 = vor.u32 %v218_v11, %v214_v9  ;;  %1743 = vmatpush3.bf16.msra.mxu1 %v1894_v8  ;;  %v476_v29 = vrot.slane %v474_v23, 1  ;;  %v679_v33 = vrot.slane %v677_v26, 1  ;;  %v828_v38 = vshll.u32 %v1911_v31, 16  ;;  %v1912_v47 = vld [vmem:[%s2024_s27 + $0x8] ss:$0 sps:$4 sm:$0x66]  }
  0x18   : > { %1756 = vmatprep.subr.bf16.mxu1 %v1958_v1  ;;  %v826_v41 = vshrl.u32 %v1911_v31, 16  ;;  %v1917_v49 = vld [vmem:[%s2024_s27 + $0x4] ss:$0 sps:$4 sm:$0x66]   ;;  %v746_v53 = vrot.slane %v1912_v47, 1  ;;  %v1925_v11 = vld [vmem:[%s2245_s1 + $0x58] sm:$0xff]  }
  0x19   : > { %1721 = vmatmul.mubr.msk.bf16.vlgmr.msra.gmra.mrb[0].mxu0 %vm232_vm1, %v219_v13  ;;  %v477_v35 = vor.u32 %v476_v29, %v472_v28  ;;  %v680_v37 = vor.u32 %v679_v33, %v675_v32  ;;  %v830_v42 = vrot.slane %v828_v38, 1  ;;  %v1922_v51 = vld [vmem:[%s2024_s27 + $0x8] ss:$0 sps:$4 sm:$0x77]   ;;  %v950_v55 = vrot.slane %v1917_v49, 1  ;;  %v1929_v8 = vld [vmem:[%s2245_s1 + $0x80] sm:$0xff]  }
  0x1a   : > { %1733 = vmatpush3.bf16.msra.mxu0 %v1891_v12  ;;  %1736 = vmatprep.mubr.msk.bf16.mxu0 %vm1959_vm0, %v1958_v1  ;;  %v1079_v56 = vshll.u32 %v1922_v51, 16  ;;  %v1077_v59 = vshrl.u32 %v1922_v51, 16  ;;  %v1605_v5 = vld [vmem:[%s2024_s27 + $0x8] sm:$0x3]  ;;  %v1631_v7 = vld [vmem:[%s2024_s27 + $0xc] sm:$0x3] }
  0x1b   : > { %1734 = vmatprep.subr.bf16.mxu0 %v1958_v1  ;;  %1745 = vmatmul.mubr.msk.bf16.vlgmr.msra.gmra.mrb[4].mxu1 %vm232_vm1, %v1530_v14  ;;  %v831_v46 = vor.u32 %v830_v42, %v826_v41  ;;  %v1927_v9 = vld [vmem:[%s2024_s27 + $0x8] ss:$0 sps:$4 sm:$0x66]   ;;  %v1933_v10 = vld [vmem:[%s2024_s27 + $0xc] ss:$0 sps:$4 sm:$0x77]  }
  0x1c   : > { %1757 = vmatpush3.bf16.msra.mxu1 %v1897_v16  ;;  %1760 = vmatprep.mubr.msk.bf16.mxu1 %vm1959_vm0, %v1958_v1  ;;  %v1081_v60 = vrot.slane %v1079_v56, 1  ;;  %v1932_v12 = vld [vmem:[%s2024_s27 + $0xc] ss:$0 sps:$4 sm:$0x66]   ;;  %v1147_v14 = vrot.slane %v1927_v9, 1  ;;  %v1279_v15 = vshll.u32 %v1933_v10, 16 }
  0x1d   : > { %1758 = vmatprep.subr.bf16.mxu1 %v1958_v1  ;;  %v1931_v13 = vld [vmem:[%s2245_s1 + $0x88] sm:$0xff]   ;;  %v1928_v16 = vld [vmem:[%s2245_s1 + $0x70] sm:$0xff]   ;;  %v1347_v17 = vrot.slane %v1932_v12, 1 }
  0x1e   : > { %1735 = vmatpush3.bf16.msra.mxu0 %v1893_v18  ;;  %v1082_v0 = vor.u32 %v1081_v60, %v1077_v59  ;;  %v1277_v18 = vshrl.u32 %v1933_v10, 16  ;;  %v1281_v19 = vrot.slane %v1279_v15, 1 }
  0x1f   : > { %1748 = vmatprep.subr.bf16.mxu0 %v1958_v1 }
  0x20   : > { %1759 = vmatpush3.bf16.msra.mxu1 %v1899_v20  ;;  %v1930_v20 = vld [vmem:[%s2245_s1 + $0x78] sm:$0xff]   ;;  %v1282_v21 = vor.u32 %v1281_v19, %v1277_v18 }
  0x21   : > { %1737 = vmatmul.mubr.msk.bf16.vlgmr.msra.gmra.mrb[4].mxu0 %vm232_vm1, %v340_v22  ;;  %1772 = vmatprep.subr.bf16.mxu1 %v1958_v1 }
  0x22   : > { %1749 = vmatpush3.bf16.msra.mxu0 %v1896_v24  ;;  %1752 = vmatprep.mubr.msk.bf16.mxu0 %vm1959_vm0, %v1958_v1 }
  0x23   : > { %1750 = vmatprep.subr.bf16.mxu0 %v1958_v1  ;;  %1761 = vmatmul.mubr.msk.bf16.vlgmr.msra.gmra.mrb[8].mxu1 %vm232_vm1, %v543_v25 }
  0x24   : > { %1773 = vmatpush3.bf16.msra.mxu1 %v1903_v27  ;;  %1776 = vmatprep.mubr.msk.bf16.mxu1 %vm1959_vm0, %v1958_v1 }
  0x25   : > { %1774 = vmatprep.subr.bf16.mxu1 %v1958_v1 }
  0x26   : > { %1751 = vmatpush3.bf16.msra.mxu0 %v1898_v30 }
  0x27   : > { %1764 = vmatprep.subr.bf16.mxu0 %v1958_v1 }
  0x28   : > { %1775 = vmatpush3.bf16.msra.mxu1 %v1905_v34 }
  0x29   : > { %1753 = vmatmul.mubr.msk.bf16.vlgmr.msra.gmra.mrb[8].mxu0 %vm232_vm1, %v477_v35  ;;  %1788 = vmatprep.subr.bf16.mxu1 %v1958_v1 }
  0x2a   : > { %1765 = vmatpush3.bf16.msra.mxu0 %v1902_v36  ;;  %1768 = vmatprep.mubr.msk.bf16.mxu0 %vm1959_vm0, %v1958_v1 }
  0x2b   : > { %1766 = vmatprep.subr.bf16.mxu0 %v1958_v1  ;;  %1777 = vmatmul.mubr.msk.bf16.vlgmr.msra.gmra.mrb[12].mxu1 %vm232_vm1, %v680_v37 }
  0x2c   : > { %1789 = vmatpush3.bf16.msra.mxu1 %v1908_v39  ;;  %1792 = vmatprep.mubr.msk.bf16.mxu1 %vm1959_vm0, %v1958_v1 }
  0x2d   : > { %1790 = vmatprep.subr.bf16.mxu1 %v1958_v1 }
  0x2e   : > { %1767 = vmatpush3.bf16.msra.mxu0 %v1904_v40 }
  0x2f   : > { %1780 = vmatprep.subr.bf16.mxu0 %v1958_v1 }
  0x30   : > { %1791 = vmatpush3.bf16.msra.mxu1 %v1910_v43 }
  0x31   : > { %1769 = vmatmul.mubr.msk.bf16.vlgmr.msra.gmra.mrb[12].mxu0 %vm232_vm1, %v1556_v44  ;;  %1804 = vmatprep.subr.bf16.mxu1 %v1958_v1 }
  0x32   : > { %1781 = vmatpush3.bf16.msra.mxu0 %v1907_v45  ;;  %1784 = vmatprep.mubr.msk.bf16.mxu0 %vm1959_vm0, %v1958_v1 }
  0x33   : > { %1782 = vmatprep.subr.bf16.mxu0 %v1958_v1  ;;  %1793 = vmatmul.mubr.msk.bf16.vlgmr.msra.gmra.mrb[16].mxu1 %vm232_vm1, %v831_v46 }
  0x34   : > { %1805 = vmatpush3.bf16.msra.mxu1 %v1914_v48  ;;  %1808 = vmatprep.mubr.msk.bf16.mxu1 %vm1959_vm0, %v1958_v1 }
  0x35   : > { %1806 = vmatprep.subr.bf16.mxu1 %v1958_v1 }
  0x36   : > { %1783 = vmatpush3.bf16.msra.mxu0 %v1909_v50 }
  0x37   : > { %1796 = vmatprep.subr.bf16.mxu0 %v1958_v1 }
  0x38   : > { %1807 = vmatpush3.bf16.msra.mxu1 %v1916_v52 }
  0x39   : > { %1785 = vmatmul.mubr.msk.bf16.vlgmr.msra.gmra.mrb[16].mxu0 %vm232_vm1, %v746_v53  ;;  %1820 = vmatprep.subr.bf16.mxu1 %v1958_v1 }
  0x3a   : > { %1797 = vmatpush3.bf16.msra.mxu0 %v1913_v54  ;;  %1800 = vmatprep.mubr.msk.bf16.mxu0 %vm1959_vm0, %v1958_v1 }
  0x3b   : > { %1798 = vmatprep.subr.bf16.mxu0 %v1958_v1  ;;  %1809 = vmatmul.mubr.msk.bf16.vlgmr.msra.gmra.mrb[20].mxu1 %vm232_vm1, %v950_v55 }
  0x3c   : > { %1821 = vmatpush3.bf16.msra.mxu1 %v1919_v57  ;;  %1824 = vmatprep.mubr.msk.bf16.mxu1 %vm1959_vm0, %v1958_v1 }
  0x3d   : > { %1822 = vmatprep.subr.bf16.mxu1 %v1958_v1 }
  0x3e   : > { %1799 = vmatpush3.bf16.msra.mxu0 %v1915_v58 }
  0x3f   : > { %1812 = vmatprep.subr.bf16.mxu0 %v1958_v1 }
  0x40   : > { %1823 = vmatpush3.bf16.msra.mxu1 %v1921_v61 }
  0x41   : > { %1801 = vmatmul.mubr.msk.bf16.vlgmr.msra.gmra.mrb[20].mxu0 %vm232_vm1, %v1583_v62  ;;  %1836 = vmatprep.subr.bf16.mxu1 %v1958_v1 }
  0x42   : > { %1813 = vmatpush3.bf16.msra.mxu0 %v1918_v63  ;;  %1816 = vmatprep.mubr.msk.bf16.mxu0 %vm1959_vm0, %v1958_v1 }
  0x43   : > { %1814 = vmatprep.subr.bf16.mxu0 %v1958_v1  ;;  %1825 = vmatmul.mubr.msk.bf16.vlgmr.msra.gmra.mrb[24].mxu1 %vm232_vm1, %v1082_v0  ;;  %v1582_v0 = vld [vmem:[%s2246_s2] ss:$0 sm:$0xff] }
  0x44   : > { %1837 = vmatpush3.bf16.msra.mxu1 %v1924_v2  ;;  %1840 = vmatprep.mubr.msk.bf16.mxu1 %vm1959_vm0, %v1958_v1 }
  0x45   : > { %1838 = vmatprep.subr.bf16.mxu1 %v1958_v1 }
  0x46   : > { %1815 = vmatpush3.bf16.msra.mxu0 %v1920_v3 }
  0x47   : > { %1828 = vmatprep.subr.bf16.mxu0 %v1958_v1 }
  0x48   : > { %1839 = vmatpush3.bf16.msra.mxu1 %v1926_v4 }
  0x49   : > { %1817 = vmatmul.mubr.msk.bf16.vlgmr.msra.gmra.mrb[24].mxu0 %vm232_vm1, %v1605_v5  ;;  %1852 = vmatprep.subr.bf16.mxu1 %v1958_v1 }
  0x4a   : > { %1829 = vmatpush3.bf16.msra.mxu0 %v1923_v6  ;;  %1832 = vmatprep.mubr.msk.bf16.mxu0 %vm1959_vm0, %v1958_v1 }
  0x4b   : > { %1830 = vmatprep.subr.bf16.mxu0 %v1958_v1  ;;  %1841 = vmatmul.mubr.msk.bf16.vlgmr.msra.gmra.mrb[28].mxu1 %vm232_vm1, %v1631_v7 }
  0x4c   : > { %1853 = vmatpush3.bf16.msra.mxu1 %v1929_v8  ;;  %1856 = vmatprep.mubr.msk.bf16.mxu1 %vm1959_vm0, %v1958_v1 }
  0x4d   : > { %1854 = vmatprep.subr.bf16.mxu1 %v1958_v1 }
  0x4e   : > { %1831 = vmatpush3.bf16.msra.mxu0 %v1925_v11 }
  0x4f   : > { %1844 = vmatprep.subr.bf16.mxu0 %v1958_v1 }
  0x50   : > { %1855 = vmatpush3.bf16.msra.mxu1 %v1931_v13 }
  0x51   : > { %1833 = vmatmul.mubr.msk.bf16.vlgmr.msra.gmra.mrb[28].mxu0 %vm232_vm1, %v1147_v14 }
  0x52   : > { %1845 = vmatpush3.bf16.msra.mxu0 %v1928_v16  ;;  %1848 = vmatprep.mubr.msk.bf16.mxu0 %vm1959_vm0, %v1958_v1 }
  0x53   : > { %1846 = vmatprep.subr.bf16.mxu0 %v1958_v1  ;;  %1857 = vmatmul.mubr.msk.bf16.vlgmr.msra.gmra.mrb[32].mxu1 %vm232_vm1, %v1347_v17 }
  0x56   : > { %1847 = vmatpush3.bf16.msra.mxu0 %v1930_v20 }
  0x59   : > { %1849 = vmatmul.mubr.msk.bf16.vlgmr.msra.gmra.mrb[32].mxu0 %vm232_vm1, %v1282_v21 }
  0xe5   : > { %v325_v22 = vpop.f32.mrb[0].mxu1 }
  0xe6   : > { %v1730_v23 = vpop.f32.mrb[1].mxu1 }
  0xe7   : > { %v328_v24 = vpop.f32.mrb[2].mxu1 }
  0xe8   : > { %v1731_v25 = vpop.f32.mrb[3].mxu1 }
  0xec   : > { %v270_v26 = vpop.f32.mrb[0].mxu0 }
  0xed   : > { %v326_v27 = vadd.f32 %v325_v22, %v270_v26  ;;  %v1722_v28 = vpop.f32.mrb[1].mxu0 }
  0xee   : > { %v273_v29 = vpop.f32.mrb[2].mxu0  ;;  %v455_v30 = vpop.f32.mrb[4].mxu1 }
  0xef   : > { %v1723_v31 = vpop.f32.mrb[3].mxu0  ;;  %v1746_v32 = vpop.f32.mrb[5].mxu1 }
  0xf0   : > { %v458_v33 = vpop.f32.mrb[6].mxu1 }
  0xf1   : > { %v1747_v34 = vpop.f32.mrb[7].mxu1 }
  0xf4   : > { %v390_v1 = vpop.f32.mrb[4].mxu0 }
  0xf5   : > { %v396_v35 = vadd.f32 %v390_v1, %v326_v27  ;;  %v1738_v36 = vpop.f32.mrb[5].mxu0 }
  0xf6   : > { %v393_v37 = vpop.f32.mrb[6].mxu0  ;;  %v593_v38 = vpop.f32.mrb[8].mxu1 }
  0xf7   : > { %v1739_v39 = vpop.f32.mrb[7].mxu0  ;;  %v461_v40 = vadd.f32 %v455_v30, %v396_v35  ;;  %v1762_v41 = vpop.f32.mrb[9].mxu1 }
  0xf8   : > { %v596_v42 = vpop.f32.mrb[10].mxu1 }
  0xf9   : > { %v1763_v43 = vpop.f32.mrb[11].mxu1 }
  0xfc   : > { %v527_v44 = vpop.f32.mrb[8].mxu0 }
  0xfd   : > { %v533_v45 = vadd.f32 %v527_v44, %v461_v40  ;;  %v1754_v46 = vpop.f32.mrb[9].mxu0 }
  0xfe   : > { %v530_v47 = vpop.f32.mrb[10].mxu0  ;;  %v730_v48 = vpop.f32.mrb[12].mxu1 }
  0xff   : > { %v1755_v49 = vpop.f32.mrb[11].mxu0  ;;  %v599_v50 = vadd.f32 %v593_v38, %v533_v45  ;;  %v1778_v51 = vpop.f32.mrb[13].mxu1 }
 0x100   : > { %v733_v52 = vpop.f32.mrb[14].mxu1 }
 0x101   : > { %v1779_v53 = vpop.f32.mrb[15].mxu1 }
 0x104   : > { %v658_v54 = vpop.f32.mrb[12].mxu0 }
 0x105   : > { %v664_v55 = vadd.f32 %v658_v54, %v599_v50  ;;  %v1770_v56 = vpop.f32.mrb[13].mxu0 }
 0x106   : > { %v661_v57 = vpop.f32.mrb[14].mxu0  ;;  %v881_v58 = vpop.f32.mrb[16].mxu1 }
 0x107   : > { %v1771_v59 = vpop.f32.mrb[15].mxu0  ;;  %v736_v60 = vadd.f32 %v730_v48, %v664_v55  ;;  %v1794_v61 = vpop.f32.mrb[17].mxu1 }
 0x108   : > { %v884_v62 = vpop.f32.mrb[18].mxu1 }
 0x109   : > { %v1795_v63 = vpop.f32.mrb[19].mxu1 }
 0x10c   : > { %v796_v2 = vpop.f32.mrb[16].mxu0 }
 0x10d   : > { %v802_v3 = vadd.f32 %v796_v2, %v736_v60  ;;  %v1786_v4 = vpop.f32.mrb[17].mxu0 }
 0x10e   : > { %v799_v5 = vpop.f32.mrb[18].mxu0  ;;  %v1000_v6 = vpop.f32.mrb[20].mxu1 }
 0x10f   : > { %v809_v7 = vadd.f32 %v1582_v0, %v802_v3  ;;  %v1787_v8 = vpop.f32.mrb[19].mxu0  ;;  %v1810_v9 = vpop.f32.mrb[21].mxu1 }
 0x110   : > { %v1003_v10 = vpop.f32.mrb[22].mxu1 }
 0x111   : > { %811 = vst.msk [vmem:[%s2229_s30] sm:$0xf] %vm810_vm2, %v809_v7  ;;  %v1811_v11 = vpop.f32.mrb[23].mxu1 }
 0x114   : > { %v936_v12 = vpop.f32.mrb[20].mxu0 }
 0x115   : > { %v937_v13 = vadd.f32 %v936_v12, %v881_v58  ;;  %v1802_v14 = vpop.f32.mrb[21].mxu0 }
 0x116   : > { %v939_v15 = vpop.f32.mrb[22].mxu0  ;;  %v1132_v16 = vpop.f32.mrb[24].mxu1 }
 0x117   : > { %v1803_v17 = vpop.f32.mrb[23].mxu0  ;;  %v1006_v18 = vadd.f32 %v1000_v6, %v937_v13  ;;  %v1826_v19 = vpop.f32.mrb[25].mxu1 }
 0x118   : > { %v1135_v20 = vpop.f32.mrb[26].mxu1 }
 0x119   : > { %v1827_v21 = vpop.f32.mrb[27].mxu1 }
 0x11c   : > { %v1061_v22 = vpop.f32.mrb[24].mxu0 }
 0x11d   : > { %v1067_v23 = vadd.f32 %v1061_v22, %v1006_v18  ;;  %v1818_v24 = vpop.f32.mrb[25].mxu0 }
 0x11e   : > { %v1064_v25 = vpop.f32.mrb[26].mxu0  ;;  %v1261_v26 = vpop.f32.mrb[28].mxu1 }
 0x11f   : > { %v1819_v27 = vpop.f32.mrb[27].mxu0  ;;  %v1138_v28 = vadd.f32 %v1132_v16, %v1067_v23  ;;  %v1842_v29 = vpop.f32.mrb[29].mxu1 }
 0x120   : > { %v1264_v30 = vpop.f32.mrb[30].mxu1 }
 0x121   : > { %v1843_v31 = vpop.f32.mrb[31].mxu1 }
 0x124   : > { %v1197_v32 = vpop.f32.mrb[28].mxu0 }
 0x125   : > { %v1203_v33 = vadd.f32 %v1197_v32, %v1138_v28  ;;  %v1834_v34 = vpop.f32.mrb[29].mxu0 }
 0x126   : > { %v1200_v1 = vpop.f32.mrb[30].mxu0  ;;  %v1397_v35 = vpop.f32.mrb[32].mxu1 }
 0x127   : > { %v1835_v36 = vpop.f32.mrb[31].mxu0  ;;  %v1267_v37 = vadd.f32 %v1261_v26, %v1203_v33  ;;  %v1858_v38 = vpop.f32.mrb[33].mxu1 }
 0x128   : > { %v1400_v39 = vpop.f32.mrb[34].mxu1 }
 0x129   : > { %v1859_v40 = vpop.f32.mrb[35].mxu1 }
 0x12c   : > { %v1332_v41 = vpop.f32.mrb[32].mxu0 }
 0x12d   : > { %v1338_v42 = vadd.f32 %v1332_v41, %v1267_v37  ;;  %v1850_v43 = vpop.f32.mrb[33].mxu0 }
 0x12e   : > { %v1335_v44 = vpop.f32.mrb[34].mxu0 }
 0x12f   : > { %v1403_v45 = vadd.f32 %v1397_v35, %v1338_v42  ;;  %v1851_v46 = vpop.f32.mrb[35].mxu0 }
 0x131   : > { %v1404_v47 = vadd.f32 %v1582_v0, %v1403_v45 }
 0x133   : > { %1657 = vst.msk [vmem:[%s2229_s30 + $0x4] sm:$0xf] %vm810_vm2, %v1404_v47 }
 0x134 PF: > { %s13_s14 = sadd.s32 1, %s1956_s14   ;;  %s2248_s12 = smov %s1952_s13 }
 0x135   : > { %p10_p5 = scmp.ge.s32.totalorder %s13_s14, 4   ;;  %s2249_s13 = smov %s2251_s15 }
 0x137   :  { %12 = sbr.rel (!%p10_p5) target bundleno = 2 (0x2), region = 75 }

// kernel: ssd_forward.21
= control target key start
LH: loop header
LB: loop body
LE: loop exit
PB: predicated region body
PF: predicated region fallthrough
CT: control target
= control target key end

     0   :  { %s1047_s12 = smov 0   ;;  %s1049_s13 = smov 0   ;;  %s1229_s0 = inlined_call_operand.vmem [shape: bf16[2,2,3,128], index: 0, kind: input, shape index: {}]   ;;  %s1230_s1 = inlined_call_operand.vmem [shape: bf16[4,128,48], index: 1, kind: input, shape index: {}]   ;;  %s1231_s2 = inlined_call_operand.vmem [shape: f32[1,48], index: 2, kind: input, shape index: {}]   ;;  %s1232_s3 = inlined_call_operand.vmem [shape: bf16[2,1,2,48], index: 3, kind: output, shape index: {}]  }
   0x1   :  { %s1051_s14 = smov 0  }
   0x2 LB: > { %s25_s15 = sadd.s32 1, %s1019_s13  ;;  %p736_p0 = scmp.ge.s32.totalorder %s1023_s14, 1  ;;  %s1023_s14 = sphi %s1051_s14, %s13_s14   ;;  %s1019_s13 = sphi %s1049_s13, %s1234_s13   ;;  %s1015_s12 = sphi %s1047_s12, %s1233_s12  }
   0x3   : > { %p27_p1 = scmp.ge.s32.totalorder %s25_s15, 2  ;;  %p151_p2 = scmp.lt.s32.totalorder %s1023_s14, 3 }
   0x5   : > { %s1236_s15 = smov (%p27_p1, %s25_s15), 0  ;;  %p152_p3 = pnand %p736_p0, %p151_p2 }
   0x6   : > { %v969_v0 = vld [vmem:[%s1230_s1 + $0x40] sm:$0xff] (!%p152_p3)   ;;  %v1025_v1 = vmov (!%p152_p3), 0.0   ;;  %v971_v3 = vld [vmem:[%s1230_s1 + $0x48] sm:$0xff] (!%p152_p3)   ;;  %vm1026_vm0 = vmmov (!%p152_p3), 0   ;;  %p176_p4 = scmp.lt.s32.totalorder (!%p152_p3), %s1015_s12, 1  ;;  %v973_v5 = vld [vmem:[%s1230_s1 + $0x50] sm:$0xff] (!%p152_p3)  }
   0x7   : > { %155 = sbr.rel (%p152_p3) target bundleno = 294 (0x126), region = 32  ;;  %863 = vmatprep.subr.bf16.mxu0 (!%p152_p3), %v1025_v1  ;;  %883 = vmatprep.subr.bf16.mxu1 (!%p152_p3), %v1025_v1  ;;  %v970_v2 = vld [vmem:[%s1230_s1] sm:$0xff] (!%p152_p3)   ;;  %v972_v4 = vld [vmem:[%s1230_s1 + $0x8] sm:$0xff] (!%p152_p3)   ;;  %v974_v6 = vld [vmem:[%s1230_s1 + $0x10] sm:$0xff] (!%p152_p3)   ;;  %vm660_vm1 = vcmask (!%p152_p3), 385024  }
   0x8   : > { %864 = vmatpush3.bf16.msra.mxu0 (!%p152_p3), %v969_v0  ;;  %879 = vmatprep.mubr.msk.bf16.mxu0 (!%p152_p3), %vm1026_vm0, %v1025_v1  ;;  %v975_v7 = vld [vmem:[%s1230_s1 + $0x58] sm:$0xff] (!%p152_p3)   ;;  %v977_v9 = vld [vmem:[%s1230_s1 + $0x60] sm:$0xff] (!%p152_p3)   ;;  %v979_v12 = vld [vmem:[%s1230_s1 + $0x68] sm:$0xff] (!%p152_p3)  }
   0x9   : > { %884 = vmatpush3.bf16.msra.mxu1 (!%p152_p3), %v970_v2  ;;  %865 = vmatprep.subr.bf16.mxu0 (!%p152_p3), %v1025_v1  ;;  %v976_v8 = vld [vmem:[%s1230_s1 + $0x18] sm:$0xff] (!%p152_p3)   ;;  %v978_v10 = vld [vmem:[%s1230_s1 + $0x20] sm:$0xff] (!%p152_p3)   ;;  %v980_v13 = vld [vmem:[%s1230_s1 + $0x28] sm:$0xff] (!%p152_p3)  }
   0xa   : > { %885 = vmatprep.subr.bf16.mxu1 (!%p152_p3), %v1025_v1  ;;  %899 = vmatprep.mubr.msk.bf16.mxu1 (!%p152_p3), %vm1026_vm0, %v1025_v1  ;;  %v981_v15 = vld [vmem:[%s1230_s1 + $0x70] sm:$0xff] (!%p152_p3)   ;;  %v983_v19 = vld [vmem:[%s1230_s1 + $0x78] sm:$0xff] (!%p152_p3)   ;;  %v985_v23 = vld [vmem:[%s1230_s1 + $0x80] sm:$0xff] (!%p152_p3)  }
   0xb   : > { %v982_v16 = vld [vmem:[%s1230_s1 + $0x30] sm:$0xff] (!%p152_p3)   ;;  %v984_v20 = vld [vmem:[%s1230_s1 + $0x38] sm:$0xff] (!%p152_p3)   ;;  %v986_v24 = vld [vmem:[%s1230_s1 + $0xc0] sm:$0xff] (!%p152_p3)  }
   0xc   : > { %866 = vmatpush3.bf16.msra.mxu0 (!%p152_p3), %v971_v3  ;;  %v987_v25 = vld [vmem:[%s1230_s1 + $0x88] sm:$0xff] (!%p152_p3)   ;;  %v989_v27 = vld [vmem:[%s1230_s1 + $0x90] sm:$0xff] (!%p152_p3)   ;;  %v991_v29 = vld [vmem:[%s1230_s1 + $0x98] sm:$0xff] (!%p152_p3)  }
   0xd   : > { %886 = vmatpush3.bf16.msra.mxu1 (!%p152_p3), %v972_v4  ;;  %867 = vmatprep.subr.bf16.mxu0 (!%p152_p3), %v1025_v1  ;;  %v988_v26 = vld [vmem:[%s1230_s1 + $0xc8] sm:$0xff] (!%p152_p3)   ;;  %v990_v28 = vld [vmem:[%s1230_s1 + $0xd0] sm:$0xff] (!%p152_p3)   ;;  %v992_v30 = vld [vmem:[%s1230_s1 + $0xd8] sm:$0xff] (!%p152_p3)  }
   0xe   : > { %s1238_s12 = smov (!%p176_p4, %s1015_s12), 1  ;;  %887 = vmatprep.subr.bf16.mxu1 %v1025_v1  ;;  %v993_v31 = vld [vmem:[%s1230_s1 + $0xa0] sm:$0xff]   ;;  %v995_v33 = vld [vmem:[%s1230_s1 + $0xa8] sm:$0xff]   ;;  %v997_v36 = vld [vmem:[%s1230_s1 + $0xb0] sm:$0xff]  }
   0xf   : > { %s826_s30 = sshll.u32 %s1238_s12, 2  ;;  %v994_v32 = vld [vmem:[%s1230_s1 + $0xe0] sm:$0xff]   ;;  %v996_v34 = vld [vmem:[%s1230_s1 + $0xe8] sm:$0xff]   ;;  %v998_v38 = vld [vmem:[%s1230_s1 + $0xf0] sm:$0xff]   ;;  %s186_s20 = scalar_lea.vmem %s1232_s3, %s1238_s12 }
  0x10   : > { %868 = vmatpush3.bf16.msra.mxu0 %v973_v5  ;;  %s1107_s8 = scalar_lea.vmem %s1229_s0, %s826_s30  ;;  %v999_v39 = vld [vmem:[%s1230_s1 + $0xb8] sm:$0xff]   ;;  %v823_v58 = vld [vmem:[%s1231_s2] ss:$0 sm:$0xff] }
  0x11   : > { %888 = vmatpush3.bf16.msra.mxu1 %v974_v6  ;;  %869 = vmatprep.subr.bf16.mxu0 %v1025_v1  ;;  %v755_v11 = vld.sshfl [vmem:[%s1107_s8] sm:$0x3 pattern:$0x76325410]  ;;  %v1000_v42 = vld [vmem:[%s1230_s1 + $0xf8] sm:$0xff]  }
  0x12   : > { %889 = vmatprep.subr.bf16.mxu1 %v1025_v1  ;;  %v237_v14 = vshll.u32 %v755_v11, 16  ;;  %v235_v17 = vshrl.u32 %v755_v11, 16  ;;  %v191_v22 = vld [vmem:[%s1107_s8] sm:$0x1]  ;;  %v772_v43 = vld [vmem:[%s1107_s8 + $0x2] sm:$0x1] }
  0x13   : > { %v814_v35 = vld.sshfl [vmem:[%s1107_s8 + $0x2] sm:$0x3 pattern:$0x76325410] }
  0x14   : > { %870 = vmatpush3.bf16.msra.mxu0 %v975_v7  ;;  %v239_v18 = vrot.slane %v237_v14, 1  ;;  %v557_v37 = vshll.u32 %v814_v35, 16  ;;  %v555_v40 = vshrl.u32 %v814_v35, 16 }
  0x15   : > { %890 = vmatpush3.bf16.msra.mxu1 %v976_v8  ;;  %871 = vmatprep.subr.bf16.mxu0 %v1025_v1 }
  0x16   : > { %891 = vmatprep.subr.bf16.mxu1 %v1025_v1  ;;  %v240_v21 = vor.u32 %v239_v18, %v235_v17  ;;  %v559_v41 = vrot.slane %v557_v37, 1 }
  0x18   : > { %872 = vmatpush3.bf16.msra.mxu0 %v977_v9  ;;  %v560_v44 = vor.u32 %v559_v41, %v555_v40 }
  0x19   : > { %892 = vmatpush3.bf16.msra.mxu1 %v978_v10  ;;  %873 = vmatprep.subr.bf16.mxu0 %v1025_v1 }
  0x1a   : > { %893 = vmatprep.subr.bf16.mxu1 %v1025_v1 }
  0x1c   : > { %874 = vmatpush3.bf16.msra.mxu0 %v979_v12 }
  0x1d   : > { %894 = vmatpush3.bf16.msra.mxu1 %v980_v13  ;;  %875 = vmatprep.subr.bf16.mxu0 %v1025_v1 }
  0x1e   : > { %895 = vmatprep.subr.bf16.mxu1 %v1025_v1 }
  0x20   : > { %876 = vmatpush3.bf16.msra.mxu0 %v981_v15 }
  0x21   : > { %896 = vmatpush3.bf16.msra.mxu1 %v982_v16  ;;  %877 = vmatprep.subr.bf16.mxu0 %v1025_v1 }
  0x22   : > { %897 = vmatprep.subr.bf16.mxu1 %v1025_v1 }
  0x24   : > { %878 = vmatpush3.bf16.msra.mxu0 %v983_v19 }
  0x25   : > { %898 = vmatpush3.bf16.msra.mxu1 %v984_v20  ;;  %903 = vmatprep.subr.bf16.mxu0 %v1025_v1 }
  0x26   : > { %923 = vmatprep.subr.bf16.mxu1 %v1025_v1 }
  0x27   : > { %880 = vmatmul.mubr.bf16.vlgmr.msra.gmra.mrb[0].mxu0 %v240_v21 }
  0x28   : > { %900 = vmatmul.mubr.bf16.vlgmr.msra.gmra.mrb[0].mxu1 %v191_v22  ;;  %904 = vmatpush3.bf16.msra.mxu0 %v985_v23 }
  0x29   : > { %924 = vmatpush3.bf16.msra.mxu1 %v986_v24  ;;  %905 = vmatprep.subr.bf16.mxu0 %v1025_v1 }
  0x2a   : > { %925 = vmatprep.subr.bf16.mxu1 %v1025_v1  ;;  %919 = vmatprep.mubr.msk.bf16.mxu0 %vm1026_vm0, %v1025_v1 }
  0x2b   : > { %939 = vmatprep.mubr.msk.bf16.mxu1 %vm1026_vm0, %v1025_v1 }
  0x2c   : > { %906 = vmatpush3.bf16.msra.mxu0 %v987_v25 }
  0x2d   : > { %926 = vmatpush3.bf16.msra.mxu1 %v988_v26  ;;  %907 = vmatprep.subr.bf16.mxu0 %v1025_v1 }
  0x2e   : > { %927 = vmatprep.subr.bf16.mxu1 %v1025_v1 }
  0x30   : > { %908 = vmatpush3.bf16.msra.mxu0 %v989_v27 }
  0x31   : > { %928 = vmatpush3.bf16.msra.mxu1 %v990_v28  ;;  %909 = vmatprep.subr.bf16.mxu0 %v1025_v1 }
  0x32   : > { %929 = vmatprep.subr.bf16.mxu1 %v1025_v1 }
  0x34   : > { %910 = vmatpush3.bf16.msra.mxu0 %v991_v29 }
  0x35   : > { %930 = vmatpush3.bf16.msra.mxu1 %v992_v30  ;;  %911 = vmatprep.subr.bf16.mxu0 %v1025_v1 }
  0x36   : > { %931 = vmatprep.subr.bf16.mxu1 %v1025_v1 }
  0x38   : > { %912 = vmatpush3.bf16.msra.mxu0 %v993_v31 }
  0x39   : > { %932 = vmatpush3.bf16.msra.mxu1 %v994_v32  ;;  %913 = vmatprep.subr.bf16.mxu0 %v1025_v1 }
  0x3a   : > { %933 = vmatprep.subr.bf16.mxu1 %v1025_v1 }
  0x3c   : > { %914 = vmatpush3.bf16.msra.mxu0 %v995_v33 }
  0x3d   : > { %934 = vmatpush3.bf16.msra.mxu1 %v996_v34  ;;  %915 = vmatprep.subr.bf16.mxu0 %v1025_v1 }
  0x3e   : > { %935 = vmatprep.subr.bf16.mxu1 %v1025_v1 }
  0x40   : > { %916 = vmatpush3.bf16.msra.mxu0 %v997_v36 }
  0x41   : > { %936 = vmatpush3.bf16.msra.mxu1 %v998_v38  ;;  %917 = vmatprep.subr.bf16.mxu0 %v1025_v1 }
  0x42   : > { %937 = vmatprep.subr.bf16.mxu1 %v1025_v1 }
  0x44   : > { %918 = vmatpush3.bf16.msra.mxu0 %v999_v39 }
  0x45   : > { %938 = vmatpush3.bf16.msra.mxu1 %v1000_v42 }
  0x47   : > { %920 = vmatmul.mubr.bf16.vlgmr.msra.gmra.mrb[4].mxu0 %v772_v43 }
  0x48   : > { %940 = vmatmul.mubr.bf16.vlgmr.msra.gmra.mrb[4].mxu1 %v560_v44 }
  0xfa   : > { %v324_v45 = vpop.f32.mrb[0].mxu0 }
  0xfb   : > { %v412_v46 = vpop.f32.mrb[0].mxu1  ;;  %v881_v47 = vpop.f32.mrb[1].mxu0 }
  0xfc   : > { %v413_v48 = vadd.f32 %v412_v46, %v324_v45  ;;  %v901_v49 = vpop.f32.mrb[1].mxu1  ;;  %v327_v50 = vpop.f32.mrb[2].mxu0 }
  0xfd   : > { %v415_v51 = vpop.f32.mrb[2].mxu1  ;;  %v882_v52 = vpop.f32.mrb[3].mxu0 }
  0xfe   : > { %v902_v53 = vpop.f32.mrb[3].mxu1 }
 0x11a   : > { %v521_v54 = vpop.f32.mrb[4].mxu0 }
 0x11b   : > { %v527_v55 = vadd.f32 %v521_v54, %v413_v48  ;;  %v644_v56 = vpop.f32.mrb[4].mxu1  ;;  %v921_v57 = vpop.f32.mrb[5].mxu0 }
 0x11c   : > { %v941_v59 = vpop.f32.mrb[5].mxu1  ;;  %v524_v60 = vpop.f32.mrb[6].mxu0 }
 0x11d   : > { %v650_v61 = vadd.f32 %v644_v56, %v527_v55  ;;  %v647_v62 = vpop.f32.mrb[6].mxu1  ;;  %v922_v63 = vpop.f32.mrb[7].mxu0 }
 0x11e   : > { %v942_v0 = vpop.f32.mrb[7].mxu1 }
 0x11f   : > { %v657_v1 = vadd.f32 %v823_v58, %v650_v61 }
 0x121   : > { %v658_v2 = vmax.f32 %v657_v1, 0.0 }
 0x123   : > { %v659_v3 = vpack.c.bf16 %v658_v2, %v658_v2 }
 0x125   : > { %661 = vst.msk [vmem:[%s186_s20] sm:$0x1] %vm660_vm1, %v659_v3 }
 0x126 PF: > { %s13_s14 = sadd.s32 1, %s1023_s14   ;;  %s1233_s12 = smov %s1019_s13 }
 0x127   : > { %p10_p5 = scmp.ge.s32.totalorder %s13_s14, 4   ;;  %s1234_s13 = smov %s1236_s15 }
 0x129   :  { %12 = sbr.rel (!%p10_p5) target bundleno = 2 (0x2), region = 67 }

// kernel: ssd_forward.22
= control target key start
LH: loop header
LB: loop body
LE: loop exit
PB: predicated region body
PF: predicated region fallthrough
CT: control target
= control target key end

     0   :  { %s427_s12 = smov 0   ;;  %s429_s13 = smov 0   ;;  %s472_s0 = inlined_call_operand.vmem [shape: bf16[2,1,2,48], index: 0, kind: input, shape index: {}]   ;;  %s473_s1 = inlined_call_operand.vmem [shape: bf16[1,48,64], index: 1, kind: input, shape index: {}]   ;;  %s474_s2 = inlined_call_operand.vmem [shape: f32[1,64], index: 2, kind: input, shape index: {}]   ;;  %s475_s3 = inlined_call_operand.vmem [shape: bf16[2,1,2,64], index: 3, kind: output, shape index: {}]  }
   0x1   :  { %s431_s14 = smov 0  }
   0x2 LB: > { %s25_s15 = sadd.s32 1, %s399_s13  ;;  %p330_p0 = scmp.ge.s32.totalorder %s403_s14, 1  ;;  %s403_s14 = sphi %s431_s14, %s13_s14   ;;  %s399_s13 = sphi %s429_s13, %s477_s13   ;;  %s395_s12 = sphi %s427_s12, %s476_s12  }
   0x3   : > { %p27_p1 = scmp.ge.s32.totalorder %s25_s15, 2  ;;  %p149_p2 = scmp.lt.s32.totalorder %s403_s14, 3 }
   0x5   : > { %s479_s15 = smov (%p27_p1, %s25_s15), 0  ;;  %p150_p3 = pnand %p330_p0, %p149_p2 }
   0x6   : > { %v378_v0 = vld [vmem:[%s473_s1] sm:$0xff] (!%p150_p3)   ;;  %v405_v1 = vmov (!%p150_p3), 0.0   ;;  %v379_v2 = vld [vmem:[%s473_s1 + $0x8] sm:$0xff] (!%p150_p3)   ;;  %vm406_vm0 = vmmov (!%p150_p3), 0   ;;  %p172_p4 = scmp.lt.s32.totalorder (!%p150_p3), %s395_s12, 1  ;;  %v380_v3 = vld [vmem:[%s473_s1 + $0x10] sm:$0xff] (!%p150_p3)  }
   0x7   : > { %153 = sbr.rel (%p150_p3) target bundleno = 238 (0xee), region = 32  ;;  %342 = vmatprep.subr.bf16.mxu0 (!%p150_p3), %v405_v1  ;;  %348 = vmatprep.mubr.msk.bf16.mxu0 (!%p150_p3), %vm406_vm0, %v405_v1  ;;  %vm215_vm1 = vcmask (!%p150_p3), 392192   ;;  %v331_v5 = vld [vmem:[%s474_s2] ss:$0 sm:$0xff] (!%p150_p3)  ;;  %vm261_vm2 = vcmask (!%p150_p3), 516096  }
   0x8   : > { %343 = vmatpush3.bf16.msra.mxu0 (!%p150_p3), %v378_v0 }
   0x9   : > { %344 = vmatprep.subr.bf16.mxu0 (!%p150_p3), %v405_v1 }
   0xc   : > { %345 = vmatpush3.bf16.msra.mxu0 (!%p150_p3), %v379_v2 }
   0xd   : > { %346 = vmatprep.subr.bf16.mxu0 (!%p150_p3), %v405_v1 }
   0xe   : > { %s481_s12 = smov (!%p172_p4, %s395_s12), 1 }
   0xf   : > { %s174_s24 = scalar_lea.vmem %s472_s0, %s481_s12  ;;  %s180_s29 = scalar_lea.vmem %s475_s3, %s481_s12 }
  0x10   : > { %347 = vmatpush3.bf16.msra.mxu0 %v380_v3  ;;  %v184_v4 = vld [vmem:[%s174_s24] sm:$0x1] }
  0x13   : > { %349 = vmatmul.mubr.msk.bf16.vlgmr.msra.gmra.mrb[0].mxu0 %vm215_vm1, %v184_v4 }
  0xe6   : > { %v253_v6 = vpop.f32.mrb[0].mxu0 }
  0xe7   : > { %v254_v7 = vadd.f32 %v331_v5, %v253_v6  ;;  %v350_v8 = vpop.f32.mrb[1].mxu0 }
  0xe8   : > { %v256_v9 = vpop.f32.mrb[2].mxu0 }
  0xe9   : > { %v259_v10 = vmax.f32 %v254_v7, 0.0  ;;  %v351_v11 = vpop.f32.mrb[3].mxu0 }
  0xeb   : > { %v260_v12 = vpack.c.bf16 %v259_v10, %v259_v10 }
  0xed   : > { %262 = vst.msk [vmem:[%s180_s29] sm:$0x1] %vm261_vm2, %v260_v12 }
  0xee PF: > { %s13_s14 = sadd.s32 1, %s403_s14   ;;  %s476_s12 = smov %s399_s13 }
  0xef   : > { %p10_p5 = scmp.ge.s32.totalorder %s13_s14, 4   ;;  %s477_s13 = smov %s479_s15 }
  0xf1   :  { %12 = sbr.rel (!%p10_p5) target bundleno = 2 (0x2), region = 63 }

// kernel: ssd_forward.23
= control target key start
LH: loop header
LB: loop body
LE: loop exit
PB: predicated region body
PF: predicated region fallthrough
CT: control target
= control target key end

     0   :  { %s440_s12 = smov 0   ;;  %s442_s13 = smov 0   ;;  %s488_s0 = inlined_call_operand.vmem [shape: bf16[2,1,2,64], index: 0, kind: input, shape index: {}]   ;;  %s489_s1 = inlined_call_operand.vmem [shape: bf16[1,64,32], index: 1, kind: input, shape index: {}]   ;;  %s490_s2 = inlined_call_operand.vmem [shape: f32[1,32], index: 2, kind: input, shape index: {}]   ;;  %s491_s3 = inlined_call_operand.vmem [shape: bf16[2,1,2,32], index: 3, kind: output, shape index: {}]  }
   0x1   :  { %s444_s14 = smov 0  }
   0x2 LB: > { %s25_s15 = sadd.s32 1, %s412_s13  ;;  %p338_p0 = scmp.ge.s32.totalorder %s416_s14, 1  ;;  %s416_s14 = sphi %s444_s14, %s13_s14   ;;  %s412_s13 = sphi %s442_s13, %s493_s13   ;;  %s408_s12 = sphi %s440_s12, %s492_s12  }
   0x3   : > { %p27_p1 = scmp.ge.s32.totalorder %s25_s15, 2  ;;  %p149_p2 = scmp.lt.s32.totalorder %s416_s14, 3 }
   0x5   : > { %s495_s15 = smov (%p27_p1, %s25_s15), 0  ;;  %p150_p3 = pnand %p338_p0, %p149_p2 }
   0x6   : > { %v390_v0 = vld [vmem:[%s489_s1] sm:$0xff] (!%p150_p3)   ;;  %v418_v1 = vmov (!%p150_p3), 0.0   ;;  %v391_v2 = vld [vmem:[%s489_s1 + $0x8] sm:$0xff] (!%p150_p3)   ;;  %vm419_vm0 = vmmov (!%p150_p3), 0   ;;  %p172_p4 = scmp.lt.s32.totalorder (!%p150_p3), %s408_s12, 1  ;;  %v392_v3 = vld [vmem:[%s489_s1 + $0x10] sm:$0xff] (!%p150_p3)  }
   0x7   : > { %153 = sbr.rel (%p150_p3) target bundleno = 242 (0xf2), region = 32  ;;  %352 = vmatprep.subr.bf16.mxu0 (!%p150_p3), %v418_v1  ;;  %360 = vmatprep.mubr.msk.bf16.mxu0 (!%p150_p3), %vm419_vm0, %v418_v1  ;;  %v393_v4 = vld [vmem:[%s489_s1 + $0x18] sm:$0xff] (!%p150_p3)   ;;  %vm223_vm1 = vcmask (!%p150_p3), 523264   ;;  %v339_v6 = vld [vmem:[%s490_s2] ss:$0 sm:$0xff] (!%p150_p3)  ;;  %vm269_vm2 = vcmask (!%p150_p3), 253952  }
   0x8   : > { %353 = vmatpush3.bf16.msra.mxu0 (!%p150_p3), %v390_v0 }
   0x9   : > { %354 = vmatprep.subr.bf16.mxu0 (!%p150_p3), %v418_v1 }
   0xc   : > { %355 = vmatpush3.bf16.msra.mxu0 (!%p150_p3), %v391_v2 }
   0xd   : > { %356 = vmatprep.subr.bf16.mxu0 (!%p150_p3), %v418_v1 }
   0xe   : > { %s497_s12 = smov (!%p172_p4, %s408_s12), 1 }
   0xf   : > { %s174_s26 = scalar_lea.vmem %s488_s0, %s497_s12  ;;  %s180_s4 = scalar_lea.vmem %s491_s3, %s497_s12 }
  0x10   : > { %357 = vmatpush3.bf16.msra.mxu0 %v392_v3  ;;  %v184_v5 = vld [vmem:[%s174_s26] sm:$0x1] }
  0x11   : > { %358 = vmatprep.subr.bf16.mxu0 %v418_v1 }
  0x14   : > { %359 = vmatpush3.bf16.msra.mxu0 %v393_v4 }
  0x17   : > { %361 = vmatmul.mubr.msk.bf16.vlgmr.msra.gmra.mrb[0].mxu0 %vm223_vm1, %v184_v5 }
  0xea   : > { %v261_v7 = vpop.f32.mrb[0].mxu0 }
  0xeb   : > { %v262_v8 = vadd.f32 %v339_v6, %v261_v7  ;;  %v362_v9 = vpop.f32.mrb[1].mxu0 }
  0xec   : > { %v264_v10 = vpop.f32.mrb[2].mxu0 }
  0xed   : > { %v267_v11 = vmax.f32 %v262_v8, 0.0  ;;  %v363_v12 = vpop.f32.mrb[3].mxu0 }
  0xef   : > { %v268_v13 = vpack.c.bf16 %v267_v11, %v267_v11 }
  0xf1   : > { %270 = vst.msk [vmem:[%s180_s4] sm:$0x1] %vm269_vm2, %v268_v13 }
  0xf2 PF: > { %s13_s14 = sadd.s32 1, %s416_s14   ;;  %s492_s12 = smov %s412_s13 }
  0xf3   : > { %p10_p5 = scmp.ge.s32.totalorder %s13_s14, 4   ;;  %s493_s13 = smov %s495_s15 }
  0xf5   :  { %12 = sbr.rel (!%p10_p5) target bundleno = 2 (0x2), region = 63 }

// kernel: ssd_forward.30
= control target key start
LH: loop header
LB: loop body
LE: loop exit
PB: predicated region body
PF: predicated region fallthrough
CT: control target
= control target key end

     0   :  { %s1452_s12 = smov 0   ;;  %s1454_s13 = smov 0   ;;  %s1674_s0 = inlined_call_operand.vmem [shape: bf16[2,3,4,64], index: 0, kind: input, shape index: {}]   ;;  %s1675_s1 = inlined_call_operand.vmem [shape: bf16[9,64,72], index: 1, kind: input, shape index: {}]   ;;  %s1676_s2 = inlined_call_operand.vmem [shape: f32[1,72], index: 2, kind: input, shape index: {}]   ;;  %s1677_s3 = inlined_call_operand.vmem [shape: f32[2,1,2,72], index: 3, kind: output, shape index: {}]  }
   0x1   :  { %s1456_s14 = smov 0  }
   0x2 LB: > { %s25_s15 = sadd.s32 1, %s1424_s13  ;;  %p1063_p0 = scmp.ge.s32.totalorder %s1428_s14, 1  ;;  %s1428_s14 = sphi %s1456_s14, %s13_s14   ;;  %s1424_s13 = sphi %s1454_s13, %s1679_s13   ;;  %s1420_s12 = sphi %s1452_s12, %s1678_s12  }
   0x3   : > { %p27_p1 = scmp.ge.s32.totalorder %s25_s15, 2  ;;  %p151_p2 = scmp.lt.s32.totalorder %s1428_s14, 3 }
   0x5   : > { %s1681_s15 = smov (%p27_p1, %s25_s15), 0  ;;  %p152_p3 = pnand %p1063_p0, %p151_p2 }
   0x6   : > { %v1370_v0 = vld [vmem:[%s1675_s1 + $0x20] sm:$0xff] (!%p152_p3)   ;;  %v1430_v1 = vmov (!%p152_p3), 0.0   ;;  %v1372_v3 = vld [vmem:[%s1675_s1 + $0x28] sm:$0xff] (!%p152_p3)   ;;  %vm1431_vm0 = vmmov (!%p152_p3), 0   ;;  %p177_p4 = scmp.lt.s32.totalorder (!%p152_p3), %s1420_s12, 1  ;;  %v1374_v5 = vld [vmem:[%s1675_s1 + $0x30] sm:$0xff] (!%p152_p3)  }
   0x7   : > { %155 = sbr.rel (%p152_p3) target bundleno = 306 (0x132), region = 32  ;;  %1235 = vmatprep.subr.bf16.mxu0 (!%p152_p3), %v1430_v1  ;;  %1247 = vmatprep.subr.bf16.mxu1 (!%p152_p3), %v1430_v1  ;;  %v1371_v2 = vld [vmem:[%s1675_s1] sm:$0xff] (!%p152_p3)   ;;  %v1373_v4 = vld [vmem:[%s1675_s1 + $0x8] sm:$0xff] (!%p152_p3)   ;;  %v1375_v6 = vld [vmem:[%s1675_s1 + $0x10] sm:$0xff] (!%p152_p3)   ;;  %vm251_vm1 = vcmask (!%p152_p3), 523264   ;;  %vm978_vm2 = vcmask (!%p152_p3), 582656  }
   0x8   : > { %1236 = vmatpush3.bf16.msra.mxu0 (!%p152_p3), %v1370_v0  ;;  %1243 = vmatprep.mubr.msk.bf16.mxu0 (!%p152_p3), %vm1431_vm0, %v1430_v1  ;;  %v1376_v7 = vld [vmem:[%s1675_s1 + $0x38] sm:$0xff] (!%p152_p3)   ;;  %v1378_v13 = vld [vmem:[%s1675_s1 + $0x40] sm:$0xff] (!%p152_p3)   ;;  %v1380_v17 = vld [vmem:[%s1675_s1 + $0x48] sm:$0xff] (!%p152_p3)  }
   0x9   : > { %1248 = vmatpush3.bf16.msra.mxu1 (!%p152_p3), %v1371_v2  ;;  %1237 = vmatprep.subr.bf16.mxu0 (!%p152_p3), %v1430_v1  ;;  %v1377_v11 = vld [vmem:[%s1675_s1 + $0x18] sm:$0xff] (!%p152_p3)   ;;  %v1379_v16 = vld [vmem:[%s1675_s1 + $0x60] sm:$0xff] (!%p152_p3)   ;;  %v1381_v18 = vld [vmem:[%s1675_s1 + $0x68] sm:$0xff] (!%p152_p3)  }
   0xa   : > { %1249 = vmatprep.subr.bf16.mxu1 (!%p152_p3), %v1430_v1  ;;  %1255 = vmatprep.mubr.msk.bf16.mxu1 (!%p152_p3), %vm1431_vm0, %v1430_v1  ;;  %v1382_v19 = vld [vmem:[%s1675_s1 + $0x50] sm:$0xff] (!%p152_p3)   ;;  %v1384_v21 = vld [vmem:[%s1675_s1 + $0x58] sm:$0xff] (!%p152_p3)   ;;  %v1386_v25 = vld [vmem:[%s1675_s1 + $0x80] sm:$0xff] (!%p152_p3)  }
   0xb   : > { %v1383_v20 = vld [vmem:[%s1675_s1 + $0x70] sm:$0xff] (!%p152_p3)   ;;  %v1385_v23 = vld [vmem:[%s1675_s1 + $0x78] sm:$0xff] (!%p152_p3)   ;;  %v1387_v26 = vld [vmem:[%s1675_s1 + $0xa0] sm:$0xff] (!%p152_p3)  }
   0xc   : > { %1238 = vmatpush3.bf16.msra.mxu0 (!%p152_p3), %v1372_v3  ;;  %v1388_v29 = vld [vmem:[%s1675_s1 + $0x88] sm:$0xff] (!%p152_p3)   ;;  %v1390_v32 = vld [vmem:[%s1675_s1 + $0x90] sm:$0xff] (!%p152_p3)   ;;  %v1392_v36 = vld [vmem:[%s1675_s1 + $0x98] sm:$0xff] (!%p152_p3)  }
   0xd   : > { %1250 = vmatpush3.bf16.msra.mxu1 (!%p152_p3), %v1373_v4  ;;  %1239 = vmatprep.subr.bf16.mxu0 (!%p152_p3), %v1430_v1  ;;  %v1389_v30 = vld [vmem:[%s1675_s1 + $0xa8] sm:$0xff] (!%p152_p3)   ;;  %v1391_v33 = vld [vmem:[%s1675_s1 + $0xb0] sm:$0xff] (!%p152_p3)   ;;  %v1393_v37 = vld [vmem:[%s1675_s1 + $0xb8] sm:$0xff] (!%p152_p3)  }
   0xe   : > { %s1683_s12 = smov (!%p177_p4, %s1420_s12), 1  ;;  %1251 = vmatprep.subr.bf16.mxu1 %v1430_v1  ;;  %v1394_v40 = vld [vmem:[%s1675_s1 + $0xc0] sm:$0xff]   ;;  %v1396_v43 = vld [vmem:[%s1675_s1 + $0xc8] sm:$0xff]   ;;  %v1398_v46 = vld [vmem:[%s1675_s1 + $0xd0] sm:$0xff]  }
   0xf   : > { %s1343_s26 = smul.u32 6, %s1683_s12  ;;  %v1395_v42 = vld [vmem:[%s1675_s1 + $0xe0] sm:$0xff]   ;;  %v1397_v44 = vld [vmem:[%s1675_s1 + $0xe8] sm:$0xff]   ;;  %v1399_v48 = vld [vmem:[%s1675_s1 + $0xf0] sm:$0xff]  }
  0x10   : > { %1240 = vmatpush3.bf16.msra.mxu0 %v1374_v5  ;;  %v1400_v49 = vld [vmem:[%s1675_s1 + $0xd8] sm:$0xff]   ;;  %v1402_v54 = vld [vmem:[%s1675_s1 + $0x100] sm:$0xff]   ;;  %v1403_v56 = vld [vmem:[%s1675_s1 + $0x108] sm:$0xff]  }
  0x11   : > { %s1504_s4 = scalar_lea.vmem %s1674_s0, %s1343_s26  ;;  %1252 = vmatpush3.bf16.msra.mxu1 %v1375_v6  ;;  %1241 = vmatprep.subr.bf16.mxu0 %v1430_v1  ;;  %v1401_v52 = vld [vmem:[%s1675_s1 + $0xf8] sm:$0xff]   ;;  %v1404_v57 = vld [vmem:[%s1675_s1 + $0x110] sm:$0xff]  }
  0x12   : > { %v1074_v8 = vld.sshfl [vmem:[%s1504_s4] sm:$0x3 pattern:$0x76325410]  ;;  %1253 = vmatprep.subr.bf16.mxu1 %v1430_v1  ;;  %v1099_v27 = vld [vmem:[%s1504_s4 + $0x2] sm:$0x1] }
  0x13   : > { %v221_v9 = vshrl.u32 %v1074_v8, 16  ;;  %v223_v10 = vshll.u32 %v1074_v8, 16  ;;  %v193_v15 = vld [vmem:[%s1504_s4] sm:$0x1]  ;;  %v1143_v53 = vld [vmem:[%s1504_s4 + $0x4] sm:$0x1] }
  0x14   : > { %1242 = vmatpush3.bf16.msra.mxu0 %v1376_v7  ;;  %v1093_v22 = vld.sshfl [vmem:[%s1504_s4] sm:$0x2 pattern:$0x76325410]  ;;  %v1405_v58 = vld [vmem:[%s1675_s1 + $0x118] sm:$0xff]  }
  0x15   : > { %v225_v12 = vrot.slane %v223_v10, 1  ;;  %1254 = vmatpush3.bf16.msra.mxu1 %v1377_v11  ;;  %1259 = vmatprep.subr.bf16.mxu0 %v1430_v1  ;;  %v380_v24 = vrot.slane %v1093_v22, 1  ;;  %v1122_v28 = vld.sshfl [vmem:[%s1504_s4 + $0x2] sm:$0x3 pattern:$0x76325410] }
  0x16   : > { %1271 = vmatprep.subr.bf16.mxu1 %v1430_v1  ;;  %v551_v31 = vshll.u32 %v1122_v28, 16  ;;  %v549_v34 = vshrl.u32 %v1122_v28, 16  ;;  %v1137_v38 = vld.sshfl [vmem:[%s1504_s4 + $0x2] sm:$0x2 pattern:$0x76325410] }
  0x17   : > { %v226_v14 = vor.u32 %v225_v12, %v221_v9  ;;  %v641_v41 = vrot.slane %v1137_v38, 1  ;;  %v1166_v45 = vld.sshfl [vmem:[%s1504_s4 + $0x4] sm:$0x3 pattern:$0x76325410] }
  0x18   : > { %1256 = vmatmul.mubr.msk.bf16.vlgmr.msra.gmra.mrb[0].mxu1 %vm251_vm1, %v193_v15  ;;  %v553_v35 = vrot.slane %v551_v31, 1  ;;  %v812_v47 = vshll.u32 %v1166_v45, 16  ;;  %v810_v50 = vshrl.u32 %v1166_v45, 16 }
  0x19   : > { %1244 = vmatmul.mubr.msk.bf16.vlgmr.msra.gmra.mrb[0].mxu0 %vm251_vm1, %v226_v14  ;;  %1272 = vmatpush3.bf16.msra.mxu1 %v1379_v16  ;;  %v1181_v59 = vld.sshfl [vmem:[%s1504_s4 + $0x4] sm:$0x2 pattern:$0x76325410]  ;;  %s1065_s4 = sshll.u32 %s1683_s12, 1 }
  0x1a   : > { %1260 = vmatpush3.bf16.msra.mxu0 %v1378_v13  ;;  %1273 = vmatprep.subr.bf16.mxu1 %v1430_v1  ;;  %v554_v39 = vor.u32 %v553_v35, %v549_v34  ;;  %v814_v51 = vrot.slane %v812_v47, 1  ;;  %v902_v60 = vrot.slane %v1181_v59, 1  ;;  %s188_s29 = scalar_lea.vmem %s1677_s3, %s1065_s4 }
  0x1b   : > { %1261 = vmatprep.subr.bf16.mxu0 %v1430_v1  ;;  %1267 = vmatprep.mubr.msk.bf16.mxu0 %vm1431_vm0, %v1430_v1 }
  0x1c   : > { %1279 = vmatprep.mubr.msk.bf16.mxu1 %vm1431_vm0, %v1430_v1  ;;  %v815_v55 = vor.u32 %v814_v51, %v810_v50 }
  0x1d   : > { %1274 = vmatpush3.bf16.msra.mxu1 %v1381_v18 }
  0x1e   : > { %1262 = vmatpush3.bf16.msra.mxu0 %v1380_v17  ;;  %1275 = vmatprep.subr.bf16.mxu1 %v1430_v1 }
  0x1f   : > { %1263 = vmatprep.subr.bf16.mxu0 %v1430_v1 }
  0x21   : > { %1276 = vmatpush3.bf16.msra.mxu1 %v1383_v20 }
  0x22   : > { %1264 = vmatpush3.bf16.msra.mxu0 %v1382_v19  ;;  %1277 = vmatprep.subr.bf16.mxu1 %v1430_v1 }
  0x23   : > { %1265 = vmatprep.subr.bf16.mxu0 %v1430_v1 }
  0x25   : > { %1278 = vmatpush3.bf16.msra.mxu1 %v1385_v23 }
  0x26   : > { %1266 = vmatpush3.bf16.msra.mxu0 %v1384_v21  ;;  %1295 = vmatprep.subr.bf16.mxu1 %v1430_v1 }
  0x27   : > { %1283 = vmatprep.subr.bf16.mxu0 %v1430_v1 }
  0x28   : > { %1280 = vmatmul.mubr.msk.bf16.vlgmr.msra.gmra.mrb[4].mxu1 %vm251_vm1, %v1099_v27 }
  0x29   : > { %1268 = vmatmul.mubr.msk.bf16.vlgmr.msra.gmra.mrb[4].mxu0 %vm251_vm1, %v380_v24  ;;  %1296 = vmatpush3.bf16.msra.mxu1 %v1387_v26 }
  0x2a   : > { %1284 = vmatpush3.bf16.msra.mxu0 %v1386_v25  ;;  %1297 = vmatprep.subr.bf16.mxu1 %v1430_v1 }
  0x2b   : > { %1285 = vmatprep.subr.bf16.mxu0 %v1430_v1  ;;  %1291 = vmatprep.mubr.msk.bf16.mxu0 %vm1431_vm0, %v1430_v1 }
  0x2c   : > { %1303 = vmatprep.mubr.msk.bf16.mxu1 %vm1431_vm0, %v1430_v1 }
  0x2d   : > { %1298 = vmatpush3.bf16.msra.mxu1 %v1389_v30 }
  0x2e   : > { %1286 = vmatpush3.bf16.msra.mxu0 %v1388_v29  ;;  %1299 = vmatprep.subr.bf16.mxu1 %v1430_v1 }
  0x2f   : > { %1287 = vmatprep.subr.bf16.mxu0 %v1430_v1 }
  0x31   : > { %1300 = vmatpush3.bf16.msra.mxu1 %v1391_v33 }
  0x32   : > { %1288 = vmatpush3.bf16.msra.mxu0 %v1390_v32  ;;  %1301 = vmatprep.subr.bf16.mxu1 %v1430_v1 }
  0x33   : > { %1289 = vmatprep.subr.bf16.mxu0 %v1430_v1 }
  0x35   : > { %1302 = vmatpush3.bf16.msra.mxu1 %v1393_v37 }
  0x36   : > { %1290 = vmatpush3.bf16.msra.mxu0 %v1392_v36  ;;  %1319 = vmatprep.subr.bf16.mxu1 %v1430_v1  ;;  %v1187_v36 = vld [vmem:[%s1676_s2] ss:$0 sm:$0xff] }
  0x37   : > { %1307 = vmatprep.subr.bf16.mxu0 %v1430_v1 }
  0x38   : > { %1304 = vmatmul.mubr.msk.bf16.vlgmr.msra.gmra.mrb[8].mxu1 %vm251_vm1, %v641_v41 }
  0x39   : > { %1292 = vmatmul.mubr.msk.bf16.vlgmr.msra.gmra.mrb[8].mxu0 %vm251_vm1, %v554_v39  ;;  %1320 = vmatpush3.bf16.msra.mxu1 %v1395_v42 }
  0x3a   : > { %1308 = vmatpush3.bf16.msra.mxu0 %v1394_v40  ;;  %1321 = vmatprep.subr.bf16.mxu1 %v1430_v1 }
  0x3b   : > { %1309 = vmatprep.subr.bf16.mxu0 %v1430_v1  ;;  %1315 = vmatprep.mubr.msk.bf16.mxu0 %vm1431_vm0, %v1430_v1 }
  0x3c   : > { %1327 = vmatprep.mubr.msk.bf16.mxu1 %vm1431_vm0, %v1430_v1 }
  0x3d   : > { %1322 = vmatpush3.bf16.msra.mxu1 %v1397_v44 }
  0x3e   : > { %1310 = vmatpush3.bf16.msra.mxu0 %v1396_v43  ;;  %1323 = vmatprep.subr.bf16.mxu1 %v1430_v1 }
  0x3f   : > { %1311 = vmatprep.subr.bf16.mxu0 %v1430_v1 }
  0x41   : > { %1324 = vmatpush3.bf16.msra.mxu1 %v1399_v48 }
  0x42   : > { %1312 = vmatpush3.bf16.msra.mxu0 %v1398_v46  ;;  %1325 = vmatprep.subr.bf16.mxu1 %v1430_v1 }
  0x43   : > { %1313 = vmatprep.subr.bf16.mxu0 %v1430_v1 }
  0x45   : > { %1326 = vmatpush3.bf16.msra.mxu1 %v1401_v52 }
  0x46   : > { %1314 = vmatpush3.bf16.msra.mxu0 %v1400_v49 }
  0x47   : > { %1331 = vmatprep.subr.bf16.mxu0 %v1430_v1 }
  0x48   : > { %1328 = vmatmul.mubr.msk.bf16.vlgmr.msra.gmra.mrb[12].mxu1 %vm251_vm1, %v815_v55 }
  0x49   : > { %1316 = vmatmul.mubr.msk.bf16.vlgmr.msra.gmra.mrb[12].mxu0 %vm251_vm1, %v1143_v53 }
  0x4a   : > { %1332 = vmatpush3.bf16.msra.mxu0 %v1402_v54  ;;  %1339 = vmatprep.mubr.msk.bf16.mxu0 %vm1431_vm0, %v1430_v1 }
  0x4b   : > { %1333 = vmatprep.subr.bf16.mxu0 %v1430_v1 }
  0x4e   : > { %1334 = vmatpush3.bf16.msra.mxu0 %v1403_v56 }
  0x4f   : > { %1335 = vmatprep.subr.bf16.mxu0 %v1430_v1 }
  0x52   : > { %1336 = vmatpush3.bf16.msra.mxu0 %v1404_v57 }
  0x53   : > { %1337 = vmatprep.subr.bf16.mxu0 %v1430_v1 }
  0x56   : > { %1338 = vmatpush3.bf16.msra.mxu0 %v1405_v58 }
  0x59   : > { %1340 = vmatmul.mubr.msk.bf16.vlgmr.msra.gmra.mrb[16].mxu0 %vm251_vm1, %v902_v60 }
  0xeb   : > { %v356_v63 = vpop.f32.mrb[0].mxu1 }
  0xec   : > { %v289_v61 = vpop.f32.mrb[0].mxu0  ;;  %v1257_v3 = vpop.f32.mrb[1].mxu1 }
  0xed   : > { %v1245_v62 = vpop.f32.mrb[1].mxu0  ;;  %v357_v0 = vadd.f32 %v356_v63, %v289_v61  ;;  %v359_v5 = vpop.f32.mrb[2].mxu1 }
  0xee   : > { %v292_v2 = vpop.f32.mrb[2].mxu0  ;;  %v1258_v6 = vpop.f32.mrb[3].mxu1 }
  0xef   : > { %v1246_v4 = vpop.f32.mrb[3].mxu0 }
  0xfb   : > { %v523_v10 = vpop.f32.mrb[4].mxu1 }
  0xfc   : > { %v442_v7 = vpop.f32.mrb[4].mxu0  ;;  %v1281_v12 = vpop.f32.mrb[5].mxu1 }
  0xfd   : > { %v448_v8 = vadd.f32 %v442_v7, %v357_v0  ;;  %v1269_v9 = vpop.f32.mrb[5].mxu0  ;;  %v526_v14 = vpop.f32.mrb[6].mxu1 }
  0xfe   : > { %v445_v11 = vpop.f32.mrb[6].mxu0  ;;  %v1282_v15 = vpop.f32.mrb[7].mxu1 }
  0xff   : > { %v529_v1 = vadd.f32 %v523_v10, %v448_v8  ;;  %v1270_v13 = vpop.f32.mrb[7].mxu0 }
 0x10b   : > { %v703_v19 = vpop.f32.mrb[8].mxu1 }
 0x10c   : > { %v616_v16 = vpop.f32.mrb[8].mxu0  ;;  %v1305_v21 = vpop.f32.mrb[9].mxu1 }
 0x10d   : > { %v622_v17 = vadd.f32 %v616_v16, %v529_v1  ;;  %v1293_v18 = vpop.f32.mrb[9].mxu0  ;;  %v706_v24 = vpop.f32.mrb[10].mxu1 }
 0x10e   : > { %v619_v20 = vpop.f32.mrb[10].mxu0  ;;  %v1306_v25 = vpop.f32.mrb[11].mxu1 }
 0x10f   : > { %v709_v22 = vadd.f32 %v703_v19, %v622_v17  ;;  %v1294_v23 = vpop.f32.mrb[11].mxu0 }
 0x11b   : > { %v877_v29 = vpop.f32.mrb[12].mxu1 }
 0x11c   : > { %v784_v26 = vpop.f32.mrb[12].mxu0  ;;  %v1329_v31 = vpop.f32.mrb[13].mxu1 }
 0x11d   : > { %v790_v27 = vadd.f32 %v784_v26, %v709_v22  ;;  %v1317_v28 = vpop.f32.mrb[13].mxu0  ;;  %v880_v34 = vpop.f32.mrb[14].mxu1 }
 0x11e   : > { %v787_v30 = vpop.f32.mrb[14].mxu0  ;;  %v1330_v35 = vpop.f32.mrb[15].mxu1 }
 0x11f   : > { %v883_v32 = vadd.f32 %v877_v29, %v790_v27  ;;  %v1318_v33 = vpop.f32.mrb[15].mxu0 }
 0x12c   : > { %v964_v37 = vpop.f32.mrb[16].mxu0 }
 0x12d   : > { %v970_v38 = vadd.f32 %v964_v37, %v883_v32  ;;  %v1341_v39 = vpop.f32.mrb[17].mxu0 }
 0x12e   : > { %v967_v40 = vpop.f32.mrb[18].mxu0 }
 0x12f   : > { %v977_v41 = vadd.f32 %v1187_v36, %v970_v38  ;;  %v1342_v42 = vpop.f32.mrb[19].mxu0 }
 0x131   : > { %979 = vst.msk [vmem:[%s188_s29] sm:$0x3] %vm978_vm2, %v977_v41 }
 0x132 PF: > { %s13_s14 = sadd.s32 1, %s1428_s14   ;;  %s1678_s12 = smov %s1424_s13 }
 0x133   : > { %p10_p5 = scmp.ge.s32.totalorder %s13_s14, 4   ;;  %s1679_s13 = smov %s1681_s15 }
 0x135   :  { %12 = sbr.rel (!%p10_p5) target bundleno = 2 (0x2), region = 73 }

// kernel: ssd_forward.31
= control target key start
LH: loop header
LB: loop body
LE: loop exit
PB: predicated region body
PF: predicated region fallthrough
CT: control target
= control target key end

     0   :  { %s1418_s12 = smov 0   ;;  %s1420_s13 = smov 0   ;;  %s1642_s0 = inlined_call_operand.vmem [shape: bf16[2,3,3,64], index: 0, kind: input, shape index: {}]   ;;  %s1643_s1 = inlined_call_operand.vmem [shape: bf16[9,64,72], index: 1, kind: input, shape index: {}]   ;;  %s1644_s2 = inlined_call_operand.vmem [shape: f32[1,72], index: 2, kind: input, shape index: {}]   ;;  %s1645_s3 = inlined_call_operand.vmem [shape: f32[2,1,1,72], index: 3, kind: output, shape index: {}]  }
   0x1   :  { %s1422_s14 = smov 0  }
   0x2 LB: > { %s25_s15 = sadd.s32 1, %s1389_s13  ;;  %p1034_p0 = scmp.ge.s32.totalorder %s1393_s14, 1  ;;  %s1393_s14 = sphi %s1422_s14, %s13_s14   ;;  %s1389_s13 = sphi %s1420_s13, %s1647_s13   ;;  %s1385_s12 = sphi %s1418_s12, %s1646_s12  }
   0x3   : > { %p27_p1 = scmp.ge.s32.totalorder %s25_s15, 2  ;;  %p151_p2 = scmp.lt.s32.totalorder %s1393_s14, 3 }
   0x5   : > { %s1649_s15 = smov (%p27_p1, %s25_s15), 0  ;;  %p152_p3 = pnand %p1034_p0, %p151_p2 }
   0x6   : > { %v1335_v0 = vld [vmem:[%s1643_s1 + $0x20] sm:$0xff] (!%p152_p3)   ;;  %v1395_v1 = vmov (!%p152_p3), 0.0   ;;  %v1337_v3 = vld [vmem:[%s1643_s1 + $0x28] sm:$0xff] (!%p152_p3)   ;;  %vm1396_vm0 = vmmov (!%p152_p3), 0   ;;  %p176_p4 = scmp.lt.s32.totalorder (!%p152_p3), %s1385_s12, 1  ;;  %v213_v5 = vlaneseq (!%p152_p3)  ;;  %v1339_v6 = vld [vmem:[%s1643_s1 + $0x30] sm:$0xff] (!%p152_p3)  }
   0x7   : > { %155 = sbr.rel (%p152_p3) target bundleno = 304 (0x130), region = 32  ;;  %1199 = vmatprep.subr.bf16.mxu0 (!%p152_p3), %v1395_v1  ;;  %1211 = vmatprep.subr.bf16.mxu1 (!%p152_p3), %v1395_v1  ;;  %v1336_v2 = vld [vmem:[%s1643_s1] sm:$0xff] (!%p152_p3)   ;;  %v1338_v4 = vld [vmem:[%s1643_s1 + $0x8] sm:$0xff] (!%p152_p3)   ;;  %v1340_v7 = vld [vmem:[%s1643_s1 + $0x10] sm:$0xff] (!%p152_p3)   ;;  %v1397_v8 = vmov (!%p152_p3), 1983009808  }
   0x8   : > { %1200 = vmatpush3.bf16.msra.mxu0 (!%p152_p3), %v1335_v0  ;;  %1207 = vmatprep.mubr.msk.bf16.mxu0 (!%p152_p3), %vm1396_vm0, %v1395_v1  ;;  %v211_v9 = vunpack.c.l.s4 (!%p152_p3), %v1397_v8  ;;  %v214_v10 = vshrl.u32 (!%p152_p3), %v213_v5, 7  ;;  %v1341_v11 = vld [vmem:[%s1643_s1 + $0x38] sm:$0xff] (!%p152_p3)   ;;  %vm244_vm1 = vcmask (!%p152_p3), 523264   ;;  %v1344_v17 = vld [vmem:[%s1643_s1 + $0x60] sm:$0xff] (!%p152_p3)   ;;  %v1346_v20 = vld [vmem:[%s1643_s1 + $0x68] sm:$0xff] (!%p152_p3)   ;;  %vm955_vm2 = vcmask (!%p152_p3), 581632  }
   0x9   : > { %1212 = vmatpush3.bf16.msra.mxu1 (!%p152_p3), %v1336_v2  ;;  %1201 = vmatprep.subr.bf16.mxu0 (!%p152_p3), %v1395_v1  ;;  %v1342_v12 = vld [vmem:[%s1643_s1 + $0x18] sm:$0xff] (!%p152_p3)   ;;  %v1343_v18 = vld [vmem:[%s1643_s1 + $0x40] sm:$0xff] (!%p152_p3)   ;;  %v1345_v21 = vld [vmem:[%s1643_s1 + $0x48] sm:$0xff] (!%p152_p3)  }
   0xa   : > { %1213 = vmatprep.subr.bf16.mxu1 (!%p152_p3), %v1395_v1  ;;  %1219 = vmatprep.mubr.msk.bf16.mxu1 (!%p152_p3), %vm1396_vm0, %v1395_v1  ;;  %v212_v13 = vunpack.c.0.s8 (!%p152_p3), %v211_v9  ;;  %v1348_v22 = vld [vmem:[%s1643_s1 + $0x70] sm:$0xff] (!%p152_p3)   ;;  %v1350_v24 = vld [vmem:[%s1643_s1 + $0x78] sm:$0xff] (!%p152_p3)   ;;  %v1352_v29 = vld [vmem:[%s1643_s1 + $0xa0] sm:$0xff] (!%p152_p3)  }
   0xb   : > { %v1347_v23 = vld [vmem:[%s1643_s1 + $0x50] sm:$0xff] (!%p152_p3)   ;;  %v1349_v26 = vld [vmem:[%s1643_s1 + $0x58] sm:$0xff] (!%p152_p3)   ;;  %v1351_v30 = vld [vmem:[%s1643_s1 + $0x80] sm:$0xff] (!%p152_p3)  }
   0xc   : > { %1202 = vmatpush3.bf16.msra.mxu0 (!%p152_p3), %v1337_v3  ;;  %v1481_v15 = vsub.s32 (!%p152_p3), %v212_v13, %v214_v10  ;;  %v1354_v31 = vld [vmem:[%s1643_s1 + $0xa8] sm:$0xff] (!%p152_p3)   ;;  %v1356_v33 = vld [vmem:[%s1643_s1 + $0xb0] sm:$0xff] (!%p152_p3)   ;;  %v1358_v36 = vld [vmem:[%s1643_s1 + $0xb8] sm:$0xff] (!%p152_p3)  }
   0xd   : > { %1214 = vmatpush3.bf16.msra.mxu1 (!%p152_p3), %v1338_v4  ;;  %1203 = vmatprep.subr.bf16.mxu0 (!%p152_p3), %v1395_v1  ;;  %v1353_v32 = vld [vmem:[%s1643_s1 + $0x88] sm:$0xff] (!%p152_p3)   ;;  %v1355_v34 = vld [vmem:[%s1643_s1 + $0x90] sm:$0xff] (!%p152_p3)   ;;  %v1357_v38 = vld [vmem:[%s1643_s1 + $0x98] sm:$0xff] (!%p152_p3)  }
   0xe   : > { %s1651_s12 = smov (!%p176_p4, %s1385_s12), 1  ;;  %1215 = vmatprep.subr.bf16.mxu1 %v1395_v1  ;;  %v1360_v41 = vld [vmem:[%s1643_s1 + $0xe0] sm:$0xff]   ;;  %v1362_v43 = vld [vmem:[%s1643_s1 + $0xe8] sm:$0xff]   ;;  %v1364_v45 = vld [vmem:[%s1643_s1 + $0xf0] sm:$0xff]  }
   0xf   : > { %s1307_s26 = smul.u32 6, %s1651_s12  ;;  %v1359_v42 = vld [vmem:[%s1643_s1 + $0xc0] sm:$0xff]   ;;  %v1361_v44 = vld [vmem:[%s1643_s1 + $0xc8] sm:$0xff]   ;;  %v1363_v47 = vld [vmem:[%s1643_s1 + $0xd0] sm:$0xff]   ;;  %s186_s28 = scalar_lea.vmem %s1645_s3, %s1651_s12 }
  0x10   : > { %1204 = vmatpush3.bf16.msra.mxu0 %v1339_v6  ;;  %v1366_v49 = vld [vmem:[%s1643_s1 + $0xf8] sm:$0xff]   ;;  %v1367_v52 = vld [vmem:[%s1643_s1 + $0x100] sm:$0xff]   ;;  %v1368_v53 = vld [vmem:[%s1643_s1 + $0x108] sm:$0xff]  }
  0x11   : > { %s1470_s4 = scalar_lea.vmem %s1642_s0, %s1307_s26  ;;  %1216 = vmatpush3.bf16.msra.mxu1 %v1340_v7  ;;  %1205 = vmatprep.subr.bf16.mxu0 %v1395_v1  ;;  %v1365_v50 = vld [vmem:[%s1643_s1 + $0xd8] sm:$0xff]   ;;  %v1369_v54 = vld [vmem:[%s1643_s1 + $0x110] sm:$0xff]  }
  0x12   : > { %1217 = vmatprep.subr.bf16.mxu1 %v1395_v1  ;;  %v191_v14 = vld [vmem:[%s1470_s4] sm:$0x1]  ;;  %v1062_v25 = vld.sshfl [vmem:[%s1470_s4] sm:$0x2 pattern:$0x76325410] }
  0x13   : > { %v216_v16 = vrot.slane %v191_v14, %v1481_v15  ;;  %v1068_v27 = vld [vmem:[%s1470_s4 + $0x2] sm:$0x1]  ;;  %v373_v28 = vrot.slane %v1062_v25, 1  ;;  %v1110_v46 = vld [vmem:[%s1470_s4 + $0x4] sm:$0x1]  ;;  %v1370_v55 = vld [vmem:[%s1643_s1 + $0x118] sm:$0xff]  }
  0x14   : > { %1206 = vmatpush3.bf16.msra.mxu0 %v1341_v11  ;;  %v539_v35 = vrot.slane %v1068_v27, %v1481_v15  ;;  %v1104_v37 = vld.sshfl [vmem:[%s1470_s4 + $0x2] sm:$0x2 pattern:$0x76325410]  ;;  %v795_v48 = vrot.slane %v1110_v46, %v1481_v15 }
  0x15   : > { %1218 = vmatpush3.bf16.msra.mxu1 %v1342_v12  ;;  %1223 = vmatprep.subr.bf16.mxu0 %v1395_v1  ;;  %v218_v19 = vshrl.u32 %v216_v16, 16  ;;  %v629_v39 = vrot.slane %v1104_v37, 1  ;;  %v1146_v56 = vld.sshfl [vmem:[%s1470_s4 + $0x4] sm:$0x2 pattern:$0x76325410] }
  0x16   : > { %1235 = vmatprep.subr.bf16.mxu1 %v1395_v1  ;;  %v541_v40 = vshrl.u32 %v539_v35, 16  ;;  %v797_v51 = vshrl.u32 %v795_v48, 16  ;;  %v885_v57 = vrot.slane %v1146_v56, 1 }
  0x17   : > { %1208 = vmatmul.mubr.msk.bf16.vlgmr.msra.gmra.mrb[0].mxu0 %vm244_vm1, %v218_v19 }
  0x18   : > { %1220 = vmatmul.mubr.msk.bf16.vlgmr.msra.gmra.mrb[0].mxu1 %vm244_vm1, %v191_v14  ;;  %1224 = vmatpush3.bf16.msra.mxu0 %v1343_v18 }
  0x19   : > { %1236 = vmatpush3.bf16.msra.mxu1 %v1344_v17  ;;  %1225 = vmatprep.subr.bf16.mxu0 %v1395_v1 }
  0x1a   : > { %1237 = vmatprep.subr.bf16.mxu1 %v1395_v1  ;;  %1231 = vmatprep.mubr.msk.bf16.mxu0 %vm1396_vm0, %v1395_v1 }
  0x1b   : > { %1243 = vmatprep.mubr.msk.bf16.mxu1 %vm1396_vm0, %v1395_v1 }
  0x1c   : > { %1226 = vmatpush3.bf16.msra.mxu0 %v1345_v21 }
  0x1d   : > { %1238 = vmatpush3.bf16.msra.mxu1 %v1346_v20  ;;  %1227 = vmatprep.subr.bf16.mxu0 %v1395_v1 }
  0x1e   : > { %1239 = vmatprep.subr.bf16.mxu1 %v1395_v1 }
  0x20   : > { %1228 = vmatpush3.bf16.msra.mxu0 %v1347_v23 }
  0x21   : > { %1240 = vmatpush3.bf16.msra.mxu1 %v1348_v22  ;;  %1229 = vmatprep.subr.bf16.mxu0 %v1395_v1 }
  0x22   : > { %1241 = vmatprep.subr.bf16.mxu1 %v1395_v1 }
  0x24   : > { %1230 = vmatpush3.bf16.msra.mxu0 %v1349_v26 }
  0x25   : > { %1242 = vmatpush3.bf16.msra.mxu1 %v1350_v24  ;;  %1247 = vmatprep.subr.bf16.mxu0 %v1395_v1 }
  0x26   : > { %1259 = vmatprep.subr.bf16.mxu1 %v1395_v1 }
  0x27   : > { %1232 = vmatmul.mubr.msk.bf16.vlgmr.msra.gmra.mrb[4].mxu0 %vm244_vm1, %v373_v28 }
  0x28   : > { %1244 = vmatmul.mubr.msk.bf16.vlgmr.msra.gmra.mrb[4].mxu1 %vm244_vm1, %v1068_v27  ;;  %1248 = vmatpush3.bf16.msra.mxu0 %v1351_v30 }
  0x29   : > { %1260 = vmatpush3.bf16.msra.mxu1 %v1352_v29  ;;  %1249 = vmatprep.subr.bf16.mxu0 %v1395_v1 }
  0x2a   : > { %1261 = vmatprep.subr.bf16.mxu1 %v1395_v1  ;;  %1255 = vmatprep.mubr.msk.bf16.mxu0 %vm1396_vm0, %v1395_v1 }
  0x2b   : > { %1267 = vmatprep.mubr.msk.bf16.mxu1 %vm1396_vm0, %v1395_v1 }
  0x2c   : > { %1250 = vmatpush3.bf16.msra.mxu0 %v1353_v32 }
  0x2d   : > { %1262 = vmatpush3.bf16.msra.mxu1 %v1354_v31  ;;  %1251 = vmatprep.subr.bf16.mxu0 %v1395_v1 }
  0x2e   : > { %1263 = vmatprep.subr.bf16.mxu1 %v1395_v1 }
  0x30   : > { %1252 = vmatpush3.bf16.msra.mxu0 %v1355_v34 }
  0x31   : > { %1264 = vmatpush3.bf16.msra.mxu1 %v1356_v33  ;;  %1253 = vmatprep.subr.bf16.mxu0 %v1395_v1  ;;  %v188_v33 = vld [vmem:[%s1644_s2] sm:$0x1] }
  0x32   : > { %1265 = vmatprep.subr.bf16.mxu1 %v1395_v1 }
  0x34   : > { %1254 = vmatpush3.bf16.msra.mxu0 %v1357_v38 }
  0x35   : > { %1266 = vmatpush3.bf16.msra.mxu1 %v1358_v36  ;;  %1271 = vmatprep.subr.bf16.mxu0 %v1395_v1 }
  0x36   : > { %1283 = vmatprep.subr.bf16.mxu1 %v1395_v1 }
  0x37   : > { %1256 = vmatmul.mubr.msk.bf16.vlgmr.msra.gmra.mrb[8].mxu0 %vm244_vm1, %v541_v40 }
  0x38   : > { %1268 = vmatmul.mubr.msk.bf16.vlgmr.msra.gmra.mrb[8].mxu1 %vm244_vm1, %v629_v39  ;;  %1272 = vmatpush3.bf16.msra.mxu0 %v1359_v42 }
  0x39   : > { %1284 = vmatpush3.bf16.msra.mxu1 %v1360_v41  ;;  %1273 = vmatprep.subr.bf16.mxu0 %v1395_v1 }
  0x3a   : > { %1285 = vmatprep.subr.bf16.mxu1 %v1395_v1  ;;  %1279 = vmatprep.mubr.msk.bf16.mxu0 %vm1396_vm0, %v1395_v1 }
  0x3b   : > { %1291 = vmatprep.mubr.msk.bf16.mxu1 %vm1396_vm0, %v1395_v1 }
  0x3c   : > { %1274 = vmatpush3.bf16.msra.mxu0 %v1361_v44 }
  0x3d   : > { %1286 = vmatpush3.bf16.msra.mxu1 %v1362_v43  ;;  %1275 = vmatprep.subr.bf16.mxu0 %v1395_v1 }
  0x3e   : > { %1287 = vmatprep.subr.bf16.mxu1 %v1395_v1 }
  0x40   : > { %1276 = vmatpush3.bf16.msra.mxu0 %v1363_v47 }
  0x41   : > { %1288 = vmatpush3.bf16.msra.mxu1 %v1364_v45  ;;  %1277 = vmatprep.subr.bf16.mxu0 %v1395_v1 }
  0x42   : > { %1289 = vmatprep.subr.bf16.mxu1 %v1395_v1 }
  0x44   : > { %1278 = vmatpush3.bf16.msra.mxu0 %v1365_v50 }
  0x45   : > { %1290 = vmatpush3.bf16.msra.mxu1 %v1366_v49  ;;  %1295 = vmatprep.subr.bf16.mxu0 %v1395_v1 }
  0x47   : > { %1280 = vmatmul.mubr.msk.bf16.vlgmr.msra.gmra.mrb[12].mxu0 %vm244_vm1, %v1110_v46 }
  0x48   : > { %1292 = vmatmul.mubr.msk.bf16.vlgmr.msra.gmra.mrb[12].mxu1 %vm244_vm1, %v797_v51  ;;  %1296 = vmatpush3.bf16.msra.mxu0 %v1367_v52 }
  0x49   : > { %1303 = vmatprep.mubr.msk.bf16.mxu0 %vm1396_vm0, %v1395_v1  ;;  %1297 = vmatprep.subr.bf16.mxu0 %v1395_v1 }
  0x4c   : > { %1298 = vmatpush3.bf16.msra.mxu0 %v1368_v53 }
  0x4d   : > { %1299 = vmatprep.subr.bf16.mxu0 %v1395_v1 }
  0x50   : > { %1300 = vmatpush3.bf16.msra.mxu0 %v1369_v54 }
  0x51   : > { %1301 = vmatprep.subr.bf16.mxu0 %v1395_v1 }
  0x54   : > { %1302 = vmatpush3.bf16.msra.mxu0 %v1370_v55 }
  0x57   : > { %1304 = vmatmul.mubr.msk.bf16.vlgmr.msra.gmra.mrb[16].mxu0 %vm244_vm1, %v885_v57 }
  0xea   : > { %v282_v59 = vpop.f32.mrb[0].mxu0 }
  0xeb   : > { %v349_v58 = vpop.f32.mrb[0].mxu1  ;;  %v1209_v61 = vpop.f32.mrb[1].mxu0 }
  0xec   : > { %v1221_v60 = vpop.f32.mrb[1].mxu1  ;;  %v350_v62 = vadd.f32 %v349_v58, %v282_v59  ;;  %v285_v0 = vpop.f32.mrb[2].mxu0 }
  0xed   : > { %v352_v63 = vpop.f32.mrb[2].mxu1  ;;  %v1210_v3 = vpop.f32.mrb[3].mxu0 }
  0xee   : > { %v1222_v2 = vpop.f32.mrb[3].mxu1 }
  0xfa   : > { %v435_v5 = vpop.f32.mrb[4].mxu0 }
  0xfb   : > { %v516_v4 = vpop.f32.mrb[4].mxu1  ;;  %v441_v7 = vadd.f32 %v435_v5, %v350_v62  ;;  %v1233_v8 = vpop.f32.mrb[5].mxu0 }
  0xfc   : > { %v1245_v6 = vpop.f32.mrb[5].mxu1  ;;  %v438_v1 = vpop.f32.mrb[6].mxu0 }
  0xfd   : > { %v519_v9 = vpop.f32.mrb[6].mxu1  ;;  %v522_v11 = vadd.f32 %v516_v4, %v441_v7  ;;  %v1234_v12 = vpop.f32.mrb[7].mxu0 }
  0xfe   : > { %v1246_v10 = vpop.f32.mrb[7].mxu1 }
 0x10a   : > { %v604_v14 = vpop.f32.mrb[8].mxu0 }
 0x10b   : > { %v691_v13 = vpop.f32.mrb[8].mxu1  ;;  %v610_v16 = vadd.f32 %v604_v14, %v522_v11  ;;  %v1257_v17 = vpop.f32.mrb[9].mxu0 }
 0x10c   : > { %v1269_v15 = vpop.f32.mrb[9].mxu1  ;;  %v607_v19 = vpop.f32.mrb[10].mxu0 }
 0x10d   : > { %v694_v18 = vpop.f32.mrb[10].mxu1  ;;  %v697_v21 = vadd.f32 %v691_v13, %v610_v16  ;;  %v1258_v22 = vpop.f32.mrb[11].mxu0 }
 0x10e   : > { %v1270_v20 = vpop.f32.mrb[11].mxu1 }
 0x11a   : > { %v772_v24 = vpop.f32.mrb[12].mxu0 }
 0x11b   : > { %v860_v23 = vpop.f32.mrb[12].mxu1  ;;  %v778_v26 = vadd.f32 %v772_v24, %v697_v21  ;;  %v1281_v27 = vpop.f32.mrb[13].mxu0 }
 0x11c   : > { %v1293_v25 = vpop.f32.mrb[13].mxu1  ;;  %v775_v29 = vpop.f32.mrb[14].mxu0 }
 0x11d   : > { %v863_v28 = vpop.f32.mrb[14].mxu1  ;;  %v866_v31 = vadd.f32 %v860_v23, %v778_v26  ;;  %v1282_v32 = vpop.f32.mrb[15].mxu0 }
 0x11e   : > { %v1294_v30 = vpop.f32.mrb[15].mxu1 }
 0x12a   : > { %v947_v34 = vpop.f32.mrb[16].mxu0 }
 0x12b   : > { %v953_v35 = vadd.f32 %v947_v34, %v866_v31  ;;  %v1305_v36 = vpop.f32.mrb[17].mxu0 }
 0x12c   : > { %v950_v37 = vpop.f32.mrb[18].mxu0 }
 0x12d   : > { %v954_v38 = vadd.f32 %v953_v35, %v188_v33  ;;  %v1306_v39 = vpop.f32.mrb[19].mxu0 }
 0x12f   : > { %956 = vst.msk [vmem:[%s186_s28] sm:$0x1] %vm955_vm2, %v954_v38 }
 0x130 PF: > { %s13_s14 = sadd.s32 1, %s1393_s14   ;;  %s1646_s12 = smov %s1389_s13 }
 0x131   : > { %p10_p5 = scmp.ge.s32.totalorder %s13_s14, 4   ;;  %s1647_s13 = smov %s1649_s15 }
 0x133   :  { %12 = sbr.rel (!%p10_p5) target bundleno = 2 (0x2), region = 73 }

// kernel: ssd_forward.24
= control target key start
LH: loop header
LB: loop body
LE: loop exit
PB: predicated region body
PF: predicated region fallthrough
CT: control target
= control target key end

     0   :  { %s1038_s12 = smov 0   ;;  %s1040_s13 = smov 0   ;;  %s1228_s0 = inlined_call_operand.vmem [shape: bf16[2,2,2,128], index: 0, kind: input, shape index: {}]   ;;  %s1229_s1 = inlined_call_operand.vmem [shape: bf16[4,128,64], index: 1, kind: input, shape index: {}]   ;;  %s1230_s2 = inlined_call_operand.vmem [shape: f32[1,64], index: 2, kind: input, shape index: {}]   ;;  %s1231_s3 = inlined_call_operand.vmem [shape: bf16[2,1,1,64], index: 3, kind: output, shape index: {}]  }
   0x1   :  { %s1042_s14 = smov 0  }
   0x2 LB: > { %s25_s15 = sadd.s32 1, %s1009_s13  ;;  %p731_p0 = scmp.ge.s32.totalorder %s1013_s14, 1  ;;  %s1013_s14 = sphi %s1042_s14, %s13_s14   ;;  %s1009_s13 = sphi %s1040_s13, %s1233_s13   ;;  %s1005_s12 = sphi %s1038_s12, %s1232_s12  }
   0x3   : > { %p27_p1 = scmp.ge.s32.totalorder %s25_s15, 2  ;;  %p150_p2 = scmp.lt.s32.totalorder %s1013_s14, 3 }
   0x5   : > { %s1235_s15 = smov (%p27_p1, %s25_s15), 0  ;;  %p151_p3 = pnand %p731_p0, %p150_p2 }
   0x6   : > { %v959_v0 = vld [vmem:[%s1229_s1 + $0x40] sm:$0xff] (!%p151_p3)   ;;  %v1015_v1 = vmov (!%p151_p3), 0.0   ;;  %v961_v3 = vld [vmem:[%s1229_s1 + $0x48] sm:$0xff] (!%p151_p3)   ;;  %vm1016_vm0 = vmmov (!%p151_p3), 0   ;;  %v963_v5 = vld [vmem:[%s1229_s1 + $0x50] sm:$0xff] (!%p151_p3)   ;;  %p174_p4 = scmp.lt.s32.totalorder (!%p151_p3), %s1005_s12, 1  ;;  %v225_v9 = vlaneseq (!%p151_p3) }
   0x7   : > { %154 = sbr.rel (%p151_p3) target bundleno = 295 (0x127), region = 32  ;;  %852 = vmatprep.subr.bf16.mxu0 (!%p151_p3), %v1015_v1  ;;  %872 = vmatprep.subr.bf16.mxu1 (!%p151_p3), %v1015_v1  ;;  %v960_v2 = vld [vmem:[%s1229_s1] sm:$0xff] (!%p151_p3)   ;;  %v962_v4 = vld [vmem:[%s1229_s1 + $0x8] sm:$0xff] (!%p151_p3)   ;;  %v964_v6 = vld [vmem:[%s1229_s1 + $0x10] sm:$0xff] (!%p151_p3)   ;;  %v1017_v12 = vmov (!%p151_p3), 1966171168  }
   0x8   : > { %853 = vmatpush3.bf16.msra.mxu0 (!%p151_p3), %v959_v0  ;;  %868 = vmatprep.mubr.msk.bf16.mxu0 (!%p151_p3), %vm1016_vm0, %v1015_v1  ;;  %v965_v7 = vld [vmem:[%s1229_s1 + $0x58] sm:$0xff] (!%p151_p3)   ;;  %v967_v10 = vld [vmem:[%s1229_s1 + $0x60] sm:$0xff] (!%p151_p3)   ;;  %v223_v13 = vunpack.c.l.s4 (!%p151_p3), %v1017_v12  ;;  %v226_v14 = vshrl.u32 (!%p151_p3), %v225_v9, 7  ;;  %v969_v15 = vld [vmem:[%s1229_s1 + $0x68] sm:$0xff] (!%p151_p3)   ;;  %vm653_vm1 = vcmask (!%p151_p3), 516096  }
   0x9   : > { %873 = vmatpush3.bf16.msra.mxu1 (!%p151_p3), %v960_v2  ;;  %854 = vmatprep.subr.bf16.mxu0 (!%p151_p3), %v1015_v1  ;;  %v966_v8 = vld [vmem:[%s1229_s1 + $0x18] sm:$0xff] (!%p151_p3)   ;;  %v968_v11 = vld [vmem:[%s1229_s1 + $0x20] sm:$0xff] (!%p151_p3)   ;;  %v970_v16 = vld [vmem:[%s1229_s1 + $0x28] sm:$0xff] (!%p151_p3)   ;;  %vm654_vm2 = vsmask.f32 (!%p151_p3), 256 }
   0xa   : > { %874 = vmatprep.subr.bf16.mxu1 (!%p151_p3), %v1015_v1  ;;  %888 = vmatprep.mubr.msk.bf16.mxu1 (!%p151_p3), %vm1016_vm0, %v1015_v1  ;;  %v224_v17 = vunpack.c.0.s8 (!%p151_p3), %v223_v13  ;;  %v971_v20 = vld [vmem:[%s1229_s1 + $0x70] sm:$0xff] (!%p151_p3)   ;;  %v973_v24 = vld [vmem:[%s1229_s1 + $0x78] sm:$0xff] (!%p151_p3)   ;;  %v975_v27 = vld [vmem:[%s1229_s1 + $0x80] sm:$0xff] (!%p151_p3)  }
   0xb   : > { %v972_v21 = vld [vmem:[%s1229_s1 + $0x30] sm:$0xff] (!%p151_p3)   ;;  %v974_v25 = vld [vmem:[%s1229_s1 + $0x38] sm:$0xff] (!%p151_p3)   ;;  %v976_v28 = vld [vmem:[%s1229_s1 + $0xc0] sm:$0xff] (!%p151_p3)  }
   0xc   : > { %855 = vmatpush3.bf16.msra.mxu0 (!%p151_p3), %v961_v3  ;;  %v1121_v19 = vsub.s32 (!%p151_p3), %v224_v17, %v226_v14  ;;  %v977_v29 = vld [vmem:[%s1229_s1 + $0x88] sm:$0xff] (!%p151_p3)   ;;  %v979_v31 = vld [vmem:[%s1229_s1 + $0x90] sm:$0xff] (!%p151_p3)   ;;  %v981_v33 = vld [vmem:[%s1229_s1 + $0x98] sm:$0xff] (!%p151_p3)  }
   0xd   : > { %875 = vmatpush3.bf16.msra.mxu1 (!%p151_p3), %v962_v4  ;;  %856 = vmatprep.subr.bf16.mxu0 (!%p151_p3), %v1015_v1  ;;  %v978_v30 = vld [vmem:[%s1229_s1 + $0xc8] sm:$0xff] (!%p151_p3)   ;;  %v980_v32 = vld [vmem:[%s1229_s1 + $0xd0] sm:$0xff] (!%p151_p3)   ;;  %v982_v34 = vld [vmem:[%s1229_s1 + $0xd8] sm:$0xff] (!%p151_p3)  }
   0xe   : > { %876 = vmatprep.subr.bf16.mxu1 %v1015_v1  ;;  %s1237_s12 = smov (!%p174_p4, %s1005_s12), 1  ;;  %v983_v35 = vld [vmem:[%s1229_s1 + $0xa0] sm:$0xff]   ;;  %v985_v37 = vld [vmem:[%s1229_s1 + $0xa8] sm:$0xff]   ;;  %v987_v40 = vld [vmem:[%s1229_s1 + $0xb0] sm:$0xff]  }
   0xf   : > { %s732_s7 = sshll.u32 %s1237_s12, 1  ;;  %v984_v36 = vld [vmem:[%s1229_s1 + $0xe0] sm:$0xff]   ;;  %v986_v38 = vld [vmem:[%s1229_s1 + $0xe8] sm:$0xff]   ;;  %v988_v42 = vld [vmem:[%s1229_s1 + $0xf0] sm:$0xff]   ;;  %s183_s20 = scalar_lea.vmem %s1231_s3, %s1237_s12 }
  0x10   : > { %857 = vmatpush3.bf16.msra.mxu0 %v963_v5  ;;  %s1110_s16 = scalar_lea.vmem %s1228_s0, %s732_s7  ;;  %v989_v43 = vld [vmem:[%s1229_s1 + $0xb8] sm:$0xff]   ;;  %v185_v60 = vld [vmem:[%s1230_s2] sm:$0x1]  ;;  %vm655_vm3 = vmand %vm653_vm1, %vm654_vm2 }
  0x11   : > { %877 = vmatpush3.bf16.msra.mxu1 %v964_v6  ;;  %858 = vmatprep.subr.bf16.mxu0 %v1015_v1  ;;  %v187_v18 = vld [vmem:[%s1110_s16] sm:$0x1]  ;;  %v765_v39 = vld [vmem:[%s1110_s16 + $0x1] sm:$0x1]  ;;  %v990_v45 = vld [vmem:[%s1229_s1 + $0xf8] sm:$0xff]  }
  0x12   : > { %878 = vmatprep.subr.bf16.mxu1 %v1015_v1  ;;  %v228_v22 = vrot.slane %v187_v18, %v1121_v19  ;;  %v549_v41 = vrot.slane %v765_v39, %v1121_v19  ;;  %v656_v5 = vld [vmem:[%s183_s20] sm:$0x1] }
  0x14   : > { %859 = vmatpush3.bf16.msra.mxu0 %v965_v7  ;;  %v235_v23 = vrot.slane %v228_v22, %v1121_v19  ;;  %v556_v44 = vrot.slane %v549_v41, %v1121_v19 }
  0x15   : > { %879 = vmatpush3.bf16.msra.mxu1 %v966_v8  ;;  %860 = vmatprep.subr.bf16.mxu0 %v1015_v1 }
  0x16   : > { %880 = vmatprep.subr.bf16.mxu1 %v1015_v1  ;;  %v237_v26 = vshrl.u32 %v235_v23, 16  ;;  %v558_v46 = vshrl.u32 %v556_v44, 16 }
  0x18   : > { %861 = vmatpush3.bf16.msra.mxu0 %v967_v10 }
  0x19   : > { %881 = vmatpush3.bf16.msra.mxu1 %v968_v11  ;;  %862 = vmatprep.subr.bf16.mxu0 %v1015_v1 }
  0x1a   : > { %882 = vmatprep.subr.bf16.mxu1 %v1015_v1 }
  0x1c   : > { %863 = vmatpush3.bf16.msra.mxu0 %v969_v15 }
  0x1d   : > { %883 = vmatpush3.bf16.msra.mxu1 %v970_v16  ;;  %864 = vmatprep.subr.bf16.mxu0 %v1015_v1 }
  0x1e   : > { %884 = vmatprep.subr.bf16.mxu1 %v1015_v1 }
  0x20   : > { %865 = vmatpush3.bf16.msra.mxu0 %v971_v20 }
  0x21   : > { %885 = vmatpush3.bf16.msra.mxu1 %v972_v21  ;;  %866 = vmatprep.subr.bf16.mxu0 %v1015_v1 }
  0x22   : > { %886 = vmatprep.subr.bf16.mxu1 %v1015_v1 }
  0x24   : > { %867 = vmatpush3.bf16.msra.mxu0 %v973_v24 }
  0x25   : > { %887 = vmatpush3.bf16.msra.mxu1 %v974_v25  ;;  %892 = vmatprep.subr.bf16.mxu0 %v1015_v1 }
  0x26   : > { %912 = vmatprep.subr.bf16.mxu1 %v1015_v1 }
  0x27   : > { %869 = vmatmul.mubr.bf16.vlgmr.msra.gmra.mrb[0].mxu0 %v237_v26 }
  0x28   : > { %889 = vmatmul.mubr.bf16.vlgmr.msra.gmra.mrb[0].mxu1 %v187_v18  ;;  %893 = vmatpush3.bf16.msra.mxu0 %v975_v27 }
  0x29   : > { %913 = vmatpush3.bf16.msra.mxu1 %v976_v28  ;;  %894 = vmatprep.subr.bf16.mxu0 %v1015_v1 }
  0x2a   : > { %914 = vmatprep.subr.bf16.mxu1 %v1015_v1  ;;  %908 = vmatprep.mubr.msk.bf16.mxu0 %vm1016_vm0, %v1015_v1 }
  0x2b   : > { %928 = vmatprep.mubr.msk.bf16.mxu1 %vm1016_vm0, %v1015_v1 }
  0x2c   : > { %895 = vmatpush3.bf16.msra.mxu0 %v977_v29 }
  0x2d   : > { %915 = vmatpush3.bf16.msra.mxu1 %v978_v30  ;;  %896 = vmatprep.subr.bf16.mxu0 %v1015_v1 }
  0x2e   : > { %916 = vmatprep.subr.bf16.mxu1 %v1015_v1 }
  0x30   : > { %897 = vmatpush3.bf16.msra.mxu0 %v979_v31 }
  0x31   : > { %917 = vmatpush3.bf16.msra.mxu1 %v980_v32  ;;  %898 = vmatprep.subr.bf16.mxu0 %v1015_v1 }
  0x32   : > { %918 = vmatprep.subr.bf16.mxu1 %v1015_v1 }
  0x34   : > { %899 = vmatpush3.bf16.msra.mxu0 %v981_v33 }
  0x35   : > { %919 = vmatpush3.bf16.msra.mxu1 %v982_v34  ;;  %900 = vmatprep.subr.bf16.mxu0 %v1015_v1 }
  0x36   : > { %920 = vmatprep.subr.bf16.mxu1 %v1015_v1 }
  0x38   : > { %901 = vmatpush3.bf16.msra.mxu0 %v983_v35 }
  0x39   : > { %921 = vmatpush3.bf16.msra.mxu1 %v984_v36  ;;  %902 = vmatprep.subr.bf16.mxu0 %v1015_v1 }
  0x3a   : > { %922 = vmatprep.subr.bf16.mxu1 %v1015_v1 }
  0x3c   : > { %903 = vmatpush3.bf16.msra.mxu0 %v985_v37 }
  0x3d   : > { %923 = vmatpush3.bf16.msra.mxu1 %v986_v38  ;;  %904 = vmatprep.subr.bf16.mxu0 %v1015_v1 }
  0x3e   : > { %924 = vmatprep.subr.bf16.mxu1 %v1015_v1 }
  0x40   : > { %905 = vmatpush3.bf16.msra.mxu0 %v987_v40 }
  0x41   : > { %925 = vmatpush3.bf16.msra.mxu1 %v988_v42  ;;  %906 = vmatprep.subr.bf16.mxu0 %v1015_v1 }
  0x42   : > { %926 = vmatprep.subr.bf16.mxu1 %v1015_v1 }
  0x44   : > { %907 = vmatpush3.bf16.msra.mxu0 %v989_v43 }
  0x45   : > { %927 = vmatpush3.bf16.msra.mxu1 %v990_v45 }
  0x47   : > { %909 = vmatmul.mubr.bf16.vlgmr.msra.gmra.mrb[4].mxu0 %v765_v39 }
  0x48   : > { %929 = vmatmul.mubr.bf16.vlgmr.msra.gmra.mrb[4].mxu1 %v558_v46 }
  0xfa   : > { %v322_v47 = vpop.f32.mrb[0].mxu0 }
  0xfb   : > { %v410_v48 = vpop.f32.mrb[0].mxu1  ;;  %v870_v49 = vpop.f32.mrb[1].mxu0 }
  0xfc   : > { %v411_v50 = vadd.f32 %v410_v48, %v322_v47  ;;  %v890_v51 = vpop.f32.mrb[1].mxu1  ;;  %v325_v52 = vpop.f32.mrb[2].mxu0 }
  0xfd   : > { %v413_v53 = vpop.f32.mrb[2].mxu1  ;;  %v871_v54 = vpop.f32.mrb[3].mxu0 }
  0xfe   : > { %v891_v55 = vpop.f32.mrb[3].mxu1 }
 0x11a   : > { %v518_v56 = vpop.f32.mrb[4].mxu0 }
 0x11b   : > { %v524_v57 = vadd.f32 %v518_v56, %v411_v50  ;;  %v643_v58 = vpop.f32.mrb[4].mxu1  ;;  %v910_v59 = vpop.f32.mrb[5].mxu0 }
 0x11c   : > { %v930_v61 = vpop.f32.mrb[5].mxu1  ;;  %v521_v62 = vpop.f32.mrb[6].mxu0 }
 0x11d   : > { %v649_v63 = vadd.f32 %v643_v58, %v524_v57  ;;  %v646_v0 = vpop.f32.mrb[6].mxu1  ;;  %v911_v1 = vpop.f32.mrb[7].mxu0 }
 0x11e   : > { %v931_v2 = vpop.f32.mrb[7].mxu1 }
 0x11f   : > { %v650_v3 = vadd.f32 %v649_v63, %v185_v60 }
 0x121   : > { %v651_v4 = vmax.f32 %v650_v3, 0.0 }
 0x123   : > { %v652_v6 = vpack.c.bf16 %v651_v4, %v651_v4 }
 0x125   : > { %v657_v7 = vsel %vm655_vm3, %v652_v6, %v656_v5 }
 0x126   : > { %658 = vst [vmem:[%s183_s20] sm:$0x1] %v657_v7 }
 0x127 PF: > { %s13_s14 = sadd.s32 1, %s1013_s14   ;;  %s1232_s12 = smov %s1009_s13 }
 0x128   : > { %p10_p5 = scmp.ge.s32.totalorder %s13_s14, 4   ;;  %s1233_s13 = smov %s1235_s15 }
 0x12a   :  { %12 = sbr.rel (!%p10_p5) target bundleno = 2 (0x2), region = 67 }

// kernel: ssd_forward.25
= control target key start
LH: loop header
LB: loop body
LE: loop exit
PB: predicated region body
PF: predicated region fallthrough
CT: control target
= control target key end

     0   :  { %s437_s12 = smov 0   ;;  %s439_s13 = smov 0   ;;  %s485_s0 = inlined_call_operand.vmem [shape: bf16[2,1,1,64], index: 0, kind: input, shape index: {}]   ;;  %s486_s1 = inlined_call_operand.vmem [shape: bf16[1,64,16], index: 1, kind: input, shape index: {}]   ;;  %s487_s2 = inlined_call_operand.vmem [shape: f32[1,16], index: 2, kind: input, shape index: {}]   ;;  %s488_s3 = inlined_call_operand.vmem [shape: bf16[2,1,1,16], index: 3, kind: output, shape index: {}]  }
   0x1   :  { %s441_s14 = smov 0  }
   0x2 LB: > { %s25_s15 = sadd.s32 1, %s409_s13  ;;  %p336_p0 = scmp.ge.s32.totalorder %s413_s14, 1  ;;  %s413_s14 = sphi %s441_s14, %s13_s14   ;;  %s409_s13 = sphi %s439_s13, %s490_s13   ;;  %s405_s12 = sphi %s437_s12, %s489_s12  }
   0x3   : > { %p27_p1 = scmp.ge.s32.totalorder %s25_s15, 2  ;;  %p149_p2 = scmp.lt.s32.totalorder %s413_s14, 3 }
   0x5   : > { %s492_s15 = smov (%p27_p1, %s25_s15), 0  ;;  %p150_p3 = pnand %p336_p0, %p149_p2 }
   0x6   : > { %v387_v0 = vld [vmem:[%s486_s1] sm:$0xff] (!%p150_p3)   ;;  %v415_v1 = vmov (!%p150_p3), 0.0   ;;  %v388_v2 = vld [vmem:[%s486_s1 + $0x8] sm:$0xff] (!%p150_p3)   ;;  %vm416_vm0 = vmmov (!%p150_p3), 0   ;;  %p172_p4 = scmp.lt.s32.totalorder (!%p150_p3), %s405_s12, 1  ;;  %v389_v3 = vld [vmem:[%s486_s1 + $0x10] sm:$0xff] (!%p150_p3)  }
   0x7   : > { %153 = sbr.rel (%p150_p3) target bundleno = 243 (0xf3), region = 32  ;;  %349 = vmatprep.subr.bf16.mxu0 (!%p150_p3), %v415_v1  ;;  %357 = vmatprep.mubr.msk.bf16.mxu0 (!%p150_p3), %vm416_vm0, %v415_v1  ;;  %v390_v4 = vld [vmem:[%s486_s1 + $0x18] sm:$0xff] (!%p150_p3)   ;;  %vm217_vm1 = vcmask (!%p150_p3), 523264   ;;  %v182_v6 = vld [vmem:[%s487_s2] sm:$0x1] (!%p150_p3)  ;;  %vm263_vm2 = vcmask (!%p150_p3), 122880  }
   0x8   : > { %350 = vmatpush3.bf16.msra.mxu0 (!%p150_p3), %v387_v0  ;;  %vm264_vm3 = vsmask.f32 (!%p150_p3), 256 }
   0x9   : > { %351 = vmatprep.subr.bf16.mxu0 (!%p150_p3), %v415_v1  ;;  %vm265_vm4 = vmand (!%p150_p3), %vm263_vm2, %vm264_vm3 }
   0xc   : > { %352 = vmatpush3.bf16.msra.mxu0 (!%p150_p3), %v388_v2 }
   0xd   : > { %353 = vmatprep.subr.bf16.mxu0 (!%p150_p3), %v415_v1 }
   0xe   : > { %s494_s12 = smov (!%p172_p4, %s405_s12), 1 }
   0xf   : > { %s174_s26 = scalar_lea.vmem %s485_s0, %s494_s12  ;;  %s180_s4 = scalar_lea.vmem %s488_s3, %s494_s12 }
  0x10   : > { %354 = vmatpush3.bf16.msra.mxu0 %v389_v3  ;;  %v184_v5 = vld [vmem:[%s174_s26] sm:$0x1] }
  0x11   : > { %355 = vmatprep.subr.bf16.mxu0 %v415_v1  ;;  %v266_v13 = vld [vmem:[%s180_s4] sm:$0x1] }
  0x14   : > { %356 = vmatpush3.bf16.msra.mxu0 %v390_v4 }
  0x17   : > { %358 = vmatmul.mubr.msk.bf16.vlgmr.msra.gmra.mrb[0].mxu0 %vm217_vm1, %v184_v5 }
  0xea   : > { %v255_v7 = vpop.f32.mrb[0].mxu0 }
  0xeb   : > { %v256_v8 = vadd.f32 %v255_v7, %v182_v6  ;;  %v359_v9 = vpop.f32.mrb[1].mxu0 }
  0xec   : > { %v258_v10 = vpop.f32.mrb[2].mxu0 }
  0xed   : > { %v261_v11 = vmax.f32 %v256_v8, 0.0  ;;  %v360_v12 = vpop.f32.mrb[3].mxu0 }
  0xef   : > { %v262_v14 = vpack.c.bf16 %v261_v11, %v261_v11 }
  0xf1   : > { %v267_v15 = vsel %vm265_vm4, %v262_v14, %v266_v13 }
  0xf2   : > { %268 = vst [vmem:[%s180_s4] sm:$0x1] %v267_v15 }
  0xf3 PF: > { %s13_s14 = sadd.s32 1, %s413_s14   ;;  %s489_s12 = smov %s409_s13 }
  0xf4   : > { %p10_p5 = scmp.ge.s32.totalorder %s13_s14, 4   ;;  %s490_s13 = smov %s492_s15 }
  0xf6   :  { %12 = sbr.rel (!%p10_p5) target bundleno = 2 (0x2), region = 63 }

// kernel: ssd_forward.27
= control target key start
LH: loop header
LB: loop body
LE: loop exit
PB: predicated region body
PF: predicated region fallthrough
CT: control target
= control target key end

     0   :  { %s411_s12 = smov 0   ;;  %s413_s13 = smov 0   ;;  %s453_s0 = inlined_call_operand.vmem [shape: bf16[2,1,1,32], index: 0, kind: input, shape index: {}]   ;;  %s454_s1 = inlined_call_operand.vmem [shape: bf16[1,32,16], index: 1, kind: input, shape index: {}]   ;;  %s455_s2 = inlined_call_operand.vmem [shape: f32[1,16], index: 2, kind: input, shape index: {}]   ;;  %s456_s3 = inlined_call_operand.vmem [shape: bf16[2,1,1,16], index: 3, kind: output, shape index: {}]  }
   0x1   :  { %s415_s14 = smov 0  }
   0x2 LB: > { %s25_s15 = sadd.s32 1, %s383_s13  ;;  %p320_p0 = scmp.ge.s32.totalorder %s387_s14, 1  ;;  %s387_s14 = sphi %s415_s14, %s13_s14   ;;  %s383_s13 = sphi %s413_s13, %s458_s13   ;;  %s379_s12 = sphi %s411_s12, %s457_s12  }
   0x3   : > { %p27_p1 = scmp.ge.s32.totalorder %s25_s15, 2  ;;  %p149_p2 = scmp.lt.s32.totalorder %s387_s14, 3 }
   0x5   : > { %s460_s15 = smov (%p27_p1, %s25_s15), 0  ;;  %p150_p3 = pnand %p320_p0, %p149_p2 }
   0x6   : > { %v363_v0 = vld [vmem:[%s454_s1] sm:$0xff] (!%p150_p3)   ;;  %v389_v1 = vmov (!%p150_p3), 0.0   ;;  %v364_v2 = vld [vmem:[%s454_s1 + $0x8] sm:$0xff] (!%p150_p3)   ;;  %vm390_vm0 = vmmov (!%p150_p3), 0   ;;  %p172_p4 = scmp.lt.s32.totalorder (!%p150_p3), %s379_s12, 1  ;;  %vm201_vm1 = vcmask (!%p150_p3), 261120  }
   0x7   : > { %153 = sbr.rel (%p150_p3) target bundleno = 237 (0xed), region = 32  ;;  %329 = vmatprep.subr.bf16.mxu0 (!%p150_p3), %v389_v1  ;;  %333 = vmatprep.mubr.msk.bf16.mxu0 (!%p150_p3), %vm390_vm0, %v389_v1  ;;  %v182_v4 = vld [vmem:[%s455_s2] sm:$0x1] (!%p150_p3)  ;;  %vm247_vm2 = vcmask (!%p150_p3), 122880   ;;  %vm248_vm3 = vsmask.f32 (!%p150_p3), 256 }
   0x8   : > { %330 = vmatpush3.bf16.msra.mxu0 (!%p150_p3), %v363_v0  ;;  %vm249_vm4 = vmand (!%p150_p3), %vm247_vm2, %vm248_vm3 }
   0x9   : > { %331 = vmatprep.subr.bf16.mxu0 (!%p150_p3), %v389_v1 }
   0xc   : > { %332 = vmatpush3.bf16.msra.mxu0 (!%p150_p3), %v364_v2 }
   0xe   : > { %s462_s12 = smov (!%p172_p4, %s379_s12), 1 }
   0xf   : > { %s174_s22 = scalar_lea.vmem %s453_s0, %s462_s12  ;;  %s180_s27 = scalar_lea.vmem %s456_s3, %s462_s12 }
  0x10   : > { %v184_v3 = vld [vmem:[%s174_s22] sm:$0x1] }
  0x11   : > { %334 = vmatmul.mubr.msk.bf16.vlgmr.msra.gmra.mrb[0].mxu0 %vm201_vm1, %v184_v3  ;;  %v250_v11 = vld [vmem:[%s180_s27] sm:$0x1] }
  0xe4   : > { %v239_v5 = vpop.f32.mrb[0].mxu0 }
  0xe5   : > { %v240_v6 = vadd.f32 %v239_v5, %v182_v4  ;;  %v335_v7 = vpop.f32.mrb[1].mxu0 }
  0xe6   : > { %v242_v8 = vpop.f32.mrb[2].mxu0 }
  0xe7   : > { %v245_v9 = vmax.f32 %v240_v6, 0.0  ;;  %v336_v10 = vpop.f32.mrb[3].mxu0 }
  0xe9   : > { %v246_v12 = vpack.c.bf16 %v245_v9, %v245_v9 }
  0xeb   : > { %v251_v13 = vsel %vm249_vm4, %v246_v12, %v250_v11 }
  0xec   : > { %252 = vst [vmem:[%s180_s27] sm:$0x1] %v251_v13 }
  0xed PF: > { %s13_s14 = sadd.s32 1, %s387_s14   ;;  %s457_s12 = smov %s383_s13 }
  0xee   : > { %p10_p5 = scmp.ge.s32.totalorder %s13_s14, 4   ;;  %s458_s13 = smov %s460_s15 }
  0xf0   :  { %12 = sbr.rel (!%p10_p5) target bundleno = 2 (0x2), region = 63 }

// kernel: ssd_forward.26
= control target key start
LH: loop header
LB: loop body
LE: loop exit
PB: predicated region body
PF: predicated region fallthrough
CT: control target
= control target key end

     0   :  { %s821_s12 = smov 0   ;;  %s823_s13 = smov 0   ;;  %s937_s0 = inlined_call_operand.vmem [shape: bf16[2,2,2,64], index: 0, kind: input, shape index: {}]   ;;  %s938_s1 = inlined_call_operand.vmem [shape: bf16[4,64,32], index: 1, kind: input, shape index: {}]   ;;  %s939_s2 = inlined_call_operand.vmem [shape: f32[1,32], index: 2, kind: input, shape index: {}]   ;;  %s940_s3 = inlined_call_operand.vmem [shape: bf16[2,1,1,32], index: 3, kind: output, shape index: {}]  }
   0x1   :  { %s825_s14 = smov 0  }
   0x2 LB: > { %s25_s15 = sadd.s32 1, %s792_s13  ;;  %p614_p0 = scmp.ge.s32.totalorder %s796_s14, 1  ;;  %s796_s14 = sphi %s825_s14, %s13_s14   ;;  %s792_s13 = sphi %s823_s13, %s942_s13   ;;  %s788_s12 = sphi %s821_s12, %s941_s12  }
   0x3   : > { %p27_p1 = scmp.ge.s32.totalorder %s25_s15, 2  ;;  %p150_p2 = scmp.lt.s32.totalorder %s796_s14, 3 }
   0x5   : > { %s944_s15 = smov (%p27_p1, %s25_s15), 0  ;;  %p151_p3 = pnand %p614_p0, %p150_p2 }
   0x6   : > { %v758_v0 = vld [vmem:[%s938_s1 + $0x20] sm:$0xff] (!%p151_p3)   ;;  %v798_v1 = vmov (!%p151_p3), 0.0   ;;  %v760_v3 = vld [vmem:[%s938_s1 + $0x28] sm:$0xff] (!%p151_p3)   ;;  %vm799_vm0 = vmmov (!%p151_p3), 0   ;;  %p174_p4 = scmp.lt.s32.totalorder (!%p151_p3), %s788_s12, 1  ;;  %v209_v5 = vlaneseq (!%p151_p3)  ;;  %v762_v6 = vld [vmem:[%s938_s1 + $0x30] sm:$0xff] (!%p151_p3)  }
   0x7   : > { %154 = sbr.rel (%p151_p3) target bundleno = 265 (0x109), region = 32  ;;  %683 = vmatprep.subr.bf16.mxu0 (!%p151_p3), %v798_v1  ;;  %695 = vmatprep.subr.bf16.mxu1 (!%p151_p3), %v798_v1  ;;  %v759_v2 = vld [vmem:[%s938_s1] sm:$0xff] (!%p151_p3)   ;;  %v761_v4 = vld [vmem:[%s938_s1 + $0x8] sm:$0xff] (!%p151_p3)   ;;  %v763_v7 = vld [vmem:[%s938_s1 + $0x10] sm:$0xff] (!%p151_p3)   ;;  %v800_v8 = vmov (!%p151_p3), 1966171168  }
   0x8   : > { %684 = vmatpush3.bf16.msra.mxu0 (!%p151_p3), %v758_v0  ;;  %691 = vmatprep.mubr.msk.bf16.mxu0 (!%p151_p3), %vm799_vm0, %v798_v1  ;;  %v207_v9 = vunpack.c.l.s4 (!%p151_p3), %v800_v8  ;;  %v210_v10 = vshrl.u32 (!%p151_p3), %v209_v5, 7  ;;  %v764_v11 = vld [vmem:[%s938_s1 + $0x38] sm:$0xff] (!%p151_p3)   ;;  %vm247_vm1 = vcmask (!%p151_p3), 523264   ;;  %v767_v17 = vld [vmem:[%s938_s1 + $0x60] sm:$0xff] (!%p151_p3)   ;;  %v769_v21 = vld [vmem:[%s938_s1 + $0x68] sm:$0xff] (!%p151_p3)   ;;  %vm536_vm2 = vcmask (!%p151_p3), 253952  }
   0x9   : > { %696 = vmatpush3.bf16.msra.mxu1 (!%p151_p3), %v759_v2  ;;  %685 = vmatprep.subr.bf16.mxu0 (!%p151_p3), %v798_v1  ;;  %v765_v12 = vld [vmem:[%s938_s1 + $0x18] sm:$0xff] (!%p151_p3)   ;;  %v766_v19 = vld [vmem:[%s938_s1 + $0x40] sm:$0xff] (!%p151_p3)   ;;  %v768_v23 = vld [vmem:[%s938_s1 + $0x48] sm:$0xff] (!%p151_p3)   ;;  %vm537_vm3 = vsmask.f32 (!%p151_p3), 256 }
   0xa   : > { %697 = vmatprep.subr.bf16.mxu1 (!%p151_p3), %v798_v1  ;;  %703 = vmatprep.mubr.msk.bf16.mxu1 (!%p151_p3), %vm799_vm0, %v798_v1  ;;  %v208_v13 = vunpack.c.0.s8 (!%p151_p3), %v207_v9  ;;  %v771_v25 = vld [vmem:[%s938_s1 + $0x70] sm:$0xff] (!%p151_p3)   ;;  %v773_v28 = vld [vmem:[%s938_s1 + $0x78] sm:$0xff] (!%p151_p3)   ;;  %v185_v47 = vld [vmem:[%s939_s2] sm:$0x1] (!%p151_p3) }
   0xb   : > { %v770_v26 = vld [vmem:[%s938_s1 + $0x50] sm:$0xff] (!%p151_p3)   ;;  %v772_v29 = vld [vmem:[%s938_s1 + $0x58] sm:$0xff] (!%p151_p3)   ;;  %vm538_vm4 = vmand (!%p151_p3), %vm536_vm2, %vm537_vm3 }
   0xc   : > { %686 = vmatpush3.bf16.msra.mxu0 (!%p151_p3), %v760_v3  ;;  %v211_v15 = vsub.s32 (!%p151_p3), %v208_v13, %v210_v10 }
   0xd   : > { %698 = vmatpush3.bf16.msra.mxu1 (!%p151_p3), %v761_v4  ;;  %687 = vmatprep.subr.bf16.mxu0 (!%p151_p3), %v798_v1 }
   0xe   : > { %s946_s12 = smov (!%p174_p4, %s788_s12), 1  ;;  %699 = vmatprep.subr.bf16.mxu1 %v798_v1 }
   0xf   : > { %s615_s26 = sshll.u32 %s946_s12, 1  ;;  %s183_s6 = scalar_lea.vmem %s940_s3, %s946_s12 }
  0x10   : > { %s177_s4 = scalar_lea.vmem %s937_s0, %s615_s26  ;;  %688 = vmatpush3.bf16.msra.mxu0 %v762_v6  ;;  %v539_v53 = vld [vmem:[%s183_s6] sm:$0x1] }
  0x11   : > { %700 = vmatpush3.bf16.msra.mxu1 %v763_v7  ;;  %689 = vmatprep.subr.bf16.mxu0 %v798_v1  ;;  %v187_v14 = vld [vmem:[%s177_s4] sm:$0x1]  ;;  %v634_v22 = vld [vmem:[%s177_s4 + $0x1] sm:$0x1] }
  0x12   : > { %701 = vmatprep.subr.bf16.mxu1 %v798_v1  ;;  %v212_v16 = vrot.slane %v187_v14, %v211_v15  ;;  %v454_v24 = vrot.slane %v634_v22, %v211_v15 }
  0x14   : > { %690 = vmatpush3.bf16.msra.mxu0 %v764_v11  ;;  %v219_v18 = vrot.slane %v212_v16, %v211_v15  ;;  %v461_v27 = vrot.slane %v454_v24, %v211_v15 }
  0x15   : > { %702 = vmatpush3.bf16.msra.mxu1 %v765_v12  ;;  %707 = vmatprep.subr.bf16.mxu0 %v798_v1 }
  0x16   : > { %719 = vmatprep.subr.bf16.mxu1 %v798_v1  ;;  %v221_v20 = vshrl.u32 %v219_v18, 16  ;;  %v463_v30 = vshrl.u32 %v461_v27, 16 }
  0x18   : > { %704 = vmatmul.mubr.msk.bf16.vlgmr.msra.gmra.mrb[0].mxu1 %vm247_vm1, %v187_v14  ;;  %692 = vmatmul.mubr.msk.bf16.vlgmr.msra.gmra.mrb[0].mxu0 %vm247_vm1, %v221_v20 }
  0x19   : > { %720 = vmatpush3.bf16.msra.mxu1 %v767_v17  ;;  %727 = vmatprep.mubr.msk.bf16.mxu1 %vm799_vm0, %v798_v1 }
  0x1a   : > { %721 = vmatprep.subr.bf16.mxu1 %v798_v1  ;;  %708 = vmatpush3.bf16.msra.mxu0 %v766_v19 }
  0x1b   : > { %715 = vmatprep.mubr.msk.bf16.mxu0 %vm799_vm0, %v798_v1  ;;  %709 = vmatprep.subr.bf16.mxu0 %v798_v1 }
  0x1d   : > { %722 = vmatpush3.bf16.msra.mxu1 %v769_v21 }
  0x1e   : > { %723 = vmatprep.subr.bf16.mxu1 %v798_v1  ;;  %710 = vmatpush3.bf16.msra.mxu0 %v768_v23 }
  0x1f   : > { %711 = vmatprep.subr.bf16.mxu0 %v798_v1 }
  0x21   : > { %724 = vmatpush3.bf16.msra.mxu1 %v771_v25 }
  0x22   : > { %725 = vmatprep.subr.bf16.mxu1 %v798_v1  ;;  %712 = vmatpush3.bf16.msra.mxu0 %v770_v26 }
  0x23   : > { %713 = vmatprep.subr.bf16.mxu0 %v798_v1 }
  0x25   : > { %726 = vmatpush3.bf16.msra.mxu1 %v773_v28 }
  0x26   : > { %714 = vmatpush3.bf16.msra.mxu0 %v772_v29 }
  0x28   : > { %728 = vmatmul.mubr.msk.bf16.vlgmr.msra.gmra.mrb[4].mxu1 %vm247_vm1, %v463_v30 }
  0x29   : > { %716 = vmatmul.mubr.msk.bf16.vlgmr.msra.gmra.mrb[4].mxu0 %vm247_vm1, %v634_v22 }
  0xeb   : > { %v352_v31 = vpop.f32.mrb[0].mxu1  ;;  %v285_v34 = vpop.f32.mrb[0].mxu0 }
  0xec   : > { %v705_v32 = vpop.f32.mrb[1].mxu1  ;;  %v353_v36 = vadd.f32 %v352_v31, %v285_v34  ;;  %v693_v37 = vpop.f32.mrb[1].mxu0 }
  0xed   : > { %v355_v33 = vpop.f32.mrb[2].mxu1  ;;  %v288_v38 = vpop.f32.mrb[2].mxu0 }
  0xee   : > { %v706_v35 = vpop.f32.mrb[3].mxu1  ;;  %v694_v39 = vpop.f32.mrb[3].mxu0 }
  0xfb   : > { %v526_v40 = vpop.f32.mrb[4].mxu1 }
  0xfc   : > { %v729_v41 = vpop.f32.mrb[5].mxu1  ;;  %v431_v43 = vpop.f32.mrb[4].mxu0 }
  0xfd   : > { %v529_v42 = vpop.f32.mrb[6].mxu1  ;;  %v437_v45 = vadd.f32 %v431_v43, %v353_v36  ;;  %v717_v46 = vpop.f32.mrb[5].mxu0 }
  0xfe   : > { %v730_v44 = vpop.f32.mrb[7].mxu1  ;;  %v434_v48 = vpop.f32.mrb[6].mxu0 }
  0xff   : > { %v532_v49 = vadd.f32 %v526_v40, %v437_v45  ;;  %v718_v50 = vpop.f32.mrb[7].mxu0 }
 0x101   : > { %v533_v51 = vadd.f32 %v532_v49, %v185_v47 }
 0x103   : > { %v534_v52 = vmax.f32 %v533_v51, 0.0 }
 0x105   : > { %v535_v54 = vpack.c.bf16 %v534_v52, %v534_v52 }
 0x107   : > { %v540_v55 = vsel %vm538_vm4, %v535_v54, %v539_v53 }
 0x108   : > { %541 = vst [vmem:[%s183_s6] sm:$0x1] %v540_v55 }
 0x109 PF: > { %s13_s14 = sadd.s32 1, %s796_s14   ;;  %s941_s12 = smov %s792_s13 }
 0x10a   : > { %p10_p5 = scmp.ge.s32.totalorder %s13_s14, 4   ;;  %s942_s13 = smov %s944_s15 }
 0x10c   :  { %12 = sbr.rel (!%p10_p5) target bundleno = 2 (0x2), region = 67 }

// kernel: ssd_forward.33
= control target key start
LH: loop header
LB: loop body
LE: loop exit
PB: predicated region body
PF: predicated region fallthrough
CT: control target
= control target key end

     0   :  { %s1152_s12 = smov 0   ;;  %s1154_s13 = smov 0   ;;  %s1299_s0 = inlined_call_operand.vmem [shape: bf16[2,3,3,32], index: 0, kind: input, shape index: {}]   ;;  %s1300_s1 = inlined_call_operand.vmem [shape: bf16[9,32,72], index: 1, kind: input, shape index: {}]   ;;  %s1301_s2 = inlined_call_operand.vmem [shape: f32[1,72], index: 2, kind: input, shape index: {}]   ;;  %s1302_s3 = inlined_call_operand.vmem [shape: f32[2,1,1,72], index: 3, kind: output, shape index: {}]  }
   0x1   :  { %s1156_s14 = smov 0  }
   0x2 LB: > { %s25_s15 = sadd.s32 1, %s1123_s13  ;;  %p890_p0 = scmp.ge.s32.totalorder %s1127_s14, 1  ;;  %s1127_s14 = sphi %s1156_s14, %s13_s14   ;;  %s1123_s13 = sphi %s1154_s13, %s1304_s13   ;;  %s1119_s12 = sphi %s1152_s12, %s1303_s12  }
   0x3   : > { %p27_p1 = scmp.ge.s32.totalorder %s25_s15, 2  ;;  %p151_p2 = scmp.lt.s32.totalorder %s1127_s14, 3 }
   0x5   : > { %s1306_s15 = smov (%p27_p1, %s25_s15), 0  ;;  %p152_p3 = pnand %p890_p0, %p151_p2 }
   0x6   : > { %v1087_v0 = vld [vmem:[%s1300_s1 + $0x10] sm:$0xff] (!%p152_p3)   ;;  %v1129_v1 = vmov (!%p152_p3), 0.0   ;;  %v1088_v2 = vld [vmem:[%s1300_s1] sm:$0xff] (!%p152_p3)   ;;  %v205_v3 = vlaneseq (!%p152_p3)  ;;  %v1089_v4 = vld [vmem:[%s1300_s1 + $0x18] sm:$0xff] (!%p152_p3)   ;;  %vm1130_vm0 = vmmov (!%p152_p3), 0   ;;  %p176_p4 = scmp.lt.s32.totalorder (!%p152_p3), %s1119_s12, 1 }
   0x7   : > { %155 = sbr.rel (%p152_p3) target bundleno = 273 (0x111), region = 32  ;;  %987 = vmatprep.subr.bf16.mxu0 (!%p152_p3), %v1129_v1  ;;  %995 = vmatprep.subr.bf16.mxu1 (!%p152_p3), %v1129_v1  ;;  %v1090_v5 = vld [vmem:[%s1300_s1 + $0x8] sm:$0xff] (!%p152_p3)   ;;  %v1131_v6 = vmov (!%p152_p3), 1983009808   ;;  %vm224_vm1 = vcmask (!%p152_p3), 261120   ;;  %v1092_v10 = vld [vmem:[%s1300_s1 + $0x30] sm:$0xff] (!%p152_p3)  }
   0x8   : > { %988 = vmatpush3.bf16.msra.mxu0 (!%p152_p3), %v1087_v0  ;;  %991 = vmatprep.mubr.msk.bf16.mxu0 (!%p152_p3), %vm1130_vm0, %v1129_v1  ;;  %v203_v7 = vunpack.c.l.s4 (!%p152_p3), %v1131_v6  ;;  %v206_v8 = vshrl.u32 (!%p152_p3), %v205_v3, 7  ;;  %v1094_v14 = vld [vmem:[%s1300_s1 + $0x38] sm:$0xff] (!%p152_p3)   ;;  %v1091_v15 = vld [vmem:[%s1300_s1 + $0x20] sm:$0xff] (!%p152_p3)   ;;  %v1096_v19 = vld [vmem:[%s1300_s1 + $0x50] sm:$0xff] (!%p152_p3)   ;;  %vm811_vm2 = vcmask (!%p152_p3), 581632  }
   0x9   : > { %996 = vmatpush3.bf16.msra.mxu1 (!%p152_p3), %v1088_v2  ;;  %989 = vmatprep.subr.bf16.mxu0 (!%p152_p3), %v1129_v1  ;;  %v1093_v20 = vld [vmem:[%s1300_s1 + $0x28] sm:$0xff] (!%p152_p3)   ;;  %v1098_v23 = vld [vmem:[%s1300_s1 + $0x58] sm:$0xff] (!%p152_p3)   ;;  %v1095_v24 = vld [vmem:[%s1300_s1 + $0x40] sm:$0xff] (!%p152_p3)  }
   0xa   : > { %997 = vmatprep.subr.bf16.mxu1 (!%p152_p3), %v1129_v1  ;;  %999 = vmatprep.mubr.msk.bf16.mxu1 (!%p152_p3), %vm1130_vm0, %v1129_v1  ;;  %v204_v9 = vunpack.c.0.s8 (!%p152_p3), %v203_v7  ;;  %v1100_v27 = vld [vmem:[%s1300_s1 + $0x70] sm:$0xff] (!%p152_p3)   ;;  %v1097_v29 = vld [vmem:[%s1300_s1 + $0x48] sm:$0xff] (!%p152_p3)   ;;  %v1102_v32 = vld [vmem:[%s1300_s1 + $0x78] sm:$0xff] (!%p152_p3)  }
   0xb   : > { %v1099_v33 = vld [vmem:[%s1300_s1 + $0x60] sm:$0xff] (!%p152_p3)   ;;  %v1101_v35 = vld [vmem:[%s1300_s1 + $0x68] sm:$0xff] (!%p152_p3)  }
   0xc   : > { %990 = vmatpush3.bf16.msra.mxu0 (!%p152_p3), %v1089_v4  ;;  %v207_v12 = vsub.s32 (!%p152_p3), %v204_v9, %v206_v8  ;;  %v1103_v36 = vld [vmem:[%s1300_s1 + $0x80] sm:$0xff] (!%p152_p3)   ;;  %v1104_v37 = vld [vmem:[%s1300_s1 + $0x88] sm:$0xff] (!%p152_p3)  }
   0xd   : > { %998 = vmatpush3.bf16.msra.mxu1 (!%p152_p3), %v1090_v5  ;;  %1003 = vmatprep.subr.bf16.mxu0 (!%p152_p3), %v1129_v1 }
   0xe   : > { %s1308_s12 = smov (!%p176_p4, %s1119_s12), 1  ;;  %1011 = vmatprep.subr.bf16.mxu1 %v1129_v1 }
   0xf   : > { %s1059_s24 = smul.u32 6, %s1308_s12  ;;  %s186_s10 = scalar_lea.vmem %s1302_s3, %s1308_s12 }
  0x11   : > { %s1200_s29 = scalar_lea.vmem %s1299_s0, %s1059_s24 }
  0x12   : > { %v191_v11 = vld [vmem:[%s1200_s29] sm:$0x1]  ;;  %v906_v17 = vld.sshfl [vmem:[%s1200_s29] sm:$0x2 pattern:$0x76325410] }
  0x13   : > { %1000 = vmatmul.mubr.msk.bf16.vlgmr.msra.gmra.mrb[0].mxu1 %vm224_vm1, %v191_v11  ;;  %v208_v13 = vrot.slane %v191_v11, %v207_v12  ;;  %v910_v18 = vld [vmem:[%s1200_s29 + $0x2] sm:$0x1]  ;;  %v930_v21 = vld.sshfl [vmem:[%s1200_s29 + $0x2] sm:$0x2 pattern:$0x76325410] }
  0x14   : > { %1012 = vmatpush3.bf16.msra.mxu1 %v1092_v10  ;;  %1015 = vmatprep.mubr.msk.bf16.mxu1 %vm1130_vm0, %v1129_v1  ;;  %v337_v22 = vrot.slane %v906_v17, 1  ;;  %v545_v25 = vrot.slane %v930_v21, 1  ;;  %v471_v26 = vrot.slane %v910_v18, %v207_v12  ;;  %v934_v28 = vld [vmem:[%s1200_s29 + $0x4] sm:$0x1] }
  0x15   : > { %1013 = vmatprep.subr.bf16.mxu1 %v1129_v1  ;;  %v210_v16 = vshrl.u32 %v208_v13, 16  ;;  %v679_v30 = vrot.slane %v934_v28, %v207_v12  ;;  %v954_v38 = vld.sshfl [vmem:[%s1200_s29 + $0x4] sm:$0x2 pattern:$0x76325410] }
  0x16   : > { %v473_v31 = vshrl.u32 %v471_v26, 16  ;;  %v753_v39 = vrot.slane %v954_v38, 1 }
  0x17   : > { %992 = vmatmul.mubr.msk.bf16.vlgmr.msra.gmra.mrb[0].mxu0 %vm224_vm1, %v210_v16  ;;  %v681_v34 = vshrl.u32 %v679_v30, 16 }
  0x18   : > { %1014 = vmatpush3.bf16.msra.mxu1 %v1094_v14  ;;  %1004 = vmatpush3.bf16.msra.mxu0 %v1091_v15  ;;  %v188_v15 = vld [vmem:[%s1301_s2] sm:$0x1] }
  0x19   : > { %1007 = vmatprep.mubr.msk.bf16.mxu0 %vm1130_vm0, %v1129_v1  ;;  %1005 = vmatprep.subr.bf16.mxu0 %v1129_v1 }
  0x1a   : > { %1027 = vmatprep.subr.bf16.mxu1 %v1129_v1 }
  0x1b   : > { %1016 = vmatmul.mubr.msk.bf16.vlgmr.msra.gmra.mrb[4].mxu1 %vm224_vm1, %v910_v18 }
  0x1c   : > { %1028 = vmatpush3.bf16.msra.mxu1 %v1096_v19  ;;  %1031 = vmatprep.mubr.msk.bf16.mxu1 %vm1130_vm0, %v1129_v1 }
  0x1d   : > { %1006 = vmatpush3.bf16.msra.mxu0 %v1093_v20  ;;  %1029 = vmatprep.subr.bf16.mxu1 %v1129_v1 }
  0x1e   : > { %1019 = vmatprep.subr.bf16.mxu0 %v1129_v1 }
  0x20   : > { %1008 = vmatmul.mubr.msk.bf16.vlgmr.msra.gmra.mrb[4].mxu0 %vm224_vm1, %v337_v22  ;;  %1030 = vmatpush3.bf16.msra.mxu1 %v1098_v23 }
  0x21   : > { %1020 = vmatpush3.bf16.msra.mxu0 %v1095_v24  ;;  %1023 = vmatprep.mubr.msk.bf16.mxu0 %vm1130_vm0, %v1129_v1 }
  0x22   : > { %1021 = vmatprep.subr.bf16.mxu0 %v1129_v1  ;;  %1043 = vmatprep.subr.bf16.mxu1 %v1129_v1 }
  0x23   : > { %1032 = vmatmul.mubr.msk.bf16.vlgmr.msra.gmra.mrb[8].mxu1 %vm224_vm1, %v545_v25 }
  0x24   : > { %1044 = vmatpush3.bf16.msra.mxu1 %v1100_v27  ;;  %1047 = vmatprep.mubr.msk.bf16.mxu1 %vm1130_vm0, %v1129_v1 }
  0x25   : > { %1022 = vmatpush3.bf16.msra.mxu0 %v1097_v29  ;;  %1045 = vmatprep.subr.bf16.mxu1 %v1129_v1 }
  0x26   : > { %1035 = vmatprep.subr.bf16.mxu0 %v1129_v1 }
  0x28   : > { %1024 = vmatmul.mubr.msk.bf16.vlgmr.msra.gmra.mrb[8].mxu0 %vm224_vm1, %v473_v31  ;;  %1046 = vmatpush3.bf16.msra.mxu1 %v1102_v32 }
  0x29   : > { %1036 = vmatpush3.bf16.msra.mxu0 %v1099_v33  ;;  %1039 = vmatprep.mubr.msk.bf16.mxu0 %vm1130_vm0, %v1129_v1 }
  0x2a   : > { %1037 = vmatprep.subr.bf16.mxu0 %v1129_v1 }
  0x2b   : > { %1048 = vmatmul.mubr.msk.bf16.vlgmr.msra.gmra.mrb[12].mxu1 %vm224_vm1, %v681_v34 }
  0x2d   : > { %1038 = vmatpush3.bf16.msra.mxu0 %v1101_v35 }
  0x2e   : > { %1051 = vmatprep.subr.bf16.mxu0 %v1129_v1 }
  0x30   : > { %1040 = vmatmul.mubr.msk.bf16.vlgmr.msra.gmra.mrb[12].mxu0 %vm224_vm1, %v934_v28 }
  0x31   : > { %1052 = vmatpush3.bf16.msra.mxu0 %v1103_v36  ;;  %1055 = vmatprep.mubr.msk.bf16.mxu0 %vm1130_vm0, %v1129_v1 }
  0x32   : > { %1053 = vmatprep.subr.bf16.mxu0 %v1129_v1 }
  0x35   : > { %1054 = vmatpush3.bf16.msra.mxu0 %v1104_v37 }
  0x38   : > { %1056 = vmatmul.mubr.msk.bf16.vlgmr.msra.gmra.mrb[16].mxu0 %vm224_vm1, %v753_v39 }
  0xe6   : > { %v317_v40 = vpop.f32.mrb[0].mxu1 }
  0xe7   : > { %v1001_v41 = vpop.f32.mrb[1].mxu1 }
  0xe8   : > { %v320_v42 = vpop.f32.mrb[2].mxu1 }
  0xe9   : > { %v1002_v43 = vpop.f32.mrb[3].mxu1 }
  0xea   : > { %v262_v44 = vpop.f32.mrb[0].mxu0 }
  0xeb   : > { %v318_v45 = vadd.f32 %v317_v40, %v262_v44  ;;  %v993_v46 = vpop.f32.mrb[1].mxu0 }
  0xec   : > { %v265_v47 = vpop.f32.mrb[2].mxu0 }
  0xed   : > { %v994_v48 = vpop.f32.mrb[3].mxu0 }
  0xee   : > { %v452_v49 = vpop.f32.mrb[4].mxu1 }
  0xef   : > { %v1017_v50 = vpop.f32.mrb[5].mxu1 }
  0xf0   : > { %v455_v51 = vpop.f32.mrb[6].mxu1 }
  0xf1   : > { %v1018_v52 = vpop.f32.mrb[7].mxu1 }
  0xf3   : > { %v387_v53 = vpop.f32.mrb[4].mxu0 }
  0xf4   : > { %v393_v54 = vadd.f32 %v387_v53, %v318_v45  ;;  %v1009_v55 = vpop.f32.mrb[5].mxu0 }
  0xf5   : > { %v390_v56 = vpop.f32.mrb[6].mxu0 }
  0xf6   : > { %v458_v57 = vadd.f32 %v452_v49, %v393_v54  ;;  %v1010_v58 = vpop.f32.mrb[7].mxu0  ;;  %v595_v59 = vpop.f32.mrb[8].mxu1 }
  0xf7   : > { %v1033_v60 = vpop.f32.mrb[9].mxu1 }
  0xf8   : > { %v598_v61 = vpop.f32.mrb[10].mxu1 }
  0xf9   : > { %v1034_v62 = vpop.f32.mrb[11].mxu1 }
  0xfb   : > { %v524_v63 = vpop.f32.mrb[8].mxu0 }
  0xfc   : > { %v530_v0 = vadd.f32 %v524_v63, %v458_v57  ;;  %v1025_v1 = vpop.f32.mrb[9].mxu0 }
  0xfd   : > { %v527_v2 = vpop.f32.mrb[10].mxu0 }
  0xfe   : > { %v601_v3 = vadd.f32 %v595_v59, %v530_v0  ;;  %v1026_v4 = vpop.f32.mrb[11].mxu0  ;;  %v732_v5 = vpop.f32.mrb[12].mxu1 }
  0xff   : > { %v1049_v6 = vpop.f32.mrb[13].mxu1 }
 0x100   : > { %v735_v7 = vpop.f32.mrb[14].mxu1 }
 0x101   : > { %v1050_v8 = vpop.f32.mrb[15].mxu1 }
 0x103   : > { %v660_v9 = vpop.f32.mrb[12].mxu0 }
 0x104   : > { %v666_v10 = vadd.f32 %v660_v9, %v601_v3  ;;  %v1041_v11 = vpop.f32.mrb[13].mxu0 }
 0x105   : > { %v663_v12 = vpop.f32.mrb[14].mxu0 }
 0x106   : > { %v738_v13 = vadd.f32 %v732_v5, %v666_v10  ;;  %v1042_v14 = vpop.f32.mrb[15].mxu0 }
 0x10b   : > { %v803_v16 = vpop.f32.mrb[16].mxu0 }
 0x10c   : > { %v809_v17 = vadd.f32 %v803_v16, %v738_v13  ;;  %v1057_v18 = vpop.f32.mrb[17].mxu0 }
 0x10d   : > { %v806_v19 = vpop.f32.mrb[18].mxu0 }
 0x10e   : > { %v810_v20 = vadd.f32 %v809_v17, %v188_v15  ;;  %v1058_v21 = vpop.f32.mrb[19].mxu0 }
 0x110   : > { %812 = vst.msk [vmem:[%s186_s10] sm:$0x1] %vm811_vm2, %v810_v20 }
 0x111 PF: > { %s13_s14 = sadd.s32 1, %s1127_s14   ;;  %s1303_s12 = smov %s1123_s13 }
 0x112   : > { %p10_p5 = scmp.ge.s32.totalorder %s13_s14, 4   ;;  %s1304_s13 = smov %s1306_s15 }
 0x114   :  { %12 = sbr.rel (!%p10_p5) target bundleno = 2 (0x2), region = 73 }

</bundles_post_ra>
